<compile_context>
chip_gen: v7x
topology: tpu7x:2x2x1
jax: 0.10.0
libtpu: 0.0.40
codegen_flags: <defaults>
</compile_context>

<pallas_src>
import functools

import jax
import jax.numpy as jnp
import numpy as np
from jax.experimental import pallas as pl
from jax.experimental.pallas import tpu as pltpu


def _round_up(x, m):
    return ((x + m - 1) // m) * m


def _vmem_limit_bytes():
    # v5e/v6e: 128 MiB physical VMEM, v7x: 64 MiB -> pick the cap per generation.
    try:
        cap = int(pltpu.get_tpu_info().vmem_capacity_bytes)
    except Exception:
        return 56 * 1024 * 1024
    return max(32 * 1024 * 1024, min(cap - 16 * 1024 * 1024, 100 * 1024 * 1024))


# -----------------------------------------------------------------------------
# Fused kernel: one ResidualCouplingLayer (+ folded Flip) on one time chunk
# -----------------------------------------------------------------------------
def _coupling_kernel(slab_ref, maskp_ref,
                     pre_w_ref, pre_b_ref,
                     in_w_t_ref, in_w_s_ref, in_b_t_ref, in_b_s_ref,
                     rs_res_w_ref, rs_res_b_ref, rs_skip_w_ref, rs_skip_b_ref,
                     post_w_ref, post_b_ref,
                     out_ref, hpad_ref,
                     *, half, n_layers, kernel_size, dilation_rate,
                     t_tile, r_pad, halo):
    f32 = jnp.float32
    wdt = pre_w_ref.dtype                       # matmul operand dtype (bf16 or f32)
    H = pre_w_ref.shape[1]
    C = 2 * half
    K = kernel_size
    text = t_tile + 2 * r_pad                   # extended (halo-recompute) window
    n_rows = out_ref.shape[0]                   # Tpad + 2*r_pad

    c = pl.program_id(1)
    base = pl.multiple_of(c * t_tile, t_tile)

    # The output halo strips are never touched by any chunk's main write; zero them
    # once per batch element so the whole revisited buffer is defined at writeback.
    if r_pad > 0:
        @pl.when(c == 0)
        def _():
            out_ref[pl.ds(0, r_pad), :] = jnp.zeros((r_pad, C), out_ref.dtype)
            out_ref[pl.ds(n_rows - r_pad, r_pad), :] = jnp.zeros((r_pad, C),
                                                                 out_ref.dtype)

    mask_ext = maskp_ref[pl.ds(base, text), :]                    # (text, 1) f32
    mask_c = maskp_ref[pl.ds(base + r_pad, t_tile), :]            # (t_tile, 1)

    x0_ext = slab_ref[pl.ds(base, text), pl.ds(0, half)]          # (text, half) f32
    x0_c = slab_ref[pl.ds(base + r_pad, t_tile), pl.ds(0, half)]
    x1_c = slab_ref[pl.ds(base + r_pad, t_tile), pl.ds(half, half)]

    # ---- pre 1x1 conv (f32 carry, compute-dtype matmul operands) ---------------
    h = jnp.dot(x0_ext.astype(wdt), pre_w_ref[...], preferred_element_type=f32)
    h = (h + pre_b_ref[...]) * mask_ext                           # (text, H) f32

    # Zero only the tap-halo strips of the staging buffer (interior rewritten each
    # layer); halo is sublane-aligned so interior stores are unmasked.
    if halo > 0:
        hpad_ref[pl.ds(0, halo), :] = jnp.zeros((halo, H), wdt)
        hpad_ref[pl.ds(halo + text, halo), :] = jnp.zeros((halo, H), wdt)

    # ---- WN: n_layers of dilated gated conv + 1x1 res/skip ---------------------
    skip = None
    for i in range(n_layers):                                     # static unroll
        d = dilation_rate ** i
        hpad_ref[pl.ds(halo, text), :] = h.astype(wdt)
        acc_t = None
        acc_s = None
        for k in range(K):                                        # static tap unroll
            off = halo + (k - (K - 1) // 2) * d                   # static, >= 0
            tap = hpad_ref[pl.ds(off, text), :]
            pt = jnp.dot(tap, in_w_t_ref[i, k], preferred_element_type=f32)
            ps = jnp.dot(tap, in_w_s_ref[i, k], preferred_element_type=f32)
            acc_t = pt if acc_t is None else acc_t + pt
            acc_s = ps if acc_s is None else acc_s + ps
        acts = jnp.tanh(acc_t + in_b_t_ref[i]) * jax.nn.sigmoid(acc_s + in_b_s_ref[i])
        acts = acts.astype(wdt)

        sk = jnp.dot(acts, rs_skip_w_ref[i], preferred_element_type=f32)
        sk = sk + rs_skip_b_ref[i]
        skip = sk if skip is None else skip + sk
        if i < n_layers - 1:
            res = jnp.dot(acts, rs_res_w_ref[i], preferred_element_type=f32)
            res = res + rs_res_b_ref[i]
            h = (h + res) * mask_ext                              # f32 residual carry

    # ---- post 1x1 conv + additive coupling (mean_only -> logs == 0) ------------
    skip_c = skip[r_pad:r_pad + t_tile, :] * mask_c               # center rows only
    stats = jnp.dot(skip_c.astype(wdt), post_w_ref[...], preferred_element_type=f32)
    stats = stats + post_b_ref[...]
    y1 = (stats + x1_c) * mask_c                                  # (t_tile, half)

    # Lane-dense full-C write: [y1-half (next x0) || x0 passthrough (next x1)].
    out_rows = jnp.concatenate([y1, x0_c], axis=-1)               # (t_tile, C)
    out_ref[pl.ds(base + r_pad, t_tile), :] = out_rows.astype(out_ref.dtype)


# -----------------------------------------------------------------------------
# pallas_call wrapper for one flow
# -----------------------------------------------------------------------------
def _coupling_flow_call(slab, maskp, p, *, t_tile, r_pad, halo, n_chunks,
                        weights_in_vmem):
    B, rows, C = slab.shape
    half = C // 2
    H = p["pre_w"].shape[1]
    wdt = p["pre_w"].dtype
    K = int(p["kernel_size"])
    dr = int(p["dilation_rate"])
    L = int(p["n_layers"])
    text = t_tile + 2 * r_pad

    kernel = functools.partial(
        _coupling_kernel, half=half, n_layers=L, kernel_size=K, dilation_rate=dr,
        t_tile=t_tile, r_pad=r_pad, halo=halo)

    def batch_spec(width):
        return pl.BlockSpec((None, rows, width), lambda b, c: (b, 0, 0))

    if weights_in_vmem:
        def wspec(arr):
            # whole array in VMEM once, single-buffered (block index never changes)
            return pl.BlockSpec(memory_space=pltpu.MemorySpace.VMEM)
    else:
        def wspec(arr):
            nd = arr.ndim
            return pl.BlockSpec(arr.shape, lambda b, c, _n=nd: (0,) * _n)

    weights = [p["pre_w"], p["pre_b"],
               p["in_w_t"], p["in_w_s"], p["in_b_t"], p["in_b_s"],
               p["rs_res_w"], p["rs_res_b"], p["rs_skip_w"], p["rs_skip_b"],
               p["post_w"], p["post_b"]]

    return pl.pallas_call(
        kernel,
        out_shape=jax.ShapeDtypeStruct((B, rows, C), jnp.float32),
        grid=(B, n_chunks),
        in_specs=[batch_spec(C), batch_spec(1)] + [wspec(w) for w in weights],
        out_specs=pl.BlockSpec((None, rows, C), lambda b, c: (b, 0, 0)),
        scratch_shapes=[pltpu.VMEM((text + 2 * halo, H), wdt)],
        compiler_params=pltpu.CompilerParams(
            dimension_semantics=("parallel", "arbitrary"),
            vmem_limit_bytes=_vmem_limit_bytes()),
    )(slab, maskp, *weights)


_WEIGHTS_IN_VMEM_OK = []      # [] = undecided, [True]/[False] once probed


def _coupling_layer_pallas(slab, maskp, p, *, t_tile, r_pad, halo, n_chunks):
    if not _WEIGHTS_IN_VMEM_OK:
        try:
            out = _coupling_flow_call(slab, maskp, p, t_tile=t_tile, r_pad=r_pad,
                                      halo=halo, n_chunks=n_chunks,
                                      weights_in_vmem=True)
            jax.block_until_ready(out)
            _WEIGHTS_IN_VMEM_OK.append(True)
            return out
        except Exception:
            _WEIGHTS_IN_VMEM_OK.append(False)
    return _coupling_flow_call(slab, maskp, p, t_tile=t_tile, r_pad=r_pad, halo=halo,
                               n_chunks=n_chunks,
                               weights_in_vmem=_WEIGHTS_IN_VMEM_OK[0])


# -----------------------------------------------------------------------------
# ResidualCouplingBlock forward (reverse=False), wrapper-facing NCW like torch
# -----------------------------------------------------------------------------
def residual_coupling_block_forward(x, x_mask, flow_params, *, time_tile=512):
    """x: (B, C, T) f32 NCW;  x_mask: (B, 1, T).  Returns (B, C, T) f32."""
    B, C, T = x.shape
    assert C % 2 == 0
    half = C // 2
    p0 = flow_params[0]
    K = int(p0["kernel_size"])
    dr = int(p0["dilation_rate"])
    L = int(p0["n_layers"])
    assert K % 2 == 1

    # cumulative receptive-field halo (sum of per-layer paddings), sublane-aligned
    r_field = sum(((K - 1) // 2) * (dr ** i) for i in range(L))
    r_pad = _round_up(r_field, 8) if r_field > 0 else 0
    pmax = ((K - 1) // 2) * (dr ** (L - 1))
    halo = _round_up(pmax, 16) if pmax > 0 else 0

    t_tile = min(_round_up(max(int(time_tile), 8), 8), _round_up(T, 8))
    n_chunks = -(-T // t_tile)
    t_pad = n_chunks * t_tile
    rows = t_pad + 2 * r_pad

    # One-time layout conversion at the block boundary: channels-last fused slab
    # with zero time halos (also serves as the conv zero padding).
    xc = jnp.transpose(x, (0, 2, 1)).astype(jnp.float32)              # (B, T, C)
    mc = jnp.transpose(x_mask, (0, 2, 1)).astype(jnp.float32)         # (B, T, 1)
    slab = jnp.zeros((B, rows, C), jnp.float32).at[:, r_pad:r_pad + T, :].set(xc)
    maskp = jnp.zeros((B, rows, 1), jnp.float32).at[:, r_pad:r_pad + T, :].set(mc)

    for p in flow_params:
        slab = _coupling_layer_pallas(slab, maskp, p, t_tile=t_tile, r_pad=r_pad,
                                      halo=halo, n_chunks=n_chunks)

    out = slab[:, r_pad:r_pad + T, :]
    if len(flow_params) % 2 == 1:
        # odd n_flows: one residual channel reversal cannot be folded into weights
        out = jnp.concatenate([out[..., :half][..., ::-1],
                               out[..., half:][..., ::-1]], axis=-1)
    return jnp.transpose(out, (0, 2, 1))                              # back to NCW


# -----------------------------------------------------------------------------
# Parameters: torch-layout init + one-time re-layout for the Pallas kernel
# -----------------------------------------------------------------------------
def init_block_params(key, channels, hidden_channels, kernel_size,
                      dilation_rate, n_layers, n_flows=4):
    """Torch-layout Conv1d weights for each coupling flow (weight_norm materialized).
    torch zero-inits `post`; here it gets a small random init so the numerical path
    is exercised (forward semantics of the ops are unchanged).  Do NOT port that
    into real weight loading."""
    half = channels // 2
    H = hidden_channels

    def conv(key, cout, cin, k):
        kw, kb = jax.random.split(key)
        s = 1.0 / np.sqrt(cin * k)
        w = jax.random.uniform(kw, (cout, cin, k), jnp.float32, -s, s)
        b = jax.random.uniform(kb, (cout,), jnp.float32, -s, s)
        return w, b

    flows = []
    for _ in range(n_flows):
        key, k_pre, k_post = jax.random.split(key, 3)
        pre_w, pre_b = conv(k_pre, H, half, 1)
        in_w, in_b, rs_w, rs_b = [], [], [], []
        for i in range(n_layers):
            key, k_in, k_rs = jax.random.split(key, 3)
            w, b = conv(k_in, 2 * H, H, kernel_size)
            in_w.append(w); in_b.append(b)
            rs_out = 2 * H if i < n_layers - 1 else H
            w, b = conv(k_rs, rs_out, H, 1)
            rs_w.append(w); rs_b.append(b)
        post_w, post_b = conv(k_post, half, H, 1)
        post_w, post_b = post_w * 0.1, post_b * 0.1
        flows.append(dict(pre_w=pre_w, pre_b=pre_b, in_w=in_w, in_b=in_b,
                          rs_w=rs_w, rs_b=rs_b, post_w=post_w, post_b=post_b,
                          kernel_size=kernel_size, dilation_rate=dilation_rate,
                          n_layers=n_layers))
    return flows


def prep_pallas_params(flows, dtype=jnp.bfloat16):
    """One-time re-layout (hoisted out of the forward path):
       * torch Conv1d layout -> channels-last matmul layout,
       * inter-flow Flip folded into odd flows (pre rows / post columns reversed),
       * gated-conv weights split into tanh / sigmoid halves, res_skip weights split
         into residual / skip halves (no lane-misaligned 2H slicing in the kernel),
       * matmul operands cast to `dtype` (bf16 by default); biases stay f32."""
    out = []
    for j, f in enumerate(flows):
        L, K = int(f["n_layers"]), int(f["kernel_size"])
        H = f["pre_w"].shape[0]
        flip = (j % 2 == 1)

        pre_w = f["pre_w"][:, :, 0].T                                 # (half, H)
        if flip:
            pre_w = pre_w[::-1, :]
        pre_b = f["pre_b"][None, :].astype(jnp.float32)

        in_w = [w.transpose(2, 1, 0) for w in f["in_w"]]              # (K, H, 2H)
        in_w_t = jnp.stack([w[:, :, :H] for w in in_w])               # (L, K, H, H)
        in_w_s = jnp.stack([w[:, :, H:] for w in in_w])
        in_b_t = jnp.stack([b[None, :H] for b in f["in_b"]]).astype(jnp.float32)
        in_b_s = jnp.stack([b[None, H:] for b in f["in_b"]]).astype(jnp.float32)

        rs_res_w, rs_res_b, rs_skip_w, rs_skip_b = [], [], [], []
        for i in range(L):
            w = f["rs_w"][i][:, :, 0].T                               # (H, cout)
            b = f["rs_b"][i][None, :]
            if i < L - 1:
                rs_res_w.append(w[:, :H]);  rs_res_b.append(b[:, :H])
                rs_skip_w.append(w[:, H:]); rs_skip_b.append(b[:, H:])
            else:                        # last layer feeds the skip path only
                rs_res_w.append(jnp.zeros((H, H), w.dtype))
                rs_res_b.append(jnp.zeros((1, H), b.dtype))
                rs_skip_w.append(w);     rs_skip_b.append(b)

        post_w = f["post_w"][:, :, 0].T                               # (H, half)
        post_b = f["post_b"][None, :]
        if flip:
            post_w = post_w[:, ::-1]
            post_b = post_b[:, ::-1]

        out.append(dict(
            pre_w=pre_w.astype(dtype), pre_b=pre_b,
            in_w_t=in_w_t.astype(dtype), in_w_s=in_w_s.astype(dtype),
            in_b_t=in_b_t, in_b_s=in_b_s,
            rs_res_w=jnp.stack(rs_res_w).astype(dtype),
            rs_res_b=jnp.stack(rs_res_b).astype(jnp.float32),
            rs_skip_w=jnp.stack(rs_skip_w).astype(dtype),
            rs_skip_b=jnp.stack(rs_skip_b).astype(jnp.float32),
            post_w=post_w.astype(dtype), post_b=post_b.astype(jnp.float32),
            kernel_size=K, dilation_rate=int(f["dilation_rate"]), n_layers=L))
    return out


# -----------------------------------------------------------------------------
# Pure-JAX reference (lax conv, HIGHEST precision) for correctness checking
# -----------------------------------------------------------------------------
def _conv1d_ref(x, w, b, dilation=1, padding=0):
    y = jax.lax.conv_general_dilated(
        x, w, window_strides=(1,), padding=[(padding, padding)],
        rhs_dilation=(dilation,),
        dimension_numbers=("NCH", "OIH", "NCH"),
        precision=jax.lax.Precision.HIGHEST)
    return y + b[None, :, None]


def residual_coupling_block_ref(x, x_mask, flows):
    for f in flows:
        H = f["pre_w"].shape[0]
        half = f["pre_w"].shape[1]
        L, K, dr = f["n_layers"], f["kernel_size"], f["dilation_rate"]
        x0, x1 = x[:, :half], x[:, half:]
        h = _conv1d_ref(x0, f["pre_w"], f["pre_b"]) * x_mask
        output = jnp.zeros_like(h)
        for i in range(L):
            d = dr ** i
            pad = (K - 1) * d // 2
            x_in = _conv1d_ref(h, f["in_w"][i], f["in_b"][i], dilation=d, padding=pad)
            acts = jnp.tanh(x_in[:, :H]) * jax.nn.sigmoid(x_in[:, H:])
            rs = _conv1d_ref(acts, f["rs_w"][i], f["rs_b"][i])
            if i < L - 1:
                h = (h + rs[:, :H]) * x_mask
                output = output + rs[:, H:]
            else:
                output = output + rs
        enc_out = output * x_mask
        stats = _conv1d_ref(enc_out, f["post_w"], f["post_b"]) * x_mask
        x1 = stats + x1 * x_mask                  # mean_only=True -> logs == 0
        x = jnp.concatenate([x0, x1], axis=1)
        x = x[:, ::-1]                            # Flip
    return x


# -----------------------------------------------------------------------------
if __name__ == "__main__":
    key = jax.random.PRNGKey(0)
    pkey, xkey = jax.random.split(key)

    # Small config consistent with the module (VITS/MMVC-style flow):
    B, C, T = 2, 8, 64                       # channels must be even
    hidden, ksz, dil_rate, n_layers, n_flows = 32, 5, 1, 4, 4

    torch_params = init_block_params(pkey, C, hidden, ksz, dil_rate, n_layers, n_flows)

    x = jax.random.normal(xkey, (B, C, T), jnp.float32)
    lengths = jnp.array([T, (3 * T) // 4])
    x_mask = (jnp.arange(T)[None, None, :] < lengths[:, None, None]).astype(jnp.float32)

    out_ref = residual_coupling_block_ref(x, x_mask, torch_params)

    # 1) f32 operands, single time tile per batch element
    params_f32 = prep_pallas_params(torch_params, dtype=jnp.float32)
    out = residual_coupling_block_forward(x, x_mask, params_f32)
    jax.block_until_ready(out)
    np.testing.assert_allclose(np.asarray(out), np.asarray(out_ref),
                               rtol=5e-3, atol=3e-3)

    # 2) f32 operands, two time tiles (exercises the halo-recompute chunking path)
    out_tiled = residual_coupling_block_forward(x, x_mask, params_f32, time_tile=32)
    jax.block_until_ready(out_tiled)
    np.testing.assert_allclose(np.asarray(out_tiled), np.asarray(out_ref),
                               rtol=5e-3, atol=3e-3)

    # 3) default bf16 matmul-operand path (f32 carry / f32 accumulation)
    params_bf16 = prep_pallas_params(torch_params)
    out_bf16 = residual_coupling_block_forward(x, x_mask, params_bf16)
    jax.block_until_ready(out_bf16)
    np.testing.assert_allclose(np.asarray(out_bf16), np.asarray(out_ref),
                               rtol=5e-2, atol=3e-2)

    print("KERNEL_OK")
</pallas_src>

<mosaic_0001>
module attributes {stable_mosaic.version = 11 : i64} {
  func.func @_coupling_kernel(%arg0: i32, %arg1: i32, %arg2: memref<1x80x8xf32, #tpu.memory_space<vmem>>, %arg3: memref<1x80x1xf32, #tpu.memory_space<vmem>>, %arg4: memref<4x32xf32, #tpu.memory_space<vmem>>, %arg5: memref<1x32xf32, #tpu.memory_space<vmem>>, %arg6: memref<4x5x32x32xf32, #tpu.memory_space<vmem>>, %arg7: memref<4x5x32x32xf32, #tpu.memory_space<vmem>>, %arg8: memref<4x1x32xf32, #tpu.memory_space<vmem>>, %arg9: memref<4x1x32xf32, #tpu.memory_space<vmem>>, %arg10: memref<4x32x32xf32, #tpu.memory_space<vmem>>, %arg11: memref<4x1x32xf32, #tpu.memory_space<vmem>>, %arg12: memref<4x32x32xf32, #tpu.memory_space<vmem>>, %arg13: memref<4x1x32xf32, #tpu.memory_space<vmem>>, %arg14: memref<32x4xf32, #tpu.memory_space<vmem>>, %arg15: memref<1x4xf32, #tpu.memory_space<vmem>>, %arg16: memref<1x80x8xf32, #tpu.memory_space<vmem>>, %arg17: memref<112x32xf32, #tpu.memory_space<vmem>>) attributes {dimension_semantics = [#tpu.dimension_semantics<parallel>, #tpu.dimension_semantics<arbitrary>], iteration_bounds = array<i64: 2, 1>, scalar_prefetch = 0 : i64, scratch_operands = 1 : i64, tpu.core_type = #tpu.core_type<tc>, window_params = [{transform_indices = @transform_0, window_bounds = array<i64: 1, 80, 8>}, {transform_indices = @transform_1, window_bounds = array<i64: 1, 80, 1>}, {pipeline_mode = #tpu.pipeline_mode<synchronous>, transform_indices = @transform_2, window_bounds = array<i64: 4, 32>}, {pipeline_mode = #tpu.pipeline_mode<synchronous>, transform_indices = @transform_3, window_bounds = array<i64: 1, 32>}, {pipeline_mode = #tpu.pipeline_mode<synchronous>, transform_indices = @transform_4, window_bounds = array<i64: 4, 5, 32, 32>}, {pipeline_mode = #tpu.pipeline_mode<synchronous>, transform_indices = @transform_5, window_bounds = array<i64: 4, 5, 32, 32>}, {pipeline_mode = #tpu.pipeline_mode<synchronous>, transform_indices = @transform_6, window_bounds = array<i64: 4, 1, 32>}, {pipeline_mode = #tpu.pipeline_mode<synchronous>, transform_indices = @transform_7, window_bounds = array<i64: 4, 1, 32>}, {pipeline_mode = #tpu.pipeline_mode<synchronous>, transform_indices = @transform_8, window_bounds = array<i64: 4, 32, 32>}, {pipeline_mode = #tpu.pipeline_mode<synchronous>, transform_indices = @transform_9, window_bounds = array<i64: 4, 1, 32>}, {pipeline_mode = #tpu.pipeline_mode<synchronous>, transform_indices = @transform_10, window_bounds = array<i64: 4, 32, 32>}, {pipeline_mode = #tpu.pipeline_mode<synchronous>, transform_indices = @transform_11, window_bounds = array<i64: 4, 1, 32>}, {pipeline_mode = #tpu.pipeline_mode<synchronous>, transform_indices = @transform_12, window_bounds = array<i64: 32, 4>}, {pipeline_mode = #tpu.pipeline_mode<synchronous>, transform_indices = @transform_13, window_bounds = array<i64: 1, 4>}, {transform_indices = @transform_14, window_bounds = array<i64: 1, 80, 8>}]} {
    %c64_i32 = arith.constant 64 : i32
    %0 = arith.muli %arg1, %c64_i32 : i32
    %1 = tpu.assume_multiple %0, 64 : i32
    %c0_i32 = arith.constant 0 : i32
    %2 = arith.cmpi eq, %arg1, %c0_i32 : i32
    %3 = arith.extui %2 : i1 to i32
    %c0_i32_0 = arith.constant 0 : i32
    %4 = arith.cmpi ne, %3, %c0_i32_0 : i32
    scf.if %4 {
      %cst_345 = arith.constant 0.000000e+00 : f32
      %348 = vector.broadcast %cst_345 : f32 to vector<8x8xf32>
      %c0_346 = arith.constant 0 : index
      %c0_347 = arith.constant 0 : index
      %c0_348 = arith.constant 0 : index
      %349 = vector.load %arg16[%c0_346, %c0_347, %c0_348] : memref<1x80x8xf32, #tpu.memory_space<vmem>>, vector<1x8x8xf32>
      %350 = vector.shape_cast %349 : vector<1x8x8xf32> to vector<8x8xf32>
      %351 = vector.shape_cast %348 : vector<8x8xf32> to vector<1x8x8xf32>
      tpu.vector_store %arg16[%c0_346, %c0_347, %c0_348], %351 {strides = array<i32>} : memref<1x80x8xf32, #tpu.memory_space<vmem>>, vector<1x8x8xf32>,
      %cst_349 = arith.constant 0.000000e+00 : f32
      %352 = vector.broadcast %cst_349 : f32 to vector<8x8xf32>
      %c0_350 = arith.constant 0 : index
      %c72 = arith.constant 72 : index
      %c0_351 = arith.constant 0 : index
      %353 = vector.load %arg16[%c0_350, %c72, %c0_351] : memref<1x80x8xf32, #tpu.memory_space<vmem>>, vector<1x8x8xf32>
      %354 = vector.shape_cast %353 : vector<1x8x8xf32> to vector<8x8xf32>
      %355 = vector.shape_cast %352 : vector<8x8xf32> to vector<1x8x8xf32>
      tpu.vector_store %arg16[%c0_350, %c72, %c0_351], %355 {strides = array<i32>} : memref<1x80x8xf32, #tpu.memory_space<vmem>>, vector<1x8x8xf32>,
    } else {
    }
    %c0 = arith.constant 0 : index
    %5 = arith.index_cast %1 : i32 to index
    %c0_1 = arith.constant 0 : index
    %6 = vector.load %arg3[%c0, %5, %c0_1] : memref<1x80x1xf32, #tpu.memory_space<vmem>>, vector<1x80x1xf32>
    %7 = vector.shape_cast %6 : vector<1x80x1xf32> to vector<80x1xf32>
    %c8_i32 = arith.constant 8 : i32
    %8 = arith.addi %1, %c8_i32 : i32
    %c0_2 = arith.constant 0 : index
    %9 = arith.index_cast %8 : i32 to index
    %c0_3 = arith.constant 0 : index
    %10 = vector.load %arg3[%c0_2, %9, %c0_3] : memref<1x80x1xf32, #tpu.memory_space<vmem>>, vector<1x64x1xf32>
    %11 = vector.shape_cast %10 : vector<1x64x1xf32> to vector<64x1xf32>
    %c0_4 = arith.constant 0 : index
    %12 = arith.index_cast %1 : i32 to index
    %c0_5 = arith.constant 0 : index
    %13 = vector.load %arg2[%c0_4, %12, %c0_5] : memref<1x80x8xf32, #tpu.memory_space<vmem>>, vector<1x80x4xf32>
    %14 = vector.shape_cast %13 : vector<1x80x4xf32> to vector<80x4xf32>
    %c8_i32_6 = arith.constant 8 : i32
    %15 = arith.addi %1, %c8_i32_6 : i32
    %c0_7 = arith.constant 0 : index
    %16 = arith.index_cast %15 : i32 to index
    %c0_8 = arith.constant 0 : index
    %17 = vector.load %arg2[%c0_7, %16, %c0_8] : memref<1x80x8xf32, #tpu.memory_space<vmem>>, vector<1x64x4xf32>
    %18 = vector.shape_cast %17 : vector<1x64x4xf32> to vector<64x4xf32>
    %c8_i32_9 = arith.constant 8 : i32
    %19 = arith.addi %1, %c8_i32_9 : i32
    %c0_10 = arith.constant 0 : index
    %20 = arith.index_cast %19 : i32 to index
    %c4 = arith.constant 4 : index
    %21 = vector.load %arg2[%c0_10, %20, %c4] : memref<1x80x8xf32, #tpu.memory_space<vmem>>, vector<1x64x4xf32>
    %22 = vector.shape_cast %21 : vector<1x64x4xf32> to vector<64x4xf32>
    %c0_11 = arith.constant 0 : index
    %c0_12 = arith.constant 0 : index
    %23 = vector.load %arg4[%c0_11, %c0_12] : memref<4x32xf32, #tpu.memory_space<vmem>>, vector<4x32xf32>
    %cst = arith.constant dense<0.000000e+00> : vector<80x32xf32>
    %24 = tpu.matmul %14, %23, %cst {dimension_numbers = #tpu.dot_dimension_numbers<[1], [0], [0], [1], [0, 0, 1, 1], [], []>} : vector<80x4xf32>, vector<4x32xf32>, vector<80x32xf32> -> vector<80x32xf32>
    %c0_13 = arith.constant 0 : index
    %c0_14 = arith.constant 0 : index
    %25 = vector.load %arg5[%c0_13, %c0_14] : memref<1x32xf32, #tpu.memory_space<vmem>>, vector<1x32xf32>
    %26 = vector.broadcast %25 : vector<1x32xf32> to vector<80x32xf32>
    %27 = arith.addf %24, %26 : vector<80x32xf32>
    %28 = vector.broadcast %7 : vector<80x1xf32> to vector<80x32xf32>
    %29 = arith.mulf %27, %28 : vector<80x32xf32>
    %cst_15 = arith.constant 0.000000e+00 : f32
    %30 = vector.broadcast %cst_15 : f32 to vector<16x32xf32>
    %c0_16 = arith.constant 0 : index
    %c0_17 = arith.constant 0 : index
    %31 = vector.load %arg17[%c0_16, %c0_17] : memref<112x32xf32, #tpu.memory_space<vmem>>, vector<16x32xf32>
    tpu.vector_store %arg17[%c0_16, %c0_17], %30 {strides = array<i32>} : memref<112x32xf32, #tpu.memory_space<vmem>>, vector<16x32xf32>,
    %cst_18 = arith.constant 0.000000e+00 : f32
    %32 = vector.broadcast %cst_18 : f32 to vector<16x32xf32>
    %c96 = arith.constant 96 : index
    %c0_19 = arith.constant 0 : index
    %33 = vector.load %arg17[%c96, %c0_19] : memref<112x32xf32, #tpu.memory_space<vmem>>, vector<16x32xf32>
    tpu.vector_store %arg17[%c96, %c0_19], %32 {strides = array<i32>} : memref<112x32xf32, #tpu.memory_space<vmem>>, vector<16x32xf32>,
    %c16 = arith.constant 16 : index
    %c0_20 = arith.constant 0 : index
    %34 = vector.load %arg17[%c16, %c0_20] : memref<112x32xf32, #tpu.memory_space<vmem>>, vector<80x32xf32>
    tpu.vector_store %arg17[%c16, %c0_20], %29 {strides = array<i32>} : memref<112x32xf32, #tpu.memory_space<vmem>>, vector<80x32xf32>,
    %c14 = arith.constant 14 : index
    %c0_21 = arith.constant 0 : index
    %35 = vector.load %arg17[%c14, %c0_21] : memref<112x32xf32, #tpu.memory_space<vmem>>, vector<80x32xf32>
    %c0_22 = arith.constant 0 : index
    %c0_23 = arith.constant 0 : index
    %c0_24 = arith.constant 0 : index
    %c0_25 = arith.constant 0 : index
    %36 = vector.load %arg6[%c0_22, %c0_23, %c0_24, %c0_25] : memref<4x5x32x32xf32, #tpu.memory_space<vmem>>, vector<1x1x32x32xf32>
    %37 = vector.shape_cast %36 : vector<1x1x32x32xf32> to vector<32x32xf32>
    %cst_26 = arith.constant dense<0.000000e+00> : vector<80x32xf32>
    %38 = tpu.matmul %35, %37, %cst_26 {dimension_numbers = #tpu.dot_dimension_numbers<[1], [0], [0], [1], [0, 0, 1, 1], [], []>} : vector<80x32xf32>, vector<32x32xf32>, vector<80x32xf32> -> vector<80x32xf32>
    %c0_27 = arith.constant 0 : index
    %c0_28 = arith.constant 0 : index
    %c0_29 = arith.constant 0 : index
    %c0_30 = arith.constant 0 : index
    %39 = vector.load %arg7[%c0_27, %c0_28, %c0_29, %c0_30] : memref<4x5x32x32xf32, #tpu.memory_space<vmem>>, vector<1x1x32x32xf32>
    %40 = vector.shape_cast %39 : vector<1x1x32x32xf32> to vector<32x32xf32>
    %cst_31 = arith.constant dense<0.000000e+00> : vector<80x32xf32>
    %41 = tpu.matmul %35, %40, %cst_31 {dimension_numbers = #tpu.dot_dimension_numbers<[1], [0], [0], [1], [0, 0, 1, 1], [], []>} : vector<80x32xf32>, vector<32x32xf32>, vector<80x32xf32> -> vector<80x32xf32>
    %c15 = arith.constant 15 : index
    %c0_32 = arith.constant 0 : index
    %42 = vector.load %arg17[%c15, %c0_32] : memref<112x32xf32, #tpu.memory_space<vmem>>, vector<80x32xf32>
    %c0_33 = arith.constant 0 : index
    %c1 = arith.constant 1 : index
    %c0_34 = arith.constant 0 : index
    %c0_35 = arith.constant 0 : index
    %43 = vector.load %arg6[%c0_33, %c1, %c0_34, %c0_35] : memref<4x5x32x32xf32, #tpu.memory_space<vmem>>, vector<1x1x32x32xf32>
    %44 = vector.shape_cast %43 : vector<1x1x32x32xf32> to vector<32x32xf32>
    %cst_36 = arith.constant dense<0.000000e+00> : vector<80x32xf32>
    %45 = tpu.matmul %42, %44, %cst_36 {dimension_numbers = #tpu.dot_dimension_numbers<[1], [0], [0], [1], [0, 0, 1, 1], [], []>} : vector<80x32xf32>, vector<32x32xf32>, vector<80x32xf32> -> vector<80x32xf32>
    %c0_37 = arith.constant 0 : index
    %c1_38 = arith.constant 1 : index
    %c0_39 = arith.constant 0 : index
    %c0_40 = arith.constant 0 : index
    %46 = vector.load %arg7[%c0_37, %c1_38, %c0_39, %c0_40] : memref<4x5x32x32xf32, #tpu.memory_space<vmem>>, vector<1x1x32x32xf32>
    %47 = vector.shape_cast %46 : vector<1x1x32x32xf32> to vector<32x32xf32>
    %cst_41 = arith.constant dense<0.000000e+00> : vector<80x32xf32>
    %48 = tpu.matmul %42, %47, %cst_41 {dimension_numbers = #tpu.dot_dimension_numbers<[1], [0], [0], [1], [0, 0, 1, 1], [], []>} : vector<80x32xf32>, vector<32x32xf32>, vector<80x32xf32> -> vector<80x32xf32>
    %49 = arith.addf %38, %45 : vector<80x32xf32>
    %50 = arith.addf %41, %48 : vector<80x32xf32>
    %c16_42 = arith.constant 16 : index
    %c0_43 = arith.constant 0 : index
    %51 = vector.load %arg17[%c16_42, %c0_43] : memref<112x32xf32, #tpu.memory_space<vmem>>, vector<80x32xf32>
    %c0_44 = arith.constant 0 : index
    %c2 = arith.constant 2 : index
    %c0_45 = arith.constant 0 : index
    %c0_46 = arith.constant 0 : index
    %52 = vector.load %arg6[%c0_44, %c2, %c0_45, %c0_46] : memref<4x5x32x32xf32, #tpu.memory_space<vmem>>, vector<1x1x32x32xf32>
    %53 = vector.shape_cast %52 : vector<1x1x32x32xf32> to vector<32x32xf32>
    %cst_47 = arith.constant dense<0.000000e+00> : vector<80x32xf32>
    %54 = tpu.matmul %51, %53, %cst_47 {dimension_numbers = #tpu.dot_dimension_numbers<[1], [0], [0], [1], [0, 0, 1, 1], [], []>} : vector<80x32xf32>, vector<32x32xf32>, vector<80x32xf32> -> vector<80x32xf32>
    %c0_48 = arith.constant 0 : index
    %c2_49 = arith.constant 2 : index
    %c0_50 = arith.constant 0 : index
    %c0_51 = arith.constant 0 : index
    %55 = vector.load %arg7[%c0_48, %c2_49, %c0_50, %c0_51] : memref<4x5x32x32xf32, #tpu.memory_space<vmem>>, vector<1x1x32x32xf32>
    %56 = vector.shape_cast %55 : vector<1x1x32x32xf32> to vector<32x32xf32>
    %cst_52 = arith.constant dense<0.000000e+00> : vector<80x32xf32>
    %57 = tpu.matmul %51, %56, %cst_52 {dimension_numbers = #tpu.dot_dimension_numbers<[1], [0], [0], [1], [0, 0, 1, 1], [], []>} : vector<80x32xf32>, vector<32x32xf32>, vector<80x32xf32> -> vector<80x32xf32>
    %58 = arith.addf %49, %54 : vector<80x32xf32>
    %59 = arith.addf %50, %57 : vector<80x32xf32>
    %c17 = arith.constant 17 : index
    %c0_53 = arith.constant 0 : index
    %60 = vector.load %arg17[%c17, %c0_53] : memref<112x32xf32, #tpu.memory_space<vmem>>, vector<80x32xf32>
    %c0_54 = arith.constant 0 : index
    %c3 = arith.constant 3 : index
    %c0_55 = arith.constant 0 : index
    %c0_56 = arith.constant 0 : index
    %61 = vector.load %arg6[%c0_54, %c3, %c0_55, %c0_56] : memref<4x5x32x32xf32, #tpu.memory_space<vmem>>, vector<1x1x32x32xf32>
    %62 = vector.shape_cast %61 : vector<1x1x32x32xf32> to vector<32x32xf32>
    %cst_57 = arith.constant dense<0.000000e+00> : vector<80x32xf32>
    %63 = tpu.matmul %60, %62, %cst_57 {dimension_numbers = #tpu.dot_dimension_numbers<[1], [0], [0], [1], [0, 0, 1, 1], [], []>} : vector<80x32xf32>, vector<32x32xf32>, vector<80x32xf32> -> vector<80x32xf32>
    %c0_58 = arith.constant 0 : index
    %c3_59 = arith.constant 3 : index
    %c0_60 = arith.constant 0 : index
    %c0_61 = arith.constant 0 : index
    %64 = vector.load %arg7[%c0_58, %c3_59, %c0_60, %c0_61] : memref<4x5x32x32xf32, #tpu.memory_space<vmem>>, vector<1x1x32x32xf32>
    %65 = vector.shape_cast %64 : vector<1x1x32x32xf32> to vector<32x32xf32>
    %cst_62 = arith.constant dense<0.000000e+00> : vector<80x32xf32>
    %66 = tpu.matmul %60, %65, %cst_62 {dimension_numbers = #tpu.dot_dimension_numbers<[1], [0], [0], [1], [0, 0, 1, 1], [], []>} : vector<80x32xf32>, vector<32x32xf32>, vector<80x32xf32> -> vector<80x32xf32>
    %67 = arith.addf %58, %63 : vector<80x32xf32>
    %68 = arith.addf %59, %66 : vector<80x32xf32>
    %c18 = arith.constant 18 : index
    %c0_63 = arith.constant 0 : index
    %69 = vector.load %arg17[%c18, %c0_63] : memref<112x32xf32, #tpu.memory_space<vmem>>, vector<80x32xf32>
    %c0_64 = arith.constant 0 : index
    %c4_65 = arith.constant 4 : index
    %c0_66 = arith.constant 0 : index
    %c0_67 = arith.constant 0 : index
    %70 = vector.load %arg6[%c0_64, %c4_65, %c0_66, %c0_67] : memref<4x5x32x32xf32, #tpu.memory_space<vmem>>, vector<1x1x32x32xf32>
    %71 = vector.shape_cast %70 : vector<1x1x32x32xf32> to vector<32x32xf32>
    %cst_68 = arith.constant dense<0.000000e+00> : vector<80x32xf32>
    %72 = tpu.matmul %69, %71, %cst_68 {dimension_numbers = #tpu.dot_dimension_numbers<[1], [0], [0], [1], [0, 0, 1, 1], [], []>} : vector<80x32xf32>, vector<32x32xf32>, vector<80x32xf32> -> vector<80x32xf32>
    %c0_69 = arith.constant 0 : index
    %c4_70 = arith.constant 4 : index
    %c0_71 = arith.constant 0 : index
    %c0_72 = arith.constant 0 : index
    %73 = vector.load %arg7[%c0_69, %c4_70, %c0_71, %c0_72] : memref<4x5x32x32xf32, #tpu.memory_space<vmem>>, vector<1x1x32x32xf32>
    %74 = vector.shape_cast %73 : vector<1x1x32x32xf32> to vector<32x32xf32>
    %cst_73 = arith.constant dense<0.000000e+00> : vector<80x32xf32>
    %75 = tpu.matmul %69, %74, %cst_73 {dimension_numbers = #tpu.dot_dimension_numbers<[1], [0], [0], [1], [0, 0, 1, 1], [], []>} : vector<80x32xf32>, vector<32x32xf32>, vector<80x32xf32> -> vector<80x32xf32>
    %76 = arith.addf %67, %72 : vector<80x32xf32>
    %77 = arith.addf %68, %75 : vector<80x32xf32>
    %c0_74 = arith.constant 0 : index
    %c0_75 = arith.constant 0 : index
    %c0_76 = arith.constant 0 : index
    %78 = vector.load %arg8[%c0_74, %c0_75, %c0_76] : memref<4x1x32xf32, #tpu.memory_space<vmem>>, vector<1x1x32xf32>
    %79 = vector.shape_cast %78 : vector<1x1x32xf32> to vector<1x32xf32>
    %80 = vector.broadcast %79 : vector<1x32xf32> to vector<80x32xf32>
    %81 = arith.addf %76, %80 : vector<80x32xf32>
    %82 = math.tanh %81 : vector<80x32xf32>
    %c0_77 = arith.constant 0 : index
    %c0_78 = arith.constant 0 : index
    %c0_79 = arith.constant 0 : index
    %83 = vector.load %arg9[%c0_77, %c0_78, %c0_79] : memref<4x1x32xf32, #tpu.memory_space<vmem>>, vector<1x1x32xf32>
    %84 = vector.shape_cast %83 : vector<1x1x32xf32> to vector<1x32xf32>
    %85 = vector.broadcast %84 : vector<1x32xf32> to vector<80x32xf32>
    %86 = arith.addf %77, %85 : vector<80x32xf32>
    %87 = arith.negf %86 : vector<80x32xf32>
    %88 = math.exp %87 : vector<80x32xf32>
    %cst_80 = arith.constant 1.000000e+00 : f32
    %89 = vector.broadcast %cst_80 : f32 to vector<80x32xf32>
    %90 = arith.addf %89, %88 : vector<80x32xf32>
    %91 = arith.divf %89, %90 : vector<80x32xf32>
    %92 = arith.mulf %82, %91 : vector<80x32xf32>
    %c0_81 = arith.constant 0 : index
    %c0_82 = arith.constant 0 : index
    %c0_83 = arith.constant 0 : index
    %93 = vector.load %arg12[%c0_81, %c0_82, %c0_83] : memref<4x32x32xf32, #tpu.memory_space<vmem>>, vector<1x32x32xf32>
    %94 = vector.shape_cast %93 : vector<1x32x32xf32> to vector<32x32xf32>
    %cst_84 = arith.constant dense<0.000000e+00> : vector<80x32xf32>
    %95 = tpu.matmul %92, %94, %cst_84 {dimension_numbers = #tpu.dot_dimension_numbers<[1], [0], [0], [1], [0, 0, 1, 1], [], []>} : vector<80x32xf32>, vector<32x32xf32>, vector<80x32xf32> -> vector<80x32xf32>
    %c0_85 = arith.constant 0 : index
    %c0_86 = arith.constant 0 : index
    %c0_87 = arith.constant 0 : index
    %96 = vector.load %arg13[%c0_85, %c0_86, %c0_87] : memref<4x1x32xf32, #tpu.memory_space<vmem>>, vector<1x1x32xf32>
    %97 = vector.shape_cast %96 : vector<1x1x32xf32> to vector<1x32xf32>
    %98 = vector.broadcast %97 : vector<1x32xf32> to vector<80x32xf32>
    %99 = arith.addf %95, %98 : vector<80x32xf32>
    %c0_88 = arith.constant 0 : index
    %c0_89 = arith.constant 0 : index
    %c0_90 = arith.constant 0 : index
    %100 = vector.load %arg10[%c0_88, %c0_89, %c0_90] : memref<4x32x32xf32, #tpu.memory_space<vmem>>, vector<1x32x32xf32>
    %101 = vector.shape_cast %100 : vector<1x32x32xf32> to vector<32x32xf32>
    %cst_91 = arith.constant dense<0.000000e+00> : vector<80x32xf32>
    %102 = tpu.matmul %92, %101, %cst_91 {dimension_numbers = #tpu.dot_dimension_numbers<[1], [0], [0], [1], [0, 0, 1, 1], [], []>} : vector<80x32xf32>, vector<32x32xf32>, vector<80x32xf32> -> vector<80x32xf32>
    %c0_92 = arith.constant 0 : index
    %c0_93 = arith.constant 0 : index
    %c0_94 = arith.constant 0 : index
    %103 = vector.load %arg11[%c0_92, %c0_93, %c0_94] : memref<4x1x32xf32, #tpu.memory_space<vmem>>, vector<1x1x32xf32>
    %104 = vector.shape_cast %103 : vector<1x1x32xf32> to vector<1x32xf32>
    %105 = vector.broadcast %104 : vector<1x32xf32> to vector<80x32xf32>
    %106 = arith.addf %102, %105 : vector<80x32xf32>
    %107 = arith.addf %29, %106 : vector<80x32xf32>
    %108 = vector.broadcast %7 : vector<80x1xf32> to vector<80x32xf32>
    %109 = arith.mulf %107, %108 : vector<80x32xf32>
    %c16_95 = arith.constant 16 : index
    %c0_96 = arith.constant 0 : index
    %110 = vector.load %arg17[%c16_95, %c0_96] : memref<112x32xf32, #tpu.memory_space<vmem>>, vector<80x32xf32>
    tpu.vector_store %arg17[%c16_95, %c0_96], %109 {strides = array<i32>} : memref<112x32xf32, #tpu.memory_space<vmem>>, vector<80x32xf32>,
    %c14_97 = arith.constant 14 : index
    %c0_98 = arith.constant 0 : index
    %111 = vector.load %arg17[%c14_97, %c0_98] : memref<112x32xf32, #tpu.memory_space<vmem>>, vector<80x32xf32>
    %c1_99 = arith.constant 1 : index
    %c0_100 = arith.constant 0 : index
    %c0_101 = arith.constant 0 : index
    %c0_102 = arith.constant 0 : index
    %112 = vector.load %arg6[%c1_99, %c0_100, %c0_101, %c0_102] : memref<4x5x32x32xf32, #tpu.memory_space<vmem>>, vector<1x1x32x32xf32>
    %113 = vector.shape_cast %112 : vector<1x1x32x32xf32> to vector<32x32xf32>
    %cst_103 = arith.constant dense<0.000000e+00> : vector<80x32xf32>
    %114 = tpu.matmul %111, %113, %cst_103 {dimension_numbers = #tpu.dot_dimension_numbers<[1], [0], [0], [1], [0, 0, 1, 1], [], []>} : vector<80x32xf32>, vector<32x32xf32>, vector<80x32xf32> -> vector<80x32xf32>
    %c1_104 = arith.constant 1 : index
    %c0_105 = arith.constant 0 : index
    %c0_106 = arith.constant 0 : index
    %c0_107 = arith.constant 0 : index
    %115 = vector.load %arg7[%c1_104, %c0_105, %c0_106, %c0_107] : memref<4x5x32x32xf32, #tpu.memory_space<vmem>>, vector<1x1x32x32xf32>
    %116 = vector.shape_cast %115 : vector<1x1x32x32xf32> to vector<32x32xf32>
    %cst_108 = arith.constant dense<0.000000e+00> : vector<80x32xf32>
    %117 = tpu.matmul %111, %116, %cst_108 {dimension_numbers = #tpu.dot_dimension_numbers<[1], [0], [0], [1], [0, 0, 1, 1], [], []>} : vector<80x32xf32>, vector<32x32xf32>, vector<80x32xf32> -> vector<80x32xf32>
    %c15_109 = arith.constant 15 : index
    %c0_110 = arith.constant 0 : index
    %118 = vector.load %arg17[%c15_109, %c0_110] : memref<112x32xf32, #tpu.memory_space<vmem>>, vector<80x32xf32>
    %c1_111 = arith.constant 1 : index
    %c1_112 = arith.constant 1 : index
    %c0_113 = arith.constant 0 : index
    %c0_114 = arith.constant 0 : index
    %119 = vector.load %arg6[%c1_111, %c1_112, %c0_113, %c0_114] : memref<4x5x32x32xf32, #tpu.memory_space<vmem>>, vector<1x1x32x32xf32>
    %120 = vector.shape_cast %119 : vector<1x1x32x32xf32> to vector<32x32xf32>
    %cst_115 = arith.constant dense<0.000000e+00> : vector<80x32xf32>
    %121 = tpu.matmul %118, %120, %cst_115 {dimension_numbers = #tpu.dot_dimension_numbers<[1], [0], [0], [1], [0, 0, 1, 1], [], []>} : vector<80x32xf32>, vector<32x32xf32>, vector<80x32xf32> -> vector<80x32xf32>
    %c1_116 = arith.constant 1 : index
    %c1_117 = arith.constant 1 : index
    %c0_118 = arith.constant 0 : index
    %c0_119 = arith.constant 0 : index
    %122 = vector.load %arg7[%c1_116, %c1_117, %c0_118, %c0_119] : memref<4x5x32x32xf32, #tpu.memory_space<vmem>>, vector<1x1x32x32xf32>
    %123 = vector.shape_cast %122 : vector<1x1x32x32xf32> to vector<32x32xf32>
    %cst_120 = arith.constant dense<0.000000e+00> : vector<80x32xf32>
    %124 = tpu.matmul %118, %123, %cst_120 {dimension_numbers = #tpu.dot_dimension_numbers<[1], [0], [0], [1], [0, 0, 1, 1], [], []>} : vector<80x32xf32>, vector<32x32xf32>, vector<80x32xf32> -> vector<80x32xf32>
    %125 = arith.addf %114, %121 : vector<80x32xf32>
    %126 = arith.addf %117, %124 : vector<80x32xf32>
    %c16_121 = arith.constant 16 : index
    %c0_122 = arith.constant 0 : index
    %127 = vector.load %arg17[%c16_121, %c0_122] : memref<112x32xf32, #tpu.memory_space<vmem>>, vector<80x32xf32>
    %c1_123 = arith.constant 1 : index
    %c2_124 = arith.constant 2 : index
    %c0_125 = arith.constant 0 : index
    %c0_126 = arith.constant 0 : index
    %128 = vector.load %arg6[%c1_123, %c2_124, %c0_125, %c0_126] : memref<4x5x32x32xf32, #tpu.memory_space<vmem>>, vector<1x1x32x32xf32>
    %129 = vector.shape_cast %128 : vector<1x1x32x32xf32> to vector<32x32xf32>
    %cst_127 = arith.constant dense<0.000000e+00> : vector<80x32xf32>
    %130 = tpu.matmul %127, %129, %cst_127 {dimension_numbers = #tpu.dot_dimension_numbers<[1], [0], [0], [1], [0, 0, 1, 1], [], []>} : vector<80x32xf32>, vector<32x32xf32>, vector<80x32xf32> -> vector<80x32xf32>
    %c1_128 = arith.constant 1 : index
    %c2_129 = arith.constant 2 : index
    %c0_130 = arith.constant 0 : index
    %c0_131 = arith.constant 0 : index
    %131 = vector.load %arg7[%c1_128, %c2_129, %c0_130, %c0_131] : memref<4x5x32x32xf32, #tpu.memory_space<vmem>>, vector<1x1x32x32xf32>
    %132 = vector.shape_cast %131 : vector<1x1x32x32xf32> to vector<32x32xf32>
    %cst_132 = arith.constant dense<0.000000e+00> : vector<80x32xf32>
    %133 = tpu.matmul %127, %132, %cst_132 {dimension_numbers = #tpu.dot_dimension_numbers<[1], [0], [0], [1], [0, 0, 1, 1], [], []>} : vector<80x32xf32>, vector<32x32xf32>, vector<80x32xf32> -> vector<80x32xf32>
    %134 = arith.addf %125, %130 : vector<80x32xf32>
    %135 = arith.addf %126, %133 : vector<80x32xf32>
    %c17_133 = arith.constant 17 : index
    %c0_134 = arith.constant 0 : index
    %136 = vector.load %arg17[%c17_133, %c0_134] : memref<112x32xf32, #tpu.memory_space<vmem>>, vector<80x32xf32>
    %c1_135 = arith.constant 1 : index
    %c3_136 = arith.constant 3 : index
    %c0_137 = arith.constant 0 : index
    %c0_138 = arith.constant 0 : index
    %137 = vector.load %arg6[%c1_135, %c3_136, %c0_137, %c0_138] : memref<4x5x32x32xf32, #tpu.memory_space<vmem>>, vector<1x1x32x32xf32>
    %138 = vector.shape_cast %137 : vector<1x1x32x32xf32> to vector<32x32xf32>
    %cst_139 = arith.constant dense<0.000000e+00> : vector<80x32xf32>
    %139 = tpu.matmul %136, %138, %cst_139 {dimension_numbers = #tpu.dot_dimension_numbers<[1], [0], [0], [1], [0, 0, 1, 1], [], []>} : vector<80x32xf32>, vector<32x32xf32>, vector<80x32xf32> -> vector<80x32xf32>
    %c1_140 = arith.constant 1 : index
    %c3_141 = arith.constant 3 : index
    %c0_142 = arith.constant 0 : index
    %c0_143 = arith.constant 0 : index
    %140 = vector.load %arg7[%c1_140, %c3_141, %c0_142, %c0_143] : memref<4x5x32x32xf32, #tpu.memory_space<vmem>>, vector<1x1x32x32xf32>
    %141 = vector.shape_cast %140 : vector<1x1x32x32xf32> to vector<32x32xf32>
    %cst_144 = arith.constant dense<0.000000e+00> : vector<80x32xf32>
    %142 = tpu.matmul %136, %141, %cst_144 {dimension_numbers = #tpu.dot_dimension_numbers<[1], [0], [0], [1], [0, 0, 1, 1], [], []>} : vector<80x32xf32>, vector<32x32xf32>, vector<80x32xf32> -> vector<80x32xf32>
    %143 = arith.addf %134, %139 : vector<80x32xf32>
    %144 = arith.addf %135, %142 : vector<80x32xf32>
    %c18_145 = arith.constant 18 : index
    %c0_146 = arith.constant 0 : index
    %145 = vector.load %arg17[%c18_145, %c0_146] : memref<112x32xf32, #tpu.memory_space<vmem>>, vector<80x32xf32>
    %c1_147 = arith.constant 1 : index
    %c4_148 = arith.constant 4 : index
    %c0_149 = arith.constant 0 : index
    %c0_150 = arith.constant 0 : index
    %146 = vector.load %arg6[%c1_147, %c4_148, %c0_149, %c0_150] : memref<4x5x32x32xf32, #tpu.memory_space<vmem>>, vector<1x1x32x32xf32>
    %147 = vector.shape_cast %146 : vector<1x1x32x32xf32> to vector<32x32xf32>
    %cst_151 = arith.constant dense<0.000000e+00> : vector<80x32xf32>
    %148 = tpu.matmul %145, %147, %cst_151 {dimension_numbers = #tpu.dot_dimension_numbers<[1], [0], [0], [1], [0, 0, 1, 1], [], []>} : vector<80x32xf32>, vector<32x32xf32>, vector<80x32xf32> -> vector<80x32xf32>
    %c1_152 = arith.constant 1 : index
    %c4_153 = arith.constant 4 : index
    %c0_154 = arith.constant 0 : index
    %c0_155 = arith.constant 0 : index
    %149 = vector.load %arg7[%c1_152, %c4_153, %c0_154, %c0_155] : memref<4x5x32x32xf32, #tpu.memory_space<vmem>>, vector<1x1x32x32xf32>
    %150 = vector.shape_cast %149 : vector<1x1x32x32xf32> to vector<32x32xf32>
    %cst_156 = arith.constant dense<0.000000e+00> : vector<80x32xf32>
    %151 = tpu.matmul %145, %150, %cst_156 {dimension_numbers = #tpu.dot_dimension_numbers<[1], [0], [0], [1], [0, 0, 1, 1], [], []>} : vector<80x32xf32>, vector<32x32xf32>, vector<80x32xf32> -> vector<80x32xf32>
    %152 = arith.addf %143, %148 : vector<80x32xf32>
    %153 = arith.addf %144, %151 : vector<80x32xf32>
    %c1_157 = arith.constant 1 : index
    %c0_158 = arith.constant 0 : index
    %c0_159 = arith.constant 0 : index
    %154 = vector.load %arg8[%c1_157, %c0_158, %c0_159] : memref<4x1x32xf32, #tpu.memory_space<vmem>>, vector<1x1x32xf32>
    %155 = vector.shape_cast %154 : vector<1x1x32xf32> to vector<1x32xf32>
    %156 = vector.broadcast %155 : vector<1x32xf32> to vector<80x32xf32>
    %157 = arith.addf %152, %156 : vector<80x32xf32>
    %158 = math.tanh %157 : vector<80x32xf32>
    %c1_160 = arith.constant 1 : index
    %c0_161 = arith.constant 0 : index
    %c0_162 = arith.constant 0 : index
    %159 = vector.load %arg9[%c1_160, %c0_161, %c0_162] : memref<4x1x32xf32, #tpu.memory_space<vmem>>, vector<1x1x32xf32>
    %160 = vector.shape_cast %159 : vector<1x1x32xf32> to vector<1x32xf32>
    %161 = vector.broadcast %160 : vector<1x32xf32> to vector<80x32xf32>
    %162 = arith.addf %153, %161 : vector<80x32xf32>
    %163 = arith.negf %162 : vector<80x32xf32>
    %164 = math.exp %163 : vector<80x32xf32>
    %cst_163 = arith.constant 1.000000e+00 : f32
    %165 = vector.broadcast %cst_163 : f32 to vector<80x32xf32>
    %166 = arith.addf %165, %164 : vector<80x32xf32>
    %167 = arith.divf %165, %166 : vector<80x32xf32>
    %168 = arith.mulf %158, %167 : vector<80x32xf32>
    %c1_164 = arith.constant 1 : index
    %c0_165 = arith.constant 0 : index
    %c0_166 = arith.constant 0 : index
    %169 = vector.load %arg12[%c1_164, %c0_165, %c0_166] : memref<4x32x32xf32, #tpu.memory_space<vmem>>, vector<1x32x32xf32>
    %170 = vector.shape_cast %169 : vector<1x32x32xf32> to vector<32x32xf32>
    %cst_167 = arith.constant dense<0.000000e+00> : vector<80x32xf32>
    %171 = tpu.matmul %168, %170, %cst_167 {dimension_numbers = #tpu.dot_dimension_numbers<[1], [0], [0], [1], [0, 0, 1, 1], [], []>} : vector<80x32xf32>, vector<32x32xf32>, vector<80x32xf32> -> vector<80x32xf32>
    %c1_168 = arith.constant 1 : index
    %c0_169 = arith.constant 0 : index
    %c0_170 = arith.constant 0 : index
    %172 = vector.load %arg13[%c1_168, %c0_169, %c0_170] : memref<4x1x32xf32, #tpu.memory_space<vmem>>, vector<1x1x32xf32>
    %173 = vector.shape_cast %172 : vector<1x1x32xf32> to vector<1x32xf32>
    %174 = vector.broadcast %173 : vector<1x32xf32> to vector<80x32xf32>
    %175 = arith.addf %171, %174 : vector<80x32xf32>
    %176 = arith.addf %99, %175 : vector<80x32xf32>
    %c1_171 = arith.constant 1 : index
    %c0_172 = arith.constant 0 : index
    %c0_173 = arith.constant 0 : index
    %177 = vector.load %arg10[%c1_171, %c0_172, %c0_173] : memref<4x32x32xf32, #tpu.memory_space<vmem>>, vector<1x32x32xf32>
    %178 = vector.shape_cast %177 : vector<1x32x32xf32> to vector<32x32xf32>
    %cst_174 = arith.constant dense<0.000000e+00> : vector<80x32xf32>
    %179 = tpu.matmul %168, %178, %cst_174 {dimension_numbers = #tpu.dot_dimension_numbers<[1], [0], [0], [1], [0, 0, 1, 1], [], []>} : vector<80x32xf32>, vector<32x32xf32>, vector<80x32xf32> -> vector<80x32xf32>
    %c1_175 = arith.constant 1 : index
    %c0_176 = arith.constant 0 : index
    %c0_177 = arith.constant 0 : index
    %180 = vector.load %arg11[%c1_175, %c0_176, %c0_177] : memref<4x1x32xf32, #tpu.memory_space<vmem>>, vector<1x1x32xf32>
    %181 = vector.shape_cast %180 : vector<1x1x32xf32> to vector<1x32xf32>
    %182 = vector.broadcast %181 : vector<1x32xf32> to vector<80x32xf32>
    %183 = arith.addf %179, %182 : vector<80x32xf32>
    %184 = arith.addf %109, %183 : vector<80x32xf32>
    %185 = vector.broadcast %7 : vector<80x1xf32> to vector<80x32xf32>
    %186 = arith.mulf %184, %185 : vector<80x32xf32>
    %c16_178 = arith.constant 16 : index
    %c0_179 = arith.constant 0 : index
    %187 = vector.load %arg17[%c16_178, %c0_179] : memref<112x32xf32, #tpu.memory_space<vmem>>, vector<80x32xf32>
    tpu.vector_store %arg17[%c16_178, %c0_179], %186 {strides = array<i32>} : memref<112x32xf32, #tpu.memory_space<vmem>>, vector<80x32xf32>,
    %c14_180 = arith.constant 14 : index
    %c0_181 = arith.constant 0 : index
    %188 = vector.load %arg17[%c14_180, %c0_181] : memref<112x32xf32, #tpu.memory_space<vmem>>, vector<80x32xf32>
    %c2_182 = arith.constant 2 : index
    %c0_183 = arith.constant 0 : index
    %c0_184 = arith.constant 0 : index
    %c0_185 = arith.constant 0 : index
    %189 = vector.load %arg6[%c2_182, %c0_183, %c0_184, %c0_185] : memref<4x5x32x32xf32, #tpu.memory_space<vmem>>, vector<1x1x32x32xf32>
    %190 = vector.shape_cast %189 : vector<1x1x32x32xf32> to vector<32x32xf32>
    %cst_186 = arith.constant dense<0.000000e+00> : vector<80x32xf32>
    %191 = tpu.matmul %188, %190, %cst_186 {dimension_numbers = #tpu.dot_dimension_numbers<[1], [0], [0], [1], [0, 0, 1, 1], [], []>} : vector<80x32xf32>, vector<32x32xf32>, vector<80x32xf32> -> vector<80x32xf32>
    %c2_187 = arith.constant 2 : index
    %c0_188 = arith.constant 0 : index
    %c0_189 = arith.constant 0 : index
    %c0_190 = arith.constant 0 : index
    %192 = vector.load %arg7[%c2_187, %c0_188, %c0_189, %c0_190] : memref<4x5x32x32xf32, #tpu.memory_space<vmem>>, vector<1x1x32x32xf32>
    %193 = vector.shape_cast %192 : vector<1x1x32x32xf32> to vector<32x32xf32>
    %cst_191 = arith.constant dense<0.000000e+00> : vector<80x32xf32>
    %194 = tpu.matmul %188, %193, %cst_191 {dimension_numbers = #tpu.dot_dimension_numbers<[1], [0], [0], [1], [0, 0, 1, 1], [], []>} : vector<80x32xf32>, vector<32x32xf32>, vector<80x32xf32> -> vector<80x32xf32>
    %c15_192 = arith.constant 15 : index
    %c0_193 = arith.constant 0 : index
    %195 = vector.load %arg17[%c15_192, %c0_193] : memref<112x32xf32, #tpu.memory_space<vmem>>, vector<80x32xf32>
    %c2_194 = arith.constant 2 : index
    %c1_195 = arith.constant 1 : index
    %c0_196 = arith.constant 0 : index
    %c0_197 = arith.constant 0 : index
    %196 = vector.load %arg6[%c2_194, %c1_195, %c0_196, %c0_197] : memref<4x5x32x32xf32, #tpu.memory_space<vmem>>, vector<1x1x32x32xf32>
    %197 = vector.shape_cast %196 : vector<1x1x32x32xf32> to vector<32x32xf32>
    %cst_198 = arith.constant dense<0.000000e+00> : vector<80x32xf32>
    %198 = tpu.matmul %195, %197, %cst_198 {dimension_numbers = #tpu.dot_dimension_numbers<[1], [0], [0], [1], [0, 0, 1, 1], [], []>} : vector<80x32xf32>, vector<32x32xf32>, vector<80x32xf32> -> vector<80x32xf32>
    %c2_199 = arith.constant 2 : index
    %c1_200 = arith.constant 1 : index
    %c0_201 = arith.constant 0 : index
    %c0_202 = arith.constant 0 : index
    %199 = vector.load %arg7[%c2_199, %c1_200, %c0_201, %c0_202] : memref<4x5x32x32xf32, #tpu.memory_space<vmem>>, vector<1x1x32x32xf32>
    %200 = vector.shape_cast %199 : vector<1x1x32x32xf32> to vector<32x32xf32>
    %cst_203 = arith.constant dense<0.000000e+00> : vector<80x32xf32>
    %201 = tpu.matmul %195, %200, %cst_203 {dimension_numbers = #tpu.dot_dimension_numbers<[1], [0], [0], [1], [0, 0, 1, 1], [], []>} : vector<80x32xf32>, vector<32x32xf32>, vector<80x32xf32> -> vector<80x32xf32>
    %202 = arith.addf %191, %198 : vector<80x32xf32>
    %203 = arith.addf %194, %201 : vector<80x32xf32>
    %c16_204 = arith.constant 16 : index
    %c0_205 = arith.constant 0 : index
    %204 = vector.load %arg17[%c16_204, %c0_205] : memref<112x32xf32, #tpu.memory_space<vmem>>, vector<80x32xf32>
    %c2_206 = arith.constant 2 : index
    %c2_207 = arith.constant 2 : index
    %c0_208 = arith.constant 0 : index
    %c0_209 = arith.constant 0 : index
    %205 = vector.load %arg6[%c2_206, %c2_207, %c0_208, %c0_209] : memref<4x5x32x32xf32, #tpu.memory_space<vmem>>, vector<1x1x32x32xf32>
    %206 = vector.shape_cast %205 : vector<1x1x32x32xf32> to vector<32x32xf32>
    %cst_210 = arith.constant dense<0.000000e+00> : vector<80x32xf32>
    %207 = tpu.matmul %204, %206, %cst_210 {dimension_numbers = #tpu.dot_dimension_numbers<[1], [0], [0], [1], [0, 0, 1, 1], [], []>} : vector<80x32xf32>, vector<32x32xf32>, vector<80x32xf32> -> vector<80x32xf32>
    %c2_211 = arith.constant 2 : index
    %c2_212 = arith.constant 2 : index
    %c0_213 = arith.constant 0 : index
    %c0_214 = arith.constant 0 : index
    %208 = vector.load %arg7[%c2_211, %c2_212, %c0_213, %c0_214] : memref<4x5x32x32xf32, #tpu.memory_space<vmem>>, vector<1x1x32x32xf32>
    %209 = vector.shape_cast %208 : vector<1x1x32x32xf32> to vector<32x32xf32>
    %cst_215 = arith.constant dense<0.000000e+00> : vector<80x32xf32>
    %210 = tpu.matmul %204, %209, %cst_215 {dimension_numbers = #tpu.dot_dimension_numbers<[1], [0], [0], [1], [0, 0, 1, 1], [], []>} : vector<80x32xf32>, vector<32x32xf32>, vector<80x32xf32> -> vector<80x32xf32>
    %211 = arith.addf %202, %207 : vector<80x32xf32>
    %212 = arith.addf %203, %210 : vector<80x32xf32>
    %c17_216 = arith.constant 17 : index
    %c0_217 = arith.constant 0 : index
    %213 = vector.load %arg17[%c17_216, %c0_217] : memref<112x32xf32, #tpu.memory_space<vmem>>, vector<80x32xf32>
    %c2_218 = arith.constant 2 : index
    %c3_219 = arith.constant 3 : index
    %c0_220 = arith.constant 0 : index
    %c0_221 = arith.constant 0 : index
    %214 = vector.load %arg6[%c2_218, %c3_219, %c0_220, %c0_221] : memref<4x5x32x32xf32, #tpu.memory_space<vmem>>, vector<1x1x32x32xf32>
    %215 = vector.shape_cast %214 : vector<1x1x32x32xf32> to vector<32x32xf32>
    %cst_222 = arith.constant dense<0.000000e+00> : vector<80x32xf32>
    %216 = tpu.matmul %213, %215, %cst_222 {dimension_numbers = #tpu.dot_dimension_numbers<[1], [0], [0], [1], [0, 0, 1, 1], [], []>} : vector<80x32xf32>, vector<32x32xf32>, vector<80x32xf32> -> vector<80x32xf32>
    %c2_223 = arith.constant 2 : index
    %c3_224 = arith.constant 3 : index
    %c0_225 = arith.constant 0 : index
    %c0_226 = arith.constant 0 : index
    %217 = vector.load %arg7[%c2_223, %c3_224, %c0_225, %c0_226] : memref<4x5x32x32xf32, #tpu.memory_space<vmem>>, vector<1x1x32x32xf32>
    %218 = vector.shape_cast %217 : vector<1x1x32x32xf32> to vector<32x32xf32>
    %cst_227 = arith.constant dense<0.000000e+00> : vector<80x32xf32>
    %219 = tpu.matmul %213, %218, %cst_227 {dimension_numbers = #tpu.dot_dimension_numbers<[1], [0], [0], [1], [0, 0, 1, 1], [], []>} : vector<80x32xf32>, vector<32x32xf32>, vector<80x32xf32> -> vector<80x32xf32>
    %220 = arith.addf %211, %216 : vector<80x32xf32>
    %221 = arith.addf %212, %219 : vector<80x32xf32>
    %c18_228 = arith.constant 18 : index
    %c0_229 = arith.constant 0 : index
    %222 = vector.load %arg17[%c18_228, %c0_229] : memref<112x32xf32, #tpu.memory_space<vmem>>, vector<80x32xf32>
    %c2_230 = arith.constant 2 : index
    %c4_231 = arith.constant 4 : index
    %c0_232 = arith.constant 0 : index
    %c0_233 = arith.constant 0 : index
    %223 = vector.load %arg6[%c2_230, %c4_231, %c0_232, %c0_233] : memref<4x5x32x32xf32, #tpu.memory_space<vmem>>, vector<1x1x32x32xf32>
    %224 = vector.shape_cast %223 : vector<1x1x32x32xf32> to vector<32x32xf32>
    %cst_234 = arith.constant dense<0.000000e+00> : vector<80x32xf32>
    %225 = tpu.matmul %222, %224, %cst_234 {dimension_numbers = #tpu.dot_dimension_numbers<[1], [0], [0], [1], [0, 0, 1, 1], [], []>} : vector<80x32xf32>, vector<32x32xf32>, vector<80x32xf32> -> vector<80x32xf32>
    %c2_235 = arith.constant 2 : index
    %c4_236 = arith.constant 4 : index
    %c0_237 = arith.constant 0 : index
    %c0_238 = arith.constant 0 : index
    %226 = vector.load %arg7[%c2_235, %c4_236, %c0_237, %c0_238] : memref<4x5x32x32xf32, #tpu.memory_space<vmem>>, vector<1x1x32x32xf32>
    %227 = vector.shape_cast %226 : vector<1x1x32x32xf32> to vector<32x32xf32>
    %cst_239 = arith.constant dense<0.000000e+00> : vector<80x32xf32>
    %228 = tpu.matmul %222, %227, %cst_239 {dimension_numbers = #tpu.dot_dimension_numbers<[1], [0], [0], [1], [0, 0, 1, 1], [], []>} : vector<80x32xf32>, vector<32x32xf32>, vector<80x32xf32> -> vector<80x32xf32>
    %229 = arith.addf %220, %225 : vector<80x32xf32>
    %230 = arith.addf %221, %228 : vector<80x32xf32>
    %c2_240 = arith.constant 2 : index
    %c0_241 = arith.constant 0 : index
    %c0_242 = arith.constant 0 : index
    %231 = vector.load %arg8[%c2_240, %c0_241, %c0_242] : memref<4x1x32xf32, #tpu.memory_space<vmem>>, vector<1x1x32xf32>
    %232 = vector.shape_cast %231 : vector<1x1x32xf32> to vector<1x32xf32>
    %233 = vector.broadcast %232 : vector<1x32xf32> to vector<80x32xf32>
    %234 = arith.addf %229, %233 : vector<80x32xf32>
    %235 = math.tanh %234 : vector<80x32xf32>
    %c2_243 = arith.constant 2 : index
    %c0_244 = arith.constant 0 : index
    %c0_245 = arith.constant 0 : index
    %236 = vector.load %arg9[%c2_243, %c0_244, %c0_245] : memref<4x1x32xf32, #tpu.memory_space<vmem>>, vector<1x1x32xf32>
    %237 = vector.shape_cast %236 : vector<1x1x32xf32> to vector<1x32xf32>
    %238 = vector.broadcast %237 : vector<1x32xf32> to vector<80x32xf32>
    %239 = arith.addf %230, %238 : vector<80x32xf32>
    %240 = arith.negf %239 : vector<80x32xf32>
    %241 = math.exp %240 : vector<80x32xf32>
    %cst_246 = arith.constant 1.000000e+00 : f32
    %242 = vector.broadcast %cst_246 : f32 to vector<80x32xf32>
    %243 = arith.addf %242, %241 : vector<80x32xf32>
    %244 = arith.divf %242, %243 : vector<80x32xf32>
    %245 = arith.mulf %235, %244 : vector<80x32xf32>
    %c2_247 = arith.constant 2 : index
    %c0_248 = arith.constant 0 : index
    %c0_249 = arith.constant 0 : index
    %246 = vector.load %arg12[%c2_247, %c0_248, %c0_249] : memref<4x32x32xf32, #tpu.memory_space<vmem>>, vector<1x32x32xf32>
    %247 = vector.shape_cast %246 : vector<1x32x32xf32> to vector<32x32xf32>
    %cst_250 = arith.constant dense<0.000000e+00> : vector<80x32xf32>
    %248 = tpu.matmul %245, %247, %cst_250 {dimension_numbers = #tpu.dot_dimension_numbers<[1], [0], [0], [1], [0, 0, 1, 1], [], []>} : vector<80x32xf32>, vector<32x32xf32>, vector<80x32xf32> -> vector<80x32xf32>
    %c2_251 = arith.constant 2 : index
    %c0_252 = arith.constant 0 : index
    %c0_253 = arith.constant 0 : index
    %249 = vector.load %arg13[%c2_251, %c0_252, %c0_253] : memref<4x1x32xf32, #tpu.memory_space<vmem>>, vector<1x1x32xf32>
    %250 = vector.shape_cast %249 : vector<1x1x32xf32> to vector<1x32xf32>
    %251 = vector.broadcast %250 : vector<1x32xf32> to vector<80x32xf32>
    %252 = arith.addf %248, %251 : vector<80x32xf32>
    %253 = arith.addf %176, %252 : vector<80x32xf32>
    %c2_254 = arith.constant 2 : index
    %c0_255 = arith.constant 0 : index
    %c0_256 = arith.constant 0 : index
    %254 = vector.load %arg10[%c2_254, %c0_255, %c0_256] : memref<4x32x32xf32, #tpu.memory_space<vmem>>, vector<1x32x32xf32>
    %255 = vector.shape_cast %254 : vector<1x32x32xf32> to vector<32x32xf32>
    %cst_257 = arith.constant dense<0.000000e+00> : vector<80x32xf32>
    %256 = tpu.matmul %245, %255, %cst_257 {dimension_numbers = #tpu.dot_dimension_numbers<[1], [0], [0], [1], [0, 0, 1, 1], [], []>} : vector<80x32xf32>, vector<32x32xf32>, vector<80x32xf32> -> vector<80x32xf32>
    %c2_258 = arith.constant 2 : index
    %c0_259 = arith.constant 0 : index
    %c0_260 = arith.constant 0 : index
    %257 = vector.load %arg11[%c2_258, %c0_259, %c0_260] : memref<4x1x32xf32, #tpu.memory_space<vmem>>, vector<1x1x32xf32>
    %258 = vector.shape_cast %257 : vector<1x1x32xf32> to vector<1x32xf32>
    %259 = vector.broadcast %258 : vector<1x32xf32> to vector<80x32xf32>
    %260 = arith.addf %256, %259 : vector<80x32xf32>
    %261 = arith.addf %186, %260 : vector<80x32xf32>
    %262 = vector.broadcast %7 : vector<80x1xf32> to vector<80x32xf32>
    %263 = arith.mulf %261, %262 : vector<80x32xf32>
    %c16_261 = arith.constant 16 : index
    %c0_262 = arith.constant 0 : index
    %264 = vector.load %arg17[%c16_261, %c0_262] : memref<112x32xf32, #tpu.memory_space<vmem>>, vector<80x32xf32>
    tpu.vector_store %arg17[%c16_261, %c0_262], %263 {strides = array<i32>} : memref<112x32xf32, #tpu.memory_space<vmem>>, vector<80x32xf32>,
    %c14_263 = arith.constant 14 : index
    %c0_264 = arith.constant 0 : index
    %265 = vector.load %arg17[%c14_263, %c0_264] : memref<112x32xf32, #tpu.memory_space<vmem>>, vector<80x32xf32>
    %c3_265 = arith.constant 3 : index
    %c0_266 = arith.constant 0 : index
    %c0_267 = arith.constant 0 : index
    %c0_268 = arith.constant 0 : index
    %266 = vector.load %arg6[%c3_265, %c0_266, %c0_267, %c0_268] : memref<4x5x32x32xf32, #tpu.memory_space<vmem>>, vector<1x1x32x32xf32>
    %267 = vector.shape_cast %266 : vector<1x1x32x32xf32> to vector<32x32xf32>
    %cst_269 = arith.constant dense<0.000000e+00> : vector<80x32xf32>
    %268 = tpu.matmul %265, %267, %cst_269 {dimension_numbers = #tpu.dot_dimension_numbers<[1], [0], [0], [1], [0, 0, 1, 1], [], []>} : vector<80x32xf32>, vector<32x32xf32>, vector<80x32xf32> -> vector<80x32xf32>
    %c3_270 = arith.constant 3 : index
    %c0_271 = arith.constant 0 : index
    %c0_272 = arith.constant 0 : index
    %c0_273 = arith.constant 0 : index
    %269 = vector.load %arg7[%c3_270, %c0_271, %c0_272, %c0_273] : memref<4x5x32x32xf32, #tpu.memory_space<vmem>>, vector<1x1x32x32xf32>
    %270 = vector.shape_cast %269 : vector<1x1x32x32xf32> to vector<32x32xf32>
    %cst_274 = arith.constant dense<0.000000e+00> : vector<80x32xf32>
    %271 = tpu.matmul %265, %270, %cst_274 {dimension_numbers = #tpu.dot_dimension_numbers<[1], [0], [0], [1], [0, 0, 1, 1], [], []>} : vector<80x32xf32>, vector<32x32xf32>, vector<80x32xf32> -> vector<80x32xf32>
    %c15_275 = arith.constant 15 : index
    %c0_276 = arith.constant 0 : index
    %272 = vector.load %arg17[%c15_275, %c0_276] : memref<112x32xf32, #tpu.memory_space<vmem>>, vector<80x32xf32>
    %c3_277 = arith.constant 3 : index
    %c1_278 = arith.constant 1 : index
    %c0_279 = arith.constant 0 : index
    %c0_280 = arith.constant 0 : index
    %273 = vector.load %arg6[%c3_277, %c1_278, %c0_279, %c0_280] : memref<4x5x32x32xf32, #tpu.memory_space<vmem>>, vector<1x1x32x32xf32>
    %274 = vector.shape_cast %273 : vector<1x1x32x32xf32> to vector<32x32xf32>
    %cst_281 = arith.constant dense<0.000000e+00> : vector<80x32xf32>
    %275 = tpu.matmul %272, %274, %cst_281 {dimension_numbers = #tpu.dot_dimension_numbers<[1], [0], [0], [1], [0, 0, 1, 1], [], []>} : vector<80x32xf32>, vector<32x32xf32>, vector<80x32xf32> -> vector<80x32xf32>
    %c3_282 = arith.constant 3 : index
    %c1_283 = arith.constant 1 : index
    %c0_284 = arith.constant 0 : index
    %c0_285 = arith.constant 0 : index
    %276 = vector.load %arg7[%c3_282, %c1_283, %c0_284, %c0_285] : memref<4x5x32x32xf32, #tpu.memory_space<vmem>>, vector<1x1x32x32xf32>
    %277 = vector.shape_cast %276 : vector<1x1x32x32xf32> to vector<32x32xf32>
    %cst_286 = arith.constant dense<0.000000e+00> : vector<80x32xf32>
    %278 = tpu.matmul %272, %277, %cst_286 {dimension_numbers = #tpu.dot_dimension_numbers<[1], [0], [0], [1], [0, 0, 1, 1], [], []>} : vector<80x32xf32>, vector<32x32xf32>, vector<80x32xf32> -> vector<80x32xf32>
    %279 = arith.addf %268, %275 : vector<80x32xf32>
    %280 = arith.addf %271, %278 : vector<80x32xf32>
    %c16_287 = arith.constant 16 : index
    %c0_288 = arith.constant 0 : index
    %281 = vector.load %arg17[%c16_287, %c0_288] : memref<112x32xf32, #tpu.memory_space<vmem>>, vector<80x32xf32>
    %c3_289 = arith.constant 3 : index
    %c2_290 = arith.constant 2 : index
    %c0_291 = arith.constant 0 : index
    %c0_292 = arith.constant 0 : index
    %282 = vector.load %arg6[%c3_289, %c2_290, %c0_291, %c0_292] : memref<4x5x32x32xf32, #tpu.memory_space<vmem>>, vector<1x1x32x32xf32>
    %283 = vector.shape_cast %282 : vector<1x1x32x32xf32> to vector<32x32xf32>
    %cst_293 = arith.constant dense<0.000000e+00> : vector<80x32xf32>
    %284 = tpu.matmul %281, %283, %cst_293 {dimension_numbers = #tpu.dot_dimension_numbers<[1], [0], [0], [1], [0, 0, 1, 1], [], []>} : vector<80x32xf32>, vector<32x32xf32>, vector<80x32xf32> -> vector<80x32xf32>
    %c3_294 = arith.constant 3 : index
    %c2_295 = arith.constant 2 : index
    %c0_296 = arith.constant 0 : index
    %c0_297 = arith.constant 0 : index
    %285 = vector.load %arg7[%c3_294, %c2_295, %c0_296, %c0_297] : memref<4x5x32x32xf32, #tpu.memory_space<vmem>>, vector<1x1x32x32xf32>
    %286 = vector.shape_cast %285 : vector<1x1x32x32xf32> to vector<32x32xf32>
    %cst_298 = arith.constant dense<0.000000e+00> : vector<80x32xf32>
    %287 = tpu.matmul %281, %286, %cst_298 {dimension_numbers = #tpu.dot_dimension_numbers<[1], [0], [0], [1], [0, 0, 1, 1], [], []>} : vector<80x32xf32>, vector<32x32xf32>, vector<80x32xf32> -> vector<80x32xf32>
    %288 = arith.addf %279, %284 : vector<80x32xf32>
    %289 = arith.addf %280, %287 : vector<80x32xf32>
    %c17_299 = arith.constant 17 : index
    %c0_300 = arith.constant 0 : index
    %290 = vector.load %arg17[%c17_299, %c0_300] : memref<112x32xf32, #tpu.memory_space<vmem>>, vector<80x32xf32>
    %c3_301 = arith.constant 3 : index
    %c3_302 = arith.constant 3 : index
    %c0_303 = arith.constant 0 : index
    %c0_304 = arith.constant 0 : index
    %291 = vector.load %arg6[%c3_301, %c3_302, %c0_303, %c0_304] : memref<4x5x32x32xf32, #tpu.memory_space<vmem>>, vector<1x1x32x32xf32>
    %292 = vector.shape_cast %291 : vector<1x1x32x32xf32> to vector<32x32xf32>
    %cst_305 = arith.constant dense<0.000000e+00> : vector<80x32xf32>
    %293 = tpu.matmul %290, %292, %cst_305 {dimension_numbers = #tpu.dot_dimension_numbers<[1], [0], [0], [1], [0, 0, 1, 1], [], []>} : vector<80x32xf32>, vector<32x32xf32>, vector<80x32xf32> -> vector<80x32xf32>
    %c3_306 = arith.constant 3 : index
    %c3_307 = arith.constant 3 : index
    %c0_308 = arith.constant 0 : index
    %c0_309 = arith.constant 0 : index
    %294 = vector.load %arg7[%c3_306, %c3_307, %c0_308, %c0_309] : memref<4x5x32x32xf32, #tpu.memory_space<vmem>>, vector<1x1x32x32xf32>
    %295 = vector.shape_cast %294 : vector<1x1x32x32xf32> to vector<32x32xf32>
    %cst_310 = arith.constant dense<0.000000e+00> : vector<80x32xf32>
    %296 = tpu.matmul %290, %295, %cst_310 {dimension_numbers = #tpu.dot_dimension_numbers<[1], [0], [0], [1], [0, 0, 1, 1], [], []>} : vector<80x32xf32>, vector<32x32xf32>, vector<80x32xf32> -> vector<80x32xf32>
    %297 = arith.addf %288, %293 : vector<80x32xf32>
    %298 = arith.addf %289, %296 : vector<80x32xf32>
    %c18_311 = arith.constant 18 : index
    %c0_312 = arith.constant 0 : index
    %299 = vector.load %arg17[%c18_311, %c0_312] : memref<112x32xf32, #tpu.memory_space<vmem>>, vector<80x32xf32>
    %c3_313 = arith.constant 3 : index
    %c4_314 = arith.constant 4 : index
    %c0_315 = arith.constant 0 : index
    %c0_316 = arith.constant 0 : index
    %300 = vector.load %arg6[%c3_313, %c4_314, %c0_315, %c0_316] : memref<4x5x32x32xf32, #tpu.memory_space<vmem>>, vector<1x1x32x32xf32>
    %301 = vector.shape_cast %300 : vector<1x1x32x32xf32> to vector<32x32xf32>
    %cst_317 = arith.constant dense<0.000000e+00> : vector<80x32xf32>
    %302 = tpu.matmul %299, %301, %cst_317 {dimension_numbers = #tpu.dot_dimension_numbers<[1], [0], [0], [1], [0, 0, 1, 1], [], []>} : vector<80x32xf32>, vector<32x32xf32>, vector<80x32xf32> -> vector<80x32xf32>
    %c3_318 = arith.constant 3 : index
    %c4_319 = arith.constant 4 : index
    %c0_320 = arith.constant 0 : index
    %c0_321 = arith.constant 0 : index
    %303 = vector.load %arg7[%c3_318, %c4_319, %c0_320, %c0_321] : memref<4x5x32x32xf32, #tpu.memory_space<vmem>>, vector<1x1x32x32xf32>
    %304 = vector.shape_cast %303 : vector<1x1x32x32xf32> to vector<32x32xf32>
    %cst_322 = arith.constant dense<0.000000e+00> : vector<80x32xf32>
    %305 = tpu.matmul %299, %304, %cst_322 {dimension_numbers = #tpu.dot_dimension_numbers<[1], [0], [0], [1], [0, 0, 1, 1], [], []>} : vector<80x32xf32>, vector<32x32xf32>, vector<80x32xf32> -> vector<80x32xf32>
    %306 = arith.addf %297, %302 : vector<80x32xf32>
    %307 = arith.addf %298, %305 : vector<80x32xf32>
    %c3_323 = arith.constant 3 : index
    %c0_324 = arith.constant 0 : index
    %c0_325 = arith.constant 0 : index
    %308 = vector.load %arg8[%c3_323, %c0_324, %c0_325] : memref<4x1x32xf32, #tpu.memory_space<vmem>>, vector<1x1x32xf32>
    %309 = vector.shape_cast %308 : vector<1x1x32xf32> to vector<1x32xf32>
    %310 = vector.broadcast %309 : vector<1x32xf32> to vector<80x32xf32>
    %311 = arith.addf %306, %310 : vector<80x32xf32>
    %312 = math.tanh %311 : vector<80x32xf32>
    %c3_326 = arith.constant 3 : index
    %c0_327 = arith.constant 0 : index
    %c0_328 = arith.constant 0 : index
    %313 = vector.load %arg9[%c3_326, %c0_327, %c0_328] : memref<4x1x32xf32, #tpu.memory_space<vmem>>, vector<1x1x32xf32>
    %314 = vector.shape_cast %313 : vector<1x1x32xf32> to vector<1x32xf32>
    %315 = vector.broadcast %314 : vector<1x32xf32> to vector<80x32xf32>
    %316 = arith.addf %307, %315 : vector<80x32xf32>
    %317 = arith.negf %316 : vector<80x32xf32>
    %318 = math.exp %317 : vector<80x32xf32>
    %cst_329 = arith.constant 1.000000e+00 : f32
    %319 = vector.broadcast %cst_329 : f32 to vector<80x32xf32>
    %320 = arith.addf %319, %318 : vector<80x32xf32>
    %321 = arith.divf %319, %320 : vector<80x32xf32>
    %322 = arith.mulf %312, %321 : vector<80x32xf32>
    %c3_330 = arith.constant 3 : index
    %c0_331 = arith.constant 0 : index
    %c0_332 = arith.constant 0 : index
    %323 = vector.load %arg12[%c3_330, %c0_331, %c0_332] : memref<4x32x32xf32, #tpu.memory_space<vmem>>, vector<1x32x32xf32>
    %324 = vector.shape_cast %323 : vector<1x32x32xf32> to vector<32x32xf32>
    %cst_333 = arith.constant dense<0.000000e+00> : vector<80x32xf32>
    %325 = tpu.matmul %322, %324, %cst_333 {dimension_numbers = #tpu.dot_dimension_numbers<[1], [0], [0], [1], [0, 0, 1, 1], [], []>} : vector<80x32xf32>, vector<32x32xf32>, vector<80x32xf32> -> vector<80x32xf32>
    %c3_334 = arith.constant 3 : index
    %c0_335 = arith.constant 0 : index
    %c0_336 = arith.constant 0 : index
    %326 = vector.load %arg13[%c3_334, %c0_335, %c0_336] : memref<4x1x32xf32, #tpu.memory_space<vmem>>, vector<1x1x32xf32>
    %327 = vector.shape_cast %326 : vector<1x1x32xf32> to vector<1x32xf32>
    %328 = vector.broadcast %327 : vector<1x32xf32> to vector<80x32xf32>
    %329 = arith.addf %325, %328 : vector<80x32xf32>
    %330 = arith.addf %253, %329 : vector<80x32xf32>
    %331 = vector.extract_strided_slice %330 {offsets = [8, 0], sizes = [64, 32], strides = [1, 1]} : vector<80x32xf32> to vector<64x32xf32>
    %332 = vector.broadcast %11 : vector<64x1xf32> to vector<64x32xf32>
    %333 = arith.mulf %331, %332 : vector<64x32xf32>
    %c0_337 = arith.constant 0 : index
    %c0_338 = arith.constant 0 : index
    %334 = vector.load %arg14[%c0_337, %c0_338] : memref<32x4xf32, #tpu.memory_space<vmem>>, vector<32x4xf32>
    %cst_339 = arith.constant dense<0.000000e+00> : vector<64x4xf32>
    %335 = tpu.matmul %333, %334, %cst_339 {dimension_numbers = #tpu.dot_dimension_numbers<[1], [0], [0], [1], [0, 0, 1, 1], [], []>} : vector<64x32xf32>, vector<32x4xf32>, vector<64x4xf32> -> vector<64x4xf32>
    %c0_340 = arith.constant 0 : index
    %c0_341 = arith.constant 0 : index
    %336 = vector.load %arg15[%c0_340, %c0_341] : memref<1x4xf32, #tpu.memory_space<vmem>>, vector<1x4xf32>
    %337 = vector.broadcast %336 : vector<1x4xf32> to vector<64x4xf32>
    %338 = arith.addf %335, %337 : vector<64x4xf32>
    %339 = arith.addf %338, %22 : vector<64x4xf32>
    %340 = vector.broadcast %11 : vector<64x1xf32> to vector<64x4xf32>
    %341 = arith.mulf %339, %340 : vector<64x4xf32>
    %342 = tpu.concatenate %341, %18 in 1 : vector<64x4xf32>, vector<64x4xf32> -> vector<64x8xf32>
    %c8_i32_342 = arith.constant 8 : i32
    %343 = arith.addi %1, %c8_i32_342 : i32
    %c0_343 = arith.constant 0 : index
    %344 = arith.index_cast %343 : i32 to index
    %c0_344 = arith.constant 0 : index
    %345 = vector.load %arg16[%c0_343, %344, %c0_344] : memref<1x80x8xf32, #tpu.memory_space<vmem>>, vector<1x64x8xf32>
    %346 = vector.shape_cast %345 : vector<1x64x8xf32> to vector<64x8xf32>
    %347 = vector.shape_cast %342 : vector<64x8xf32> to vector<1x64x8xf32>
    tpu.vector_store %arg16[%c0_343, %344, %c0_344], %347 {strides = array<i32>} : memref<1x80x8xf32, #tpu.memory_space<vmem>>, vector<1x64x8xf32>,
    return
  }
  func.func @transform_0(%arg0: i32, %arg1: i32) -> (i32, i32, i32) {
    %c0_i32 = arith.constant 0 : i32
    %c0_i32_0 = arith.constant 0 : i32
    %c0_i32_1 = arith.constant 0 : i32
    return %arg0, %c0_i32, %c0_i32_0 : i32, i32, i32
  }
  func.func @transform_1(%arg0: i32, %arg1: i32) -> (i32, i32, i32) {
    %c0_i32 = arith.constant 0 : i32
    %c0_i32_0 = arith.constant 0 : i32
    %c0_i32_1 = arith.constant 0 : i32
    return %arg0, %c0_i32, %c0_i32_0 : i32, i32, i32
  }
  func.func @transform_2(%arg0: i32, %arg1: i32) -> (i32, i32) {
    %c0_i32 = arith.constant 0 : i32
    %c0_i32_0 = arith.constant 0 : i32
    %c0_i32_1 = arith.constant 0 : i32
    return %c0_i32, %c0_i32_0 : i32, i32
  }
  func.func @transform_3(%arg0: i32, %arg1: i32) -> (i32, i32) {
    %c0_i32 = arith.constant 0 : i32
    %c0_i32_0 = arith.constant 0 : i32
    %c0_i32_1 = arith.constant 0 : i32
    return %c0_i32, %c0_i32_0 : i32, i32
  }
  func.func @transform_4(%arg0: i32, %arg1: i32) -> (i32, i32, i32, i32) {
    %c0_i32 = arith.constant 0 : i32
    %c0_i32_0 = arith.constant 0 : i32
    %c0_i32_1 = arith.constant 0 : i32
    %c0_i32_2 = arith.constant 0 : i32
    %c0_i32_3 = arith.constant 0 : i32
    return %c0_i32, %c0_i32_0, %c0_i32_1, %c0_i32_2 : i32, i32, i32, i32
  }
  func.func @transform_5(%arg0: i32, %arg1: i32) -> (i32, i32, i32, i32) {
    %c0_i32 = arith.constant 0 : i32
    %c0_i32_0 = arith.constant 0 : i32
    %c0_i32_1 = arith.constant 0 : i32
    %c0_i32_2 = arith.constant 0 : i32
    %c0_i32_3 = arith.constant 0 : i32
    return %c0_i32, %c0_i32_0, %c0_i32_1, %c0_i32_2 : i32, i32, i32, i32
  }
  func.func @transform_6(%arg0: i32, %arg1: i32) -> (i32, i32, i32) {
    %c0_i32 = arith.constant 0 : i32
    %c0_i32_0 = arith.constant 0 : i32
    %c0_i32_1 = arith.constant 0 : i32
    %c0_i32_2 = arith.constant 0 : i32
    return %c0_i32, %c0_i32_0, %c0_i32_1 : i32, i32, i32
  }
  func.func @transform_7(%arg0: i32, %arg1: i32) -> (i32, i32, i32) {
    %c0_i32 = arith.constant 0 : i32
    %c0_i32_0 = arith.constant 0 : i32
    %c0_i32_1 = arith.constant 0 : i32
    %c0_i32_2 = arith.constant 0 : i32
    return %c0_i32, %c0_i32_0, %c0_i32_1 : i32, i32, i32
  }
  func.func @transform_8(%arg0: i32, %arg1: i32) -> (i32, i32, i32) {
    %c0_i32 = arith.constant 0 : i32
    %c0_i32_0 = arith.constant 0 : i32
    %c0_i32_1 = arith.constant 0 : i32
    %c0_i32_2 = arith.constant 0 : i32
    return %c0_i32, %c0_i32_0, %c0_i32_1 : i32, i32, i32
  }
  func.func @transform_9(%arg0: i32, %arg1: i32) -> (i32, i32, i32) {
    %c0_i32 = arith.constant 0 : i32
    %c0_i32_0 = arith.constant 0 : i32
    %c0_i32_1 = arith.constant 0 : i32
    %c0_i32_2 = arith.constant 0 : i32
    return %c0_i32, %c0_i32_0, %c0_i32_1 : i32, i32, i32
  }
  func.func @transform_10(%arg0: i32, %arg1: i32) -> (i32, i32, i32) {
    %c0_i32 = arith.constant 0 : i32
    %c0_i32_0 = arith.constant 0 : i32
    %c0_i32_1 = arith.constant 0 : i32
    %c0_i32_2 = arith.constant 0 : i32
    return %c0_i32, %c0_i32_0, %c0_i32_1 : i32, i32, i32
  }
  func.func @transform_11(%arg0: i32, %arg1: i32) -> (i32, i32, i32) {
    %c0_i32 = arith.constant 0 : i32
    %c0_i32_0 = arith.constant 0 : i32
    %c0_i32_1 = arith.constant 0 : i32
    %c0_i32_2 = arith.constant 0 : i32
    return %c0_i32, %c0_i32_0, %c0_i32_1 : i32, i32, i32
  }
  func.func @transform_12(%arg0: i32, %arg1: i32) -> (i32, i32) {
    %c0_i32 = arith.constant 0 : i32
    %c0_i32_0 = arith.constant 0 : i32
    %c0_i32_1 = arith.constant 0 : i32
    return %c0_i32, %c0_i32_0 : i32, i32
  }
  func.func @transform_13(%arg0: i32, %arg1: i32) -> (i32, i32) {
    %c0_i32 = arith.constant 0 : i32
    %c0_i32_0 = arith.constant 0 : i32
    %c0_i32_1 = arith.constant 0 : i32
    return %c0_i32, %c0_i32_0 : i32, i32
  }
  func.func @transform_14(%arg0: i32, %arg1: i32) -> (i32, i32, i32) {
    %c0_i32 = arith.constant 0 : i32
    %c0_i32_0 = arith.constant 0 : i32
    %c0_i32_1 = arith.constant 0 : i32
    return %arg0, %c0_i32, %c0_i32_0 : i32, i32, i32
  }
}

module attributes {stable_mosaic.version = 11 : i64} {
  func.func @_coupling_kernel(%arg0: i32, %arg1: i32, %arg2: memref<1x80x8xf32, #tpu.memory_space<vmem>>, %arg3: memref<1x80x1xf32, #tpu.memory_space<vmem>>, %arg4: memref<4x32xf32, #tpu.memory_space<vmem>>, %arg5: memref<1x32xf32, #tpu.memory_space<vmem>>, %arg6: memref<4x5x32x32xf32, #tpu.memory_space<vmem>>, %arg7: memref<4x5x32x32xf32, #tpu.memory_space<vmem>>, %arg8: memref<4x1x32xf32, #tpu.memory_space<vmem>>, %arg9: memref<4x1x32xf32, #tpu.memory_space<vmem>>, %arg10: memref<4x32x32xf32, #tpu.memory_space<vmem>>, %arg11: memref<4x1x32xf32, #tpu.memory_space<vmem>>, %arg12: memref<4x32x32xf32, #tpu.memory_space<vmem>>, %arg13: memref<4x1x32xf32, #tpu.memory_space<vmem>>, %arg14: memref<32x4xf32, #tpu.memory_space<vmem>>, %arg15: memref<1x4xf32, #tpu.memory_space<vmem>>, %arg16: memref<1x80x8xf32, #tpu.memory_space<vmem>>, %arg17: memref<112x32xf32, #tpu.memory_space<vmem>>) attributes {dimension_semantics = [#tpu.dimension_semantics<parallel>, #tpu.dimension_semantics<arbitrary>], iteration_bounds = array<i64: 2, 1>, scalar_prefetch = 0 : i64, scratch_operands = 1 : i64, tpu.core_type = #tpu.core_type<tc>, window_params = [{transform_indices = @transform_0, window_bounds = array<i64: 1, 80, 8>}, {transform_indices = @transform_1, window_bounds = array<i64: 1, 80, 1>}, {pipeline_mode = #tpu.pipeline_mode<synchronous>, transform_indices = @transform_2, window_bounds = array<i64: 4, 32>}, {pipeline_mode = #tpu.pipeline_mode<synchronous>, transform_indices = @transform_3, window_bounds = array<i64: 1, 32>}, {pipeline_mode = #tpu.pipeline_mode<synchronous>, transform_indices = @transform_4, window_bounds = array<i64: 4, 5, 32, 32>}, {pipeline_mode = #tpu.pipeline_mode<synchronous>, transform_indices = @transform_5, window_bounds = array<i64: 4, 5, 32, 32>}, {pipeline_mode = #tpu.pipeline_mode<synchronous>, transform_indices = @transform_6, window_bounds = array<i64: 4, 1, 32>}, {pipeline_mode = #tpu.pipeline_mode<synchronous>, transform_indices = @transform_7, window_bounds = array<i64: 4, 1, 32>}, {pipeline_mode = #tpu.pipeline_mode<synchronous>, transform_indices = @transform_8, window_bounds = array<i64: 4, 32, 32>}, {pipeline_mode = #tpu.pipeline_mode<synchronous>, transform_indices = @transform_9, window_bounds = array<i64: 4, 1, 32>}, {pipeline_mode = #tpu.pipeline_mode<synchronous>, transform_indices = @transform_10, window_bounds = array<i64: 4, 32, 32>}, {pipeline_mode = #tpu.pipeline_mode<synchronous>, transform_indices = @transform_11, window_bounds = array<i64: 4, 1, 32>}, {pipeline_mode = #tpu.pipeline_mode<synchronous>, transform_indices = @transform_12, window_bounds = array<i64: 32, 4>}, {pipeline_mode = #tpu.pipeline_mode<synchronous>, transform_indices = @transform_13, window_bounds = array<i64: 1, 4>}, {transform_indices = @transform_14, window_bounds = array<i64: 1, 80, 8>}]} {
    %c64_i32 = arith.constant 64 : i32
    %0 = arith.muli %arg1, %c64_i32 : i32
    %1 = tpu.assume_multiple %0, 64 : i32
    %c0_i32 = arith.constant 0 : i32
    %2 = arith.cmpi eq, %arg1, %c0_i32 : i32
    %3 = arith.extui %2 : i1 to i32
    %c0_i32_0 = arith.constant 0 : i32
    %4 = arith.cmpi ne, %3, %c0_i32_0 : i32
    scf.if %4 {
      %cst_345 = arith.constant 0.000000e+00 : f32
      %348 = vector.broadcast %cst_345 : f32 to vector<8x8xf32>
      %c0_346 = arith.constant 0 : index
      %c0_347 = arith.constant 0 : index
      %c0_348 = arith.constant 0 : index
      %349 = vector.load %arg16[%c0_346, %c0_347, %c0_348] : memref<1x80x8xf32, #tpu.memory_space<vmem>>, vector<1x8x8xf32>
      %350 = vector.shape_cast %349 : vector<1x8x8xf32> to vector<8x8xf32>
      %351 = vector.shape_cast %348 : vector<8x8xf32> to vector<1x8x8xf32>
      tpu.vector_store %arg16[%c0_346, %c0_347, %c0_348], %351 {strides = array<i32>} : memref<1x80x8xf32, #tpu.memory_space<vmem>>, vector<1x8x8xf32>,
      %cst_349 = arith.constant 0.000000e+00 : f32
      %352 = vector.broadcast %cst_349 : f32 to vector<8x8xf32>
      %c0_350 = arith.constant 0 : index
      %c72 = arith.constant 72 : index
      %c0_351 = arith.constant 0 : index
      %353 = vector.load %arg16[%c0_350, %c72, %c0_351] : memref<1x80x8xf32, #tpu.memory_space<vmem>>, vector<1x8x8xf32>
      %354 = vector.shape_cast %353 : vector<1x8x8xf32> to vector<8x8xf32>
      %355 = vector.shape_cast %352 : vector<8x8xf32> to vector<1x8x8xf32>
      tpu.vector_store %arg16[%c0_350, %c72, %c0_351], %355 {strides = array<i32>} : memref<1x80x8xf32, #tpu.memory_space<vmem>>, vector<1x8x8xf32>,
    } else {
    }
    %c0 = arith.constant 0 : index
    %5 = arith.index_cast %1 : i32 to index
    %c0_1 = arith.constant 0 : index
    %6 = vector.load %arg3[%c0, %5, %c0_1] : memref<1x80x1xf32, #tpu.memory_space<vmem>>, vector<1x80x1xf32>
    %7 = vector.shape_cast %6 : vector<1x80x1xf32> to vector<80x1xf32>
    %c8_i32 = arith.constant 8 : i32
    %8 = arith.addi %1, %c8_i32 : i32
    %c0_2 = arith.constant 0 : index
    %9 = arith.index_cast %8 : i32 to index
    %c0_3 = arith.constant 0 : index
    %10 = vector.load %arg3[%c0_2, %9, %c0_3] : memref<1x80x1xf32, #tpu.memory_space<vmem>>, vector<1x64x1xf32>
    %11 = vector.shape_cast %10 : vector<1x64x1xf32> to vector<64x1xf32>
    %c0_4 = arith.constant 0 : index
    %12 = arith.index_cast %1 : i32 to index
    %c0_5 = arith.constant 0 : index
    %13 = vector.load %arg2[%c0_4, %12, %c0_5] : memref<1x80x8xf32, #tpu.memory_space<vmem>>, vector<1x80x4xf32>
    %14 = vector.shape_cast %13 : vector<1x80x4xf32> to vector<80x4xf32>
    %c8_i32_6 = arith.constant 8 : i32
    %15 = arith.addi %1, %c8_i32_6 : i32
    %c0_7 = arith.constant 0 : index
    %16 = arith.index_cast %15 : i32 to index
    %c0_8 = arith.constant 0 : index
    %17 = vector.load %arg2[%c0_7, %16, %c0_8] : memref<1x80x8xf32, #tpu.memory_space<vmem>>, vector<1x64x4xf32>
    %18 = vector.shape_cast %17 : vector<1x64x4xf32> to vector<64x4xf32>
    %c8_i32_9 = arith.constant 8 : i32
    %19 = arith.addi %1, %c8_i32_9 : i32
    %c0_10 = arith.constant 0 : index
    %20 = arith.index_cast %19 : i32 to index
    %c4 = arith.constant 4 : index
    %21 = vector.load %arg2[%c0_10, %20, %c4] : memref<1x80x8xf32, #tpu.memory_space<vmem>>, vector<1x64x4xf32>
    %22 = vector.shape_cast %21 : vector<1x64x4xf32> to vector<64x4xf32>
    %c0_11 = arith.constant 0 : index
    %c0_12 = arith.constant 0 : index
    %23 = vector.load %arg4[%c0_11, %c0_12] : memref<4x32xf32, #tpu.memory_space<vmem>>, vector<4x32xf32>
    %cst = arith.constant dense<0.000000e+00> : vector<80x32xf32>
    %24 = tpu.matmul %14, %23, %cst {dimension_numbers = #tpu.dot_dimension_numbers<[1], [0], [0], [1], [0, 0, 1, 1], [], []>} : vector<80x4xf32>, vector<4x32xf32>, vector<80x32xf32> -> vector<80x32xf32>
    %c0_13 = arith.constant 0 : index
    %c0_14 = arith.constant 0 : index
    %25 = vector.load %arg5[%c0_13, %c0_14] : memref<1x32xf32, #tpu.memory_space<vmem>>, vector<1x32xf32>
    %26 = vector.broadcast %25 : vector<1x32xf32> to vector<80x32xf32>
    %27 = arith.addf %24, %26 : vector<80x32xf32>
    %28 = vector.broadcast %7 : vector<80x1xf32> to vector<80x32xf32>
    %29 = arith.mulf %27, %28 : vector<80x32xf32>
    %cst_15 = arith.constant 0.000000e+00 : f32
    %30 = vector.broadcast %cst_15 : f32 to vector<16x32xf32>
    %c0_16 = arith.constant 0 : index
    %c0_17 = arith.constant 0 : index
    %31 = vector.load %arg17[%c0_16, %c0_17] : memref<112x32xf32, #tpu.memory_space<vmem>>, vector<16x32xf32>
    tpu.vector_store %arg17[%c0_16, %c0_17], %30 {strides = array<i32>} : memref<112x32xf32, #tpu.memory_space<vmem>>, vector<16x32xf32>,
    %cst_18 = arith.constant 0.000000e+00 : f32
    %32 = vector.broadcast %cst_18 : f32 to vector<16x32xf32>
    %c96 = arith.constant 96 : index
    %c0_19 = arith.constant 0 : index
    %33 = vector.load %arg17[%c96, %c0_19] : memref<112x32xf32, #tpu.memory_space<vmem>>, vector<16x32xf32>
    tpu.vector_store %arg17[%c96, %c0_19], %32 {strides = array<i32>} : memref<112x32xf32, #tpu.memory_space<vmem>>, vector<16x32xf32>,
    %c16 = arith.constant 16 : index
    %c0_20 = arith.constant 0 : index
    %34 = vector.load %arg17[%c16, %c0_20] : memref<112x32xf32, #tpu.memory_space<vmem>>, vector<80x32xf32>
    tpu.vector_store %arg17[%c16, %c0_20], %29 {strides = array<i32>} : memref<112x32xf32, #tpu.memory_space<vmem>>, vector<80x32xf32>,
    %c14 = arith.constant 14 : index
    %c0_21 = arith.constant 0 : index
    %35 = vector.load %arg17[%c14, %c0_21] : memref<112x32xf32, #tpu.memory_space<vmem>>, vector<80x32xf32>
    %c0_22 = arith.constant 0 : index
    %c0_23 = arith.constant 0 : index
    %c0_24 = arith.constant 0 : index
    %c0_25 = arith.constant 0 : index
    %36 = vector.load %arg6[%c0_22, %c0_23, %c0_24, %c0_25] : memref<4x5x32x32xf32, #tpu.memory_space<vmem>>, vector<1x1x32x32xf32>
    %37 = vector.shape_cast %36 : vector<1x1x32x32xf32> to vector<32x32xf32>
    %cst_26 = arith.constant dense<0.000000e+00> : vector<80x32xf32>
    %38 = tpu.matmul %35, %37, %cst_26 {dimension_numbers = #tpu.dot_dimension_numbers<[1], [0], [0], [1], [0, 0, 1, 1], [], []>} : vector<80x32xf32>, vector<32x32xf32>, vector<80x32xf32> -> vector<80x32xf32>
    %c0_27 = arith.constant 0 : index
    %c0_28 = arith.constant 0 : index
    %c0_29 = arith.constant 0 : index
    %c0_30 = arith.constant 0 : index
    %39 = vector.load %arg7[%c0_27, %c0_28, %c0_29, %c0_30] : memref<4x5x32x32xf32, #tpu.memory_space<vmem>>, vector<1x1x32x32xf32>
    %40 = vector.shape_cast %39 : vector<1x1x32x32xf32> to vector<32x32xf32>
    %cst_31 = arith.constant dense<0.000000e+00> : vector<80x32xf32>
    %41 = tpu.matmul %35, %40, %cst_31 {dimension_numbers = #tpu.dot_dimension_numbers<[1], [0], [0], [1], [0, 0, 1, 1], [], []>} : vector<80x32xf32>, vector<32x32xf32>, vector<80x32xf32> -> vector<80x32xf32>
    %c15 = arith.constant 15 : index
    %c0_32 = arith.constant 0 : index
    %42 = vector.load %arg17[%c15, %c0_32] : memref<112x32xf32, #tpu.memory_space<vmem>>, vector<80x32xf32>
    %c0_33 = arith.constant 0 : index
    %c1 = arith.constant 1 : index
    %c0_34 = arith.constant 0 : index
    %c0_35 = arith.constant 0 : index
    %43 = vector.load %arg6[%c0_33, %c1, %c0_34, %c0_35] : memref<4x5x32x32xf32, #tpu.memory_space<vmem>>, vector<1x1x32x32xf32>
    %44 = vector.shape_cast %43 : vector<1x1x32x32xf32> to vector<32x32xf32>
    %cst_36 = arith.constant dense<0.000000e+00> : vector<80x32xf32>
    %45 = tpu.matmul %42, %44, %cst_36 {dimension_numbers = #tpu.dot_dimension_numbers<[1], [0], [0], [1], [0, 0, 1, 1], [], []>} : vector<80x32xf32>, vector<32x32xf32>, vector<80x32xf32> -> vector<80x32xf32>
    %c0_37 = arith.constant 0 : index
    %c1_38 = arith.constant 1 : index
    %c0_39 = arith.constant 0 : index
    %c0_40 = arith.constant 0 : index
    %46 = vector.load %arg7[%c0_37, %c1_38, %c0_39, %c0_40] : memref<4x5x32x32xf32, #tpu.memory_space<vmem>>, vector<1x1x32x32xf32>
    %47 = vector.shape_cast %46 : vector<1x1x32x32xf32> to vector<32x32xf32>
    %cst_41 = arith.constant dense<0.000000e+00> : vector<80x32xf32>
    %48 = tpu.matmul %42, %47, %cst_41 {dimension_numbers = #tpu.dot_dimension_numbers<[1], [0], [0], [1], [0, 0, 1, 1], [], []>} : vector<80x32xf32>, vector<32x32xf32>, vector<80x32xf32> -> vector<80x32xf32>
    %49 = arith.addf %38, %45 : vector<80x32xf32>
    %50 = arith.addf %41, %48 : vector<80x32xf32>
    %c16_42 = arith.constant 16 : index
    %c0_43 = arith.constant 0 : index
    %51 = vector.load %arg17[%c16_42, %c0_43] : memref<112x32xf32, #tpu.memory_space<vmem>>, vector<80x32xf32>
    %c0_44 = arith.constant 0 : index
    %c2 = arith.constant 2 : index
    %c0_45 = arith.constant 0 : index
    %c0_46 = arith.constant 0 : index
    %52 = vector.load %arg6[%c0_44, %c2, %c0_45, %c0_46] : memref<4x5x32x32xf32, #tpu.memory_space<vmem>>, vector<1x1x32x32xf32>
    %53 = vector.shape_cast %52 : vector<1x1x32x32xf32> to vector<32x32xf32>
    %cst_47 = arith.constant dense<0.000000e+00> : vector<80x32xf32>
    %54 = tpu.matmul %51, %53, %cst_47 {dimension_numbers = #tpu.dot_dimension_numbers<[1], [0], [0], [1], [0, 0, 1, 1], [], []>} : vector<80x32xf32>, vector<32x32xf32>, vector<80x32xf32> -> vector<80x32xf32>
    %c0_48 = arith.constant 0 : index
    %c2_49 = arith.constant 2 : index
    %c0_50 = arith.constant 0 : index
    %c0_51 = arith.constant 0 : index
    %55 = vector.load %arg7[%c0_48, %c2_49, %c0_50, %c0_51] : memref<4x5x32x32xf32, #tpu.memory_space<vmem>>, vector<1x1x32x32xf32>
    %56 = vector.shape_cast %55 : vector<1x1x32x32xf32> to vector<32x32xf32>
    %cst_52 = arith.constant dense<0.000000e+00> : vector<80x32xf32>
    %57 = tpu.matmul %51, %56, %cst_52 {dimension_numbers = #tpu.dot_dimension_numbers<[1], [0], [0], [1], [0, 0, 1, 1], [], []>} : vector<80x32xf32>, vector<32x32xf32>, vector<80x32xf32> -> vector<80x32xf32>
    %58 = arith.addf %49, %54 : vector<80x32xf32>
    %59 = arith.addf %50, %57 : vector<80x32xf32>
    %c17 = arith.constant 17 : index
    %c0_53 = arith.constant 0 : index
    %60 = vector.load %arg17[%c17, %c0_53] : memref<112x32xf32, #tpu.memory_space<vmem>>, vector<80x32xf32>
    %c0_54 = arith.constant 0 : index
    %c3 = arith.constant 3 : index
    %c0_55 = arith.constant 0 : index
    %c0_56 = arith.constant 0 : index
    %61 = vector.load %arg6[%c0_54, %c3, %c0_55, %c0_56] : memref<4x5x32x32xf32, #tpu.memory_space<vmem>>, vector<1x1x32x32xf32>
    %62 = vector.shape_cast %61 : vector<1x1x32x32xf32> to vector<32x32xf32>
    %cst_57 = arith.constant dense<0.000000e+00> : vector<80x32xf32>
    %63 = tpu.matmul %60, %62, %cst_57 {dimension_numbers = #tpu.dot_dimension_numbers<[1], [0], [0], [1], [0, 0, 1, 1], [], []>} : vector<80x32xf32>, vector<32x32xf32>, vector<80x32xf32> -> vector<80x32xf32>
    %c0_58 = arith.constant 0 : index
    %c3_59 = arith.constant 3 : index
    %c0_60 = arith.constant 0 : index
    %c0_61 = arith.constant 0 : index
    %64 = vector.load %arg7[%c0_58, %c3_59, %c0_60, %c0_61] : memref<4x5x32x32xf32, #tpu.memory_space<vmem>>, vector<1x1x32x32xf32>
    %65 = vector.shape_cast %64 : vector<1x1x32x32xf32> to vector<32x32xf32>
    %cst_62 = arith.constant dense<0.000000e+00> : vector<80x32xf32>
    %66 = tpu.matmul %60, %65, %cst_62 {dimension_numbers = #tpu.dot_dimension_numbers<[1], [0], [0], [1], [0, 0, 1, 1], [], []>} : vector<80x32xf32>, vector<32x32xf32>, vector<80x32xf32> -> vector<80x32xf32>
    %67 = arith.addf %58, %63 : vector<80x32xf32>
    %68 = arith.addf %59, %66 : vector<80x32xf32>
    %c18 = arith.constant 18 : index
    %c0_63 = arith.constant 0 : index
    %69 = vector.load %arg17[%c18, %c0_63] : memref<112x32xf32, #tpu.memory_space<vmem>>, vector<80x32xf32>
    %c0_64 = arith.constant 0 : index
    %c4_65 = arith.constant 4 : index
    %c0_66 = arith.constant 0 : index
    %c0_67 = arith.constant 0 : index
    %70 = vector.load %arg6[%c0_64, %c4_65, %c0_66, %c0_67] : memref<4x5x32x32xf32, #tpu.memory_space<vmem>>, vector<1x1x32x32xf32>
    %71 = vector.shape_cast %70 : vector<1x1x32x32xf32> to vector<32x32xf32>
    %cst_68 = arith.constant dense<0.000000e+00> : vector<80x32xf32>
    %72 = tpu.matmul %69, %71, %cst_68 {dimension_numbers = #tpu.dot_dimension_numbers<[1], [0], [0], [1], [0, 0, 1, 1], [], []>} : vector<80x32xf32>, vector<32x32xf32>, vector<80x32xf32> -> vector<80x32xf32>
    %c0_69 = arith.constant 0 : index
    %c4_70 = arith.constant 4 : index
    %c0_71 = arith.constant 0 : index
    %c0_72 = arith.constant 0 : index
    %73 = vector.load %arg7[%c0_69, %c4_70, %c0_71, %c0_72] : memref<4x5x32x32xf32, #tpu.memory_space<vmem>>, vector<1x1x32x32xf32>
    %74 = vector.shape_cast %73 : vector<1x1x32x32xf32> to vector<32x32xf32>
    %cst_73 = arith.constant dense<0.000000e+00> : vector<80x32xf32>
    %75 = tpu.matmul %69, %74, %cst_73 {dimension_numbers = #tpu.dot_dimension_numbers<[1], [0], [0], [1], [0, 0, 1, 1], [], []>} : vector<80x32xf32>, vector<32x32xf32>, vector<80x32xf32> -> vector<80x32xf32>
    %76 = arith.addf %67, %72 : vector<80x32xf32>
    %77 = arith.addf %68, %75 : vector<80x32xf32>
    %c0_74 = arith.constant 0 : index
    %c0_75 = arith.constant 0 : index
    %c0_76 = arith.constant 0 : index
    %78 = vector.load %arg8[%c0_74, %c0_75, %c0_76] : memref<4x1x32xf32, #tpu.memory_space<vmem>>, vector<1x1x32xf32>
    %79 = vector.shape_cast %78 : vector<1x1x32xf32> to vector<1x32xf32>
    %80 = vector.broadcast %79 : vector<1x32xf32> to vector<80x32xf32>
    %81 = arith.addf %76, %80 : vector<80x32xf32>
    %82 = math.tanh %81 : vector<80x32xf32>
    %c0_77 = arith.constant 0 : index
    %c0_78 = arith.constant 0 : index
    %c0_79 = arith.constant 0 : index
    %83 = vector.load %arg9[%c0_77, %c0_78, %c0_79] : memref<4x1x32xf32, #tpu.memory_space<vmem>>, vector<1x1x32xf32>
    %84 = vector.shape_cast %83 : vector<1x1x32xf32> to vector<1x32xf32>
    %85 = vector.broadcast %84 : vector<1x32xf32> to vector<80x32xf32>
    %86 = arith.addf %77, %85 : vector<80x32xf32>
    %87 = arith.negf %86 : vector<80x32xf32>
    %88 = math.exp %87 : vector<80x32xf32>
    %cst_80 = arith.constant 1.000000e+00 : f32
    %89 = vector.broadcast %cst_80 : f32 to vector<80x32xf32>
    %90 = arith.addf %89, %88 : vector<80x32xf32>
    %91 = arith.divf %89, %90 : vector<80x32xf32>
    %92 = arith.mulf %82, %91 : vector<80x32xf32>
    %c0_81 = arith.constant 0 : index
    %c0_82 = arith.constant 0 : index
    %c0_83 = arith.constant 0 : index
    %93 = vector.load %arg12[%c0_81, %c0_82, %c0_83] : memref<4x32x32xf32, #tpu.memory_space<vmem>>, vector<1x32x32xf32>
    %94 = vector.shape_cast %93 : vector<1x32x32xf32> to vector<32x32xf32>
    %cst_84 = arith.constant dense<0.000000e+00> : vector<80x32xf32>
    %95 = tpu.matmul %92, %94, %cst_84 {dimension_numbers = #tpu.dot_dimension_numbers<[1], [0], [0], [1], [0, 0, 1, 1], [], []>} : vector<80x32xf32>, vector<32x32xf32>, vector<80x32xf32> -> vector<80x32xf32>
    %c0_85 = arith.constant 0 : index
    %c0_86 = arith.constant 0 : index
    %c0_87 = arith.constant 0 : index
    %96 = vector.load %arg13[%c0_85, %c0_86, %c0_87] : memref<4x1x32xf32, #tpu.memory_space<vmem>>, vector<1x1x32xf32>
    %97 = vector.shape_cast %96 : vector<1x1x32xf32> to vector<1x32xf32>
    %98 = vector.broadcast %97 : vector<1x32xf32> to vector<80x32xf32>
    %99 = arith.addf %95, %98 : vector<80x32xf32>
    %c0_88 = arith.constant 0 : index
    %c0_89 = arith.constant 0 : index
    %c0_90 = arith.constant 0 : index
    %100 = vector.load %arg10[%c0_88, %c0_89, %c0_90] : memref<4x32x32xf32, #tpu.memory_space<vmem>>, vector<1x32x32xf32>
    %101 = vector.shape_cast %100 : vector<1x32x32xf32> to vector<32x32xf32>
    %cst_91 = arith.constant dense<0.000000e+00> : vector<80x32xf32>
    %102 = tpu.matmul %92, %101, %cst_91 {dimension_numbers = #tpu.dot_dimension_numbers<[1], [0], [0], [1], [0, 0, 1, 1], [], []>} : vector<80x32xf32>, vector<32x32xf32>, vector<80x32xf32> -> vector<80x32xf32>
    %c0_92 = arith.constant 0 : index
    %c0_93 = arith.constant 0 : index
    %c0_94 = arith.constant 0 : index
    %103 = vector.load %arg11[%c0_92, %c0_93, %c0_94] : memref<4x1x32xf32, #tpu.memory_space<vmem>>, vector<1x1x32xf32>
    %104 = vector.shape_cast %103 : vector<1x1x32xf32> to vector<1x32xf32>
    %105 = vector.broadcast %104 : vector<1x32xf32> to vector<80x32xf32>
    %106 = arith.addf %102, %105 : vector<80x32xf32>
    %107 = arith.addf %29, %106 : vector<80x32xf32>
    %108 = vector.broadcast %7 : vector<80x1xf32> to vector<80x32xf32>
    %109 = arith.mulf %107, %108 : vector<80x32xf32>
    %c16_95 = arith.constant 16 : index
    %c0_96 = arith.constant 0 : index
    %110 = vector.load %arg17[%c16_95, %c0_96] : memref<112x32xf32, #tpu.memory_space<vmem>>, vector<80x32xf32>
    tpu.vector_store %arg17[%c16_95, %c0_96], %109 {strides = array<i32>} : memref<112x32xf32, #tpu.memory_space<vmem>>, vector<80x32xf32>,
    %c14_97 = arith.constant 14 : index
    %c0_98 = arith.constant 0 : index
    %111 = vector.load %arg17[%c14_97, %c0_98] : memref<112x32xf32, #tpu.memory_space<vmem>>, vector<80x32xf32>
    %c1_99 = arith.constant 1 : index
    %c0_100 = arith.constant 0 : index
    %c0_101 = arith.constant 0 : index
    %c0_102 = arith.constant 0 : index
    %112 = vector.load %arg6[%c1_99, %c0_100, %c0_101, %c0_102] : memref<4x5x32x32xf32, #tpu.memory_space<vmem>>, vector<1x1x32x32xf32>
    %113 = vector.shape_cast %112 : vector<1x1x32x32xf32> to vector<32x32xf32>
    %cst_103 = arith.constant dense<0.000000e+00> : vector<80x32xf32>
    %114 = tpu.matmul %111, %113, %cst_103 {dimension_numbers = #tpu.dot_dimension_numbers<[1], [0], [0], [1], [0, 0, 1, 1], [], []>} : vector<80x32xf32>, vector<32x32xf32>, vector<80x32xf32> -> vector<80x32xf32>
    %c1_104 = arith.constant 1 : index
    %c0_105 = arith.constant 0 : index
    %c0_106 = arith.constant 0 : index
    %c0_107 = arith.constant 0 : index
    %115 = vector.load %arg7[%c1_104, %c0_105, %c0_106, %c0_107] : memref<4x5x32x32xf32, #tpu.memory_space<vmem>>, vector<1x1x32x32xf32>
    %116 = vector.shape_cast %115 : vector<1x1x32x32xf32> to vector<32x32xf32>
    %cst_108 = arith.constant dense<0.000000e+00> : vector<80x32xf32>
    %117 = tpu.matmul %111, %116, %cst_108 {dimension_numbers = #tpu.dot_dimension_numbers<[1], [0], [0], [1], [0, 0, 1, 1], [], []>} : vector<80x32xf32>, vector<32x32xf32>, vector<80x32xf32> -> vector<80x32xf32>
    %c15_109 = arith.constant 15 : index
    %c0_110 = arith.constant 0 : index
    %118 = vector.load %arg17[%c15_109, %c0_110] : memref<112x32xf32, #tpu.memory_space<vmem>>, vector<80x32xf32>
    %c1_111 = arith.constant 1 : index
    %c1_112 = arith.constant 1 : index
    %c0_113 = arith.constant 0 : index
    %c0_114 = arith.constant 0 : index
    %119 = vector.load %arg6[%c1_111, %c1_112, %c0_113, %c0_114] : memref<4x5x32x32xf32, #tpu.memory_space<vmem>>, vector<1x1x32x32xf32>
    %120 = vector.shape_cast %119 : vector<1x1x32x32xf32> to vector<32x32xf32>
    %cst_115 = arith.constant dense<0.000000e+00> : vector<80x32xf32>
    %121 = tpu.matmul %118, %120, %cst_115 {dimension_numbers = #tpu.dot_dimension_numbers<[1], [0], [0], [1], [0, 0, 1, 1], [], []>} : vector<80x32xf32>, vector<32x32xf32>, vector<80x32xf32> -> vector<80x32xf32>
    %c1_116 = arith.constant 1 : index
    %c1_117 = arith.constant 1 : index
    %c0_118 = arith.constant 0 : index
    %c0_119 = arith.constant 0 : index
    %122 = vector.load %arg7[%c1_116, %c1_117, %c0_118, %c0_119] : memref<4x5x32x32xf32, #tpu.memory_space<vmem>>, vector<1x1x32x32xf32>
    %123 = vector.shape_cast %122 : vector<1x1x32x32xf32> to vector<32x32xf32>
    %cst_120 = arith.constant dense<0.000000e+00> : vector<80x32xf32>
    %124 = tpu.matmul %118, %123, %cst_120 {dimension_numbers = #tpu.dot_dimension_numbers<[1], [0], [0], [1], [0, 0, 1, 1], [], []>} : vector<80x32xf32>, vector<32x32xf32>, vector<80x32xf32> -> vector<80x32xf32>
    %125 = arith.addf %114, %121 : vector<80x32xf32>
    %126 = arith.addf %117, %124 : vector<80x32xf32>
    %c16_121 = arith.constant 16 : index
    %c0_122 = arith.constant 0 : index
    %127 = vector.load %arg17[%c16_121, %c0_122] : memref<112x32xf32, #tpu.memory_space<vmem>>, vector<80x32xf32>
    %c1_123 = arith.constant 1 : index
    %c2_124 = arith.constant 2 : index
    %c0_125 = arith.constant 0 : index
    %c0_126 = arith.constant 0 : index
    %128 = vector.load %arg6[%c1_123, %c2_124, %c0_125, %c0_126] : memref<4x5x32x32xf32, #tpu.memory_space<vmem>>, vector<1x1x32x32xf32>
    %129 = vector.shape_cast %128 : vector<1x1x32x32xf32> to vector<32x32xf32>
    %cst_127 = arith.constant dense<0.000000e+00> : vector<80x32xf32>
    %130 = tpu.matmul %127, %129, %cst_127 {dimension_numbers = #tpu.dot_dimension_numbers<[1], [0], [0], [1], [0, 0, 1, 1], [], []>} : vector<80x32xf32>, vector<32x32xf32>, vector<80x32xf32> -> vector<80x32xf32>
    %c1_128 = arith.constant 1 : index
    %c2_129 = arith.constant 2 : index
    %c0_130 = arith.constant 0 : index
    %c0_131 = arith.constant 0 : index
    %131 = vector.load %arg7[%c1_128, %c2_129, %c0_130, %c0_131] : memref<4x5x32x32xf32, #tpu.memory_space<vmem>>, vector<1x1x32x32xf32>
    %132 = vector.shape_cast %131 : vector<1x1x32x32xf32> to vector<32x32xf32>
    %cst_132 = arith.constant dense<0.000000e+00> : vector<80x32xf32>
    %133 = tpu.matmul %127, %132, %cst_132 {dimension_numbers = #tpu.dot_dimension_numbers<[1], [0], [0], [1], [0, 0, 1, 1], [], []>} : vector<80x32xf32>, vector<32x32xf32>, vector<80x32xf32> -> vector<80x32xf32>
    %134 = arith.addf %125, %130 : vector<80x32xf32>
    %135 = arith.addf %126, %133 : vector<80x32xf32>
    %c17_133 = arith.constant 17 : index
    %c0_134 = arith.constant 0 : index
    %136 = vector.load %arg17[%c17_133, %c0_134] : memref<112x32xf32, #tpu.memory_space<vmem>>, vector<80x32xf32>
    %c1_135 = arith.constant 1 : index
    %c3_136 = arith.constant 3 : index
    %c0_137 = arith.constant 0 : index
    %c0_138 = arith.constant 0 : index
    %137 = vector.load %arg6[%c1_135, %c3_136, %c0_137, %c0_138] : memref<4x5x32x32xf32, #tpu.memory_space<vmem>>, vector<1x1x32x32xf32>
    %138 = vector.shape_cast %137 : vector<1x1x32x32xf32> to vector<32x32xf32>
    %cst_139 = arith.constant dense<0.000000e+00> : vector<80x32xf32>
    %139 = tpu.matmul %136, %138, %cst_139 {dimension_numbers = #tpu.dot_dimension_numbers<[1], [0], [0], [1], [0, 0, 1, 1], [], []>} : vector<80x32xf32>, vector<32x32xf32>, vector<80x32xf32> -> vector<80x32xf32>
    %c1_140 = arith.constant 1 : index
    %c3_141 = arith.constant 3 : index
    %c0_142 = arith.constant 0 : index
    %c0_143 = arith.constant 0 : index
    %140 = vector.load %arg7[%c1_140, %c3_141, %c0_142, %c0_143] : memref<4x5x32x32xf32, #tpu.memory_space<vmem>>, vector<1x1x32x32xf32>
    %141 = vector.shape_cast %140 : vector<1x1x32x32xf32> to vector<32x32xf32>
    %cst_144 = arith.constant dense<0.000000e+00> : vector<80x32xf32>
    %142 = tpu.matmul %136, %141, %cst_144 {dimension_numbers = #tpu.dot_dimension_numbers<[1], [0], [0], [1], [0, 0, 1, 1], [], []>} : vector<80x32xf32>, vector<32x32xf32>, vector<80x32xf32> -> vector<80x32xf32>
    %143 = arith.addf %134, %139 : vector<80x32xf32>
    %144 = arith.addf %135, %142 : vector<80x32xf32>
    %c18_145 = arith.constant 18 : index
    %c0_146 = arith.constant 0 : index
    %145 = vector.load %arg17[%c18_145, %c0_146] : memref<112x32xf32, #tpu.memory_space<vmem>>, vector<80x32xf32>
    %c1_147 = arith.constant 1 : index
    %c4_148 = arith.constant 4 : index
    %c0_149 = arith.constant 0 : index
    %c0_150 = arith.constant 0 : index
    %146 = vector.load %arg6[%c1_147, %c4_148, %c0_149, %c0_150] : memref<4x5x32x32xf32, #tpu.memory_space<vmem>>, vector<1x1x32x32xf32>
    %147 = vector.shape_cast %146 : vector<1x1x32x32xf32> to vector<32x32xf32>
    %cst_151 = arith.constant dense<0.000000e+00> : vector<80x32xf32>
    %148 = tpu.matmul %145, %147, %cst_151 {dimension_numbers = #tpu.dot_dimension_numbers<[1], [0], [0], [1], [0, 0, 1, 1], [], []>} : vector<80x32xf32>, vector<32x32xf32>, vector<80x32xf32> -> vector<80x32xf32>
    %c1_152 = arith.constant 1 : index
    %c4_153 = arith.constant 4 : index
    %c0_154 = arith.constant 0 : index
    %c0_155 = arith.constant 0 : index
    %149 = vector.load %arg7[%c1_152, %c4_153, %c0_154, %c0_155] : memref<4x5x32x32xf32, #tpu.memory_space<vmem>>, vector<1x1x32x32xf32>
    %150 = vector.shape_cast %149 : vector<1x1x32x32xf32> to vector<32x32xf32>
    %cst_156 = arith.constant dense<0.000000e+00> : vector<80x32xf32>
    %151 = tpu.matmul %145, %150, %cst_156 {dimension_numbers = #tpu.dot_dimension_numbers<[1], [0], [0], [1], [0, 0, 1, 1], [], []>} : vector<80x32xf32>, vector<32x32xf32>, vector<80x32xf32> -> vector<80x32xf32>
    %152 = arith.addf %143, %148 : vector<80x32xf32>
    %153 = arith.addf %144, %151 : vector<80x32xf32>
    %c1_157 = arith.constant 1 : index
    %c0_158 = arith.constant 0 : index
    %c0_159 = arith.constant 0 : index
    %154 = vector.load %arg8[%c1_157, %c0_158, %c0_159] : memref<4x1x32xf32, #tpu.memory_space<vmem>>, vector<1x1x32xf32>
    %155 = vector.shape_cast %154 : vector<1x1x32xf32> to vector<1x32xf32>
    %156 = vector.broadcast %155 : vector<1x32xf32> to vector<80x32xf32>
    %157 = arith.addf %152, %156 : vector<80x32xf32>
    %158 = math.tanh %157 : vector<80x32xf32>
    %c1_160 = arith.constant 1 : index
    %c0_161 = arith.constant 0 : index
    %c0_162 = arith.constant 0 : index
    %159 = vector.load %arg9[%c1_160, %c0_161, %c0_162] : memref<4x1x32xf32, #tpu.memory_space<vmem>>, vector<1x1x32xf32>
    %160 = vector.shape_cast %159 : vector<1x1x32xf32> to vector<1x32xf32>
    %161 = vector.broadcast %160 : vector<1x32xf32> to vector<80x32xf32>
    %162 = arith.addf %153, %161 : vector<80x32xf32>
    %163 = arith.negf %162 : vector<80x32xf32>
    %164 = math.exp %163 : vector<80x32xf32>
    %cst_163 = arith.constant 1.000000e+00 : f32
    %165 = vector.broadcast %cst_163 : f32 to vector<80x32xf32>
    %166 = arith.addf %165, %164 : vector<80x32xf32>
    %167 = arith.divf %165, %166 : vector<80x32xf32>
    %168 = arith.mulf %158, %167 : vector<80x32xf32>
    %c1_164 = arith.constant 1 : index
    %c0_165 = arith.constant 0 : index
    %c0_166 = arith.constant 0 : index
    %169 = vector.load %arg12[%c1_164, %c0_165, %c0_166] : memref<4x32x32xf32, #tpu.memory_space<vmem>>, vector<1x32x32xf32>
    %170 = vector.shape_cast %169 : vector<1x32x32xf32> to vector<32x32xf32>
    %cst_167 = arith.constant dense<0.000000e+00> : vector<80x32xf32>
    %171 = tpu.matmul %168, %170, %cst_167 {dimension_numbers = #tpu.dot_dimension_numbers<[1], [0], [0], [1], [0, 0, 1, 1], [], []>} : vector<80x32xf32>, vector<32x32xf32>, vector<80x32xf32> -> vector<80x32xf32>
    %c1_168 = arith.constant 1 : index
    %c0_169 = arith.constant 0 : index
    %c0_170 = arith.constant 0 : index
    %172 = vector.load %arg13[%c1_168, %c0_169, %c0_170] : memref<4x1x32xf32, #tpu.memory_space<vmem>>, vector<1x1x32xf32>
    %173 = vector.shape_cast %172 : vector<1x1x32xf32> to vector<1x32xf32>
    %174 = vector.broadcast %173 : vector<1x32xf32> to vector<80x32xf32>
    %175 = arith.addf %171, %174 : vector<80x32xf32>
    %176 = arith.addf %99, %175 : vector<80x32xf32>
    %c1_171 = arith.constant 1 : index
    %c0_172 = arith.constant 0 : index
    %c0_173 = arith.constant 0 : index
    %177 = vector.load %arg10[%c1_171, %c0_172, %c0_173] : memref<4x32x32xf32, #tpu.memory_space<vmem>>, vector<1x32x32xf32>
    %178 = vector.shape_cast %177 : vector<1x32x32xf32> to vector<32x32xf32>
    %cst_174 = arith.constant dense<0.000000e+00> : vector<80x32xf32>
    %179 = tpu.matmul %168, %178, %cst_174 {dimension_numbers = #tpu.dot_dimension_numbers<[1], [0], [0], [1], [0, 0, 1, 1], [], []>} : vector<80x32xf32>, vector<32x32xf32>, vector<80x32xf32> -> vector<80x32xf32>
    %c1_175 = arith.constant 1 : index
    %c0_176 = arith.constant 0 : index
    %c0_177 = arith.constant 0 : index
    %180 = vector.load %arg11[%c1_175, %c0_176, %c0_177] : memref<4x1x32xf32, #tpu.memory_space<vmem>>, vector<1x1x32xf32>
    %181 = vector.shape_cast %180 : vector<1x1x32xf32> to vector<1x32xf32>
    %182 = vector.broadcast %181 : vector<1x32xf32> to vector<80x32xf32>
    %183 = arith.addf %179, %182 : vector<80x32xf32>
    %184 = arith.addf %109, %183 : vector<80x32xf32>
    %185 = vector.broadcast %7 : vector<80x1xf32> to vector<80x32xf32>
    %186 = arith.mulf %184, %185 : vector<80x32xf32>
    %c16_178 = arith.constant 16 : index
    %c0_179 = arith.constant 0 : index
    %187 = vector.load %arg17[%c16_178, %c0_179] : memref<112x32xf32, #tpu.memory_space<vmem>>, vector<80x32xf32>
    tpu.vector_store %arg17[%c16_178, %c0_179], %186 {strides = array<i32>} : memref<112x32xf32, #tpu.memory_space<vmem>>, vector<80x32xf32>,
    %c14_180 = arith.constant 14 : index
    %c0_181 = arith.constant 0 : index
    %188 = vector.load %arg17[%c14_180, %c0_181] : memref<112x32xf32, #tpu.memory_space<vmem>>, vector<80x32xf32>
    %c2_182 = arith.constant 2 : index
    %c0_183 = arith.constant 0 : index
    %c0_184 = arith.constant 0 : index
    %c0_185 = arith.constant 0 : index
    %189 = vector.load %arg6[%c2_182, %c0_183, %c0_184, %c0_185] : memref<4x5x32x32xf32, #tpu.memory_space<vmem>>, vector<1x1x32x32xf32>
    %190 = vector.shape_cast %189 : vector<1x1x32x32xf32> to vector<32x32xf32>
    %cst_186 = arith.constant dense<0.000000e+00> : vector<80x32xf32>
    %191 = tpu.matmul %188, %190, %cst_186 {dimension_numbers = #tpu.dot_dimension_numbers<[1], [0], [0], [1], [0, 0, 1, 1], [], []>} : vector<80x32xf32>, vector<32x32xf32>, vector<80x32xf32> -> vector<80x32xf32>
    %c2_187 = arith.constant 2 : index
    %c0_188 = arith.constant 0 : index
    %c0_189 = arith.constant 0 : index
    %c0_190 = arith.constant 0 : index
    %192 = vector.load %arg7[%c2_187, %c0_188, %c0_189, %c0_190] : memref<4x5x32x32xf32, #tpu.memory_space<vmem>>, vector<1x1x32x32xf32>
    %193 = vector.shape_cast %192 : vector<1x1x32x32xf32> to vector<32x32xf32>
    %cst_191 = arith.constant dense<0.000000e+00> : vector<80x32xf32>
    %194 = tpu.matmul %188, %193, %cst_191 {dimension_numbers = #tpu.dot_dimension_numbers<[1], [0], [0], [1], [0, 0, 1, 1], [], []>} : vector<80x32xf32>, vector<32x32xf32>, vector<80x32xf32> -> vector<80x32xf32>
    %c15_192 = arith.constant 15 : index
    %c0_193 = arith.constant 0 : index
    %195 = vector.load %arg17[%c15_192, %c0_193] : memref<112x32xf32, #tpu.memory_space<vmem>>, vector<80x32xf32>
    %c2_194 = arith.constant 2 : index
    %c1_195 = arith.constant 1 : index
    %c0_196 = arith.constant 0 : index
    %c0_197 = arith.constant 0 : index
    %196 = vector.load %arg6[%c2_194, %c1_195, %c0_196, %c0_197] : memref<4x5x32x32xf32, #tpu.memory_space<vmem>>, vector<1x1x32x32xf32>
    %197 = vector.shape_cast %196 : vector<1x1x32x32xf32> to vector<32x32xf32>
    %cst_198 = arith.constant dense<0.000000e+00> : vector<80x32xf32>
    %198 = tpu.matmul %195, %197, %cst_198 {dimension_numbers = #tpu.dot_dimension_numbers<[1], [0], [0], [1], [0, 0, 1, 1], [], []>} : vector<80x32xf32>, vector<32x32xf32>, vector<80x32xf32> -> vector<80x32xf32>
    %c2_199 = arith.constant 2 : index
    %c1_200 = arith.constant 1 : index
    %c0_201 = arith.constant 0 : index
    %c0_202 = arith.constant 0 : index
    %199 = vector.load %arg7[%c2_199, %c1_200, %c0_201, %c0_202] : memref<4x5x32x32xf32, #tpu.memory_space<vmem>>, vector<1x1x32x32xf32>
    %200 = vector.shape_cast %199 : vector<1x1x32x32xf32> to vector<32x32xf32>
    %cst_203 = arith.constant dense<0.000000e+00> : vector<80x32xf32>
    %201 = tpu.matmul %195, %200, %cst_203 {dimension_numbers = #tpu.dot_dimension_numbers<[1], [0], [0], [1], [0, 0, 1, 1], [], []>} : vector<80x32xf32>, vector<32x32xf32>, vector<80x32xf32> -> vector<80x32xf32>
    %202 = arith.addf %191, %198 : vector<80x32xf32>
    %203 = arith.addf %194, %201 : vector<80x32xf32>
    %c16_204 = arith.constant 16 : index
    %c0_205 = arith.constant 0 : index
    %204 = vector.load %arg17[%c16_204, %c0_205] : memref<112x32xf32, #tpu.memory_space<vmem>>, vector<80x32xf32>
    %c2_206 = arith.constant 2 : index
    %c2_207 = arith.constant 2 : index
    %c0_208 = arith.constant 0 : index
    %c0_209 = arith.constant 0 : index
    %205 = vector.load %arg6[%c2_206, %c2_207, %c0_208, %c0_209] : memref<4x5x32x32xf32, #tpu.memory_space<vmem>>, vector<1x1x32x32xf32>
    %206 = vector.shape_cast %205 : vector<1x1x32x32xf32> to vector<32x32xf32>
    %cst_210 = arith.constant dense<0.000000e+00> : vector<80x32xf32>
    %207 = tpu.matmul %204, %206, %cst_210 {dimension_numbers = #tpu.dot_dimension_numbers<[1], [0], [0], [1], [0, 0, 1, 1], [], []>} : vector<80x32xf32>, vector<32x32xf32>, vector<80x32xf32> -> vector<80x32xf32>
    %c2_211 = arith.constant 2 : index
    %c2_212 = arith.constant 2 : index
    %c0_213 = arith.constant 0 : index
    %c0_214 = arith.constant 0 : index
    %208 = vector.load %arg7[%c2_211, %c2_212, %c0_213, %c0_214] : memref<4x5x32x32xf32, #tpu.memory_space<vmem>>, vector<1x1x32x32xf32>
    %209 = vector.shape_cast %208 : vector<1x1x32x32xf32> to vector<32x32xf32>
    %cst_215 = arith.constant dense<0.000000e+00> : vector<80x32xf32>
    %210 = tpu.matmul %204, %209, %cst_215 {dimension_numbers = #tpu.dot_dimension_numbers<[1], [0], [0], [1], [0, 0, 1, 1], [], []>} : vector<80x32xf32>, vector<32x32xf32>, vector<80x32xf32> -> vector<80x32xf32>
    %211 = arith.addf %202, %207 : vector<80x32xf32>
    %212 = arith.addf %203, %210 : vector<80x32xf32>
    %c17_216 = arith.constant 17 : index
    %c0_217 = arith.constant 0 : index
    %213 = vector.load %arg17[%c17_216, %c0_217] : memref<112x32xf32, #tpu.memory_space<vmem>>, vector<80x32xf32>
    %c2_218 = arith.constant 2 : index
    %c3_219 = arith.constant 3 : index
    %c0_220 = arith.constant 0 : index
    %c0_221 = arith.constant 0 : index
    %214 = vector.load %arg6[%c2_218, %c3_219, %c0_220, %c0_221] : memref<4x5x32x32xf32, #tpu.memory_space<vmem>>, vector<1x1x32x32xf32>
    %215 = vector.shape_cast %214 : vector<1x1x32x32xf32> to vector<32x32xf32>
    %cst_222 = arith.constant dense<0.000000e+00> : vector<80x32xf32>
    %216 = tpu.matmul %213, %215, %cst_222 {dimension_numbers = #tpu.dot_dimension_numbers<[1], [0], [0], [1], [0, 0, 1, 1], [], []>} : vector<80x32xf32>, vector<32x32xf32>, vector<80x32xf32> -> vector<80x32xf32>
    %c2_223 = arith.constant 2 : index
    %c3_224 = arith.constant 3 : index
    %c0_225 = arith.constant 0 : index
    %c0_226 = arith.constant 0 : index
    %217 = vector.load %arg7[%c2_223, %c3_224, %c0_225, %c0_226] : memref<4x5x32x32xf32, #tpu.memory_space<vmem>>, vector<1x1x32x32xf32>
    %218 = vector.shape_cast %217 : vector<1x1x32x32xf32> to vector<32x32xf32>
    %cst_227 = arith.constant dense<0.000000e+00> : vector<80x32xf32>
    %219 = tpu.matmul %213, %218, %cst_227 {dimension_numbers = #tpu.dot_dimension_numbers<[1], [0], [0], [1], [0, 0, 1, 1], [], []>} : vector<80x32xf32>, vector<32x32xf32>, vector<80x32xf32> -> vector<80x32xf32>
    %220 = arith.addf %211, %216 : vector<80x32xf32>
    %221 = arith.addf %212, %219 : vector<80x32xf32>
    %c18_228 = arith.constant 18 : index
    %c0_229 = arith.constant 0 : index
    %222 = vector.load %arg17[%c18_228, %c0_229] : memref<112x32xf32, #tpu.memory_space<vmem>>, vector<80x32xf32>
    %c2_230 = arith.constant 2 : index
    %c4_231 = arith.constant 4 : index
    %c0_232 = arith.constant 0 : index
    %c0_233 = arith.constant 0 : index
    %223 = vector.load %arg6[%c2_230, %c4_231, %c0_232, %c0_233] : memref<4x5x32x32xf32, #tpu.memory_space<vmem>>, vector<1x1x32x32xf32>
    %224 = vector.shape_cast %223 : vector<1x1x32x32xf32> to vector<32x32xf32>
    %cst_234 = arith.constant dense<0.000000e+00> : vector<80x32xf32>
    %225 = tpu.matmul %222, %224, %cst_234 {dimension_numbers = #tpu.dot_dimension_numbers<[1], [0], [0], [1], [0, 0, 1, 1], [], []>} : vector<80x32xf32>, vector<32x32xf32>, vector<80x32xf32> -> vector<80x32xf32>
    %c2_235 = arith.constant 2 : index
    %c4_236 = arith.constant 4 : index
    %c0_237 = arith.constant 0 : index
    %c0_238 = arith.constant 0 : index
    %226 = vector.load %arg7[%c2_235, %c4_236, %c0_237, %c0_238] : memref<4x5x32x32xf32, #tpu.memory_space<vmem>>, vector<1x1x32x32xf32>
    %227 = vector.shape_cast %226 : vector<1x1x32x32xf32> to vector<32x32xf32>
    %cst_239 = arith.constant dense<0.000000e+00> : vector<80x32xf32>
    %228 = tpu.matmul %222, %227, %cst_239 {dimension_numbers = #tpu.dot_dimension_numbers<[1], [0], [0], [1], [0, 0, 1, 1], [], []>} : vector<80x32xf32>, vector<32x32xf32>, vector<80x32xf32> -> vector<80x32xf32>
    %229 = arith.addf %220, %225 : vector<80x32xf32>
    %230 = arith.addf %221, %228 : vector<80x32xf32>
    %c2_240 = arith.constant 2 : index
    %c0_241 = arith.constant 0 : index
    %c0_242 = arith.constant 0 : index
    %231 = vector.load %arg8[%c2_240, %c0_241, %c0_242] : memref<4x1x32xf32, #tpu.memory_space<vmem>>, vector<1x1x32xf32>
    %232 = vector.shape_cast %231 : vector<1x1x32xf32> to vector<1x32xf32>
    %233 = vector.broadcast %232 : vector<1x32xf32> to vector<80x32xf32>
    %234 = arith.addf %229, %233 : vector<80x32xf32>
    %235 = math.tanh %234 : vector<80x32xf32>
    %c2_243 = arith.constant 2 : index
    %c0_244 = arith.constant 0 : index
    %c0_245 = arith.constant 0 : index
    %236 = vector.load %arg9[%c2_243, %c0_244, %c0_245] : memref<4x1x32xf32, #tpu.memory_space<vmem>>, vector<1x1x32xf32>
    %237 = vector.shape_cast %236 : vector<1x1x32xf32> to vector<1x32xf32>
    %238 = vector.broadcast %237 : vector<1x32xf32> to vector<80x32xf32>
    %239 = arith.addf %230, %238 : vector<80x32xf32>
    %240 = arith.negf %239 : vector<80x32xf32>
    %241 = math.exp %240 : vector<80x32xf32>
    %cst_246 = arith.constant 1.000000e+00 : f32
    %242 = vector.broadcast %cst_246 : f32 to vector<80x32xf32>
    %243 = arith.addf %242, %241 : vector<80x32xf32>
    %244 = arith.divf %242, %243 : vector<80x32xf32>
    %245 = arith.mulf %235, %244 : vector<80x32xf32>
    %c2_247 = arith.constant 2 : index
    %c0_248 = arith.constant 0 : index
    %c0_249 = arith.constant 0 : index
    %246 = vector.load %arg12[%c2_247, %c0_248, %c0_249] : memref<4x32x32xf32, #tpu.memory_space<vmem>>, vector<1x32x32xf32>
    %247 = vector.shape_cast %246 : vector<1x32x32xf32> to vector<32x32xf32>
    %cst_250 = arith.constant dense<0.000000e+00> : vector<80x32xf32>
    %248 = tpu.matmul %245, %247, %cst_250 {dimension_numbers = #tpu.dot_dimension_numbers<[1], [0], [0], [1], [0, 0, 1, 1], [], []>} : vector<80x32xf32>, vector<32x32xf32>, vector<80x32xf32> -> vector<80x32xf32>
    %c2_251 = arith.constant 2 : index
    %c0_252 = arith.constant 0 : index
    %c0_253 = arith.constant 0 : index
    %249 = vector.load %arg13[%c2_251, %c0_252, %c0_253] : memref<4x1x32xf32, #tpu.memory_space<vmem>>, vector<1x1x32xf32>
    %250 = vector.shape_cast %249 : vector<1x1x32xf32> to vector<1x32xf32>
    %251 = vector.broadcast %250 : vector<1x32xf32> to vector<80x32xf32>
    %252 = arith.addf %248, %251 : vector<80x32xf32>
    %253 = arith.addf %176, %252 : vector<80x32xf32>
    %c2_254 = arith.constant 2 : index
    %c0_255 = arith.constant 0 : index
    %c0_256 = arith.constant 0 : index
    %254 = vector.load %arg10[%c2_254, %c0_255, %c0_256] : memref<4x32x32xf32, #tpu.memory_space<vmem>>, vector<1x32x32xf32>
    %255 = vector.shape_cast %254 : vector<1x32x32xf32> to vector<32x32xf32>
    %cst_257 = arith.constant dense<0.000000e+00> : vector<80x32xf32>
    %256 = tpu.matmul %245, %255, %cst_257 {dimension_numbers = #tpu.dot_dimension_numbers<[1], [0], [0], [1], [0, 0, 1, 1], [], []>} : vector<80x32xf32>, vector<32x32xf32>, vector<80x32xf32> -> vector<80x32xf32>
    %c2_258 = arith.constant 2 : index
    %c0_259 = arith.constant 0 : index
    %c0_260 = arith.constant 0 : index
    %257 = vector.load %arg11[%c2_258, %c0_259, %c0_260] : memref<4x1x32xf32, #tpu.memory_space<vmem>>, vector<1x1x32xf32>
    %258 = vector.shape_cast %257 : vector<1x1x32xf32> to vector<1x32xf32>
    %259 = vector.broadcast %258 : vector<1x32xf32> to vector<80x32xf32>
    %260 = arith.addf %256, %259 : vector<80x32xf32>
    %261 = arith.addf %186, %260 : vector<80x32xf32>
    %262 = vector.broadcast %7 : vector<80x1xf32> to vector<80x32xf32>
    %263 = arith.mulf %261, %262 : vector<80x32xf32>
    %c16_261 = arith.constant 16 : index
    %c0_262 = arith.constant 0 : index
    %264 = vector.load %arg17[%c16_261, %c0_262] : memref<112x32xf32, #tpu.memory_space<vmem>>, vector<80x32xf32>
    tpu.vector_store %arg17[%c16_261, %c0_262], %263 {strides = array<i32>} : memref<112x32xf32, #tpu.memory_space<vmem>>, vector<80x32xf32>,
    %c14_263 = arith.constant 14 : index
    %c0_264 = arith.constant 0 : index
    %265 = vector.load %arg17[%c14_263, %c0_264] : memref<112x32xf32, #tpu.memory_space<vmem>>, vector<80x32xf32>
    %c3_265 = arith.constant 3 : index
    %c0_266 = arith.constant 0 : index
    %c0_267 = arith.constant 0 : index
    %c0_268 = arith.constant 0 : index
    %266 = vector.load %arg6[%c3_265, %c0_266, %c0_267, %c0_268] : memref<4x5x32x32xf32, #tpu.memory_space<vmem>>, vector<1x1x32x32xf32>
    %267 = vector.shape_cast %266 : vector<1x1x32x32xf32> to vector<32x32xf32>
    %cst_269 = arith.constant dense<0.000000e+00> : vector<80x32xf32>
    %268 = tpu.matmul %265, %267, %cst_269 {dimension_numbers = #tpu.dot_dimension_numbers<[1], [0], [0], [1], [0, 0, 1, 1], [], []>} : vector<80x32xf32>, vector<32x32xf32>, vector<80x32xf32> -> vector<80x32xf32>
    %c3_270 = arith.constant 3 : index
    %c0_271 = arith.constant 0 : index
    %c0_272 = arith.constant 0 : index
    %c0_273 = arith.constant 0 : index
    %269 = vector.load %arg7[%c3_270, %c0_271, %c0_272, %c0_273] : memref<4x5x32x32xf32, #tpu.memory_space<vmem>>, vector<1x1x32x32xf32>
    %270 = vector.shape_cast %269 : vector<1x1x32x32xf32> to vector<32x32xf32>
    %cst_274 = arith.constant dense<0.000000e+00> : vector<80x32xf32>
    %271 = tpu.matmul %265, %270, %cst_274 {dimension_numbers = #tpu.dot_dimension_numbers<[1], [0], [0], [1], [0, 0, 1, 1], [], []>} : vector<80x32xf32>, vector<32x32xf32>, vector<80x32xf32> -> vector<80x32xf32>
    %c15_275 = arith.constant 15 : index
    %c0_276 = arith.constant 0 : index
    %272 = vector.load %arg17[%c15_275, %c0_276] : memref<112x32xf32, #tpu.memory_space<vmem>>, vector<80x32xf32>
    %c3_277 = arith.constant 3 : index
    %c1_278 = arith.constant 1 : index
    %c0_279 = arith.constant 0 : index
    %c0_280 = arith.constant 0 : index
    %273 = vector.load %arg6[%c3_277, %c1_278, %c0_279, %c0_280] : memref<4x5x32x32xf32, #tpu.memory_space<vmem>>, vector<1x1x32x32xf32>
    %274 = vector.shape_cast %273 : vector<1x1x32x32xf32> to vector<32x32xf32>
    %cst_281 = arith.constant dense<0.000000e+00> : vector<80x32xf32>
    %275 = tpu.matmul %272, %274, %cst_281 {dimension_numbers = #tpu.dot_dimension_numbers<[1], [0], [0], [1], [0, 0, 1, 1], [], []>} : vector<80x32xf32>, vector<32x32xf32>, vector<80x32xf32> -> vector<80x32xf32>
    %c3_282 = arith.constant 3 : index
    %c1_283 = arith.constant 1 : index
    %c0_284 = arith.constant 0 : index
    %c0_285 = arith.constant 0 : index
    %276 = vector.load %arg7[%c3_282, %c1_283, %c0_284, %c0_285] : memref<4x5x32x32xf32, #tpu.memory_space<vmem>>, vector<1x1x32x32xf32>
    %277 = vector.shape_cast %276 : vector<1x1x32x32xf32> to vector<32x32xf32>
    %cst_286 = arith.constant dense<0.000000e+00> : vector<80x32xf32>
    %278 = tpu.matmul %272, %277, %cst_286 {dimension_numbers = #tpu.dot_dimension_numbers<[1], [0], [0], [1], [0, 0, 1, 1], [], []>} : vector<80x32xf32>, vector<32x32xf32>, vector<80x32xf32> -> vector<80x32xf32>
    %279 = arith.addf %268, %275 : vector<80x32xf32>
    %280 = arith.addf %271, %278 : vector<80x32xf32>
    %c16_287 = arith.constant 16 : index
    %c0_288 = arith.constant 0 : index
    %281 = vector.load %arg17[%c16_287, %c0_288] : memref<112x32xf32, #tpu.memory_space<vmem>>, vector<80x32xf32>
    %c3_289 = arith.constant 3 : index
    %c2_290 = arith.constant 2 : index
    %c0_291 = arith.constant 0 : index
    %c0_292 = arith.constant 0 : index
    %282 = vector.load %arg6[%c3_289, %c2_290, %c0_291, %c0_292] : memref<4x5x32x32xf32, #tpu.memory_space<vmem>>, vector<1x1x32x32xf32>
    %283 = vector.shape_cast %282 : vector<1x1x32x32xf32> to vector<32x32xf32>
    %cst_293 = arith.constant dense<0.000000e+00> : vector<80x32xf32>
    %284 = tpu.matmul %281, %283, %cst_293 {dimension_numbers = #tpu.dot_dimension_numbers<[1], [0], [0], [1], [0, 0, 1, 1], [], []>} : vector<80x32xf32>, vector<32x32xf32>, vector<80x32xf32> -> vector<80x32xf32>
    %c3_294 = arith.constant 3 : index
    %c2_295 = arith.constant 2 : index
    %c0_296 = arith.constant 0 : index
    %c0_297 = arith.constant 0 : index
    %285 = vector.load %arg7[%c3_294, %c2_295, %c0_296, %c0_297] : memref<4x5x32x32xf32, #tpu.memory_space<vmem>>, vector<1x1x32x32xf32>
    %286 = vector.shape_cast %285 : vector<1x1x32x32xf32> to vector<32x32xf32>
    %cst_298 = arith.constant dense<0.000000e+00> : vector<80x32xf32>
    %287 = tpu.matmul %281, %286, %cst_298 {dimension_numbers = #tpu.dot_dimension_numbers<[1], [0], [0], [1], [0, 0, 1, 1], [], []>} : vector<80x32xf32>, vector<32x32xf32>, vector<80x32xf32> -> vector<80x32xf32>
    %288 = arith.addf %279, %284 : vector<80x32xf32>
    %289 = arith.addf %280, %287 : vector<80x32xf32>
    %c17_299 = arith.constant 17 : index
    %c0_300 = arith.constant 0 : index
    %290 = vector.load %arg17[%c17_299, %c0_300] : memref<112x32xf32, #tpu.memory_space<vmem>>, vector<80x32xf32>
    %c3_301 = arith.constant 3 : index
    %c3_302 = arith.constant 3 : index
    %c0_303 = arith.constant 0 : index
    %c0_304 = arith.constant 0 : index
    %291 = vector.load %arg6[%c3_301, %c3_302, %c0_303, %c0_304] : memref<4x5x32x32xf32, #tpu.memory_space<vmem>>, vector<1x1x32x32xf32>
    %292 = vector.shape_cast %291 : vector<1x1x32x32xf32> to vector<32x32xf32>
    %cst_305 = arith.constant dense<0.000000e+00> : vector<80x32xf32>
    %293 = tpu.matmul %290, %292, %cst_305 {dimension_numbers = #tpu.dot_dimension_numbers<[1], [0], [0], [1], [0, 0, 1, 1], [], []>} : vector<80x32xf32>, vector<32x32xf32>, vector<80x32xf32> -> vector<80x32xf32>
    %c3_306 = arith.constant 3 : index
    %c3_307 = arith.constant 3 : index
    %c0_308 = arith.constant 0 : index
    %c0_309 = arith.constant 0 : index
    %294 = vector.load %arg7[%c3_306, %c3_307, %c0_308, %c0_309] : memref<4x5x32x32xf32, #tpu.memory_space<vmem>>, vector<1x1x32x32xf32>
    %295 = vector.shape_cast %294 : vector<1x1x32x32xf32> to vector<32x32xf32>
    %cst_310 = arith.constant dense<0.000000e+00> : vector<80x32xf32>
    %296 = tpu.matmul %290, %295, %cst_310 {dimension_numbers = #tpu.dot_dimension_numbers<[1], [0], [0], [1], [0, 0, 1, 1], [], []>} : vector<80x32xf32>, vector<32x32xf32>, vector<80x32xf32> -> vector<80x32xf32>
    %297 = arith.addf %288, %293 : vector<80x32xf32>
    %298 = arith.addf %289, %296 : vector<80x32xf32>
    %c18_311 = arith.constant 18 : index
    %c0_312 = arith.constant 0 : index
    %299 = vector.load %arg17[%c18_311, %c0_312] : memref<112x32xf32, #tpu.memory_space<vmem>>, vector<80x32xf32>
    %c3_313 = arith.constant 3 : index
    %c4_314 = arith.constant 4 : index
    %c0_315 = arith.constant 0 : index
    %c0_316 = arith.constant 0 : index
    %300 = vector.load %arg6[%c3_313, %c4_314, %c0_315, %c0_316] : memref<4x5x32x32xf32, #tpu.memory_space<vmem>>, vector<1x1x32x32xf32>
    %301 = vector.shape_cast %300 : vector<1x1x32x32xf32> to vector<32x32xf32>
    %cst_317 = arith.constant dense<0.000000e+00> : vector<80x32xf32>
    %302 = tpu.matmul %299, %301, %cst_317 {dimension_numbers = #tpu.dot_dimension_numbers<[1], [0], [0], [1], [0, 0, 1, 1], [], []>} : vector<80x32xf32>, vector<32x32xf32>, vector<80x32xf32> -> vector<80x32xf32>
    %c3_318 = arith.constant 3 : index
    %c4_319 = arith.constant 4 : index
    %c0_320 = arith.constant 0 : index
    %c0_321 = arith.constant 0 : index
    %303 = vector.load %arg7[%c3_318, %c4_319, %c0_320, %c0_321] : memref<4x5x32x32xf32, #tpu.memory_space<vmem>>, vector<1x1x32x32xf32>
    %304 = vector.shape_cast %303 : vector<1x1x32x32xf32> to vector<32x32xf32>
    %cst_322 = arith.constant dense<0.000000e+00> : vector<80x32xf32>
    %305 = tpu.matmul %299, %304, %cst_322 {dimension_numbers = #tpu.dot_dimension_numbers<[1], [0], [0], [1], [0, 0, 1, 1], [], []>} : vector<80x32xf32>, vector<32x32xf32>, vector<80x32xf32> -> vector<80x32xf32>
    %306 = arith.addf %297, %302 : vector<80x32xf32>
    %307 = arith.addf %298, %305 : vector<80x32xf32>
    %c3_323 = arith.constant 3 : index
    %c0_324 = arith.constant 0 : index
    %c0_325 = arith.constant 0 : index
    %308 = vector.load %arg8[%c3_323, %c0_324, %c0_325] : memref<4x1x32xf32, #tpu.memory_space<vmem>>, vector<1x1x32xf32>
    %309 = vector.shape_cast %308 : vector<1x1x32xf32> to vector<1x32xf32>
    %310 = vector.broadcast %309 : vector<1x32xf32> to vector<80x32xf32>
    %311 = arith.addf %306, %310 : vector<80x32xf32>
    %312 = math.tanh %311 : vector<80x32xf32>
    %c3_326 = arith.constant 3 : index
    %c0_327 = arith.constant 0 : index
    %c0_328 = arith.constant 0 : index
    %313 = vector.load %arg9[%c3_326, %c0_327, %c0_328] : memref<4x1x32xf32, #tpu.memory_space<vmem>>, vector<1x1x32xf32>
    %314 = vector.shape_cast %313 : vector<1x1x32xf32> to vector<1x32xf32>
    %315 = vector.broadcast %314 : vector<1x32xf32> to vector<80x32xf32>
    %316 = arith.addf %307, %315 : vector<80x32xf32>
    %317 = arith.negf %316 : vector<80x32xf32>
    %318 = math.exp %317 : vector<80x32xf32>
    %cst_329 = arith.constant 1.000000e+00 : f32
    %319 = vector.broadcast %cst_329 : f32 to vector<80x32xf32>
    %320 = arith.addf %319, %318 : vector<80x32xf32>
    %321 = arith.divf %319, %320 : vector<80x32xf32>
    %322 = arith.mulf %312, %321 : vector<80x32xf32>
    %c3_330 = arith.constant 3 : index
    %c0_331 = arith.constant 0 : index
    %c0_332 = arith.constant 0 : index
    %323 = vector.load %arg12[%c3_330, %c0_331, %c0_332] : memref<4x32x32xf32, #tpu.memory_space<vmem>>, vector<1x32x32xf32>
    %324 = vector.shape_cast %323 : vector<1x32x32xf32> to vector<32x32xf32>
    %cst_333 = arith.constant dense<0.000000e+00> : vector<80x32xf32>
    %325 = tpu.matmul %322, %324, %cst_333 {dimension_numbers = #tpu.dot_dimension_numbers<[1], [0], [0], [1], [0, 0, 1, 1], [], []>} : vector<80x32xf32>, vector<32x32xf32>, vector<80x32xf32> -> vector<80x32xf32>
    %c3_334 = arith.constant 3 : index
    %c0_335 = arith.constant 0 : index
    %c0_336 = arith.constant 0 : index
    %326 = vector.load %arg13[%c3_334, %c0_335, %c0_336] : memref<4x1x32xf32, #tpu.memory_space<vmem>>, vector<1x1x32xf32>
    %327 = vector.shape_cast %326 : vector<1x1x32xf32> to vector<1x32xf32>
    %328 = vector.broadcast %327 : vector<1x32xf32> to vector<80x32xf32>
    %329 = arith.addf %325, %328 : vector<80x32xf32>
    %330 = arith.addf %253, %329 : vector<80x32xf32>
    %331 = vector.extract_strided_slice %330 {offsets = [8, 0], sizes = [64, 32], strides = [1, 1]} : vector<80x32xf32> to vector<64x32xf32>
    %332 = vector.broadcast %11 : vector<64x1xf32> to vector<64x32xf32>
    %333 = arith.mulf %331, %332 : vector<64x32xf32>
    %c0_337 = arith.constant 0 : index
    %c0_338 = arith.constant 0 : index
    %334 = vector.load %arg14[%c0_337, %c0_338] : memref<32x4xf32, #tpu.memory_space<vmem>>, vector<32x4xf32>
    %cst_339 = arith.constant dense<0.000000e+00> : vector<64x4xf32>
    %335 = tpu.matmul %333, %334, %cst_339 {dimension_numbers = #tpu.dot_dimension_numbers<[1], [0], [0], [1], [0, 0, 1, 1], [], []>} : vector<64x32xf32>, vector<32x4xf32>, vector<64x4xf32> -> vector<64x4xf32>
    %c0_340 = arith.constant 0 : index
    %c0_341 = arith.constant 0 : index
    %336 = vector.load %arg15[%c0_340, %c0_341] : memref<1x4xf32, #tpu.memory_space<vmem>>, vector<1x4xf32>
    %337 = vector.broadcast %336 : vector<1x4xf32> to vector<64x4xf32>
    %338 = arith.addf %335, %337 : vector<64x4xf32>
    %339 = arith.addf %338, %22 : vector<64x4xf32>
    %340 = vector.broadcast %11 : vector<64x1xf32> to vector<64x4xf32>
    %341 = arith.mulf %339, %340 : vector<64x4xf32>
    %342 = tpu.concatenate %341, %18 in 1 : vector<64x4xf32>, vector<64x4xf32> -> vector<64x8xf32>
    %c8_i32_342 = arith.constant 8 : i32
    %343 = arith.addi %1, %c8_i32_342 : i32
    %c0_343 = arith.constant 0 : index
    %344 = arith.index_cast %343 : i32 to index
    %c0_344 = arith.constant 0 : index
    %345 = vector.load %arg16[%c0_343, %344, %c0_344] : memref<1x80x8xf32, #tpu.memory_space<vmem>>, vector<1x64x8xf32>
    %346 = vector.shape_cast %345 : vector<1x64x8xf32> to vector<64x8xf32>
    %347 = vector.shape_cast %342 : vector<64x8xf32> to vector<1x64x8xf32>
    tpu.vector_store %arg16[%c0_343, %344, %c0_344], %347 {strides = array<i32>} : memref<1x80x8xf32, #tpu.memory_space<vmem>>, vector<1x64x8xf32>,
    return
  }
  func.func @transform_0(%arg0: i32, %arg1: i32) -> (i32, i32, i32) {
    %c0_i32 = arith.constant 0 : i32
    %c0_i32_0 = arith.constant 0 : i32
    %c0_i32_1 = arith.constant 0 : i32
    return %arg0, %c0_i32, %c0_i32_0 : i32, i32, i32
  }
  func.func @transform_1(%arg0: i32, %arg1: i32) -> (i32, i32, i32) {
    %c0_i32 = arith.constant 0 : i32
    %c0_i32_0 = arith.constant 0 : i32
    %c0_i32_1 = arith.constant 0 : i32
    return %arg0, %c0_i32, %c0_i32_0 : i32, i32, i32
  }
  func.func @transform_2(%arg0: i32, %arg1: i32) -> (i32, i32) {
    %c0_i32 = arith.constant 0 : i32
    %c0_i32_0 = arith.constant 0 : i32
    %c0_i32_1 = arith.constant 0 : i32
    return %c0_i32, %c0_i32_0 : i32, i32
  }
  func.func @transform_3(%arg0: i32, %arg1: i32) -> (i32, i32) {
    %c0_i32 = arith.constant 0 : i32
    %c0_i32_0 = arith.constant 0 : i32
    %c0_i32_1 = arith.constant 0 : i32
    return %c0_i32, %c0_i32_0 : i32, i32
  }
  func.func @transform_4(%arg0: i32, %arg1: i32) -> (i32, i32, i32, i32) {
    %c0_i32 = arith.constant 0 : i32
    %c0_i32_0 = arith.constant 0 : i32
    %c0_i32_1 = arith.constant 0 : i32
    %c0_i32_2 = arith.constant 0 : i32
    %c0_i32_3 = arith.constant 0 : i32
    return %c0_i32, %c0_i32_0, %c0_i32_1, %c0_i32_2 : i32, i32, i32, i32
  }
  func.func @transform_5(%arg0: i32, %arg1: i32) -> (i32, i32, i32, i32) {
    %c0_i32 = arith.constant 0 : i32
    %c0_i32_0 = arith.constant 0 : i32
    %c0_i32_1 = arith.constant 0 : i32
    %c0_i32_2 = arith.constant 0 : i32
    %c0_i32_3 = arith.constant 0 : i32
    return %c0_i32, %c0_i32_0, %c0_i32_1, %c0_i32_2 : i32, i32, i32, i32
  }
  func.func @transform_6(%arg0: i32, %arg1: i32) -> (i32, i32, i32) {
    %c0_i32 = arith.constant 0 : i32
    %c0_i32_0 = arith.constant 0 : i32
    %c0_i32_1 = arith.constant 0 : i32
    %c0_i32_2 = arith.constant 0 : i32
    return %c0_i32, %c0_i32_0, %c0_i32_1 : i32, i32, i32
  }
  func.func @transform_7(%arg0: i32, %arg1: i32) -> (i32, i32, i32) {
    %c0_i32 = arith.constant 0 : i32
    %c0_i32_0 = arith.constant 0 : i32
    %c0_i32_1 = arith.constant 0 : i32
    %c0_i32_2 = arith.constant 0 : i32
    return %c0_i32, %c0_i32_0, %c0_i32_1 : i32, i32, i32
  }
  func.func @transform_8(%arg0: i32, %arg1: i32) -> (i32, i32, i32) {
    %c0_i32 = arith.constant 0 : i32
    %c0_i32_0 = arith.constant 0 : i32
    %c0_i32_1 = arith.constant 0 : i32
    %c0_i32_2 = arith.constant 0 : i32
    return %c0_i32, %c0_i32_0, %c0_i32_1 : i32, i32, i32
  }
  func.func @transform_9(%arg0: i32, %arg1: i32) -> (i32, i32, i32) {
    %c0_i32 = arith.constant 0 : i32
    %c0_i32_0 = arith.constant 0 : i32
    %c0_i32_1 = arith.constant 0 : i32
    %c0_i32_2 = arith.constant 0 : i32
    return %c0_i32, %c0_i32_0, %c0_i32_1 : i32, i32, i32
  }
  func.func @transform_10(%arg0: i32, %arg1: i32) -> (i32, i32, i32) {
    %c0_i32 = arith.constant 0 : i32
    %c0_i32_0 = arith.constant 0 : i32
    %c0_i32_1 = arith.constant 0 : i32
    %c0_i32_2 = arith.constant 0 : i32
    return %c0_i32, %c0_i32_0, %c0_i32_1 : i32, i32, i32
  }
  func.func @transform_11(%arg0: i32, %arg1: i32) -> (i32, i32, i32) {
    %c0_i32 = arith.constant 0 : i32
    %c0_i32_0 = arith.constant 0 : i32
    %c0_i32_1 = arith.constant 0 : i32
    %c0_i32_2 = arith.constant 0 : i32
    return %c0_i32, %c0_i32_0, %c0_i32_1 : i32, i32, i32
  }
  func.func @transform_12(%arg0: i32, %arg1: i32) -> (i32, i32) {
    %c0_i32 = arith.constant 0 : i32
    %c0_i32_0 = arith.constant 0 : i32
    %c0_i32_1 = arith.constant 0 : i32
    return %c0_i32, %c0_i32_0 : i32, i32
  }
  func.func @transform_13(%arg0: i32, %arg1: i32) -> (i32, i32) {
    %c0_i32 = arith.constant 0 : i32
    %c0_i32_0 = arith.constant 0 : i32
    %c0_i32_1 = arith.constant 0 : i32
    return %c0_i32, %c0_i32_0 : i32, i32
  }
  func.func @transform_14(%arg0: i32, %arg1: i32) -> (i32, i32, i32) {
    %c0_i32 = arith.constant 0 : i32
    %c0_i32_0 = arith.constant 0 : i32
    %c0_i32_1 = arith.constant 0 : i32
    return %arg0, %c0_i32, %c0_i32_0 : i32, i32, i32
  }
}

</mosaic_0001>

<bundles_post_ra>
// kernel: tpu_custom_call.1
= control target key start
LH: loop header
LB: loop body
LE: loop exit
PB: predicated region body
PF: predicated region fallthrough
CT: control target
= control target key end

     0   :  { %s13485_s0 = inlined_call_operand.vmem [shape: f32[2,80,8], index: 0, kind: input, shape index: {}]   ;;  %s13486_s1 = inlined_call_operand.vmem [shape: f32[2,80,1], index: 1, kind: input, shape index: {}]   ;;  %s13487_s2 = inlined_call_operand.vmem [shape: f32[4,32], index: 2, kind: input, shape index: {}]   ;;  %s13488_s3 = inlined_call_operand.vmem [shape: f32[1,32], index: 3, kind: input, shape index: {}]   ;;  %s13489_s4 = inlined_call_operand.hbm [shape: f32[4,5,32,32], index: 4, kind: input, shape index: {}]   ;;  %s13490_s5 = inlined_call_operand.hbm [shape: f32[4,5,32,32], index: 5, kind: input, shape index: {}]   ;;  %s13491_s6 = inlined_call_operand.vmem [shape: f32[4,1,32], index: 6, kind: input, shape index: {}]   ;;  %s13492_s7 = inlined_call_operand.vmem [shape: f32[4,1,32], index: 7, kind: input, shape index: {}]   ;;  %s13493_s8 = inlined_call_operand.vmem [shape: f32[4,32,32], index: 8, kind: input, shape index: {}]   ;;  %s13494_s9 = inlined_call_operand.vmem [shape: f32[4,1,32], index: 9, kind: input, shape index: {}]   ;;  %s13495_s10 = inlined_call_operand.vmem [shape: f32[4,32,32], index: 10, kind: input, shape index: {}]   ;;  %s13496_s11 = inlined_call_operand.vmem [shape: f32[4,1,32], index: 11, kind: input, shape index: {}]   ;;  %s13497_s12 = inlined_call_operand.vmem [shape: f32[32,4], index: 12, kind: input, shape index: {}]   ;;  %s13498_s13 = inlined_call_operand.vmem [shape: f32[1,4], index: 13, kind: input, shape index: {}]   ;;  %s13499_s14 = inlined_call_operand.vmem [shape: f32[2,80,8], index: 14, kind: output, shape index: {}]  }
   0x1   :  { %13505 = sst [smem:[#allocation12_spill]] %s13498_s13 }
   0x2   :  { %19 = vsyncpa [#allocation4], 0 }
   0x3   :  { %20 = vsyncpa [#allocation6], 0  ;;  %s12266_s29 = smov 0   ;;  %s12268_s30 = smov 0  }
   0x4   :  { %s12270_s15 = smov 0  }
   0x5 LB: > { %13506 = sst [smem:[#allocation9_spill]] %s12177_s30  ;;  %s8619_s16 = sadd.s32 4294967295, %s12181_s15   ;;  %s12181_s15 = sphi %s12270_s15, %s26_s15   ;;  %s12177_s30 = sphi %s12268_s30, %s13517_s30   ;;  %s12173_s29 = sphi %s12266_s29, %s13516_s29  }
   0x6   : > { %13507 = sst [smem:[#allocation10_spill]] %s12181_s15  ;;  %s38_s17 = sadd.s32 1, %s12177_s30 }
   0x7   : > { %p40_p0 = scmp.ge.s32.totalorder %s38_s17, 2  ;;  %p8621_p1 = scmp.ge.s32.totalorder %s12181_s15, 1 }
   0x8   : > { %p373_p2 = scmp.lt.s32.totalorder %s12181_s15, 3  ;;  %p12291_p4 = scmp.eq.s32.totalorder %s8619_s16, 0 }
   0x9   : > { %s13519_s17 = smov (%p40_p0, %s38_s17), 0  ;;  %s12183_s20 = smov [#allocation3]  }
   0xa   : > { %13508 = sst [smem:[#allocation11_spill]] %s13519_s17  ;;  %p12287_p3 = pnand %p8621_p1, %p373_p2 }
   0xb   : > { %s13510_s19 = scalar_select %p12291_p4, 1, 0 }
   0xc   : > { %s13509_s18 = scalar_select %p12287_p3, 1, 0 }
   0xd   : > { %p11810_p5 = pneg %p12287_p3  ;;  %s391_s21 = sshll.u32 %s12183_s20, 4  ;;  %s392_s21 = int_to_ptr.vmem [resolvable:$true] %s391_s21 }
   0xe   : > { %s12184_s23 = smov [#allocation5]   ;;  %s12095_s27 = scalar_lea.hbm %s13489_s4, 10240 }
   0xf   : > { %p12299_p6 = pnand %p12291_p4, %p11810_p5  ;;  %s404_s24 = sshll.u32 %s12184_s23, 4  ;;  %s12303_s24 = int_to_ptr.vmem [resolvable:$true] %s404_s24 }
  0x10   : > { %p12096_p7 = scmp.ne.s32.totalorder %s13489_s4, %s12095_s27  ;;  %p12102_p11 = scmp.lt.u32.totalorder %s12095_s27, %s13489_s4 }
  0x11   : > { %p12097_p8 = pneg %p12299_p6 }
  0x13   : > { %p12098_p9 = pnand %p12097_p8, %p12096_p7 }
  0x15   : > { %p12099_p10 = pneg %p12098_p9 }
  0x17   : > { %p12104_p12 = pnand %p12102_p11, %p12099_p10 }
  0x19   : > { %12107 = shalt.err (!%p12104_p12)
}
  0x1a   : > { %s12108_s23 = scalar_lea.vmem %s392_s21, 10240  ;;  %p12116_p2 = scmp.lt.s32.totalorder %s392_s21, %s392_s21 }
  0x1b   : > { %p12109_p13 = scmp.ne.s32.totalorder %s392_s21, %s12108_s23  ;;  %p12117_p5 = scmp.lt.s32.totalorder %s12108_s23, %s12108_s23 }
  0x1d   : > { %p12111_p0 = pnand %p12109_p13, %p12097_p8  ;;  %p12118_p4 = por %p12117_p5, %p12116_p2 }
  0x1f   : > { %p12112_p1 = pneg %p12111_p0 }
  0x21   : > { %p12119_p3 = pnand %p12118_p4, %p12112_p1 }
  0x23   : > { %12122 = shalt.err (!%p12119_p3)
}
  0x24   : > { %s12185_s25 = smov 128   ;;  %s12186_s26 = smov 8  }
  0x25   : > { %11813 = dma.hbm_to_vmem [thread:$0]  (!%p12299_p6), %s13489_s4, 10240, %s392_s21, [#allocation4], %s12185_s25, %s12185_s25, %s12186_s26  }
  0x26   : > { %s12123_s20 = scalar_lea.hbm %s13490_s5, 10240 }
  0x27   : > { %p12124_p7 = scmp.ne.s32.totalorder %s13490_s5, %s12123_s20  ;;  %p12130_p9 = scmp.lt.u32.totalorder %s12123_s20, %s13490_s5 }
  0x29   : > { %p12126_p3 = pnand %p12124_p7, %p12097_p8 }
  0x2b   : > { %p12127_p4 = pneg %p12126_p3 }
  0x2d   : > { %p12132_p10 = pnand %p12130_p9, %p12127_p4 }
  0x2f   : > { %12135 = shalt.err (!%p12132_p10)
}
  0x30   : > { %s12136_s21 = scalar_lea.vmem %s12303_s24, 10240  ;;  %p12144_p0 = scmp.lt.s32.totalorder %s12303_s24, %s12303_s24 }
  0x31   : > { %p12137_p11 = scmp.ne.s32.totalorder %s12303_s24, %s12136_s21  ;;  %p12145_p1 = scmp.lt.s32.totalorder %s12136_s21, %s12136_s21 }
  0x33   : > { %p12139_p12 = pnand %p12137_p11, %p12097_p8  ;;  %p12146_p2 = por %p12145_p1, %p12144_p0 }
  0x35   : > { %p12140_p13 = pneg %p12139_p12 }
  0x37   : > { %p12147_p5 = pnand %p12146_p2, %p12140_p13 }
  0x39   : > { %12150 = shalt.err (!%p12147_p5)
}
  0x3a   : > { %11816 = dma.hbm_to_vmem [thread:$0]  (!%p12299_p6), %s13490_s5, 10240, %s12303_s24, [#allocation6], %s12185_s25, %s12185_s25, %s12186_s26  }
  0x3b   : > { %p13512_p7 = scmp.ne.s32.totalorder %s13509_s18, 0 }
  0x3c   : > { %p13513_p3 = scmp.ne.s32.totalorder (!%p13512_p7), %s13510_s19, 0 }
  0x3d   : > { %460 = sbr.rel (%p13512_p7) target bundleno = 2763 (0xacb), region = 76 }
  0x44   : > { %12164 = dma.done.wait (%p13513_p3), [#allocation4], 10240  }
  0x45   : > { %12166 = vsyncadd (%p13513_p3), [#allocation4], 4294957056 }
  0x46   : > { %12168 = dma.done.wait (%p13513_p3), [#allocation6], 10240  }
  0x47   : > { %12170 = vsyncadd (%p13513_p3), [#allocation6], 4294957056  ;;  %p515_p8 = scmp.lt.s32.totalorder %s12173_s29, 1  ;;  %v12187_v0 = vmov 0   ;;  %vm618_vm0 = vcmask 1043456   ;;  %vm587_vm1 = vcmask 31744  }
  0x48   : > { %11853 = vset.pattern.permute.xlu0 %v12187_v0  ;;  %11854 = vset.pattern.permute.xlu1 %v12187_v0  ;;  %v579_v1 = vld [vmem:[%s13487_s2] sm:$0xf]  ;;  %vm797_vm2 = vcmask 261120   ;;  %v991_v22 = vld [vmem:[#allocation5 + $0x20] sm:$0xff]  ;;  %v992_v23 = vld [vmem:[#allocation5 + $0x28] sm:$0xff]  ;;  %v12188_v28 = vmov 0.0  }
  0x49   : > { %s13521_s29 = smov (!%p515_p8, %s12173_s29), 1  ;;  %9915 = vmatprep.subr.msk.mxu0 %vm618_vm0, %v579_v1  ;;  %11417 = vmatprep.subr.msk.mxu1 %vm618_vm0, %v579_v1  ;;  %v841_v24 = vld [vmem:[#allocation3 + $0x20] sm:$0xff]  ;;  %v11041_v25 = vpack.c.bf16 %v992_v23, %v991_v22  ;;  %v842_v26 = vld [vmem:[#allocation3 + $0x28] sm:$0xff]  ;;  %799 = vst.msk [vmem:[#allocation2 + $0x8] sm:$0xff] %vm797_vm2, %v12188_v28  ;;  %800 = vst.msk [vmem:[#allocation2 + $0x60] sm:$0xff] %vm797_vm2, %v12188_v28  ;;  %s12189_s26 = smov 124  }
  0x4a   : > { %s12364_s15 = smul.u32 80, %s13521_s29  ;;  %9916 = vmatpush3.msk.msra.mxu0 %vm618_vm0, %v579_v1  ;;  %11418 = vmatpush3.msk.msra.mxu1 %vm618_vm0, %v579_v1  ;;  %v11033_v27 = vpack.c.bf16 %v842_v26, %v841_v24  ;;  %v993_v29 = vld [vmem:[#allocation5 + $0x30] sm:$0xff]  ;;  %v994_v30 = vld [vmem:[#allocation5 + $0x38] sm:$0xff]  ;;  %v826_v35 = vld [vmem:[#allocation5] sm:$0xff]  ;;  %vm535_vm3 = vcmask 64512   ;;  %s13514_s19 = sld [smem:[#allocation12_spill]] }
  0x4b   : > { %11042 = vmatprep.subr.bf16.mxu0 %v11041_v25  ;;  %v843_v31 = vld [vmem:[#allocation3 + $0x30] sm:$0xff]  ;;  %v11045_v32 = vpack.c.bf16 %v994_v30, %v993_v29  ;;  %v844_v33 = vld [vmem:[#allocation3 + $0x38] sm:$0xff]  ;;  %v827_v36 = vld [vmem:[#allocation5 + $0x8] sm:$0xff] }
  0x4c   : > { %s12370_s24 = scalar_lea.vmem %s13485_s0, %s12364_s15  ;;  %s12381_s17 = scalar_lea.vmem %s13486_s1, %s12364_s15  ;;  %11034 = vmatprep.subr.bf16.mxu1 %v11033_v27  ;;  %v11037_v34 = vpack.c.bf16 %v844_v33, %v843_v31  ;;  %v12415_v37 = vpack.c.bf16 %v827_v36, %v826_v35  ;;  %v822_v38 = vld [vmem:[#allocation3] sm:$0xff]  ;;  %v823_v39 = vld [vmem:[#allocation3 + $0x8] sm:$0xff]  ;;  %v8647_v47 = vld [vmem:[%s13488_s3] ss:$0 sm:$0xff] }
  0x4d   : > { %v560_v2 = vld [vmem:[%s12370_s24] sm:$0xff]  ;;  %v566_v3 = vld [vmem:[%s12370_s24 + $0x30] sm:$0xff]  ;;  %v561_v4 = vld [vmem:[%s12370_s24 + $0x8] sm:$0xff]  ;;  %v12418_v40 = vpack.c.bf16 %v823_v39, %v822_v38  ;;  %s13436_s22 = scalar_lea.vmem %s13499_s14, %s12364_s15 }
  0x4e   : > { %v567_v5 = vld [vmem:[%s12370_s24 + $0x38] sm:$0xff]  ;;  %v562_v6 = vld [vmem:[%s12370_s24 + $0x10] sm:$0xff]  ;;  %v568_v7 = vld [vmem:[%s12370_s24 + $0x40] sm:$0xff]  ;;  %9917 = vmatprep.mubr.msk.f32.mxu0 %vm587_vm1, %v560_v2  ;;  %9926 = vmatprep.mubr.msk.f32.mxu1 %vm587_vm1, %v566_v3  ;;  %536 = vst.msk [vmem:[%s13436_s22] sm:$0xff] %vm535_vm3, %v12188_v28 }
  0x4f   : > { %v539_v8 = vld [vmem:[%s12381_s17] sm:$0xff]  ;;  %9918 = vmatmul.mubr.msk.f32.vlgmr.msra.gmra.mrb[0].mxu0 %vm587_vm1, %v561_v4  ;;  %9927 = vmatmul.mubr.msk.f32.vlgmr.msra.gmra.mrb[0].mxu1 %vm587_vm1, %v567_v5  ;;  %v541_v9 = vld [vmem:[%s12381_s17 + $0x10] sm:$0xff]  ;;  %v563_v10 = vld [vmem:[%s12370_s24 + $0x18] sm:$0xff]  ;;  %537 = vst.msk [vmem:[%s13436_s22 + $0x48] sm:$0xff] %vm535_vm3, %v12188_v28 }
  0x50   : > { %9920 = vmatprep.mubr.msk.f32.mxu0 %vm587_vm1, %v562_v6  ;;  %9929 = vmatprep.mubr.msk.f32.mxu1 %vm587_vm1, %v568_v7  ;;  %v569_v11 = vld [vmem:[%s12370_s24 + $0x48] sm:$0xff]  ;;  %v564_v12 = vld [vmem:[%s12370_s24 + $0x20] sm:$0xff]  ;;  %v542_v14 = vld [vmem:[%s12381_s17 + $0x18] sm:$0xff] }
  0x51   : > { %739 = vperm.xlu0 %11853, %v539_v8   ;;  %749 = vperm.xlu1 %11854, %v541_v9   ;;  %v540_v13 = vld [vmem:[%s12381_s17 + $0x8] sm:$0xff]  ;;  %v543_v16 = vld [vmem:[%s12381_s17 + $0x20] sm:$0xff]  ;;  %v545_v18 = vld [vmem:[%s12381_s17 + $0x30] sm:$0xff] }
  0x52   : > { %v565_v15 = vld [vmem:[%s12370_s24 + $0x28] sm:$0xff]  ;;  %v546_v19 = vld [vmem:[%s12381_s17 + $0x38] sm:$0xff]  ;;  %v547_v20 = vld [vmem:[%s12381_s17 + $0x40] sm:$0xff]  ;;  %11044 = vmatpush3.bf16.msra.mxu0 %v11041_v25  ;;  %11036 = vmatpush3.bf16.msra.mxu1 %v11033_v27 }
  0x53   : > { %9921 = vmatmul.mubr.msk.f32.gmra.mrb[2].mxu0 %vm587_vm1, %v563_v10  ;;  %9930 = vmatmul.mubr.msk.f32.gmra.mrb[2].mxu1 %vm587_vm1, %v569_v11  ;;  %v544_v17 = vld [vmem:[%s12381_s17 + $0x28] sm:$0xff]  ;;  %v1531_v26 = vld [vmem:[#allocation5 + $0x40] sm:$0xff]  ;;  %v1532_v27 = vld [vmem:[#allocation5 + $0x48] sm:$0xff] }
  0x54   : > { %9923 = vmatprep.mubr.msk.f32.mxu0 %vm587_vm1, %v564_v12  ;;  %v548_v21 = vld [vmem:[%s12381_s17 + $0x48] sm:$0xff]  ;;  %11046 = vmatprep.subr.bf16.mxu0 %v11045_v32  ;;  %v1381_v29 = vld [vmem:[#allocation3 + $0x40] sm:$0xff]  ;;  %v1382_v30 = vld [vmem:[#allocation3 + $0x48] sm:$0xff]  ;;  %v11073_v33 = vpack.c.bf16 %v1532_v27, %v1531_v26  ;;  %s12190_s17 = smov 4  }
  0x55   : > { %744 = vperm.xlu0 %11853, %v540_v13   ;;  %754 = vperm.xlu1 %11854, %v542_v14   ;;  %v2131_v27 = vld [vmem:[#allocation5 + $0x80] sm:$0xff] }
  0x56   : > { %11048 = vmatpush3.bf16.msra.mxu0 %v11045_v32  ;;  %11038 = vmatprep.subr.bf16.mxu1 %v11037_v34 }
  0x57   : > { %9924 = vmatmul.mubr.msk.f32.gmra.mrb[4].mxu0 %vm587_vm1, %v565_v15  ;;  %11040 = vmatpush3.bf16.msra.mxu1 %v11037_v34  ;;  %v828_v15 = vld [vmem:[#allocation5 + $0x10] sm:$0xff]  ;;  %v11065_v34 = vpack.c.bf16 %v1382_v30, %v1381_v29  ;;  %v2132_v29 = vld [vmem:[#allocation5 + $0x88] sm:$0xff] }
  0x58   : > { %11058 = vmatprep.subr.bf16.mxu0 %v12415_v37  ;;  %11050 = vmatprep.subr.bf16.mxu1 %v12418_v40 }
  0x59   : > { %759 = vperm.xlu0 %11853, %v543_v16   ;;  %764 = vperm.xlu1 %11854, %v544_v17  }
  0x5d   : > { %769 = vperm.xlu0 %11853, %v545_v18   ;;  %774 = vperm.xlu1 %11854, %v546_v19  }
  0x61   : > { %779 = vperm.xlu0 %11853, %v547_v20   ;;  %784 = vperm.xlu1 %11854, %v548_v21  }
  0x65   : > { %8232 = vperm.xlu0 %11853, %v540_v13   ;;  %8237 = vperm.xlu1 %11854, %v541_v9  }
  0x69   : > { %8242 = vperm.xlu0 %11853, %v542_v14   ;;  %8247 = vperm.xlu1 %11854, %v543_v16  }
  0x6d   : > { %8252 = vperm.xlu0 %11853, %v544_v17   ;;  %8257 = vperm.xlu1 %11854, %v545_v18   ;;  %v829_v17 = vld [vmem:[#allocation5 + $0x18] sm:$0xff]  ;;  %v824_v18 = vld [vmem:[#allocation3 + $0x10] sm:$0xff] }
  0x6e   : > { %v11061_v24 = vpack.c.bf16 %v829_v17, %v828_v15  ;;  %v1833_v17 = vld [vmem:[#allocation5 + $0x70] sm:$0xff] }
  0x71   : > { %8262 = vperm.xlu0 %11853, %v546_v19   ;;  %8267 = vperm.xlu1 %11854, %v547_v20   ;;  %v825_v19 = vld [vmem:[#allocation3 + $0x18] sm:$0xff] }
  0x72   : > { %v11053_v25 = vpack.c.bf16 %v825_v19, %v824_v18  ;;  %v1834_v18 = vld [vmem:[#allocation5 + $0x78] sm:$0xff] }
  0xd0   : > { %v12421_v41 = vpop.permute.xlu0 %739  ;;  %v12423_v42 = vpop.permute.xlu1 %749 }
  0xd4   : > { %v12425_v43 = vpop.permute.xlu0 %744  ;;  %v12427_v44 = vpop.permute.xlu1 %754 }
  0xd8   : > { %v12429_v45 = vpop.permute.xlu0 %759  ;;  %v12431_v46 = vpop.permute.xlu1 %764 }
  0xdc   : > { %v12436_v48 = vpop.permute.xlu0 %769  ;;  %v12438_v49 = vpop.permute.xlu1 %774 }
  0xe0   : > { %v12456_v4 = vpop.permute.xlu1 %784  ;;  %v12462_v7 = vpop.permute.xlu0 %779 }
 0x122   : > { %v9919_v50 = vpop.f32.mrb[0].mxu0  ;;  %v9928_v51 = vpop.f32.mrb[0].mxu1 }
 0x123   : > { %v694_v52 = vadd.f32 %v9919_v50, %v8647_v47  ;;  %v724_v53 = vadd.f32 %v9928_v51, %v8647_v47  ;;  %v688_v54 = vpop.f32.mrb[1].mxu0  ;;  %v718_v55 = vpop.f32.mrb[1].mxu1  ;;  %v1534_v50 = vld [vmem:[#allocation5 + $0x58] sm:$0xff] }
 0x124   : > { %v689_v56 = vadd.f32 %v8647_v47, %v688_v54  ;;  %v719_v57 = vadd.f32 %v8647_v47, %v718_v55  ;;  %v1383_v54 = vld [vmem:[#allocation3 + $0x50] sm:$0xff]  ;;  %v1384_v55 = vld [vmem:[#allocation3 + $0x58] sm:$0xff] }
 0x125   : > { %v12441_v58 = vmul.f32 %v12425_v43, %v694_v52  ;;  %v12444_v59 = vmul.f32 %v12438_v49, %v724_v53 }
 0x126   : > { %v12447_v60 = vmul.f32 %v12421_v41, %v689_v56  ;;  %v12450_v61 = vmul.f32 %v12436_v48, %v719_v57  ;;  %v9922_v62 = vpop.f32.mrb[2].mxu0  ;;  %v9931_v63 = vpop.f32.mrb[2].mxu1  ;;  %v1831_v57 = vld [vmem:[#allocation5 + $0x60] sm:$0xff] }
 0x127   : > { %803 = vst.msk [vmem:[#allocation2 + $0x18] sm:$0xff] %vm797_vm2, %v12441_v58  ;;  %809 = vst.msk [vmem:[#allocation2 + $0x48] sm:$0xff] %vm797_vm2, %v12444_v59  ;;  %v704_v0 = vadd.f32 %v9922_v62, %v8647_v47  ;;  %v734_v1 = vadd.f32 %v9931_v63, %v8647_v47  ;;  %v698_v2 = vpop.f32.mrb[3].mxu0  ;;  %v728_v3 = vpop.f32.mrb[3].mxu1  ;;  %v1832_v62 = vld [vmem:[#allocation5 + $0x68] sm:$0xff]  ;;  %v11069_v63 = vpack.c.bf16 %v1384_v55, %v1383_v54  ;;  %v1983_v55 = vld [vmem:[#allocation3 + $0x90] sm:$0xff] }
 0x128   : > { %802 = vst.msk [vmem:[#allocation2 + $0x10] sm:$0xff] %vm797_vm2, %v12447_v60  ;;  %808 = vst.msk [vmem:[#allocation2 + $0x40] sm:$0xff] %vm797_vm2, %v12450_v61  ;;  %v699_v5 = vadd.f32 %v8647_v47, %v698_v2  ;;  %v729_v6 = vadd.f32 %v8647_v47, %v728_v3  ;;  %v1681_v2 = vld [vmem:[#allocation3 + $0x60] sm:$0xff]  ;;  %v1682_v3 = vld [vmem:[#allocation3 + $0x68] sm:$0xff] }
 0x129   : > { %v12465_v8 = vmul.f32 %v12427_v44, %v704_v0  ;;  %v12468_v9 = vmul.f32 %v12456_v4, %v734_v1  ;;  %v11089_v1 = vpack.c.bf16 %v1832_v62, %v1831_v57 }
 0x12a   : > { %v12471_v10 = vmul.f32 %v12423_v42, %v699_v5  ;;  %v12474_v11 = vmul.f32 %v12462_v7, %v729_v6  ;;  %v9925_v12 = vpop.f32.mrb[4].mxu0  ;;  %v11081_v6 = vpack.c.bf16 %v1682_v3, %v1681_v2 }
 0x12b   : > { %805 = vst.msk [vmem:[#allocation2 + $0x28] sm:$0xff] %vm797_vm2, %v12465_v8  ;;  %811 = vst.msk [vmem:[#allocation2 + $0x58] sm:$0xff] %vm797_vm2, %v12468_v9  ;;  %v714_v13 = vadd.f32 %v9925_v12, %v8647_v47  ;;  %v708_v14 = vpop.f32.mrb[5].mxu0 }
 0x12c   : > { %804 = vst.msk [vmem:[#allocation2 + $0x20] sm:$0xff] %vm797_vm2, %v12471_v10  ;;  %810 = vst.msk [vmem:[#allocation2 + $0x50] sm:$0xff] %vm797_vm2, %v12474_v11  ;;  %v709_v16 = vadd.f32 %v8647_v47, %v708_v14  ;;  %v1533_v47 = vld [vmem:[#allocation5 + $0x50] sm:$0xff] }
 0x12d   : > { %v12485_v20 = vmul.f32 %v12431_v46, %v714_v13  ;;  %v11077_v52 = vpack.c.bf16 %v1534_v50, %v1533_v47  ;;  %v2133_v50 = vld [vmem:[#allocation5 + $0x90] sm:$0xff] }
 0x12e   : > { %v12488_v21 = vmul.f32 %v12429_v45, %v709_v16 }
 0x12f   : > { %807 = vst.msk [vmem:[#allocation2 + $0x38] sm:$0xff] %vm797_vm2, %v12485_v20  ;;  %v830_v22 = vld [vmem:[#allocation2 + $0xf] sm:$0xff]  ;;  %v831_v23 = vld [vmem:[#allocation2 + $0x17] sm:$0xff]  ;;  %v837_v38 = vld [vmem:[#allocation2 + $0x47] sm:$0xff] }
 0x130   : > { %806 = vst.msk [vmem:[#allocation2 + $0x30] sm:$0xff] %vm797_vm2, %v12488_v21  ;;  %9940 = vmatprep.mubr.msk.f32.mxu1 %vm797_vm2, %v830_v22  ;;  %9963 = vmatprep.mubr.msk.f32.mxu0 %vm797_vm2, %v830_v22  ;;  %v812_v51 = vld [vmem:[#allocation2 + $0xe] sm:$0xff]  ;;  %v813_v53 = vld [vmem:[#allocation2 + $0x16] sm:$0xff]  ;;  %v819_v14 = vld [vmem:[#allocation2 + $0x46] sm:$0xff]  ;;  %v11093_v22 = vpack.c.bf16 %v1834_v18, %v1833_v17 }
 0x131   : > { %9941 = vmatmul.mubr.msk.f32.vlgmr.msra.gmra.mrb[4].mxu1 %vm797_vm2, %v831_v23  ;;  %9964 = vmatmul.mubr.msk.f32.vlgmr.msra.gmra.mrb[6].mxu0 %vm797_vm2, %v831_v23  ;;  %v1370_v19 = vld [vmem:[#allocation2 + $0x10] sm:$0xff]  ;;  %v1371_v23 = vld [vmem:[#allocation2 + $0x18] sm:$0xff]  ;;  %v1676_v2 = vld [vmem:[#allocation2 + $0x41] sm:$0xff] }
 0x132   : > { %11060 = vmatpush3.bf16.msra.mxu0 %v12415_v37  ;;  %11052 = vmatpush3.bf16.msra.mxu1 %v12418_v40  ;;  %v1379_v47 = vld [vmem:[#allocation2 + $0x58] sm:$0xff]  ;;  %v1976_v18 = vld [vmem:[#allocation2 + $0x42] sm:$0xff] }
 0x133   : > { %v832_v31 = vld [vmem:[#allocation2 + $0x1f] sm:$0xff]  ;;  %v833_v32 = vld [vmem:[#allocation2 + $0x27] sm:$0xff]  ;;  %11062 = vmatprep.subr.bf16.mxu0 %v11061_v24  ;;  %11054 = vmatprep.subr.bf16.mxu1 %v11053_v25  ;;  %v838_v39 = vld [vmem:[#allocation2 + $0x4f] sm:$0xff] }
 0x134   : > { %9943 = vmatprep.mubr.msk.f32.mxu1 %vm797_vm2, %v832_v31  ;;  %9966 = vmatprep.mubr.msk.f32.mxu0 %vm797_vm2, %v832_v31  ;;  %v839_v40 = vld [vmem:[#allocation2 + $0x57] sm:$0xff]  ;;  %v815_v0 = vld [vmem:[#allocation2 + $0x26] sm:$0xff]  ;;  %v820_v15 = vld [vmem:[#allocation2 + $0x4e] sm:$0xff] }
 0x135   : > { %9944 = vmatmul.mubr.msk.f32.gmra.mrb[6].mxu1 %vm797_vm2, %v833_v32  ;;  %9967 = vmatmul.mubr.msk.f32.gmra.mrb[8].mxu0 %vm797_vm2, %v833_v32  ;;  %v814_v56 = vld [vmem:[#allocation2 + $0x1e] sm:$0xff]  ;;  %v821_v16 = vld [vmem:[#allocation2 + $0x56] sm:$0xff]  ;;  %v1373_v31 = vld [vmem:[#allocation2 + $0x28] sm:$0xff]  ;;  %v11105_v32 = vpack.c.bf16 %v2132_v29, %v2131_v27 }
 0x136   : > { %11064 = vmatpush3.bf16.msra.mxu0 %v11061_v24  ;;  %11056 = vmatpush3.bf16.msra.mxu1 %v11053_v25  ;;  %v836_v37 = vld [vmem:[#allocation2 + $0x3f] sm:$0xff]  ;;  %v1684_v25 = vld [vmem:[#allocation3 + $0x78] sm:$0xff] }
 0x137   : > { %v834_v35 = vld [vmem:[#allocation2 + $0x2f] sm:$0xff]  ;;  %v835_v36 = vld [vmem:[#allocation2 + $0x37] sm:$0xff]  ;;  %11074 = vmatprep.subr.bf16.mxu0 %v11073_v33  ;;  %11066 = vmatprep.subr.bf16.mxu1 %v11065_v34  ;;  %v1683_v24 = vld [vmem:[#allocation3 + $0x70] sm:$0xff] }
 0x138   : > { %9946 = vmatprep.mubr.msk.f32.mxu1 %vm797_vm2, %v834_v35  ;;  %9969 = vmatprep.mubr.msk.f32.mxu0 %vm797_vm2, %v834_v35  ;;  %v816_v5 = vld [vmem:[#allocation2 + $0x2e] sm:$0xff]  ;;  %v817_v12 = vld [vmem:[#allocation2 + $0x36] sm:$0xff]  ;;  %v818_v13 = vld [vmem:[#allocation2 + $0x3e] sm:$0xff]  ;;  %v11085_v30 = vpack.c.bf16 %v1684_v25, %v1683_v24 }
 0x139   : > { %9947 = vmatmul.mubr.msk.f32.gmra.mrb[8].mxu1 %vm797_vm2, %v835_v36  ;;  %9970 = vmatmul.mubr.msk.f32.gmra.mrb[10].mxu0 %vm797_vm2, %v835_v36  ;;  %v1372_v26 = vld [vmem:[#allocation2 + $0x20] sm:$0xff]  ;;  %v1374_v35 = vld [vmem:[#allocation2 + $0x30] sm:$0xff]  ;;  %v2539_v25 = vld [vmem:[%s13493_s8 + $0x8] sm:$0xff] }
 0x13a   : > { %9949 = vmatprep.mubr.msk.f32.mxu1 %vm797_vm2, %v836_v37  ;;  %9972 = vmatprep.mubr.msk.f32.mxu0 %vm797_vm2, %v836_v37  ;;  %v1375_v37 = vld [vmem:[#allocation2 + $0x38] sm:$0xff]  ;;  %v1672_v57 = vld [vmem:[#allocation2 + $0x21] sm:$0xff]  ;;  %v1677_v3 = vld [vmem:[#allocation2 + $0x49] sm:$0xff] }
 0x13b   : > { %v1671_v54 = vld [vmem:[#allocation2 + $0x19] sm:$0xff]  ;;  %v2385_v29 = vld [vmem:[%s13495_s10 + $0x8] sm:$0xff] }
 0x13c   : > { %v1975_v17 = vld [vmem:[#allocation2 + $0x3a] sm:$0xff] }
 0x13d   : > { %9950 = vmatmul.mubr.msk.f32.gmra.mrb[10].mxu1 %vm797_vm2, %v837_v38  ;;  %9973 = vmatmul.mubr.msk.f32.gmra.mrb[12].mxu0 %vm797_vm2, %v837_v38  ;;  %v1376_v38 = vld [vmem:[#allocation2 + $0x40] sm:$0xff] }
 0x13e   : > { %9952 = vmatprep.mubr.msk.f32.mxu1 %vm797_vm2, %v838_v39  ;;  %9975 = vmatprep.mubr.msk.f32.mxu0 %vm797_vm2, %v838_v39  ;;  %v1377_v39 = vld [vmem:[#allocation2 + $0x48] sm:$0xff]  ;;  %v2538_v24 = vld [vmem:[%s13493_s8] sm:$0xff] }
 0x13f   : > { %v2384_v27 = vld [vmem:[%s13495_s10] sm:$0xff] }
 0x141   : > { %9953 = vmatmul.mubr.msk.f32.gmra.mrb[12].mxu1 %vm797_vm2, %v839_v40  ;;  %9976 = vmatmul.mubr.msk.f32.gmra.mrb[14].mxu0 %vm797_vm2, %v839_v40  ;;  %v1378_v40 = vld [vmem:[#allocation2 + $0x50] sm:$0xff] }
 0x142   : > { %9986 = vmatprep.mubr.msk.f32.mxu1 %vm797_vm2, %v812_v51  ;;  %10009 = vmatprep.mubr.msk.f32.mxu0 %vm797_vm2, %v812_v51  ;;  %v2134_v51 = vld [vmem:[#allocation5 + $0x98] sm:$0xff] }
 0x145   : > { %9987 = vmatmul.mubr.msk.f32.vlgmr.msra.gmra.mrb[4].mxu1 %vm797_vm2, %v813_v53  ;;  %10010 = vmatmul.mubr.msk.f32.vlgmr.msra.gmra.mrb[6].mxu0 %vm797_vm2, %v813_v53  ;;  %v11109_v53 = vpack.c.bf16 %v2134_v51, %v2133_v50 }
 0x146   : > { %11076 = vmatpush3.bf16.msra.mxu0 %v11073_v33  ;;  %9989 = vmatprep.mubr.msk.f32.mxu1 %vm797_vm2, %v814_v56  ;;  %v1981_v33 = vld [vmem:[#allocation3 + $0x80] sm:$0xff] }
 0x147   : > { %10012 = vmatprep.mubr.msk.f32.mxu0 %vm797_vm2, %v814_v56  ;;  %11078 = vmatprep.subr.bf16.mxu0 %v11077_v52  ;;  %v1984_v56 = vld [vmem:[#allocation3 + $0x98] sm:$0xff] }
 0x148   : > { %11068 = vmatpush3.bf16.msra.mxu1 %v11065_v34  ;;  %v1982_v34 = vld [vmem:[#allocation3 + $0x88] sm:$0xff]  ;;  %v11101_v62 = vpack.c.bf16 %v1984_v56, %v1983_v55  ;;  %v12633_v56 = vld [vmem:[%s13491_s6] ss:$0 sm:$0xff] }
 0x149   : > { %9990 = vmatmul.mubr.msk.f32.gmra.mrb[6].mxu1 %vm797_vm2, %v815_v0  ;;  %10013 = vmatmul.mubr.msk.f32.gmra.mrb[8].mxu0 %vm797_vm2, %v815_v0  ;;  %v11097_v36 = vpack.c.bf16 %v1982_v34, %v1981_v33  ;;  %v1674_v0 = vld [vmem:[#allocation2 + $0x31] sm:$0xff] }
 0x14a   : > { %9992 = vmatprep.mubr.msk.f32.mxu1 %vm797_vm2, %v816_v5  ;;  %10015 = vmatprep.mubr.msk.f32.mxu0 %vm797_vm2, %v816_v5  ;;  %v1678_v5 = vld [vmem:[#allocation2 + $0x51] sm:$0xff] }
 0x14b   : > { %11080 = vmatpush3.bf16.msra.mxu0 %v11077_v52  ;;  %11070 = vmatprep.subr.bf16.mxu1 %v11069_v63  ;;  %v1670_v52 = vld [vmem:[#allocation2 + $0x11] sm:$0xff] }
 0x14c   : > { %11072 = vmatpush3.bf16.msra.mxu1 %v11069_v63  ;;  %11090 = vmatprep.subr.bf16.mxu0 %v11089_v1  ;;  %v1673_v63 = vld [vmem:[#allocation2 + $0x29] sm:$0xff] }
 0x14d   : > { %9993 = vmatmul.mubr.msk.f32.gmra.mrb[8].mxu1 %vm797_vm2, %v817_v12  ;;  %10016 = vmatmul.mubr.msk.f32.gmra.mrb[10].mxu0 %vm797_vm2, %v817_v12  ;;  %v1970_v12 = vld [vmem:[#allocation2 + $0x12] sm:$0xff] }
 0x14e   : > { %9995 = vmatprep.mubr.msk.f32.mxu1 %vm797_vm2, %v818_v13  ;;  %10018 = vmatprep.mubr.msk.f32.mxu0 %vm797_vm2, %v818_v13  ;;  %v1971_v13 = vld [vmem:[#allocation2 + $0x1a] sm:$0xff]  ;;  %v2386_v33 = vld [vmem:[%s13495_s10 + $0x10] sm:$0xff] }
 0x14f   : > { %11082 = vmatprep.subr.bf16.mxu1 %v11081_v6 }
 0x151   : > { %9996 = vmatmul.mubr.msk.f32.gmra.mrb[10].mxu1 %vm797_vm2, %v819_v14  ;;  %10019 = vmatmul.mubr.msk.f32.gmra.mrb[12].mxu0 %vm797_vm2, %v819_v14  ;;  %v1972_v14 = vld [vmem:[#allocation2 + $0x22] sm:$0xff] }
 0x152   : > { %9998 = vmatprep.mubr.msk.f32.mxu1 %vm797_vm2, %v820_v15  ;;  %10021 = vmatprep.mubr.msk.f32.mxu0 %vm797_vm2, %v820_v15  ;;  %v1973_v15 = vld [vmem:[#allocation2 + $0x2a] sm:$0xff] }
 0x155   : > { %9999 = vmatmul.mubr.msk.f32.gmra.mrb[12].mxu1 %vm797_vm2, %v821_v16  ;;  %10022 = vmatmul.mubr.msk.f32.gmra.mrb[14].mxu0 %vm797_vm2, %v821_v16  ;;  %v1974_v16 = vld [vmem:[#allocation2 + $0x32] sm:$0xff] }
 0x156   : > { %10032 = vmatprep.mubr.msk.f32.mxu1 %vm797_vm2, %v1370_v19  ;;  %10055 = vmatprep.mubr.msk.f32.mxu0 %vm797_vm2, %v1370_v19  ;;  %v1977_v19 = vld [vmem:[#allocation2 + $0x4a] sm:$0xff] }
 0x159   : > { %10033 = vmatmul.mubr.msk.f32.vlgmr.msra.gmra.mrb[4].mxu1 %vm797_vm2, %v1371_v23  ;;  %10056 = vmatmul.mubr.msk.f32.vlgmr.msra.gmra.mrb[6].mxu0 %vm797_vm2, %v1371_v23  ;;  %v1979_v23 = vld [vmem:[#allocation2 + $0x5a] sm:$0xff] }
 0x15a   : > { %11092 = vmatpush3.bf16.msra.mxu0 %v11089_v1  ;;  %10035 = vmatprep.mubr.msk.f32.mxu1 %vm797_vm2, %v1372_v26  ;;  %v1675_v1 = vld [vmem:[#allocation2 + $0x39] sm:$0xff] }
 0x15b   : > { %10058 = vmatprep.mubr.msk.f32.mxu0 %vm797_vm2, %v1372_v26  ;;  %11094 = vmatprep.subr.bf16.mxu0 %v11093_v22  ;;  %v11121_v26 = vpack.c.bf16 %v2539_v25, %v2538_v24 }
 0x15c   : > { %11084 = vmatpush3.bf16.msra.mxu1 %v11081_v6  ;;  %v1679_v6 = vld [vmem:[#allocation2 + $0x59] sm:$0xff] }
 0x15d   : > { %10036 = vmatmul.mubr.msk.f32.gmra.mrb[6].mxu1 %vm797_vm2, %v1373_v31  ;;  %10059 = vmatmul.mubr.msk.f32.gmra.mrb[8].mxu0 %vm797_vm2, %v1373_v31  ;;  %v2540_v31 = vld [vmem:[%s13493_s8 + $0x10] sm:$0xff] }
 0x15e   : > { %10038 = vmatprep.mubr.msk.f32.mxu1 %vm797_vm2, %v1374_v35  ;;  %10061 = vmatprep.mubr.msk.f32.mxu0 %vm797_vm2, %v1374_v35  ;;  %v2387_v35 = vld [vmem:[%s13495_s10 + $0x18] sm:$0xff] }
 0x15f   : > { %11096 = vmatpush3.bf16.msra.mxu0 %v11093_v22  ;;  %11086 = vmatprep.subr.bf16.mxu1 %v11085_v30  ;;  %v1978_v22 = vld [vmem:[#allocation2 + $0x52] sm:$0xff] }
 0x160   : > { %11088 = vmatpush3.bf16.msra.mxu1 %v11085_v30  ;;  %11106 = vmatprep.subr.bf16.mxu0 %v11105_v32  ;;  %v11113_v30 = vpack.c.bf16 %v2385_v29, %v2384_v27 }
 0x161   : > { %10039 = vmatmul.mubr.msk.f32.gmra.mrb[8].mxu1 %vm797_vm2, %v1375_v37  ;;  %10062 = vmatmul.mubr.msk.f32.gmra.mrb[10].mxu0 %vm797_vm2, %v1375_v37  ;;  %v2875_v37 = vld [vmem:[#allocation5 + $0xc0] sm:$0xff] }
 0x162   : > { %10041 = vmatprep.mubr.msk.f32.mxu1 %vm797_vm2, %v1376_v38  ;;  %10064 = vmatprep.mubr.msk.f32.mxu0 %vm797_vm2, %v1376_v38  ;;  %v2876_v38 = vld [vmem:[#allocation5 + $0xc8] sm:$0xff] }
 0x163   : > { %11098 = vmatprep.subr.bf16.mxu1 %v11097_v36 }
 0x165   : > { %10042 = vmatmul.mubr.msk.f32.gmra.mrb[10].mxu1 %vm797_vm2, %v1377_v39  ;;  %10065 = vmatmul.mubr.msk.f32.gmra.mrb[12].mxu0 %vm797_vm2, %v1377_v39  ;;  %v12620_v39 = vpack.c.bf16 %v2876_v38, %v2875_v37 }
 0x166   : > { %10044 = vmatprep.mubr.msk.f32.mxu1 %vm797_vm2, %v1378_v40  ;;  %10067 = vmatprep.mubr.msk.f32.mxu0 %vm797_vm2, %v1378_v40  ;;  %v12626_v40 = vld [vmem:[%s13492_s7] ss:$0 sm:$0xff] }
 0x169   : > { %10045 = vmatmul.mubr.msk.f32.gmra.mrb[12].mxu1 %vm797_vm2, %v1379_v47  ;;  %10068 = vmatmul.mubr.msk.f32.gmra.mrb[14].mxu0 %vm797_vm2, %v1379_v47 }
 0x16a   : > { %10078 = vmatprep.mubr.msk.f32.mxu1 %vm797_vm2, %v1670_v52  ;;  %10101 = vmatprep.mubr.msk.f32.mxu0 %vm797_vm2, %v1670_v52 }
 0x16d   : > { %10079 = vmatmul.mubr.msk.f32.vlgmr.msra.gmra.mrb[4].mxu1 %vm797_vm2, %v1671_v54  ;;  %10102 = vmatmul.mubr.msk.f32.vlgmr.msra.gmra.mrb[6].mxu0 %vm797_vm2, %v1671_v54 }
 0x16e   : > { %11108 = vmatpush3.bf16.msra.mxu0 %v11105_v32  ;;  %10081 = vmatprep.mubr.msk.f32.mxu1 %vm797_vm2, %v1672_v57  ;;  %v2541_v32 = vld [vmem:[%s13493_s8 + $0x18] sm:$0xff] }
 0x16f   : > { %10104 = vmatprep.mubr.msk.f32.mxu0 %vm797_vm2, %v1672_v57  ;;  %11110 = vmatprep.subr.bf16.mxu0 %v11109_v53  ;;  %v11125_v34 = vpack.c.bf16 %v2541_v32, %v2540_v31 }
 0x170   : > { %11100 = vmatpush3.bf16.msra.mxu1 %v11097_v36  ;;  %v11117_v36 = vpack.c.bf16 %v2387_v35, %v2386_v33 }
 0x171   : > { %10082 = vmatmul.mubr.msk.f32.gmra.mrb[6].mxu1 %vm797_vm2, %v1673_v63  ;;  %10105 = vmatmul.mubr.msk.f32.gmra.mrb[8].mxu0 %vm797_vm2, %v1673_v63 }
 0x172   : > { %10084 = vmatprep.mubr.msk.f32.mxu1 %vm797_vm2, %v1674_v0  ;;  %10107 = vmatprep.mubr.msk.f32.mxu0 %vm797_vm2, %v1674_v0 }
 0x173   : > { %11112 = vmatpush3.bf16.msra.mxu0 %v11109_v53  ;;  %11102 = vmatprep.subr.bf16.mxu1 %v11101_v62 }
 0x174   : > { %11104 = vmatpush3.bf16.msra.mxu1 %v11101_v62  ;;  %11122 = vmatprep.subr.bf16.mxu0 %v11121_v26 }
 0x175   : > { %10085 = vmatmul.mubr.msk.f32.gmra.mrb[8].mxu1 %vm797_vm2, %v1675_v1  ;;  %10108 = vmatmul.mubr.msk.f32.gmra.mrb[10].mxu0 %vm797_vm2, %v1675_v1 }
 0x176   : > { %10087 = vmatprep.mubr.msk.f32.mxu1 %vm797_vm2, %v1676_v2  ;;  %10110 = vmatprep.mubr.msk.f32.mxu0 %vm797_vm2, %v1676_v2 }
 0x177   : > { %11114 = vmatprep.subr.bf16.mxu1 %v11113_v30 }
 0x179   : > { %10088 = vmatmul.mubr.msk.f32.gmra.mrb[10].mxu1 %vm797_vm2, %v1677_v3  ;;  %10111 = vmatmul.mubr.msk.f32.gmra.mrb[12].mxu0 %vm797_vm2, %v1677_v3 }
 0x17a   : > { %10090 = vmatprep.mubr.msk.f32.mxu1 %vm797_vm2, %v1678_v5  ;;  %10113 = vmatprep.mubr.msk.f32.mxu0 %vm797_vm2, %v1678_v5 }
 0x17d   : > { %10091 = vmatmul.mubr.msk.f32.gmra.mrb[12].mxu1 %vm797_vm2, %v1679_v6  ;;  %10114 = vmatmul.mubr.msk.f32.gmra.mrb[14].mxu0 %vm797_vm2, %v1679_v6 }
 0x17e   : > { %10124 = vmatprep.mubr.msk.f32.mxu1 %vm797_vm2, %v1970_v12  ;;  %10147 = vmatprep.mubr.msk.f32.mxu0 %vm797_vm2, %v1970_v12 }
 0x181   : > { %10125 = vmatmul.mubr.msk.f32.vlgmr.msra.gmra.mrb[4].mxu1 %vm797_vm2, %v1971_v13  ;;  %10148 = vmatmul.mubr.msk.f32.vlgmr.msra.gmra.mrb[6].mxu0 %vm797_vm2, %v1971_v13 }
 0x182   : > { %10127 = vmatprep.mubr.msk.f32.mxu1 %vm797_vm2, %v1972_v14  ;;  %10150 = vmatprep.mubr.msk.f32.mxu0 %vm797_vm2, %v1972_v14 }
 0x183   : > { %11124 = vmatpush3.bf16.msra.mxu0 %v11121_v26  ;;  %11116 = vmatpush3.bf16.msra.mxu1 %v11113_v30 }
 0x184   : > { %11126 = vmatprep.subr.bf16.mxu0 %v11125_v34  ;;  %11118 = vmatprep.subr.bf16.mxu1 %v11117_v36 }
 0x185   : > { %10128 = vmatmul.mubr.msk.f32.gmra.mrb[6].mxu1 %vm797_vm2, %v1973_v15  ;;  %10151 = vmatmul.mubr.msk.f32.gmra.mrb[8].mxu0 %vm797_vm2, %v1973_v15 }
 0x186   : > { %10130 = vmatprep.mubr.msk.f32.mxu1 %vm797_vm2, %v1974_v16  ;;  %10153 = vmatprep.mubr.msk.f32.mxu0 %vm797_vm2, %v1974_v16 }
 0x187   : > { %11128 = vmatpush3.bf16.msra.mxu0 %v11125_v34  ;;  %11120 = vmatpush3.bf16.msra.mxu1 %v11117_v36 }
 0x188   : > { %11138 = vmatprep.subr.bf16.mxu0 %v12620_v39 }
 0x189   : > { %10131 = vmatmul.mubr.msk.f32.gmra.mrb[8].mxu1 %vm797_vm2, %v1975_v17  ;;  %10154 = vmatmul.mubr.msk.f32.gmra.mrb[10].mxu0 %vm797_vm2, %v1975_v17 }
 0x18a   : > { %10133 = vmatprep.mubr.msk.f32.mxu1 %vm797_vm2, %v1976_v18  ;;  %10156 = vmatprep.mubr.msk.f32.mxu0 %vm797_vm2, %v1976_v18 }
 0x18d   : > { %10134 = vmatmul.mubr.msk.f32.gmra.mrb[10].mxu1 %vm797_vm2, %v1977_v19  ;;  %10157 = vmatmul.mubr.msk.f32.gmra.mrb[12].mxu0 %vm797_vm2, %v1977_v19 }
 0x18e   : > { %10136 = vmatprep.mubr.msk.f32.mxu1 %vm797_vm2, %v1978_v22  ;;  %10159 = vmatprep.mubr.msk.f32.mxu0 %vm797_vm2, %v1978_v22 }
 0x191   : > { %10137 = vmatmul.mubr.msk.f32.gmra.mrb[12].mxu1 %vm797_vm2, %v1979_v23  ;;  %10160 = vmatmul.mubr.msk.f32.gmra.mrb[14].mxu0 %vm797_vm2, %v1979_v23 }
 0x254   : > { %v10126_v47 = vpop.f32.mrb[4].mxu1  ;;  %v10149_v50 = vpop.f32.mrb[6].mxu0 }
 0x255   : > { %v2305_v51 = vadd.f32 %v10149_v50, %v12626_v40  ;;  %v2081_v52 = vpop.f32.mrb[5].mxu1  ;;  %v2201_v53 = vpop.f32.mrb[7].mxu0  ;;  %v2278_v5 = vadd.f32 %v10126_v47, %v12633_v56 }
 0x256   : > { %v2304_v54 = vadd.f32 %v12626_v40, %v2201_v53  ;;  %v2277_v12 = vadd.f32 %v12633_v56, %v2081_v52 }
 0x257   : > { %v8762_v55 = vmul.f32 -1.442695, %v2305_v51 }
 0x258   : > { %v8761_v57 = vmul.f32 -1.442695, %v2304_v54  ;;  %v10129_v62 = vpop.f32.mrb[6].mxu1  ;;  %v10152_v63 = vpop.f32.mrb[8].mxu0 }
 0x259   : > { %11855 = vpow2.f32 %v8762_v55  ;;  %v2307_v0 = vadd.f32 %v10152_v63, %v12626_v40  ;;  %v2091_v1 = vpop.f32.mrb[7].mxu1  ;;  %v2211_v2 = vpop.f32.mrb[9].mxu0  ;;  %v2280_v22 = vadd.f32 %v10129_v62, %v12633_v56 }
 0x25a   : > { %11857 = vpow2.f32 %v8761_v57  ;;  %v2306_v3 = vadd.f32 %v12626_v40, %v2211_v2  ;;  %v2279_v24 = vadd.f32 %v12633_v56, %v2091_v1 }
 0x25b   : > { %v8764_v6 = vmul.f32 -1.442695, %v2307_v0 }
 0x25c   : > { %v8763_v13 = vmul.f32 -1.442695, %v2306_v3  ;;  %v10132_v14 = vpop.f32.mrb[8].mxu1  ;;  %v10155_v15 = vpop.f32.mrb[10].mxu0 }
 0x25d   : > { %11859 = vpow2.f32 %v8764_v6  ;;  %v2309_v16 = vadd.f32 %v10155_v15, %v12626_v40  ;;  %v2101_v17 = vpop.f32.mrb[9].mxu1  ;;  %v2221_v18 = vpop.f32.mrb[11].mxu0  ;;  %v2282_v51 = vadd.f32 %v10132_v14, %v12633_v56 }
 0x25e   : > { %11861 = vpow2.f32 %v8763_v13  ;;  %v2308_v19 = vadd.f32 %v12626_v40, %v2221_v18  ;;  %v2281_v3 = vadd.f32 %v12633_v56, %v2101_v17 }
 0x25f   : > { %11863 = vtanh.f32 %v2278_v5  ;;  %v8766_v23 = vmul.f32 -1.442695, %v2309_v16 }
 0x260   : > { %11865 = vtanh.f32 %v2277_v12  ;;  %v8765_v25 = vmul.f32 -1.442695, %v2308_v19  ;;  %v10135_v26 = vpop.f32.mrb[10].mxu1  ;;  %v10158_v27 = vpop.f32.mrb[12].mxu0 }
 0x261   : > { %11867 = vpow2.f32 %v8766_v23  ;;  %v2311_v29 = vadd.f32 %v10158_v27, %v12626_v40  ;;  %v2111_v30 = vpop.f32.mrb[11].mxu1  ;;  %v2231_v31 = vpop.f32.mrb[13].mxu0  ;;  %v2284_v18 = vadd.f32 %v10135_v26, %v12633_v56 }
 0x262   : > { %11869 = vpow2.f32 %v8765_v25  ;;  %v2310_v32 = vadd.f32 %v12626_v40, %v2231_v31  ;;  %v2283_v17 = vadd.f32 %v12633_v56, %v2111_v30 }
 0x263   : > { %v11856_v33 = vpop.eup %11855  ;;  %11871 = vtanh.f32 %v2280_v22  ;;  %v8768_v34 = vmul.f32 -1.442695, %v2311_v29 }
 0x264   : > { %v11858_v35 = vpop.eup %11857  ;;  %v2345_v36 = vadd.f32 1.0, %v11856_v33  ;;  %11873 = vtanh.f32 %v2279_v24  ;;  %v8767_v37 = vmul.f32 -1.442695, %v2310_v32  ;;  %v10138_v38 = vpop.f32.mrb[12].mxu1 }
 0x265   : > { %v10161_v47 = vpop.f32.mrb[14].mxu0  ;;  %v2344_v50 = vadd.f32 1.0, %v11858_v35  ;;  %11875 = vpow2.f32 %v8768_v34  ;;  %v2121_v53 = vpop.f32.mrb[13].mxu1  ;;  %v2286_v26 = vadd.f32 %v10138_v38, %v12633_v56 }
 0x266   : > { %v2313_v52 = vadd.f32 %v10161_v47, %v12626_v40  ;;  %v2241_v54 = vpop.f32.mrb[15].mxu0  ;;  %11877 = vrcp.f32 %v2345_v36  ;;  %v2285_v38 = vadd.f32 %v12633_v56, %v2121_v53 }
 0x267   : > { %v11860_v55 = vpop.eup %11859  ;;  %11879 = vrcp.f32 %v2344_v50  ;;  %v2312_v0 = vadd.f32 %v12626_v40, %v2241_v54 }
 0x268   : > { %v11862_v57 = vpop.eup %11861  ;;  %v2347_v62 = vadd.f32 1.0, %v11860_v55  ;;  %11881 = vpow2.f32 %v8767_v37  ;;  %v8770_v63 = vmul.f32 -1.442695, %v2313_v52 }
 0x269   : > { %v11864_v1 = vpop.eup %11863  ;;  %v2346_v2 = vadd.f32 1.0, %v11862_v57  ;;  %11883 = vtanh.f32 %v2282_v51  ;;  %v8769_v14 = vmul.f32 -1.442695, %v2312_v0 }
 0x26a   : > { %v11866_v5 = vpop.eup %11865  ;;  %11885 = vrcp.f32 %v2347_v62 }
 0x26b   : > { %v11868_v6 = vpop.eup %11867  ;;  %11887 = vrcp.f32 %v2346_v2 }
 0x26c   : > { %v11870_v12 = vpop.eup %11869  ;;  %v2349_v13 = vadd.f32 1.0, %v11868_v6  ;;  %11889 = vpow2.f32 %v8770_v63 }
 0x26d   : > { %v11872_v15 = vpop.eup %11871  ;;  %11891 = vtanh.f32 %v2281_v3  ;;  %v2348_v16 = vadd.f32 1.0, %v11870_v12 }
 0x26e   : > { %v11874_v19 = vpop.eup %11873  ;;  %11893 = vrcp.f32 %v2349_v13  ;;  %v2877_v13 = vld [vmem:[#allocation5 + $0xd0] sm:$0xff] }
 0x26f   : > { %v11876_v40 = vpop.eup %11875  ;;  %11895 = vrcp.f32 %v2348_v16  ;;  %v2725_v16 = vld [vmem:[#allocation3 + $0xc0] sm:$0xff] }
 0x270   : > { %v11878_v22 = vpop.eup %11877  ;;  %v2351_v23 = vadd.f32 1.0, %v11876_v40  ;;  %11897 = vpow2.f32 %v8769_v14  ;;  %v2878_v14 = vld [vmem:[#allocation5 + $0xd8] sm:$0xff]  ;;  %v2727_v40 = vld [vmem:[#allocation3 + $0xd0] sm:$0xff] }
 0x271   : > { %v11880_v24 = vpop.eup %11879  ;;  %v2375_v25 = vmul.f32 %v11878_v22, %v11864_v1  ;;  %11899 = vtanh.f32 %v2284_v18  ;;  %v2726_v18 = vld [vmem:[#allocation3 + $0xc8] sm:$0xff]  ;;  %v2728_v22 = vld [vmem:[#allocation3 + $0xd8] sm:$0xff] }
 0x272   : > { %v11882_v27 = vpop.eup %11881  ;;  %11901 = vrcp.f32 %v2351_v23  ;;  %v2374_v29 = vmul.f32 %v11880_v24, %v11866_v5  ;;  %v11133_v23 = vpack.c.bf16 %v2728_v22, %v2727_v40  ;;  %v2711_v24 = vld [vmem:[#allocation5 + $0xa8] sm:$0xff] }
 0x273   : > { %v11884_v31 = vpop.eup %11883  ;;  %v2350_v32 = vadd.f32 1.0, %v11882_v27  ;;  %11903 = vtanh.f32 %v2283_v17  ;;  %v2710_v17 = vld [vmem:[#allocation5 + $0xa0] sm:$0xff]  ;;  %v3266_v40 = vld [vmem:[#allocation3 + $0xe8] sm:$0xff] }
 0x274   : > { %v11886_v33 = vpop.eup %11885  ;;  %10170 = vmatprep.mubr.msk.f32.mxu1 %vm797_vm2, %v2374_v29  ;;  %10193 = vmatprep.mubr.msk.f32.mxu0 %vm797_vm2, %v2374_v29  ;;  %v2705_v27 = vld [vmem:[#allocation3 + $0xa0] sm:$0xff]  ;;  %v2706_v29 = vld [vmem:[#allocation3 + $0xa8] sm:$0xff] }
 0x275   : > { %v11888_v34 = vpop.eup %11887  ;;  %11905 = vrcp.f32 %v2350_v32  ;;  %10171 = vmatmul.mubr.msk.f32.vlgmr.msra.gmra.mrb[14].mxu1 %vm797_vm2, %v2375_v25  ;;  %10194 = vmatmul.mubr.msk.f32.vlgmr.msra.gmra.mrb[16].mxu0 %vm797_vm2, %v2375_v25  ;;  %v2377_v30 = vmul.f32 %v11886_v33, %v11872_v15  ;;  %v11141_v15 = vpack.c.bf16 %v2878_v14, %v2877_v13  ;;  %v11153_v25 = vpack.c.bf16 %v2711_v24, %v2710_v17  ;;  %v12677_v32 = vld [vmem:[%s13494_s9] ss:$0 sm:$0xff] }
 0x276   : > { %v11890_v35 = vpop.eup %11889  ;;  %v2376_v36 = vmul.f32 %v11888_v34, %v11874_v19  ;;  %11140 = vmatpush3.bf16.msra.mxu0 %v12620_v39  ;;  %11907 = vtanh.f32 %v2286_v26  ;;  %v11129_v19 = vpack.c.bf16 %v2726_v18, %v2725_v16  ;;  %v3416_v18 = vld [vmem:[#allocation5 + $0xe8] sm:$0xff] }
 0x277   : > { %v11892_v37 = vpop.eup %11891  ;;  %v2353_v47 = vadd.f32 1.0, %v11890_v35  ;;  %11142 = vmatprep.subr.bf16.mxu0 %v11141_v15 }
 0x278   : > { %v11894_v50 = vpop.eup %11893  ;;  %10173 = vmatprep.mubr.msk.f32.mxu1 %vm797_vm2, %v2376_v36  ;;  %10196 = vmatprep.mubr.msk.f32.mxu0 %vm797_vm2, %v2376_v36 }
 0x279   : > { %v11896_v51 = vpop.eup %11895  ;;  %11909 = vrcp.f32 %v2353_v47  ;;  %10174 = vmatmul.mubr.msk.f32.gmra.mrb[16].mxu1 %vm797_vm2, %v2377_v30  ;;  %10197 = vmatmul.mubr.msk.f32.gmra.mrb[18].mxu0 %vm797_vm2, %v2377_v30  ;;  %v2379_v52 = vmul.f32 %v11894_v50, %v11884_v31  ;;  %v11145_v31 = vpack.c.bf16 %v2706_v29, %v2705_v27 }
 0x27a   : > { %v11898_v54 = vpop.eup %11897  ;;  %v2378_v55 = vmul.f32 %v11896_v51, %v11892_v37  ;;  %11911 = vtanh.f32 %v2285_v38  ;;  %11144 = vmatpush3.bf16.msra.mxu0 %v11141_v15  ;;  %11130 = vmatprep.subr.bf16.mxu1 %v11129_v19  ;;  %v3415_v15 = vld [vmem:[#allocation5 + $0xe0] sm:$0xff] }
 0x27b   : > { %v11900_v39 = vpop.eup %11899  ;;  %v2352_v57 = vadd.f32 1.0, %v11898_v54  ;;  %11132 = vmatpush3.bf16.msra.mxu1 %v11129_v19  ;;  %11154 = vmatprep.subr.bf16.mxu0 %v11153_v25  ;;  %v3265_v19 = vld [vmem:[#allocation3 + $0xe0] sm:$0xff]  ;;  %v11169_v29 = vpack.c.bf16 %v3416_v18, %v3415_v15  ;;  %v3717_v18 = vld [vmem:[#allocation5 + $0x110] sm:$0xff] }
 0x27c   : > { %v11902_v62 = vpop.eup %11901  ;;  %10176 = vmatprep.mubr.msk.f32.mxu1 %vm797_vm2, %v2378_v55  ;;  %10199 = vmatprep.mubr.msk.f32.mxu0 %vm797_vm2, %v2378_v55 }
 0x27d   : > { %11913 = vrcp.f32 %v2352_v57  ;;  %10177 = vmatmul.mubr.msk.f32.gmra.mrb[18].mxu1 %vm797_vm2, %v2379_v52  ;;  %10200 = vmatmul.mubr.msk.f32.gmra.mrb[20].mxu0 %vm797_vm2, %v2379_v52  ;;  %v2381_v56 = vmul.f32 %v11902_v62, %v11900_v39  ;;  %v11904_v53 = vpop.eup %11903 }
 0x27e   : > { %11134 = vmatprep.subr.bf16.mxu1 %v11133_v23 }
 0x27f   : > { %v11906_v63 = vpop.eup %11905  ;;  %11136 = vmatpush3.bf16.msra.mxu1 %v11133_v23 }
 0x280   : > { %v2380_v0 = vmul.f32 %v11906_v63, %v11904_v53  ;;  %v11908_v1 = vpop.eup %11907  ;;  %11146 = vmatprep.subr.bf16.mxu1 %v11145_v31  ;;  %v2712_v53 = vld [vmem:[#allocation5 + $0xb0] sm:$0xff]  ;;  %v2713_v63 = vld [vmem:[#allocation5 + $0xb8] sm:$0xff] }
 0x281   : > { %v11157_v14 = vpack.c.bf16 %v2713_v63, %v2712_v53  ;;  %v3715_v53 = vld [vmem:[#allocation5 + $0x100] sm:$0xff] }
 0x282   : > { %10179 = vmatprep.mubr.msk.f32.mxu1 %vm797_vm2, %v2380_v0  ;;  %10202 = vmatprep.mubr.msk.f32.mxu0 %vm797_vm2, %v2380_v0  ;;  %v2707_v0 = vld [vmem:[#allocation3 + $0xb0] sm:$0xff] }
 0x283   : > { %v11910_v2 = vpop.eup %11909  ;;  %10180 = vmatmul.mubr.msk.f32.gmra.mrb[20].mxu1 %vm797_vm2, %v2381_v56  ;;  %10203 = vmatmul.mubr.msk.f32.gmra.mrb[22].mxu0 %vm797_vm2, %v2381_v56 }
 0x284   : > { %v2383_v3 = vmul.f32 %v11910_v2, %v11908_v1  ;;  %v11912_v5 = vpop.eup %11911  ;;  %v2708_v1 = vld [vmem:[#allocation3 + $0xb8] sm:$0xff] }
 0x287   : > { %v11914_v6 = vpop.eup %11913 }
 0x288   : > { %v2382_v12 = vmul.f32 %v11914_v6, %v11912_v5 }
 0x28a   : > { %10182 = vmatprep.mubr.msk.f32.mxu1 %vm797_vm2, %v2382_v12  ;;  %10205 = vmatprep.mubr.msk.f32.mxu0 %vm797_vm2, %v2382_v12 }
 0x28b   : > { %10183 = vmatmul.mubr.msk.f32.gmra.mrb[22].mxu1 %vm797_vm2, %v2383_v3  ;;  %10206 = vmatmul.mubr.msk.f32.gmra.mrb[24].mxu0 %vm797_vm2, %v2383_v3 }
 0x348   : > { %v10195_v33 = vpop.f32.mrb[16].mxu0 }
 0x349   : > { %v2621_v26 = vadd.f32 %v10195_v33, %v12677_v32  ;;  %v2615_v34 = vpop.f32.mrb[17].mxu0  ;;  %v11161_v33 = vpack.c.bf16 %v3266_v40, %v3265_v19  ;;  %v3718_v19 = vld [vmem:[#allocation5 + $0x118] sm:$0xff] }
 0x34a   : > { %v2616_v30 = vadd.f32 %v12677_v32, %v2615_v34 }
 0x34b   : > { %v2665_v35 = vadd.f32 %v2621_v26, %v12441_v58 }
 0x34c   : > { %v2664_v36 = vadd.f32 %v2616_v30, %v12447_v60  ;;  %v10198_v37 = vpop.f32.mrb[18].mxu0 }
 0x34d   : > { %v12684_v47 = vmul.f32 %v2665_v35, %v12425_v43  ;;  %v2631_v50 = vadd.f32 %v10198_v37, %v12677_v32  ;;  %v2625_v38 = vpop.f32.mrb[19].mxu0 }
 0x34e   : > { %v12688_v51 = vmul.f32 %v2664_v36, %v12421_v41  ;;  %v2626_v52 = vadd.f32 %v12677_v32, %v2625_v38 }
 0x34f   : > { %2685 = vst.msk [vmem:[#allocation2 + $0x18] sm:$0xff] %vm797_vm2, %v12684_v47  ;;  %v2667_v54 = vadd.f32 %v2631_v50, %v12465_v8 }
 0x350   : > { %2684 = vst.msk [vmem:[#allocation2 + $0x10] sm:$0xff] %vm797_vm2, %v12688_v51  ;;  %v2666_v58 = vadd.f32 %v2626_v52, %v12471_v10  ;;  %v10201_v60 = vpop.f32.mrb[20].mxu0  ;;  %v3417_v52 = vld [vmem:[#allocation5 + $0xf0] sm:$0xff] }
 0x351   : > { %v12698_v55 = vmul.f32 %v2667_v54, %v12427_v44  ;;  %v2641_v39 = vadd.f32 %v10201_v60, %v12677_v32  ;;  %v2635_v57 = vpop.f32.mrb[21].mxu0  ;;  %v3418_v54 = vld [vmem:[#allocation5 + $0xf8] sm:$0xff] }
 0x352   : > { %v12702_v62 = vmul.f32 %v2666_v58, %v12423_v42  ;;  %v2636_v56 = vadd.f32 %v12677_v32, %v2635_v57  ;;  %v11173_v60 = vpack.c.bf16 %v3418_v54, %v3417_v52  ;;  %v3267_v57 = vld [vmem:[#allocation3 + $0xf0] sm:$0xff] }
 0x353   : > { %2687 = vst.msk [vmem:[#allocation2 + $0x28] sm:$0xff] %vm797_vm2, %v12698_v55  ;;  %v2669_v8 = vadd.f32 %v2641_v39, %v12485_v20  ;;  %v4017_v54 = vld [vmem:[#allocation5 + $0x130] sm:$0xff] }
 0x354   : > { %2686 = vst.msk [vmem:[#allocation2 + $0x20] sm:$0xff] %vm797_vm2, %v12702_v62  ;;  %v2668_v10 = vadd.f32 %v2636_v56, %v12488_v21  ;;  %v11149_v21 = vpack.c.bf16 %v2708_v1, %v2707_v0  ;;  %v3268_v56 = vld [vmem:[#allocation3 + $0xf8] sm:$0xff] }
 0x355   : > { %v12712_v2 = vmul.f32 %v2669_v8, %v12431_v46  ;;  %v11165_v63 = vpack.c.bf16 %v3268_v56, %v3267_v57  ;;  %v3867_v56 = vld [vmem:[#allocation3 + $0x130] sm:$0xff] }
 0x356   : > { %v12715_v3 = vmul.f32 %v2668_v10, %v12429_v45  ;;  %v10204_v5 = vpop.f32.mrb[22].mxu0  ;;  %v3716_v10 = vld [vmem:[#allocation5 + $0x108] sm:$0xff] }
 0x357   : > { %2689 = vst.msk [vmem:[#allocation2 + $0x38] sm:$0xff] %vm797_vm2, %v12712_v2  ;;  %v2651_v20 = vadd.f32 %v10204_v5, %v12677_v32  ;;  %v2645_v6 = vpop.f32.mrb[23].mxu0  ;;  %v2714_v12 = vld [vmem:[#allocation2 + $0xf] sm:$0xff]  ;;  %v2715_v13 = vld [vmem:[#allocation2 + $0x17] sm:$0xff]  ;;  %v11185_v1 = vpack.c.bf16 %v3716_v10, %v3715_v53 }
 0x358   : > { %2688 = vst.msk [vmem:[#allocation2 + $0x30] sm:$0xff] %vm797_vm2, %v12715_v3  ;;  %v2646_v16 = vadd.f32 %v12677_v32, %v2645_v6  ;;  %10216 = vmatprep.mubr.msk.f32.mxu1 %vm797_vm2, %v2714_v12  ;;  %10239 = vmatprep.mubr.msk.f32.mxu0 %vm797_vm2, %v2714_v12  ;;  %v2694_v58 = vld [vmem:[#allocation2 + $0xe] sm:$0xff]  ;;  %v2695_v39 = vld [vmem:[#allocation2 + $0x16] sm:$0xff] }
 0x359   : > { %v2671_v22 = vadd.f32 %v2651_v20, %v12444_v59  ;;  %10217 = vmatmul.mubr.msk.f32.vlgmr.msra.gmra.mrb[24].mxu1 %vm797_vm2, %v2715_v13  ;;  %10240 = vmatmul.mubr.msk.f32.vlgmr.msra.gmra.mrb[26].mxu0 %vm797_vm2, %v2715_v13  ;;  %v3565_v5 = vld [vmem:[#allocation3 + $0x100] sm:$0xff]  ;;  %v3566_v20 = vld [vmem:[#allocation3 + $0x108] sm:$0xff] }
 0x35a   : > { %v2670_v23 = vadd.f32 %v2646_v16, %v12450_v61  ;;  %11156 = vmatpush3.bf16.msra.mxu0 %v11153_v25  ;;  %11148 = vmatpush3.bf16.msra.mxu1 %v11145_v31  ;;  %v11177_v12 = vpack.c.bf16 %v3566_v20, %v3565_v5  ;;  %v3254_v40 = vld [vmem:[#allocation2 + $0x10] sm:$0xff] }
 0x35b   : > { %v12730_v17 = vmul.f32 %v2671_v22, %v12438_v49  ;;  %v2716_v24 = vld [vmem:[#allocation2 + $0x1f] sm:$0xff]  ;;  %v2717_v27 = vld [vmem:[#allocation2 + $0x27] sm:$0xff]  ;;  %11158 = vmatprep.subr.bf16.mxu0 %v11157_v14  ;;  %11150 = vmatprep.subr.bf16.mxu1 %v11149_v21  ;;  %v11189_v22 = vpack.c.bf16 %v3718_v19, %v3717_v18 }
 0x35c   : > { %v12733_v26 = vmul.f32 %v2670_v23, %v12436_v48  ;;  %10219 = vmatprep.mubr.msk.f32.mxu1 %vm797_vm2, %v2716_v24  ;;  %10242 = vmatprep.mubr.msk.f32.mxu0 %vm797_vm2, %v2716_v24  ;;  %v2696_v8 = vld [vmem:[#allocation2 + $0x1e] sm:$0xff]  ;;  %v2697_v0 = vld [vmem:[#allocation2 + $0x26] sm:$0xff] }
 0x35d   : > { %2691 = vst.msk [vmem:[#allocation2 + $0x48] sm:$0xff] %vm797_vm2, %v12730_v17  ;;  %10220 = vmatmul.mubr.msk.f32.gmra.mrb[26].mxu1 %vm797_vm2, %v2717_v27  ;;  %10243 = vmatmul.mubr.msk.f32.gmra.mrb[28].mxu0 %vm797_vm2, %v2717_v27  ;;  %v3255_v23 = vld [vmem:[#allocation2 + $0x18] sm:$0xff]  ;;  %v3567_v24 = vld [vmem:[#allocation3 + $0x110] sm:$0xff]  ;;  %v3568_v27 = vld [vmem:[#allocation3 + $0x118] sm:$0xff] }
 0x35e   : > { %2690 = vst.msk [vmem:[#allocation2 + $0x40] sm:$0xff] %vm797_vm2, %v12733_v26  ;;  %v10207_v59 = vpop.f32.mrb[24].mxu0  ;;  %11160 = vmatpush3.bf16.msra.mxu0 %v11157_v14  ;;  %11152 = vmatpush3.bf16.msra.mxu1 %v11149_v21  ;;  %v3555_v57 = vld [vmem:[#allocation2 + $0x19] sm:$0xff]  ;;  %v3556_v53 = vld [vmem:[#allocation2 + $0x21] sm:$0xff] }
 0x35f   : > { %v2661_v61 = vadd.f32 %v10207_v59, %v12677_v32  ;;  %v2655_v25 = vpop.f32.mrb[25].mxu0  ;;  %v2718_v31 = vld [vmem:[#allocation2 + $0x2f] sm:$0xff]  ;;  %v2719_v34 = vld [vmem:[#allocation2 + $0x37] sm:$0xff]  ;;  %11170 = vmatprep.subr.bf16.mxu0 %v11169_v29  ;;  %11162 = vmatprep.subr.bf16.mxu1 %v11161_v33 }
 0x360   : > { %v2656_v30 = vadd.f32 %v12677_v32, %v2655_v25  ;;  %10222 = vmatprep.mubr.msk.f32.mxu1 %vm797_vm2, %v2718_v31  ;;  %10245 = vmatprep.mubr.msk.f32.mxu0 %vm797_vm2, %v2718_v31  ;;  %v2698_v6 = vld [vmem:[#allocation2 + $0x2e] sm:$0xff]  ;;  %v2699_v13 = vld [vmem:[#allocation2 + $0x36] sm:$0xff] }
 0x361   : > { %v2673_v35 = vadd.f32 %v2661_v61, %v12468_v9  ;;  %10223 = vmatmul.mubr.msk.f32.gmra.mrb[28].mxu1 %vm797_vm2, %v2719_v34  ;;  %10246 = vmatmul.mubr.msk.f32.gmra.mrb[30].mxu0 %vm797_vm2, %v2719_v34  ;;  %v4016_v59 = vld [vmem:[#allocation5 + $0x128] sm:$0xff]  ;;  %v11181_v61 = vpack.c.bf16 %v3568_v27, %v3567_v24  ;;  %v3257_v25 = vld [vmem:[#allocation2 + $0x28] sm:$0xff]  ;;  %v3865_v34 = vld [vmem:[#allocation3 + $0x120] sm:$0xff] }
 0x362   : > { %v2672_v36 = vadd.f32 %v2656_v30, %v12474_v11  ;;  %v3866_v30 = vld [vmem:[#allocation3 + $0x128] sm:$0xff]  ;;  %v8923_v24 = vld [vmem:[%s13493_s8 + $0x20] sm:$0xff]  ;;  %v8924_v27 = vld [vmem:[%s13493_s8 + $0x28] sm:$0xff] }
 0x363   : > { %v12752_v37 = vmul.f32 %v2673_v35, %v12456_v4  ;;  %v3258_v35 = vld [vmem:[#allocation2 + $0x30] sm:$0xff] }
 0x364   : > { %v12755_v50 = vmul.f32 %v2672_v36, %v12462_v7  ;;  %v11193_v36 = vpack.c.bf16 %v3866_v30, %v3865_v34  ;;  %v8909_v34 = vld [vmem:[%s13495_s10 + $0x30] sm:$0xff] }
 0x365   : > { %2693 = vst.msk [vmem:[#allocation2 + $0x58] sm:$0xff] %vm797_vm2, %v12752_v37  ;;  %v2720_v32 = vld [vmem:[#allocation2 + $0x3f] sm:$0xff]  ;;  %v2721_v38 = vld [vmem:[#allocation2 + $0x47] sm:$0xff] }
 0x366   : > { %2692 = vst.msk [vmem:[#allocation2 + $0x50] sm:$0xff] %vm797_vm2, %v12755_v50  ;;  %10225 = vmatprep.mubr.msk.f32.mxu1 %vm797_vm2, %v2720_v32  ;;  %10248 = vmatprep.mubr.msk.f32.mxu0 %vm797_vm2, %v2720_v32  ;;  %v2700_v14 = vld [vmem:[#allocation2 + $0x3e] sm:$0xff]  ;;  %v2701_v21 = vld [vmem:[#allocation2 + $0x46] sm:$0xff] }
 0x367   : > { %10226 = vmatmul.mubr.msk.f32.gmra.mrb[30].mxu1 %vm797_vm2, %v2721_v38  ;;  %10249 = vmatmul.mubr.msk.f32.gmra.mrb[32].mxu0 %vm797_vm2, %v2721_v38  ;;  %v3259_v32 = vld [vmem:[#allocation2 + $0x38] sm:$0xff]  ;;  %v3260_v38 = vld [vmem:[#allocation2 + $0x40] sm:$0xff] }
 0x368   : > { %v3560_v5 = vld [vmem:[#allocation2 + $0x41] sm:$0xff] }
 0x369   : > { %v3859_v18 = vld [vmem:[#allocation2 + $0x3a] sm:$0xff]  ;;  %v3860_v19 = vld [vmem:[#allocation2 + $0x42] sm:$0xff] }
 0x36c   : > { %v3263_v52 = vld [vmem:[#allocation2 + $0x58] sm:$0xff] }
 0x36d   : > { %v2722_v9 = vld [vmem:[#allocation2 + $0x4f] sm:$0xff]  ;;  %v2723_v11 = vld [vmem:[#allocation2 + $0x57] sm:$0xff] }
 0x36e   : > { %10228 = vmatprep.mubr.msk.f32.mxu1 %vm797_vm2, %v2722_v9  ;;  %10251 = vmatprep.mubr.msk.f32.mxu0 %vm797_vm2, %v2722_v9  ;;  %v2702_v15 = vld [vmem:[#allocation2 + $0x4e] sm:$0xff]  ;;  %v2703_v16 = vld [vmem:[#allocation2 + $0x56] sm:$0xff] }
 0x36f   : > { %10229 = vmatmul.mubr.msk.f32.gmra.mrb[32].mxu1 %vm797_vm2, %v2723_v11  ;;  %10252 = vmatmul.mubr.msk.f32.gmra.mrb[34].mxu0 %vm797_vm2, %v2723_v11  ;;  %v3261_v9 = vld [vmem:[#allocation2 + $0x48] sm:$0xff]  ;;  %v3262_v11 = vld [vmem:[#allocation2 + $0x50] sm:$0xff] }
 0x370   : > { %10262 = vmatprep.mubr.msk.f32.mxu1 %vm797_vm2, %v2694_v58  ;;  %10285 = vmatprep.mubr.msk.f32.mxu0 %vm797_vm2, %v2694_v58  ;;  %v4018_v58 = vld [vmem:[#allocation5 + $0x138] sm:$0xff] }
 0x371   : > { %v3561_v20 = vld [vmem:[#allocation2 + $0x49] sm:$0xff] }
 0x373   : > { %10263 = vmatmul.mubr.msk.f32.vlgmr.msra.gmra.mrb[24].mxu1 %vm797_vm2, %v2695_v39  ;;  %10286 = vmatmul.mubr.msk.f32.vlgmr.msra.gmra.mrb[26].mxu0 %vm797_vm2, %v2695_v39  ;;  %v11205_v39 = vpack.c.bf16 %v4018_v58, %v4017_v54 }
 0x374   : > { %11172 = vmatpush3.bf16.msra.mxu0 %v11169_v29  ;;  %10265 = vmatprep.mubr.msk.f32.mxu1 %vm797_vm2, %v2696_v8  ;;  %v3256_v29 = vld [vmem:[#allocation2 + $0x20] sm:$0xff] }
 0x375   : > { %10288 = vmatprep.mubr.msk.f32.mxu0 %vm797_vm2, %v2696_v8  ;;  %11174 = vmatprep.subr.bf16.mxu0 %v11173_v60  ;;  %v3868_v8 = vld [vmem:[#allocation3 + $0x138] sm:$0xff] }
 0x376   : > { %11164 = vmatpush3.bf16.msra.mxu1 %v11161_v33  ;;  %v4015_v33 = vld [vmem:[#allocation5 + $0x120] sm:$0xff]  ;;  %v11197_v10 = vpack.c.bf16 %v3868_v8, %v3867_v56  ;;  %v12886_v8 = vld [vmem:[%s13491_s6 + $0x1] ss:$0 sm:$0xff] }
 0x377   : > { %10266 = vmatmul.mubr.msk.f32.gmra.mrb[26].mxu1 %vm797_vm2, %v2697_v0  ;;  %10289 = vmatmul.mubr.msk.f32.gmra.mrb[28].mxu0 %vm797_vm2, %v2697_v0  ;;  %v11201_v31 = vpack.c.bf16 %v4016_v59, %v4015_v33  ;;  %v3558_v0 = vld [vmem:[#allocation2 + $0x31] sm:$0xff]  ;;  %v11217_v33 = vpack.c.bf16 %v8924_v27, %v8923_v24  ;;  %v8908_v59 = vld [vmem:[%s13495_s10 + $0x28] sm:$0xff] }
 0x378   : > { %10268 = vmatprep.mubr.msk.f32.mxu1 %vm797_vm2, %v2698_v6  ;;  %10291 = vmatprep.mubr.msk.f32.mxu0 %vm797_vm2, %v2698_v6  ;;  %v3562_v6 = vld [vmem:[#allocation2 + $0x51] sm:$0xff] }
 0x379   : > { %11176 = vmatpush3.bf16.msra.mxu0 %v11173_v60  ;;  %11166 = vmatprep.subr.bf16.mxu1 %v11165_v63  ;;  %v3554_v60 = vld [vmem:[#allocation2 + $0x11] sm:$0xff] }
 0x37a   : > { %11168 = vmatpush3.bf16.msra.mxu1 %v11165_v63  ;;  %11186 = vmatprep.subr.bf16.mxu0 %v11185_v1  ;;  %v3557_v63 = vld [vmem:[#allocation2 + $0x29] sm:$0xff] }
 0x37b   : > { %10269 = vmatmul.mubr.msk.f32.gmra.mrb[28].mxu1 %vm797_vm2, %v2699_v13  ;;  %10292 = vmatmul.mubr.msk.f32.gmra.mrb[30].mxu0 %vm797_vm2, %v2699_v13  ;;  %v3854_v13 = vld [vmem:[#allocation2 + $0x12] sm:$0xff] }
 0x37c   : > { %10271 = vmatprep.mubr.msk.f32.mxu1 %vm797_vm2, %v2700_v14  ;;  %10294 = vmatprep.mubr.msk.f32.mxu0 %vm797_vm2, %v2700_v14  ;;  %v3855_v14 = vld [vmem:[#allocation2 + $0x1a] sm:$0xff] }
 0x37d   : > { %11178 = vmatprep.subr.bf16.mxu1 %v11177_v12 }
 0x37f   : > { %10272 = vmatmul.mubr.msk.f32.gmra.mrb[30].mxu1 %vm797_vm2, %v2701_v21  ;;  %10295 = vmatmul.mubr.msk.f32.gmra.mrb[32].mxu0 %vm797_vm2, %v2701_v21  ;;  %v3856_v21 = vld [vmem:[#allocation2 + $0x22] sm:$0xff] }
 0x380   : > { %10274 = vmatprep.mubr.msk.f32.mxu1 %vm797_vm2, %v2702_v15  ;;  %10297 = vmatprep.mubr.msk.f32.mxu0 %vm797_vm2, %v2702_v15  ;;  %v3857_v15 = vld [vmem:[#allocation2 + $0x2a] sm:$0xff] }
 0x383   : > { %10275 = vmatmul.mubr.msk.f32.gmra.mrb[32].mxu1 %vm797_vm2, %v2703_v16  ;;  %10298 = vmatmul.mubr.msk.f32.gmra.mrb[34].mxu0 %vm797_vm2, %v2703_v16  ;;  %v3858_v16 = vld [vmem:[#allocation2 + $0x32] sm:$0xff] }
 0x384   : > { %10308 = vmatprep.mubr.msk.f32.mxu1 %vm797_vm2, %v3254_v40  ;;  %10331 = vmatprep.mubr.msk.f32.mxu0 %vm797_vm2, %v3254_v40  ;;  %v3861_v40 = vld [vmem:[#allocation2 + $0x4a] sm:$0xff] }
 0x387   : > { %10309 = vmatmul.mubr.msk.f32.vlgmr.msra.gmra.mrb[24].mxu1 %vm797_vm2, %v3255_v23  ;;  %10332 = vmatmul.mubr.msk.f32.vlgmr.msra.gmra.mrb[26].mxu0 %vm797_vm2, %v3255_v23  ;;  %v3863_v23 = vld [vmem:[#allocation2 + $0x5a] sm:$0xff] }
 0x388   : > { %11188 = vmatpush3.bf16.msra.mxu0 %v11185_v1  ;;  %10311 = vmatprep.mubr.msk.f32.mxu1 %vm797_vm2, %v3256_v29  ;;  %v3559_v1 = vld [vmem:[#allocation2 + $0x39] sm:$0xff] }
 0x389   : > { %10334 = vmatprep.mubr.msk.f32.mxu0 %vm797_vm2, %v3256_v29  ;;  %11190 = vmatprep.subr.bf16.mxu0 %v11189_v22  ;;  %v8907_v29 = vld [vmem:[%s13495_s10 + $0x20] sm:$0xff] }
 0x38a   : > { %11180 = vmatpush3.bf16.msra.mxu1 %v11177_v12  ;;  %v3563_v12 = vld [vmem:[#allocation2 + $0x59] sm:$0xff] }
 0x38b   : > { %10312 = vmatmul.mubr.msk.f32.gmra.mrb[26].mxu1 %vm797_vm2, %v3257_v25  ;;  %10335 = vmatmul.mubr.msk.f32.gmra.mrb[28].mxu0 %vm797_vm2, %v3257_v25  ;;  %v8925_v25 = vld [vmem:[%s13493_s8 + $0x30] sm:$0xff] }
 0x38c   : > { %10314 = vmatprep.mubr.msk.f32.mxu1 %vm797_vm2, %v3258_v35  ;;  %10337 = vmatprep.mubr.msk.f32.mxu0 %vm797_vm2, %v3258_v35  ;;  %v8910_v35 = vld [vmem:[%s13495_s10 + $0x38] sm:$0xff] }
 0x38d   : > { %11192 = vmatpush3.bf16.msra.mxu0 %v11189_v22  ;;  %11182 = vmatprep.subr.bf16.mxu1 %v11181_v61  ;;  %v3862_v22 = vld [vmem:[#allocation2 + $0x52] sm:$0xff] }
 0x38e   : > { %11184 = vmatpush3.bf16.msra.mxu1 %v11181_v61  ;;  %11202 = vmatprep.subr.bf16.mxu0 %v11201_v31  ;;  %v11209_v61 = vpack.c.bf16 %v8908_v59, %v8907_v29 }
 0x38f   : > { %10315 = vmatmul.mubr.msk.f32.gmra.mrb[28].mxu1 %vm797_vm2, %v3259_v32  ;;  %10338 = vmatmul.mubr.msk.f32.gmra.mrb[30].mxu0 %vm797_vm2, %v3259_v32  ;;  %v4773_v32 = vld [vmem:[#allocation5 + $0x160] sm:$0xff] }
 0x390   : > { %10317 = vmatprep.mubr.msk.f32.mxu1 %vm797_vm2, %v3260_v38  ;;  %10340 = vmatprep.mubr.msk.f32.mxu0 %vm797_vm2, %v3260_v38  ;;  %v4774_v38 = vld [vmem:[#allocation5 + $0x168] sm:$0xff] }
 0x391   : > { %11194 = vmatprep.subr.bf16.mxu1 %v11193_v36 }
 0x393   : > { %10318 = vmatmul.mubr.msk.f32.gmra.mrb[30].mxu1 %vm797_vm2, %v3261_v9  ;;  %10341 = vmatmul.mubr.msk.f32.gmra.mrb[32].mxu0 %vm797_vm2, %v3261_v9  ;;  %v12873_v9 = vpack.c.bf16 %v4774_v38, %v4773_v32 }
 0x394   : > { %10320 = vmatprep.mubr.msk.f32.mxu1 %vm797_vm2, %v3262_v11  ;;  %10343 = vmatprep.mubr.msk.f32.mxu0 %vm797_vm2, %v3262_v11  ;;  %v12879_v11 = vld [vmem:[%s13492_s7 + $0x1] ss:$0 sm:$0xff] }
 0x397   : > { %10321 = vmatmul.mubr.msk.f32.gmra.mrb[32].mxu1 %vm797_vm2, %v3263_v52  ;;  %10344 = vmatmul.mubr.msk.f32.gmra.mrb[34].mxu0 %vm797_vm2, %v3263_v52 }
 0x398   : > { %10354 = vmatprep.mubr.msk.f32.mxu1 %vm797_vm2, %v3554_v60  ;;  %10377 = vmatprep.mubr.msk.f32.mxu0 %vm797_vm2, %v3554_v60 }
 0x39b   : > { %10355 = vmatmul.mubr.msk.f32.vlgmr.msra.gmra.mrb[24].mxu1 %vm797_vm2, %v3555_v57  ;;  %10378 = vmatmul.mubr.msk.f32.vlgmr.msra.gmra.mrb[26].mxu0 %vm797_vm2, %v3555_v57 }
 0x39c   : > { %11204 = vmatpush3.bf16.msra.mxu0 %v11201_v31  ;;  %10357 = vmatprep.mubr.msk.f32.mxu1 %vm797_vm2, %v3556_v53  ;;  %v8926_v31 = vld [vmem:[%s13493_s8 + $0x38] sm:$0xff] }
 0x39d   : > { %10380 = vmatprep.mubr.msk.f32.mxu0 %vm797_vm2, %v3556_v53  ;;  %11206 = vmatprep.subr.bf16.mxu0 %v11205_v39  ;;  %v11221_v30 = vpack.c.bf16 %v8926_v31, %v8925_v25 }
 0x39e   : > { %11196 = vmatpush3.bf16.msra.mxu1 %v11193_v36  ;;  %v11213_v36 = vpack.c.bf16 %v8910_v35, %v8909_v34 }
 0x39f   : > { %10358 = vmatmul.mubr.msk.f32.gmra.mrb[26].mxu1 %vm797_vm2, %v3557_v63  ;;  %10381 = vmatmul.mubr.msk.f32.gmra.mrb[28].mxu0 %vm797_vm2, %v3557_v63 }
 0x3a0   : > { %10360 = vmatprep.mubr.msk.f32.mxu1 %vm797_vm2, %v3558_v0  ;;  %10383 = vmatprep.mubr.msk.f32.mxu0 %vm797_vm2, %v3558_v0 }
 0x3a1   : > { %11208 = vmatpush3.bf16.msra.mxu0 %v11205_v39  ;;  %11198 = vmatprep.subr.bf16.mxu1 %v11197_v10 }
 0x3a2   : > { %11200 = vmatpush3.bf16.msra.mxu1 %v11197_v10  ;;  %11218 = vmatprep.subr.bf16.mxu0 %v11217_v33 }
 0x3a3   : > { %10361 = vmatmul.mubr.msk.f32.gmra.mrb[28].mxu1 %vm797_vm2, %v3559_v1  ;;  %10384 = vmatmul.mubr.msk.f32.gmra.mrb[30].mxu0 %vm797_vm2, %v3559_v1 }
 0x3a4   : > { %10363 = vmatprep.mubr.msk.f32.mxu1 %vm797_vm2, %v3560_v5  ;;  %10386 = vmatprep.mubr.msk.f32.mxu0 %vm797_vm2, %v3560_v5 }
 0x3a5   : > { %11210 = vmatprep.subr.bf16.mxu1 %v11209_v61 }
 0x3a7   : > { %10364 = vmatmul.mubr.msk.f32.gmra.mrb[30].mxu1 %vm797_vm2, %v3561_v20  ;;  %10387 = vmatmul.mubr.msk.f32.gmra.mrb[32].mxu0 %vm797_vm2, %v3561_v20 }
 0x3a8   : > { %10366 = vmatprep.mubr.msk.f32.mxu1 %vm797_vm2, %v3562_v6  ;;  %10389 = vmatprep.mubr.msk.f32.mxu0 %vm797_vm2, %v3562_v6 }
 0x3ab   : > { %10367 = vmatmul.mubr.msk.f32.gmra.mrb[32].mxu1 %vm797_vm2, %v3563_v12  ;;  %10390 = vmatmul.mubr.msk.f32.gmra.mrb[34].mxu0 %vm797_vm2, %v3563_v12 }
 0x3ac   : > { %10400 = vmatprep.mubr.msk.f32.mxu1 %vm797_vm2, %v3854_v13  ;;  %10423 = vmatprep.mubr.msk.f32.mxu0 %vm797_vm2, %v3854_v13 }
 0x3af   : > { %10401 = vmatmul.mubr.msk.f32.vlgmr.msra.gmra.mrb[24].mxu1 %vm797_vm2, %v3855_v14  ;;  %10424 = vmatmul.mubr.msk.f32.vlgmr.msra.gmra.mrb[26].mxu0 %vm797_vm2, %v3855_v14 }
 0x3b0   : > { %10403 = vmatprep.mubr.msk.f32.mxu1 %vm797_vm2, %v3856_v21  ;;  %10426 = vmatprep.mubr.msk.f32.mxu0 %vm797_vm2, %v3856_v21 }
 0x3b1   : > { %11220 = vmatpush3.bf16.msra.mxu0 %v11217_v33  ;;  %11212 = vmatpush3.bf16.msra.mxu1 %v11209_v61 }
 0x3b2   : > { %11222 = vmatprep.subr.bf16.mxu0 %v11221_v30  ;;  %11214 = vmatprep.subr.bf16.mxu1 %v11213_v36 }
 0x3b3   : > { %10404 = vmatmul.mubr.msk.f32.gmra.mrb[26].mxu1 %vm797_vm2, %v3857_v15  ;;  %10427 = vmatmul.mubr.msk.f32.gmra.mrb[28].mxu0 %vm797_vm2, %v3857_v15 }
 0x3b4   : > { %10406 = vmatprep.mubr.msk.f32.mxu1 %vm797_vm2, %v3858_v16  ;;  %10429 = vmatprep.mubr.msk.f32.mxu0 %vm797_vm2, %v3858_v16 }
 0x3b5   : > { %11224 = vmatpush3.bf16.msra.mxu0 %v11221_v30  ;;  %11216 = vmatpush3.bf16.msra.mxu1 %v11213_v36 }
 0x3b6   : > { %11234 = vmatprep.subr.bf16.mxu0 %v12873_v9 }
 0x3b7   : > { %10407 = vmatmul.mubr.msk.f32.gmra.mrb[28].mxu1 %vm797_vm2, %v3859_v18  ;;  %10430 = vmatmul.mubr.msk.f32.gmra.mrb[30].mxu0 %vm797_vm2, %v3859_v18 }
 0x3b8   : > { %10409 = vmatprep.mubr.msk.f32.mxu1 %vm797_vm2, %v3860_v19  ;;  %10432 = vmatprep.mubr.msk.f32.mxu0 %vm797_vm2, %v3860_v19 }
 0x3bb   : > { %10410 = vmatmul.mubr.msk.f32.gmra.mrb[30].mxu1 %vm797_vm2, %v3861_v40  ;;  %10433 = vmatmul.mubr.msk.f32.gmra.mrb[32].mxu0 %vm797_vm2, %v3861_v40 }
 0x3bc   : > { %10412 = vmatprep.mubr.msk.f32.mxu1 %vm797_vm2, %v3862_v22  ;;  %10435 = vmatprep.mubr.msk.f32.mxu0 %vm797_vm2, %v3862_v22 }
 0x3bf   : > { %10413 = vmatmul.mubr.msk.f32.gmra.mrb[32].mxu1 %vm797_vm2, %v3863_v23  ;;  %10436 = vmatmul.mubr.msk.f32.gmra.mrb[34].mxu0 %vm797_vm2, %v3863_v23 }
 0x482   : > { %v10402_v52 = vpop.f32.mrb[24].mxu1  ;;  %v10425_v54 = vpop.f32.mrb[26].mxu0 }
 0x483   : > { %v4191_v58 = vadd.f32 %v10425_v54, %v12879_v11  ;;  %v3965_v60 = vpop.f32.mrb[25].mxu1  ;;  %v4085_v39 = vpop.f32.mrb[27].mxu0  ;;  %v4163_v6 = vadd.f32 %v10402_v52, %v12886_v8 }
 0x484   : > { %v4190_v57 = vadd.f32 %v12879_v11, %v4085_v39  ;;  %v4162_v13 = vadd.f32 %v12886_v8, %v3965_v60 }
 0x485   : > { %v8898_v56 = vmul.f32 -1.442695, %v4191_v58 }
 0x486   : > { %v8897_v53 = vmul.f32 -1.442695, %v4190_v57  ;;  %v10405_v10 = vpop.f32.mrb[26].mxu1  ;;  %v10428_v63 = vpop.f32.mrb[28].mxu0 }
 0x487   : > { %11915 = vpow2.f32 %v8898_v56  ;;  %v4193_v0 = vadd.f32 %v10428_v63, %v12879_v11  ;;  %v3975_v1 = vpop.f32.mrb[27].mxu1  ;;  %v4095_v5 = vpop.f32.mrb[29].mxu0  ;;  %v4165_v22 = vadd.f32 %v10405_v10, %v12886_v8 }
 0x488   : > { %11917 = vpow2.f32 %v8897_v53  ;;  %v4192_v20 = vadd.f32 %v12879_v11, %v4095_v5  ;;  %v4164_v24 = vadd.f32 %v12886_v8, %v3975_v1 }
 0x489   : > { %v8900_v12 = vmul.f32 -1.442695, %v4193_v0 }
 0x48a   : > { %v8899_v14 = vmul.f32 -1.442695, %v4192_v20  ;;  %v10408_v21 = vpop.f32.mrb[28].mxu1  ;;  %v10431_v15 = vpop.f32.mrb[30].mxu0 }
 0x48b   : > { %11919 = vpow2.f32 %v8900_v12  ;;  %v4195_v16 = vadd.f32 %v10431_v15, %v12879_v11  ;;  %v3985_v18 = vpop.f32.mrb[29].mxu1  ;;  %v4105_v19 = vpop.f32.mrb[31].mxu0  ;;  %v4167_v58 = vadd.f32 %v10408_v21, %v12886_v8 }
 0x48c   : > { %11921 = vpow2.f32 %v8899_v14  ;;  %v4194_v40 = vadd.f32 %v12879_v11, %v4105_v19  ;;  %v4166_v20 = vadd.f32 %v12886_v8, %v3985_v18 }
 0x48d   : > { %11923 = vtanh.f32 %v4163_v6  ;;  %v8902_v23 = vmul.f32 -1.442695, %v4195_v16 }
 0x48e   : > { %11925 = vtanh.f32 %v4162_v13  ;;  %v8901_v27 = vmul.f32 -1.442695, %v4194_v40  ;;  %v10411_v29 = vpop.f32.mrb[30].mxu1  ;;  %v10434_v33 = vpop.f32.mrb[32].mxu0 }
 0x48f   : > { %11927 = vpow2.f32 %v8902_v23  ;;  %v4197_v59 = vadd.f32 %v10434_v33, %v12879_v11  ;;  %v3995_v61 = vpop.f32.mrb[31].mxu1  ;;  %v4115_v25 = vpop.f32.mrb[33].mxu0  ;;  %v4169_v19 = vadd.f32 %v10411_v29, %v12886_v8 }
 0x490   : > { %11929 = vpow2.f32 %v8901_v27  ;;  %v4196_v31 = vadd.f32 %v12879_v11, %v4115_v25  ;;  %v4168_v18 = vadd.f32 %v12886_v8, %v3995_v61 }
 0x491   : > { %v11916_v34 = vpop.eup %11915  ;;  %11931 = vtanh.f32 %v4165_v22  ;;  %v8904_v30 = vmul.f32 -1.442695, %v4197_v59 }
 0x492   : > { %v11918_v35 = vpop.eup %11917  ;;  %v4231_v36 = vadd.f32 1.0, %v11916_v34  ;;  %11933 = vtanh.f32 %v4164_v24  ;;  %v8903_v32 = vmul.f32 -1.442695, %v4196_v31  ;;  %v10414_v38 = vpop.f32.mrb[32].mxu1 }
 0x493   : > { %v10437_v52 = vpop.f32.mrb[34].mxu0  ;;  %v4230_v54 = vadd.f32 1.0, %v11918_v35  ;;  %11935 = vpow2.f32 %v8904_v30  ;;  %v4005_v39 = vpop.f32.mrb[33].mxu1  ;;  %v4171_v29 = vadd.f32 %v10414_v38, %v12886_v8 }
 0x494   : > { %v4199_v60 = vadd.f32 %v10437_v52, %v12879_v11  ;;  %v4125_v57 = vpop.f32.mrb[35].mxu0  ;;  %11937 = vrcp.f32 %v4231_v36  ;;  %v4170_v38 = vadd.f32 %v12886_v8, %v4005_v39 }
 0x495   : > { %v11920_v56 = vpop.eup %11919  ;;  %11939 = vrcp.f32 %v4230_v54  ;;  %v4198_v0 = vadd.f32 %v12879_v11, %v4125_v57 }
 0x496   : > { %v11922_v53 = vpop.eup %11921  ;;  %v4233_v10 = vadd.f32 1.0, %v11920_v56  ;;  %11941 = vpow2.f32 %v8903_v32  ;;  %v8906_v63 = vmul.f32 -1.442695, %v4199_v60 }
 0x497   : > { %v11924_v1 = vpop.eup %11923  ;;  %v4232_v5 = vadd.f32 1.0, %v11922_v53  ;;  %11943 = vtanh.f32 %v4167_v58  ;;  %v8905_v21 = vmul.f32 -1.442695, %v4198_v0 }
 0x498   : > { %v11926_v6 = vpop.eup %11925  ;;  %11945 = vrcp.f32 %v4233_v10 }
 0x499   : > { %v11928_v12 = vpop.eup %11927  ;;  %11947 = vrcp.f32 %v4232_v5 }
 0x49a   : > { %v11930_v13 = vpop.eup %11929  ;;  %v4235_v14 = vadd.f32 1.0, %v11928_v12  ;;  %11949 = vpow2.f32 %v8906_v63 }
 0x49b   : > { %v11932_v15 = vpop.eup %11931  ;;  %11951 = vtanh.f32 %v4166_v20  ;;  %v4234_v16 = vadd.f32 1.0, %v11930_v13 }
 0x49c   : > { %v11934_v40 = vpop.eup %11933  ;;  %11953 = vrcp.f32 %v4235_v14  ;;  %v4775_v14 = vld [vmem:[#allocation5 + $0x170] sm:$0xff] }
 0x49d   : > { %v11936_v11 = vpop.eup %11935  ;;  %11955 = vrcp.f32 %v4234_v16  ;;  %v4623_v16 = vld [vmem:[#allocation3 + $0x160] sm:$0xff] }
 0x49e   : > { %v11938_v22 = vpop.eup %11937  ;;  %v4237_v23 = vadd.f32 1.0, %v11936_v11  ;;  %11957 = vpow2.f32 %v8905_v21  ;;  %v4776_v21 = vld [vmem:[#allocation5 + $0x178] sm:$0xff]  ;;  %v4625_v11 = vld [vmem:[#allocation3 + $0x170] sm:$0xff] }
 0x49f   : > { %v11940_v24 = vpop.eup %11939  ;;  %v4261_v27 = vmul.f32 %v11938_v22, %v11924_v1  ;;  %11959 = vtanh.f32 %v4169_v19  ;;  %v4624_v19 = vld [vmem:[#allocation3 + $0x168] sm:$0xff]  ;;  %v4626_v22 = vld [vmem:[#allocation3 + $0x178] sm:$0xff] }
 0x4a0   : > { %v11942_v33 = vpop.eup %11941  ;;  %11961 = vrcp.f32 %v4237_v23  ;;  %v4260_v59 = vmul.f32 %v11940_v24, %v11926_v6  ;;  %v11229_v23 = vpack.c.bf16 %v4626_v22, %v4625_v11  ;;  %v4609_v24 = vld [vmem:[#allocation5 + $0x148] sm:$0xff] }
 0x4a1   : > { %v11944_v25 = vpop.eup %11943  ;;  %v4236_v31 = vadd.f32 1.0, %v11942_v33  ;;  %11963 = vtanh.f32 %v4168_v18  ;;  %v4608_v18 = vld [vmem:[#allocation5 + $0x140] sm:$0xff]  ;;  %v5164_v11 = vld [vmem:[#allocation3 + $0x188] sm:$0xff] }
 0x4a2   : > { %v11946_v34 = vpop.eup %11945  ;;  %10446 = vmatprep.mubr.msk.f32.mxu1 %vm797_vm2, %v4260_v59  ;;  %10469 = vmatprep.mubr.msk.f32.mxu0 %vm797_vm2, %v4260_v59  ;;  %v4603_v33 = vld [vmem:[#allocation3 + $0x140] sm:$0xff]  ;;  %v4604_v59 = vld [vmem:[#allocation3 + $0x148] sm:$0xff] }
 0x4a3   : > { %v11948_v30 = vpop.eup %11947  ;;  %11965 = vrcp.f32 %v4236_v31  ;;  %10447 = vmatmul.mubr.msk.f32.vlgmr.msra.gmra.mrb[14].mxu1 %vm797_vm2, %v4261_v27  ;;  %10470 = vmatmul.mubr.msk.f32.vlgmr.msra.gmra.mrb[36].mxu0 %vm797_vm2, %v4261_v27  ;;  %v4263_v61 = vmul.f32 %v11946_v34, %v11932_v15  ;;  %v11237_v15 = vpack.c.bf16 %v4776_v21, %v4775_v14  ;;  %v11249_v27 = vpack.c.bf16 %v4609_v24, %v4608_v18  ;;  %v12930_v31 = vld [vmem:[%s13494_s9 + $0x1] ss:$0 sm:$0xff] }
 0x4a4   : > { %v11950_v35 = vpop.eup %11949  ;;  %v4262_v36 = vmul.f32 %v11948_v30, %v11934_v40  ;;  %11236 = vmatpush3.bf16.msra.mxu0 %v12873_v9  ;;  %11967 = vtanh.f32 %v4171_v29  ;;  %v11225_v40 = vpack.c.bf16 %v4624_v19, %v4623_v16  ;;  %v5314_v19 = vld [vmem:[#allocation5 + $0x188] sm:$0xff] }
 0x4a5   : > { %v11952_v32 = vpop.eup %11951  ;;  %v4239_v52 = vadd.f32 1.0, %v11950_v35  ;;  %11238 = vmatprep.subr.bf16.mxu0 %v11237_v15 }
 0x4a6   : > { %v11954_v54 = vpop.eup %11953  ;;  %10449 = vmatprep.mubr.msk.f32.mxu1 %vm797_vm2, %v4262_v36  ;;  %10472 = vmatprep.mubr.msk.f32.mxu0 %vm797_vm2, %v4262_v36 }
 0x4a7   : > { %v11956_v58 = vpop.eup %11955  ;;  %11969 = vrcp.f32 %v4239_v52  ;;  %10450 = vmatmul.mubr.msk.f32.gmra.mrb[16].mxu1 %vm797_vm2, %v4263_v61  ;;  %10473 = vmatmul.mubr.msk.f32.gmra.mrb[38].mxu0 %vm797_vm2, %v4263_v61  ;;  %v4265_v60 = vmul.f32 %v11954_v54, %v11944_v25  ;;  %v11241_v25 = vpack.c.bf16 %v4604_v59, %v4603_v33 }
 0x4a8   : > { %v11958_v57 = vpop.eup %11957  ;;  %v4264_v56 = vmul.f32 %v11956_v58, %v11952_v32  ;;  %11971 = vtanh.f32 %v4170_v38  ;;  %11240 = vmatpush3.bf16.msra.mxu0 %v11237_v15  ;;  %11226 = vmatprep.subr.bf16.mxu1 %v11225_v40  ;;  %v5313_v15 = vld [vmem:[#allocation5 + $0x180] sm:$0xff] }
 0x4a9   : > { %v11960_v9 = vpop.eup %11959  ;;  %v4238_v53 = vadd.f32 1.0, %v11958_v57  ;;  %11228 = vmatpush3.bf16.msra.mxu1 %v11225_v40  ;;  %11250 = vmatprep.subr.bf16.mxu0 %v11249_v27  ;;  %v5163_v40 = vld [vmem:[#allocation3 + $0x180] sm:$0xff]  ;;  %v11265_v59 = vpack.c.bf16 %v5314_v19, %v5313_v15  ;;  %v5615_v19 = vld [vmem:[#allocation5 + $0x1b0] sm:$0xff] }
 0x4aa   : > { %v11962_v10 = vpop.eup %11961  ;;  %10452 = vmatprep.mubr.msk.f32.mxu1 %vm797_vm2, %v4264_v56  ;;  %10475 = vmatprep.mubr.msk.f32.mxu0 %vm797_vm2, %v4264_v56 }
 0x4ab   : > { %11973 = vrcp.f32 %v4238_v53  ;;  %10453 = vmatmul.mubr.msk.f32.gmra.mrb[18].mxu1 %vm797_vm2, %v4265_v60  ;;  %10476 = vmatmul.mubr.msk.f32.gmra.mrb[40].mxu0 %vm797_vm2, %v4265_v60  ;;  %v4267_v8 = vmul.f32 %v11962_v10, %v11960_v9  ;;  %v11964_v39 = vpop.eup %11963 }
 0x4ac   : > { %11230 = vmatprep.subr.bf16.mxu1 %v11229_v23 }
 0x4ad   : > { %v11966_v63 = vpop.eup %11965  ;;  %11232 = vmatpush3.bf16.msra.mxu1 %v11229_v23 }
 0x4ae   : > { %v4266_v0 = vmul.f32 %v11966_v63, %v11964_v39  ;;  %v11968_v1 = vpop.eup %11967  ;;  %11242 = vmatprep.subr.bf16.mxu1 %v11241_v25  ;;  %v4610_v39 = vld [vmem:[#allocation5 + $0x150] sm:$0xff]  ;;  %v4611_v63 = vld [vmem:[#allocation5 + $0x158] sm:$0xff] }
 0x4af   : > { %v11253_v21 = vpack.c.bf16 %v4611_v63, %v4610_v39  ;;  %v5613_v39 = vld [vmem:[#allocation5 + $0x1a0] sm:$0xff] }
 0x4b0   : > { %10455 = vmatprep.mubr.msk.f32.mxu1 %vm797_vm2, %v4266_v0  ;;  %10478 = vmatprep.mubr.msk.f32.mxu0 %vm797_vm2, %v4266_v0  ;;  %v4605_v0 = vld [vmem:[#allocation3 + $0x150] sm:$0xff] }
 0x4b1   : > { %v11970_v5 = vpop.eup %11969  ;;  %10456 = vmatmul.mubr.msk.f32.gmra.mrb[20].mxu1 %vm797_vm2, %v4267_v8  ;;  %10479 = vmatmul.mubr.msk.f32.gmra.mrb[42].mxu0 %vm797_vm2, %v4267_v8 }
 0x4b2   : > { %v4269_v20 = vmul.f32 %v11970_v5, %v11968_v1  ;;  %v11972_v6 = vpop.eup %11971  ;;  %v4606_v1 = vld [vmem:[#allocation3 + $0x158] sm:$0xff] }
 0x4b5   : > { %v11974_v12 = vpop.eup %11973 }
 0x4b6   : > { %v4268_v13 = vmul.f32 %v11974_v12, %v11972_v6 }
 0x4b8   : > { %10458 = vmatprep.mubr.msk.f32.mxu1 %vm797_vm2, %v4268_v13  ;;  %10481 = vmatprep.mubr.msk.f32.mxu0 %vm797_vm2, %v4268_v13 }
 0x4b9   : > { %10459 = vmatmul.mubr.msk.f32.gmra.mrb[22].mxu1 %vm797_vm2, %v4269_v20  ;;  %10482 = vmatmul.mubr.msk.f32.gmra.mrb[44].mxu0 %vm797_vm2, %v4269_v20 }
 0x576   : > { %v10471_v34 = vpop.f32.mrb[36].mxu0 }
 0x577   : > { %v4519_v29 = vadd.f32 %v10471_v34, %v12930_v31  ;;  %v4513_v30 = vpop.f32.mrb[37].mxu0  ;;  %v11257_v34 = vpack.c.bf16 %v5164_v11, %v5163_v40  ;;  %v5616_v40 = vld [vmem:[#allocation5 + $0x1b8] sm:$0xff] }
 0x578   : > { %v4514_v61 = vadd.f32 %v12930_v31, %v4513_v30 }
 0x579   : > { %v4563_v35 = vadd.f32 %v4519_v29, %v12684_v47 }
 0x57a   : > { %v4562_v36 = vadd.f32 %v4514_v61, %v12688_v51  ;;  %v10474_v32 = vpop.f32.mrb[38].mxu0 }
 0x57b   : > { %v12937_v52 = vmul.f32 %v4563_v35, %v12425_v43  ;;  %v4529_v54 = vadd.f32 %v10474_v32, %v12930_v31  ;;  %v4523_v38 = vpop.f32.mrb[39].mxu0 }
 0x57c   : > { %v12941_v58 = vmul.f32 %v4562_v36, %v12421_v41  ;;  %v4524_v60 = vadd.f32 %v12930_v31, %v4523_v38 }
 0x57d   : > { %4583 = vst.msk [vmem:[#allocation2 + $0x18] sm:$0xff] %vm797_vm2, %v12937_v52  ;;  %v4565_v57 = vadd.f32 %v4529_v54, %v12698_v55 }
 0x57e   : > { %4582 = vst.msk [vmem:[#allocation2 + $0x10] sm:$0xff] %vm797_vm2, %v12941_v58  ;;  %v4564_v47 = vadd.f32 %v4524_v60, %v12702_v62  ;;  %v10477_v51 = vpop.f32.mrb[40].mxu0  ;;  %v5315_v60 = vld [vmem:[#allocation5 + $0x190] sm:$0xff] }
 0x57f   : > { %v12951_v56 = vmul.f32 %v4565_v57, %v12427_v44  ;;  %v4539_v9 = vadd.f32 %v10477_v51, %v12930_v31  ;;  %v4533_v53 = vpop.f32.mrb[41].mxu0  ;;  %v5316_v57 = vld [vmem:[#allocation5 + $0x198] sm:$0xff] }
 0x580   : > { %v12955_v10 = vmul.f32 %v4564_v47, %v12423_v42  ;;  %v4534_v8 = vadd.f32 %v12930_v31, %v4533_v53  ;;  %v11269_v51 = vpack.c.bf16 %v5316_v57, %v5315_v60  ;;  %v5165_v53 = vld [vmem:[#allocation3 + $0x190] sm:$0xff] }
 0x581   : > { %4585 = vst.msk [vmem:[#allocation2 + $0x28] sm:$0xff] %vm797_vm2, %v12951_v56  ;;  %v4567_v55 = vadd.f32 %v4539_v9, %v12712_v2  ;;  %v5915_v57 = vld [vmem:[#allocation5 + $0x1d0] sm:$0xff] }
 0x582   : > { %4584 = vst.msk [vmem:[#allocation2 + $0x20] sm:$0xff] %vm797_vm2, %v12955_v10  ;;  %v4566_v62 = vadd.f32 %v4534_v8, %v12715_v3  ;;  %v11245_v3 = vpack.c.bf16 %v4606_v1, %v4605_v0  ;;  %v5166_v8 = vld [vmem:[#allocation3 + $0x198] sm:$0xff] }
 0x583   : > { %v12965_v5 = vmul.f32 %v4567_v55, %v12431_v46  ;;  %v11261_v63 = vpack.c.bf16 %v5166_v8, %v5165_v53  ;;  %v5765_v8 = vld [vmem:[#allocation3 + $0x1d0] sm:$0xff] }
 0x584   : > { %v12968_v20 = vmul.f32 %v4566_v62, %v12429_v45  ;;  %v10480_v6 = vpop.f32.mrb[42].mxu0  ;;  %v5614_v62 = vld [vmem:[#allocation5 + $0x1a8] sm:$0xff] }
 0x585   : > { %4587 = vst.msk [vmem:[#allocation2 + $0x38] sm:$0xff] %vm797_vm2, %v12965_v5  ;;  %v4549_v2 = vadd.f32 %v10480_v6, %v12930_v31  ;;  %v4543_v12 = vpop.f32.mrb[43].mxu0  ;;  %v4612_v13 = vld [vmem:[#allocation2 + $0xf] sm:$0xff]  ;;  %v4613_v14 = vld [vmem:[#allocation2 + $0x17] sm:$0xff]  ;;  %v11281_v1 = vpack.c.bf16 %v5614_v62, %v5613_v39 }
 0x586   : > { %4586 = vst.msk [vmem:[#allocation2 + $0x30] sm:$0xff] %vm797_vm2, %v12968_v20  ;;  %v4544_v16 = vadd.f32 %v12930_v31, %v4543_v12  ;;  %10492 = vmatprep.mubr.msk.f32.mxu1 %vm797_vm2, %v4612_v13  ;;  %10515 = vmatprep.mubr.msk.f32.mxu0 %vm797_vm2, %v4612_v13  ;;  %v4592_v47 = vld [vmem:[#allocation2 + $0xe] sm:$0xff]  ;;  %v4593_v9 = vld [vmem:[#allocation2 + $0x16] sm:$0xff] }
 0x587   : > { %v4569_v22 = vadd.f32 %v4549_v2, %v12730_v17  ;;  %10493 = vmatmul.mubr.msk.f32.vlgmr.msra.gmra.mrb[34].mxu1 %vm797_vm2, %v4613_v14  ;;  %10516 = vmatmul.mubr.msk.f32.vlgmr.msra.gmra.mrb[46].mxu0 %vm797_vm2, %v4613_v14  ;;  %v5463_v6 = vld [vmem:[#allocation3 + $0x1a0] sm:$0xff]  ;;  %v5464_v2 = vld [vmem:[#allocation3 + $0x1a8] sm:$0xff] }
 0x588   : > { %v4568_v23 = vadd.f32 %v4544_v16, %v12733_v26  ;;  %11252 = vmatpush3.bf16.msra.mxu0 %v11249_v27  ;;  %11244 = vmatpush3.bf16.msra.mxu1 %v11241_v25  ;;  %v11273_v13 = vpack.c.bf16 %v5464_v2, %v5463_v6  ;;  %v5152_v11 = vld [vmem:[#allocation2 + $0x10] sm:$0xff] }
 0x589   : > { %v12983_v18 = vmul.f32 %v4569_v22, %v12438_v49  ;;  %v4614_v24 = vld [vmem:[#allocation2 + $0x1f] sm:$0xff]  ;;  %v4615_v33 = vld [vmem:[#allocation2 + $0x27] sm:$0xff]  ;;  %11254 = vmatprep.subr.bf16.mxu0 %v11253_v21  ;;  %11246 = vmatprep.subr.bf16.mxu1 %v11245_v3  ;;  %v11285_v22 = vpack.c.bf16 %v5616_v40, %v5615_v19 }
 0x58a   : > { %v12986_v29 = vmul.f32 %v4568_v23, %v12436_v48  ;;  %10495 = vmatprep.mubr.msk.f32.mxu1 %vm797_vm2, %v4614_v24  ;;  %10518 = vmatprep.mubr.msk.f32.mxu0 %vm797_vm2, %v4614_v24  ;;  %v4594_v55 = vld [vmem:[#allocation2 + $0x1e] sm:$0xff]  ;;  %v4595_v0 = vld [vmem:[#allocation2 + $0x26] sm:$0xff] }
 0x58b   : > { %4589 = vst.msk [vmem:[#allocation2 + $0x48] sm:$0xff] %vm797_vm2, %v12983_v18  ;;  %10496 = vmatmul.mubr.msk.f32.gmra.mrb[36].mxu1 %vm797_vm2, %v4615_v33  ;;  %10519 = vmatmul.mubr.msk.f32.gmra.mrb[48].mxu0 %vm797_vm2, %v4615_v33  ;;  %v5153_v23 = vld [vmem:[#allocation2 + $0x18] sm:$0xff]  ;;  %v5465_v24 = vld [vmem:[#allocation3 + $0x1b0] sm:$0xff]  ;;  %v5466_v33 = vld [vmem:[#allocation3 + $0x1b8] sm:$0xff] }
 0x58c   : > { %4588 = vst.msk [vmem:[#allocation2 + $0x40] sm:$0xff] %vm797_vm2, %v12986_v29  ;;  %v10483_v17 = vpop.f32.mrb[44].mxu0  ;;  %11256 = vmatpush3.bf16.msra.mxu0 %v11253_v21  ;;  %11248 = vmatpush3.bf16.msra.mxu1 %v11245_v3  ;;  %v5453_v53 = vld [vmem:[#allocation2 + $0x19] sm:$0xff]  ;;  %v5454_v39 = vld [vmem:[#allocation2 + $0x21] sm:$0xff] }
 0x58d   : > { %v4559_v26 = vadd.f32 %v10483_v17, %v12930_v31  ;;  %v4553_v27 = vpop.f32.mrb[45].mxu0  ;;  %v4616_v25 = vld [vmem:[#allocation2 + $0x2f] sm:$0xff]  ;;  %v4617_v30 = vld [vmem:[#allocation2 + $0x37] sm:$0xff]  ;;  %11266 = vmatprep.subr.bf16.mxu0 %v11265_v59  ;;  %11258 = vmatprep.subr.bf16.mxu1 %v11257_v34 }
 0x58e   : > { %v4554_v61 = vadd.f32 %v12930_v31, %v4553_v27  ;;  %10498 = vmatprep.mubr.msk.f32.mxu1 %vm797_vm2, %v4616_v25  ;;  %10521 = vmatprep.mubr.msk.f32.mxu0 %vm797_vm2, %v4616_v25  ;;  %v4596_v12 = vld [vmem:[#allocation2 + $0x2e] sm:$0xff]  ;;  %v4597_v14 = vld [vmem:[#allocation2 + $0x36] sm:$0xff] }
 0x58f   : > { %v4571_v35 = vadd.f32 %v4559_v26, %v12752_v37  ;;  %10499 = vmatmul.mubr.msk.f32.gmra.mrb[38].mxu1 %vm797_vm2, %v4617_v30  ;;  %10522 = vmatmul.mubr.msk.f32.gmra.mrb[50].mxu0 %vm797_vm2, %v4617_v30  ;;  %v5914_v17 = vld [vmem:[#allocation5 + $0x1c8] sm:$0xff]  ;;  %v11277_v26 = vpack.c.bf16 %v5466_v33, %v5465_v24  ;;  %v5155_v27 = vld [vmem:[#allocation2 + $0x28] sm:$0xff]  ;;  %v5763_v30 = vld [vmem:[#allocation3 + $0x1c0] sm:$0xff] }
 0x590   : > { %v4570_v36 = vadd.f32 %v4554_v61, %v12755_v50  ;;  %v5764_v61 = vld [vmem:[#allocation3 + $0x1c8] sm:$0xff]  ;;  %v9069_v24 = vld [vmem:[%s13493_s8 + $0x40] sm:$0xff]  ;;  %v9070_v33 = vld [vmem:[%s13493_s8 + $0x48] sm:$0xff] }
 0x591   : > { %v13005_v32 = vmul.f32 %v4571_v35, %v12456_v4  ;;  %v5156_v35 = vld [vmem:[#allocation2 + $0x30] sm:$0xff] }
 0x592   : > { %v13008_v54 = vmul.f32 %v4570_v36, %v12462_v7  ;;  %v11289_v36 = vpack.c.bf16 %v5764_v61, %v5763_v30  ;;  %v9055_v30 = vld [vmem:[%s13495_s10 + $0x50] sm:$0xff] }
 0x593   : > { %4591 = vst.msk [vmem:[#allocation2 + $0x58] sm:$0xff] %vm797_vm2, %v13005_v32  ;;  %v4618_v31 = vld [vmem:[#allocation2 + $0x3f] sm:$0xff]  ;;  %v4619_v38 = vld [vmem:[#allocation2 + $0x47] sm:$0xff] }
 0x594   : > { %4590 = vst.msk [vmem:[#allocation2 + $0x50] sm:$0xff] %vm797_vm2, %v13008_v54  ;;  %10501 = vmatprep.mubr.msk.f32.mxu1 %vm797_vm2, %v4618_v31  ;;  %10524 = vmatprep.mubr.msk.f32.mxu0 %vm797_vm2, %v4618_v31  ;;  %v4598_v21 = vld [vmem:[#allocation2 + $0x3e] sm:$0xff]  ;;  %v4599_v3 = vld [vmem:[#allocation2 + $0x46] sm:$0xff] }
 0x595   : > { %10502 = vmatmul.mubr.msk.f32.gmra.mrb[40].mxu1 %vm797_vm2, %v4619_v38  ;;  %10525 = vmatmul.mubr.msk.f32.gmra.mrb[52].mxu0 %vm797_vm2, %v4619_v38  ;;  %v5157_v31 = vld [vmem:[#allocation2 + $0x38] sm:$0xff]  ;;  %v5158_v38 = vld [vmem:[#allocation2 + $0x40] sm:$0xff] }
 0x596   : > { %v5458_v6 = vld [vmem:[#allocation2 + $0x41] sm:$0xff] }
 0x597   : > { %v5757_v19 = vld [vmem:[#allocation2 + $0x3a] sm:$0xff]  ;;  %v5758_v40 = vld [vmem:[#allocation2 + $0x42] sm:$0xff] }
 0x59a   : > { %v5161_v60 = vld [vmem:[#allocation2 + $0x58] sm:$0xff] }
 0x59b   : > { %v4620_v37 = vld [vmem:[#allocation2 + $0x4f] sm:$0xff]  ;;  %v4621_v50 = vld [vmem:[#allocation2 + $0x57] sm:$0xff] }
 0x59c   : > { %10504 = vmatprep.mubr.msk.f32.mxu1 %vm797_vm2, %v4620_v37  ;;  %10527 = vmatprep.mubr.msk.f32.mxu0 %vm797_vm2, %v4620_v37  ;;  %v4600_v15 = vld [vmem:[#allocation2 + $0x4e] sm:$0xff]  ;;  %v4601_v16 = vld [vmem:[#allocation2 + $0x56] sm:$0xff] }
 0x59d   : > { %10505 = vmatmul.mubr.msk.f32.gmra.mrb[42].mxu1 %vm797_vm2, %v4621_v50  ;;  %10528 = vmatmul.mubr.msk.f32.gmra.mrb[54].mxu0 %vm797_vm2, %v4621_v50  ;;  %v5159_v37 = vld [vmem:[#allocation2 + $0x48] sm:$0xff]  ;;  %v5160_v50 = vld [vmem:[#allocation2 + $0x50] sm:$0xff] }
 0x59e   : > { %10538 = vmatprep.mubr.msk.f32.mxu1 %vm797_vm2, %v4592_v47  ;;  %10561 = vmatprep.mubr.msk.f32.mxu0 %vm797_vm2, %v4592_v47  ;;  %v5916_v47 = vld [vmem:[#allocation5 + $0x1d8] sm:$0xff] }
 0x59f   : > { %v5459_v2 = vld [vmem:[#allocation2 + $0x49] sm:$0xff] }
 0x5a1   : > { %10539 = vmatmul.mubr.msk.f32.vlgmr.msra.gmra.mrb[34].mxu1 %vm797_vm2, %v4593_v9  ;;  %10562 = vmatmul.mubr.msk.f32.vlgmr.msra.gmra.mrb[46].mxu0 %vm797_vm2, %v4593_v9  ;;  %v11301_v9 = vpack.c.bf16 %v5916_v47, %v5915_v57 }
 0x5a2   : > { %11268 = vmatpush3.bf16.msra.mxu0 %v11265_v59  ;;  %10541 = vmatprep.mubr.msk.f32.mxu1 %vm797_vm2, %v4594_v55  ;;  %v5154_v59 = vld [vmem:[#allocation2 + $0x20] sm:$0xff] }
 0x5a3   : > { %10564 = vmatprep.mubr.msk.f32.mxu0 %vm797_vm2, %v4594_v55  ;;  %11270 = vmatprep.subr.bf16.mxu0 %v11269_v51  ;;  %v5766_v55 = vld [vmem:[#allocation3 + $0x1d8] sm:$0xff] }
 0x5a4   : > { %11260 = vmatpush3.bf16.msra.mxu1 %v11257_v34  ;;  %v5913_v34 = vld [vmem:[#allocation5 + $0x1c0] sm:$0xff]  ;;  %v11293_v62 = vpack.c.bf16 %v5766_v55, %v5765_v8  ;;  %v13139_v55 = vld [vmem:[%s13491_s6 + $0x2] ss:$0 sm:$0xff] }
 0x5a5   : > { %10542 = vmatmul.mubr.msk.f32.gmra.mrb[36].mxu1 %vm797_vm2, %v4595_v0  ;;  %10565 = vmatmul.mubr.msk.f32.gmra.mrb[48].mxu0 %vm797_vm2, %v4595_v0  ;;  %v11297_v25 = vpack.c.bf16 %v5914_v17, %v5913_v34  ;;  %v5456_v0 = vld [vmem:[#allocation2 + $0x31] sm:$0xff]  ;;  %v9053_v34 = vld [vmem:[%s13495_s10 + $0x40] sm:$0xff]  ;;  %v9054_v17 = vld [vmem:[%s13495_s10 + $0x48] sm:$0xff] }
 0x5a6   : > { %10544 = vmatprep.mubr.msk.f32.mxu1 %vm797_vm2, %v4596_v12  ;;  %10567 = vmatprep.mubr.msk.f32.mxu0 %vm797_vm2, %v4596_v12  ;;  %v5460_v12 = vld [vmem:[#allocation2 + $0x51] sm:$0xff] }
 0x5a7   : > { %11272 = vmatpush3.bf16.msra.mxu0 %v11269_v51  ;;  %11262 = vmatprep.subr.bf16.mxu1 %v11261_v63  ;;  %v5452_v51 = vld [vmem:[#allocation2 + $0x11] sm:$0xff] }
 0x5a8   : > { %11264 = vmatpush3.bf16.msra.mxu1 %v11261_v63  ;;  %11282 = vmatprep.subr.bf16.mxu0 %v11281_v1  ;;  %v5455_v63 = vld [vmem:[#allocation2 + $0x29] sm:$0xff] }
 0x5a9   : > { %10545 = vmatmul.mubr.msk.f32.gmra.mrb[38].mxu1 %vm797_vm2, %v4597_v14  ;;  %10568 = vmatmul.mubr.msk.f32.gmra.mrb[50].mxu0 %vm797_vm2, %v4597_v14  ;;  %v5752_v14 = vld [vmem:[#allocation2 + $0x12] sm:$0xff] }
 0x5aa   : > { %10547 = vmatprep.mubr.msk.f32.mxu1 %vm797_vm2, %v4598_v21  ;;  %10570 = vmatprep.mubr.msk.f32.mxu0 %vm797_vm2, %v4598_v21  ;;  %v5753_v21 = vld [vmem:[#allocation2 + $0x1a] sm:$0xff] }
 0x5ab   : > { %11274 = vmatprep.subr.bf16.mxu1 %v11273_v13 }
 0x5ad   : > { %10548 = vmatmul.mubr.msk.f32.gmra.mrb[40].mxu1 %vm797_vm2, %v4599_v3  ;;  %10571 = vmatmul.mubr.msk.f32.gmra.mrb[52].mxu0 %vm797_vm2, %v4599_v3  ;;  %v5754_v3 = vld [vmem:[#allocation2 + $0x22] sm:$0xff] }
 0x5ae   : > { %10550 = vmatprep.mubr.msk.f32.mxu1 %vm797_vm2, %v4600_v15  ;;  %10573 = vmatprep.mubr.msk.f32.mxu0 %vm797_vm2, %v4600_v15  ;;  %v5755_v15 = vld [vmem:[#allocation2 + $0x2a] sm:$0xff] }
 0x5b1   : > { %10551 = vmatmul.mubr.msk.f32.gmra.mrb[42].mxu1 %vm797_vm2, %v4601_v16  ;;  %10574 = vmatmul.mubr.msk.f32.gmra.mrb[54].mxu0 %vm797_vm2, %v4601_v16  ;;  %v5756_v16 = vld [vmem:[#allocation2 + $0x32] sm:$0xff] }
 0x5b2   : > { %10584 = vmatprep.mubr.msk.f32.mxu1 %vm797_vm2, %v5152_v11  ;;  %10607 = vmatprep.mubr.msk.f32.mxu0 %vm797_vm2, %v5152_v11  ;;  %v5759_v11 = vld [vmem:[#allocation2 + $0x4a] sm:$0xff] }
 0x5b5   : > { %10585 = vmatmul.mubr.msk.f32.vlgmr.msra.gmra.mrb[34].mxu1 %vm797_vm2, %v5153_v23  ;;  %10608 = vmatmul.mubr.msk.f32.vlgmr.msra.gmra.mrb[46].mxu0 %vm797_vm2, %v5153_v23  ;;  %v5761_v23 = vld [vmem:[#allocation2 + $0x5a] sm:$0xff] }
 0x5b6   : > { %11284 = vmatpush3.bf16.msra.mxu0 %v11281_v1  ;;  %10587 = vmatprep.mubr.msk.f32.mxu1 %vm797_vm2, %v5154_v59  ;;  %v5457_v1 = vld [vmem:[#allocation2 + $0x39] sm:$0xff] }
 0x5b7   : > { %10610 = vmatprep.mubr.msk.f32.mxu0 %vm797_vm2, %v5154_v59  ;;  %11286 = vmatprep.subr.bf16.mxu0 %v11285_v22  ;;  %v11313_v59 = vpack.c.bf16 %v9070_v33, %v9069_v24 }
 0x5b8   : > { %11276 = vmatpush3.bf16.msra.mxu1 %v11273_v13  ;;  %v5461_v13 = vld [vmem:[#allocation2 + $0x59] sm:$0xff] }
 0x5b9   : > { %10588 = vmatmul.mubr.msk.f32.gmra.mrb[36].mxu1 %vm797_vm2, %v5155_v27  ;;  %10611 = vmatmul.mubr.msk.f32.gmra.mrb[48].mxu0 %vm797_vm2, %v5155_v27  ;;  %v9071_v27 = vld [vmem:[%s13493_s8 + $0x50] sm:$0xff] }
 0x5ba   : > { %10590 = vmatprep.mubr.msk.f32.mxu1 %vm797_vm2, %v5156_v35  ;;  %10613 = vmatprep.mubr.msk.f32.mxu0 %vm797_vm2, %v5156_v35  ;;  %v9056_v35 = vld [vmem:[%s13495_s10 + $0x58] sm:$0xff] }
 0x5bb   : > { %11288 = vmatpush3.bf16.msra.mxu0 %v11285_v22  ;;  %11278 = vmatprep.subr.bf16.mxu1 %v11277_v26  ;;  %v5760_v22 = vld [vmem:[#allocation2 + $0x52] sm:$0xff] }
 0x5bc   : > { %11280 = vmatpush3.bf16.msra.mxu1 %v11277_v26  ;;  %11298 = vmatprep.subr.bf16.mxu0 %v11297_v25  ;;  %v11305_v26 = vpack.c.bf16 %v9054_v17, %v9053_v34 }
 0x5bd   : > { %10591 = vmatmul.mubr.msk.f32.gmra.mrb[38].mxu1 %vm797_vm2, %v5157_v31  ;;  %10614 = vmatmul.mubr.msk.f32.gmra.mrb[50].mxu0 %vm797_vm2, %v5157_v31  ;;  %v6671_v31 = vld [vmem:[#allocation5 + $0x200] sm:$0xff] }
 0x5be   : > { %10593 = vmatprep.mubr.msk.f32.mxu1 %vm797_vm2, %v5158_v38  ;;  %10616 = vmatprep.mubr.msk.f32.mxu0 %vm797_vm2, %v5158_v38  ;;  %v6672_v38 = vld [vmem:[#allocation5 + $0x208] sm:$0xff] }
 0x5bf   : > { %11290 = vmatprep.subr.bf16.mxu1 %v11289_v36 }
 0x5c1   : > { %10594 = vmatmul.mubr.msk.f32.gmra.mrb[40].mxu1 %vm797_vm2, %v5159_v37  ;;  %10617 = vmatmul.mubr.msk.f32.gmra.mrb[52].mxu0 %vm797_vm2, %v5159_v37  ;;  %v13126_v37 = vpack.c.bf16 %v6672_v38, %v6671_v31 }
 0x5c2   : > { %10596 = vmatprep.mubr.msk.f32.mxu1 %vm797_vm2, %v5160_v50  ;;  %10619 = vmatprep.mubr.msk.f32.mxu0 %vm797_vm2, %v5160_v50  ;;  %v13132_v50 = vld [vmem:[%s13492_s7 + $0x2] ss:$0 sm:$0xff] }
 0x5c5   : > { %10597 = vmatmul.mubr.msk.f32.gmra.mrb[42].mxu1 %vm797_vm2, %v5161_v60  ;;  %10620 = vmatmul.mubr.msk.f32.gmra.mrb[54].mxu0 %vm797_vm2, %v5161_v60 }
 0x5c6   : > { %10630 = vmatprep.mubr.msk.f32.mxu1 %vm797_vm2, %v5452_v51  ;;  %10653 = vmatprep.mubr.msk.f32.mxu0 %vm797_vm2, %v5452_v51 }
 0x5c9   : > { %10631 = vmatmul.mubr.msk.f32.vlgmr.msra.gmra.mrb[34].mxu1 %vm797_vm2, %v5453_v53  ;;  %10654 = vmatmul.mubr.msk.f32.vlgmr.msra.gmra.mrb[46].mxu0 %vm797_vm2, %v5453_v53 }
 0x5ca   : > { %11300 = vmatpush3.bf16.msra.mxu0 %v11297_v25  ;;  %10633 = vmatprep.mubr.msk.f32.mxu1 %vm797_vm2, %v5454_v39  ;;  %v9072_v25 = vld [vmem:[%s13493_s8 + $0x58] sm:$0xff] }
 0x5cb   : > { %10656 = vmatprep.mubr.msk.f32.mxu0 %vm797_vm2, %v5454_v39  ;;  %11302 = vmatprep.subr.bf16.mxu0 %v11301_v9  ;;  %v11317_v61 = vpack.c.bf16 %v9072_v25, %v9071_v27 }
 0x5cc   : > { %11292 = vmatpush3.bf16.msra.mxu1 %v11289_v36  ;;  %v11309_v36 = vpack.c.bf16 %v9056_v35, %v9055_v30 }
 0x5cd   : > { %10634 = vmatmul.mubr.msk.f32.gmra.mrb[36].mxu1 %vm797_vm2, %v5455_v63  ;;  %10657 = vmatmul.mubr.msk.f32.gmra.mrb[48].mxu0 %vm797_vm2, %v5455_v63 }
 0x5ce   : > { %10636 = vmatprep.mubr.msk.f32.mxu1 %vm797_vm2, %v5456_v0  ;;  %10659 = vmatprep.mubr.msk.f32.mxu0 %vm797_vm2, %v5456_v0 }
 0x5cf   : > { %11304 = vmatpush3.bf16.msra.mxu0 %v11301_v9  ;;  %11294 = vmatprep.subr.bf16.mxu1 %v11293_v62 }
 0x5d0   : > { %11296 = vmatpush3.bf16.msra.mxu1 %v11293_v62  ;;  %11314 = vmatprep.subr.bf16.mxu0 %v11313_v59 }
 0x5d1   : > { %10637 = vmatmul.mubr.msk.f32.gmra.mrb[38].mxu1 %vm797_vm2, %v5457_v1  ;;  %10660 = vmatmul.mubr.msk.f32.gmra.mrb[50].mxu0 %vm797_vm2, %v5457_v1 }
 0x5d2   : > { %10639 = vmatprep.mubr.msk.f32.mxu1 %vm797_vm2, %v5458_v6  ;;  %10662 = vmatprep.mubr.msk.f32.mxu0 %vm797_vm2, %v5458_v6 }
 0x5d3   : > { %11306 = vmatprep.subr.bf16.mxu1 %v11305_v26 }
 0x5d5   : > { %10640 = vmatmul.mubr.msk.f32.gmra.mrb[40].mxu1 %vm797_vm2, %v5459_v2  ;;  %10663 = vmatmul.mubr.msk.f32.gmra.mrb[52].mxu0 %vm797_vm2, %v5459_v2 }
 0x5d6   : > { %10642 = vmatprep.mubr.msk.f32.mxu1 %vm797_vm2, %v5460_v12  ;;  %10665 = vmatprep.mubr.msk.f32.mxu0 %vm797_vm2, %v5460_v12 }
 0x5d9   : > { %10643 = vmatmul.mubr.msk.f32.gmra.mrb[42].mxu1 %vm797_vm2, %v5461_v13  ;;  %10666 = vmatmul.mubr.msk.f32.gmra.mrb[54].mxu0 %vm797_vm2, %v5461_v13 }
 0x5da   : > { %10676 = vmatprep.mubr.msk.f32.mxu1 %vm797_vm2, %v5752_v14  ;;  %10699 = vmatprep.mubr.msk.f32.mxu0 %vm797_vm2, %v5752_v14 }
 0x5dd   : > { %10677 = vmatmul.mubr.msk.f32.vlgmr.msra.gmra.mrb[34].mxu1 %vm797_vm2, %v5753_v21  ;;  %10700 = vmatmul.mubr.msk.f32.vlgmr.msra.gmra.mrb[46].mxu0 %vm797_vm2, %v5753_v21 }
 0x5de   : > { %10679 = vmatprep.mubr.msk.f32.mxu1 %vm797_vm2, %v5754_v3  ;;  %10702 = vmatprep.mubr.msk.f32.mxu0 %vm797_vm2, %v5754_v3 }
 0x5df   : > { %11316 = vmatpush3.bf16.msra.mxu0 %v11313_v59  ;;  %11308 = vmatpush3.bf16.msra.mxu1 %v11305_v26 }
 0x5e0   : > { %11318 = vmatprep.subr.bf16.mxu0 %v11317_v61  ;;  %11310 = vmatprep.subr.bf16.mxu1 %v11309_v36 }
 0x5e1   : > { %10680 = vmatmul.mubr.msk.f32.gmra.mrb[36].mxu1 %vm797_vm2, %v5755_v15  ;;  %10703 = vmatmul.mubr.msk.f32.gmra.mrb[48].mxu0 %vm797_vm2, %v5755_v15 }
 0x5e2   : > { %10682 = vmatprep.mubr.msk.f32.mxu1 %vm797_vm2, %v5756_v16  ;;  %10705 = vmatprep.mubr.msk.f32.mxu0 %vm797_vm2, %v5756_v16 }
 0x5e3   : > { %11320 = vmatpush3.bf16.msra.mxu0 %v11317_v61  ;;  %11312 = vmatpush3.bf16.msra.mxu1 %v11309_v36 }
 0x5e4   : > { %11330 = vmatprep.subr.bf16.mxu0 %v13126_v37 }
 0x5e5   : > { %10683 = vmatmul.mubr.msk.f32.gmra.mrb[38].mxu1 %vm797_vm2, %v5757_v19  ;;  %10706 = vmatmul.mubr.msk.f32.gmra.mrb[50].mxu0 %vm797_vm2, %v5757_v19 }
 0x5e6   : > { %10685 = vmatprep.mubr.msk.f32.mxu1 %vm797_vm2, %v5758_v40  ;;  %10708 = vmatprep.mubr.msk.f32.mxu0 %vm797_vm2, %v5758_v40 }
 0x5e9   : > { %10686 = vmatmul.mubr.msk.f32.gmra.mrb[40].mxu1 %vm797_vm2, %v5759_v11  ;;  %10709 = vmatmul.mubr.msk.f32.gmra.mrb[52].mxu0 %vm797_vm2, %v5759_v11 }
 0x5ea   : > { %10688 = vmatprep.mubr.msk.f32.mxu1 %vm797_vm2, %v5760_v22  ;;  %10711 = vmatprep.mubr.msk.f32.mxu0 %vm797_vm2, %v5760_v22 }
 0x5ed   : > { %10689 = vmatmul.mubr.msk.f32.gmra.mrb[42].mxu1 %vm797_vm2, %v5761_v23  ;;  %10712 = vmatmul.mubr.msk.f32.gmra.mrb[54].mxu0 %vm797_vm2, %v5761_v23 }
 0x6b0   : > { %v10678_v60 = vpop.f32.mrb[34].mxu1  ;;  %v10701_v57 = vpop.f32.mrb[46].mxu0 }
 0x6b1   : > { %v6089_v47 = vadd.f32 %v10701_v57, %v13132_v50  ;;  %v5863_v51 = vpop.f32.mrb[35].mxu1  ;;  %v5983_v9 = vpop.f32.mrb[47].mxu0  ;;  %v6061_v12 = vadd.f32 %v10678_v60, %v13139_v55 }
 0x6b2   : > { %v6088_v53 = vadd.f32 %v13132_v50, %v5983_v9  ;;  %v6060_v14 = vadd.f32 %v13139_v55, %v5863_v51 }
 0x6b3   : > { %v9044_v8 = vmul.f32 -1.442695, %v6089_v47 }
 0x6b4   : > { %v9043_v39 = vmul.f32 -1.442695, %v6088_v53  ;;  %v10681_v62 = vpop.f32.mrb[36].mxu1  ;;  %v10704_v63 = vpop.f32.mrb[48].mxu0 }
 0x6b5   : > { %11975 = vpow2.f32 %v9044_v8  ;;  %v6091_v0 = vadd.f32 %v10704_v63, %v13132_v50  ;;  %v5873_v1 = vpop.f32.mrb[37].mxu1  ;;  %v5993_v6 = vpop.f32.mrb[49].mxu0  ;;  %v6063_v22 = vadd.f32 %v10681_v62, %v13139_v55 }
 0x6b6   : > { %11977 = vpow2.f32 %v9043_v39  ;;  %v6090_v2 = vadd.f32 %v13132_v50, %v5993_v6  ;;  %v6062_v24 = vadd.f32 %v13139_v55, %v5873_v1 }
 0x6b7   : > { %v9046_v13 = vmul.f32 -1.442695, %v6091_v0 }
 0x6b8   : > { %v9045_v21 = vmul.f32 -1.442695, %v6090_v2  ;;  %v10684_v3 = vpop.f32.mrb[38].mxu1  ;;  %v10707_v15 = vpop.f32.mrb[50].mxu0 }
 0x6b9   : > { %11979 = vpow2.f32 %v9046_v13  ;;  %v6093_v16 = vadd.f32 %v10707_v15, %v13132_v50  ;;  %v5883_v19 = vpop.f32.mrb[39].mxu1  ;;  %v6003_v40 = vpop.f32.mrb[51].mxu0  ;;  %v6065_v47 = vadd.f32 %v10684_v3, %v13139_v55 }
 0x6ba   : > { %11981 = vpow2.f32 %v9045_v21  ;;  %v6092_v11 = vadd.f32 %v13132_v50, %v6003_v40  ;;  %v6064_v2 = vadd.f32 %v13139_v55, %v5883_v19 }
 0x6bb   : > { %11983 = vtanh.f32 %v6061_v12  ;;  %v9048_v23 = vmul.f32 -1.442695, %v6093_v16 }
 0x6bc   : > { %11985 = vtanh.f32 %v6060_v14  ;;  %v9047_v33 = vmul.f32 -1.442695, %v6092_v11  ;;  %v10687_v59 = vpop.f32.mrb[40].mxu1  ;;  %v10710_v34 = vpop.f32.mrb[52].mxu0 }
 0x6bd   : > { %11987 = vpow2.f32 %v9048_v23  ;;  %v6095_v17 = vadd.f32 %v10710_v34, %v13132_v50  ;;  %v5893_v26 = vpop.f32.mrb[41].mxu1  ;;  %v6013_v27 = vpop.f32.mrb[53].mxu0  ;;  %v6067_v40 = vadd.f32 %v10687_v59, %v13139_v55 }
 0x6be   : > { %11989 = vpow2.f32 %v9047_v33  ;;  %v6094_v25 = vadd.f32 %v13132_v50, %v6013_v27  ;;  %v6066_v19 = vadd.f32 %v13139_v55, %v5893_v26 }
 0x6bf   : > { %v11976_v30 = vpop.eup %11975  ;;  %11991 = vtanh.f32 %v6063_v22  ;;  %v9050_v61 = vmul.f32 -1.442695, %v6095_v17 }
 0x6c0   : > { %v11978_v35 = vpop.eup %11977  ;;  %v6129_v36 = vadd.f32 1.0, %v11976_v30  ;;  %11993 = vtanh.f32 %v6062_v24  ;;  %v9049_v31 = vmul.f32 -1.442695, %v6094_v25  ;;  %v10690_v38 = vpop.f32.mrb[42].mxu1 }
 0x6c1   : > { %v10713_v60 = vpop.f32.mrb[54].mxu0  ;;  %v6128_v57 = vadd.f32 1.0, %v11978_v35  ;;  %11995 = vpow2.f32 %v9050_v61  ;;  %v5903_v9 = vpop.f32.mrb[43].mxu1  ;;  %v6069_v59 = vadd.f32 %v10690_v38, %v13139_v55 }
 0x6c2   : > { %v6097_v51 = vadd.f32 %v10713_v60, %v13132_v50  ;;  %v6023_v53 = vpop.f32.mrb[55].mxu0  ;;  %11997 = vrcp.f32 %v6129_v36  ;;  %v6068_v38 = vadd.f32 %v13139_v55, %v5903_v9 }
 0x6c3   : > { %v11980_v8 = vpop.eup %11979  ;;  %11999 = vrcp.f32 %v6128_v57  ;;  %v6096_v0 = vadd.f32 %v13132_v50, %v6023_v53 }
 0x6c4   : > { %v11982_v39 = vpop.eup %11981  ;;  %v6131_v62 = vadd.f32 1.0, %v11980_v8  ;;  %12001 = vpow2.f32 %v9049_v31  ;;  %v9052_v63 = vmul.f32 -1.442695, %v6097_v51 }
 0x6c5   : > { %v11984_v1 = vpop.eup %11983  ;;  %v6130_v6 = vadd.f32 1.0, %v11982_v39  ;;  %12003 = vtanh.f32 %v6065_v47  ;;  %v9051_v3 = vmul.f32 -1.442695, %v6096_v0 }
 0x6c6   : > { %v11986_v12 = vpop.eup %11985  ;;  %12005 = vrcp.f32 %v6131_v62 }
 0x6c7   : > { %v11988_v13 = vpop.eup %11987  ;;  %12007 = vrcp.f32 %v6130_v6 }
 0x6c8   : > { %v11990_v14 = vpop.eup %11989  ;;  %v6133_v21 = vadd.f32 1.0, %v11988_v13  ;;  %12009 = vpow2.f32 %v9052_v63 }
 0x6c9   : > { %v11992_v15 = vpop.eup %11991  ;;  %12011 = vtanh.f32 %v6064_v2  ;;  %v6132_v16 = vadd.f32 1.0, %v11990_v14 }
 0x6ca   : > { %v11994_v11 = vpop.eup %11993  ;;  %12013 = vrcp.f32 %v6133_v21  ;;  %v6673_v21 = vld [vmem:[#allocation5 + $0x210] sm:$0xff] }
 0x6cb   : > { %v11996_v50 = vpop.eup %11995  ;;  %12015 = vrcp.f32 %v6132_v16 }
 0x6cc   : > { %v11998_v22 = vpop.eup %11997  ;;  %v6135_v23 = vadd.f32 1.0, %v11996_v50  ;;  %12017 = vpow2.f32 %v9051_v3  ;;  %v6674_v3 = vld [vmem:[#allocation5 + $0x218] sm:$0xff]  ;;  %v6523_v50 = vld [vmem:[#allocation3 + $0x210] sm:$0xff] }
 0x6cd   : > { %v12000_v24 = vpop.eup %11999  ;;  %v6159_v33 = vmul.f32 %v11998_v22, %v11984_v1  ;;  %12019 = vtanh.f32 %v6067_v40  ;;  %v11333_v16 = vpack.c.bf16 %v6674_v3, %v6673_v21  ;;  %v6522_v40 = vld [vmem:[#allocation3 + $0x208] sm:$0xff]  ;;  %v6524_v22 = vld [vmem:[#allocation3 + $0x218] sm:$0xff] }
 0x6ce   : > { %v12002_v34 = vpop.eup %12001  ;;  %12021 = vrcp.f32 %v6135_v23  ;;  %v6158_v17 = vmul.f32 %v12000_v24, %v11986_v12  ;;  %v11325_v23 = vpack.c.bf16 %v6524_v22, %v6523_v50  ;;  %v6507_v24 = vld [vmem:[#allocation5 + $0x1e8] sm:$0xff] }
 0x6cf   : > { %v12004_v27 = vpop.eup %12003  ;;  %v6134_v25 = vadd.f32 1.0, %v12002_v34  ;;  %12023 = vtanh.f32 %v6066_v19  ;;  %v6506_v19 = vld [vmem:[#allocation5 + $0x1e0] sm:$0xff]  ;;  %v7062_v21 = vld [vmem:[#allocation3 + $0x228] sm:$0xff] }
 0x6d0   : > { %v12006_v30 = vpop.eup %12005  ;;  %10722 = vmatprep.mubr.msk.f32.mxu1 %vm797_vm2, %v6158_v17  ;;  %10745 = vmatprep.mubr.msk.f32.mxu0 %vm797_vm2, %v6158_v17  ;;  %v6501_v34 = vld [vmem:[#allocation3 + $0x1e0] sm:$0xff]  ;;  %v6502_v17 = vld [vmem:[#allocation3 + $0x1e8] sm:$0xff] }
 0x6d1   : > { %v12008_v61 = vpop.eup %12007  ;;  %12025 = vrcp.f32 %v6134_v25  ;;  %10723 = vmatmul.mubr.msk.f32.vlgmr.msra.gmra.mrb[14].mxu1 %vm797_vm2, %v6159_v33  ;;  %10746 = vmatmul.mubr.msk.f32.vlgmr.msra.gmra.mrb[56].mxu0 %vm797_vm2, %v6159_v33  ;;  %v6161_v26 = vmul.f32 %v12006_v30, %v11992_v15  ;;  %v6521_v15 = vld [vmem:[#allocation3 + $0x200] sm:$0xff]  ;;  %v11345_v33 = vpack.c.bf16 %v6507_v24, %v6506_v19  ;;  %v13183_v25 = vld [vmem:[%s13494_s9 + $0x2] ss:$0 sm:$0xff] }
 0x6d2   : > { %v12010_v35 = vpop.eup %12009  ;;  %v6160_v36 = vmul.f32 %v12008_v61, %v11994_v11  ;;  %11332 = vmatpush3.bf16.msra.mxu0 %v13126_v37  ;;  %12027 = vtanh.f32 %v6069_v59  ;;  %v11321_v11 = vpack.c.bf16 %v6522_v40, %v6521_v15 }
 0x6d3   : > { %v12012_v31 = vpop.eup %12011  ;;  %v6137_v60 = vadd.f32 1.0, %v12010_v35  ;;  %11334 = vmatprep.subr.bf16.mxu0 %v11333_v16 }
 0x6d4   : > { %v12014_v57 = vpop.eup %12013  ;;  %10725 = vmatprep.mubr.msk.f32.mxu1 %vm797_vm2, %v6160_v36  ;;  %10748 = vmatprep.mubr.msk.f32.mxu0 %vm797_vm2, %v6160_v36 }
 0x6d5   : > { %v12016_v47 = vpop.eup %12015  ;;  %12029 = vrcp.f32 %v6137_v60  ;;  %10726 = vmatmul.mubr.msk.f32.gmra.mrb[16].mxu1 %vm797_vm2, %v6161_v26  ;;  %10749 = vmatmul.mubr.msk.f32.gmra.mrb[58].mxu0 %vm797_vm2, %v6161_v26  ;;  %v6163_v51 = vmul.f32 %v12014_v57, %v12004_v27  ;;  %v11337_v27 = vpack.c.bf16 %v6502_v17, %v6501_v34 }
 0x6d6   : > { %v12018_v53 = vpop.eup %12017  ;;  %v6162_v8 = vmul.f32 %v12016_v47, %v12012_v31  ;;  %12031 = vtanh.f32 %v6068_v38  ;;  %11336 = vmatpush3.bf16.msra.mxu0 %v11333_v16  ;;  %11322 = vmatprep.subr.bf16.mxu1 %v11321_v11 }
 0x6d7   : > { %v12020_v37 = vpop.eup %12019  ;;  %v6136_v39 = vadd.f32 1.0, %v12018_v53  ;;  %11324 = vmatpush3.bf16.msra.mxu1 %v11321_v11  ;;  %11346 = vmatprep.subr.bf16.mxu0 %v11345_v33 }
 0x6d8   : > { %v12022_v62 = vpop.eup %12021  ;;  %10728 = vmatprep.mubr.msk.f32.mxu1 %vm797_vm2, %v6162_v8  ;;  %10751 = vmatprep.mubr.msk.f32.mxu0 %vm797_vm2, %v6162_v8 }
 0x6d9   : > { %12033 = vrcp.f32 %v6136_v39  ;;  %10729 = vmatmul.mubr.msk.f32.gmra.mrb[18].mxu1 %vm797_vm2, %v6163_v51  ;;  %10752 = vmatmul.mubr.msk.f32.gmra.mrb[60].mxu0 %vm797_vm2, %v6163_v51  ;;  %v6165_v55 = vmul.f32 %v12022_v62, %v12020_v37  ;;  %v12024_v9 = vpop.eup %12023 }
 0x6da   : > { %11326 = vmatprep.subr.bf16.mxu1 %v11325_v23 }
 0x6db   : > { %v12026_v63 = vpop.eup %12025  ;;  %11328 = vmatpush3.bf16.msra.mxu1 %v11325_v23 }
 0x6dc   : > { %v6164_v0 = vmul.f32 %v12026_v63, %v12024_v9  ;;  %v12028_v1 = vpop.eup %12027  ;;  %11338 = vmatprep.subr.bf16.mxu1 %v11337_v27  ;;  %v6503_v9 = vld [vmem:[#allocation3 + $0x1f0] sm:$0xff]  ;;  %v6504_v63 = vld [vmem:[#allocation3 + $0x1f8] sm:$0xff] }
 0x6de   : > { %10731 = vmatprep.mubr.msk.f32.mxu1 %vm797_vm2, %v6164_v0  ;;  %10754 = vmatprep.mubr.msk.f32.mxu0 %vm797_vm2, %v6164_v0 }
 0x6df   : > { %v12030_v6 = vpop.eup %12029  ;;  %10732 = vmatmul.mubr.msk.f32.gmra.mrb[20].mxu1 %vm797_vm2, %v6165_v55  ;;  %10755 = vmatmul.mubr.msk.f32.gmra.mrb[62].mxu0 %vm797_vm2, %v6165_v55  ;;  %v6508_v55 = vld [vmem:[#allocation5 + $0x1f0] sm:$0xff] }
 0x6e0   : > { %v6167_v2 = vmul.f32 %v12030_v6, %v12028_v1  ;;  %v12032_v12 = vpop.eup %12031 }
 0x6e3   : > { %v12034_v13 = vpop.eup %12033 }
 0x6e4   : > { %v6166_v14 = vmul.f32 %v12034_v13, %v12032_v12  ;;  %v11341_v13 = vpack.c.bf16 %v6504_v63, %v6503_v9 }
 0x6e6   : > { %10734 = vmatprep.mubr.msk.f32.mxu1 %vm797_vm2, %v6166_v14  ;;  %10757 = vmatprep.mubr.msk.f32.mxu0 %vm797_vm2, %v6166_v14  ;;  %v7211_v14 = vld [vmem:[#allocation5 + $0x220] sm:$0xff] }
 0x6e7   : > { %10735 = vmatmul.mubr.msk.f32.gmra.mrb[22].mxu1 %vm797_vm2, %v6167_v2  ;;  %10758 = vmatmul.mubr.msk.f32.gmra.mrb[64].mxu0 %vm797_vm2, %v6167_v2 }
 0x7a4   : > { %v10747_v30 = vpop.f32.mrb[56].mxu0 }
 0x7a5   : > { %v6417_v59 = vadd.f32 %v10747_v30, %v13183_v25  ;;  %v6411_v61 = vpop.f32.mrb[57].mxu0 }
 0x7a6   : > { %v6412_v26 = vadd.f32 %v13183_v25, %v6411_v61 }
 0x7a7   : > { %v6461_v35 = vadd.f32 %v6417_v59, %v12937_v52 }
 0x7a8   : > { %v6460_v36 = vadd.f32 %v6412_v26, %v12941_v58  ;;  %v10750_v31 = vpop.f32.mrb[58].mxu0 }
 0x7a9   : > { %v6471_v60 = vmul.f32 %v6461_v35, %v12425_v43  ;;  %v6427_v57 = vadd.f32 %v10750_v31, %v13183_v25  ;;  %v6421_v38 = vpop.f32.mrb[59].mxu0  ;;  %v7063_v35 = vld [vmem:[#allocation3 + $0x230] sm:$0xff] }
 0x7aa   : > { %v6470_v47 = vmul.f32 %v6460_v36, %v12421_v41  ;;  %v6422_v51 = vadd.f32 %v13183_v25, %v6421_v38  ;;  %v7064_v36 = vld [vmem:[#allocation3 + $0x238] sm:$0xff] }
 0x7ab   : > { %6481 = vst.msk [vmem:[#allocation2 + $0x18] sm:$0xff] %vm797_vm2, %v6471_v60  ;;  %v6463_v53 = vadd.f32 %v6427_v57, %v12951_v56  ;;  %v7511_v60 = vld [vmem:[#allocation5 + $0x240] sm:$0xff]  ;;  %v7512_v57 = vld [vmem:[#allocation5 + $0x248] sm:$0xff]  ;;  %v11357_v38 = vpack.c.bf16 %v7064_v36, %v7063_v35 }
 0x7ac   : > { %6480 = vst.msk [vmem:[#allocation2 + $0x10] sm:$0xff] %vm797_vm2, %v6470_v47  ;;  %v6462_v52 = vadd.f32 %v6422_v51, %v12955_v10  ;;  %v10753_v8 = vpop.f32.mrb[60].mxu0  ;;  %v6509_v10 = vld [vmem:[#allocation5 + $0x1f8] sm:$0xff]  ;;  %v11377_v51 = vpack.c.bf16 %v7512_v57, %v7511_v60 }
 0x7ad   : > { %v6473_v58 = vmul.f32 %v6463_v53, %v12427_v44  ;;  %v6437_v43 = vadd.f32 %v10753_v8, %v13183_v25  ;;  %v6431_v37 = vpop.f32.mrb[61].mxu0  ;;  %v11349_v12 = vpack.c.bf16 %v6509_v10, %v6508_v55  ;;  %v7361_v53 = vld [vmem:[#allocation3 + $0x240] sm:$0xff]  ;;  %v7513_v55 = vld [vmem:[#allocation5 + $0x250] sm:$0xff]  ;;  %v9200_v60 = vld [vmem:[%s13495_s10 + $0x68] sm:$0xff] }
 0x7ae   : > { %v6472_v39 = vmul.f32 %v6462_v52, %v12423_v42  ;;  %v6432_v41 = vadd.f32 %v13183_v25, %v6431_v37  ;;  %v7362_v52 = vld [vmem:[#allocation3 + $0x248] sm:$0xff] }
 0x7af   : > { %6483 = vst.msk [vmem:[#allocation2 + $0x28] sm:$0xff] %vm797_vm2, %v6473_v58  ;;  %v6465_v62 = vadd.f32 %v6437_v43, %v12965_v5  ;;  %v11369_v58 = vpack.c.bf16 %v7362_v52, %v7361_v53  ;;  %v8278_v53 = vld [vmem:[%s13497_s12] sm:$0xff]  ;;  %v8279_v52 = vld [vmem:[%s13497_s12 + $0x8] sm:$0xff] }
 0x7b0   : > { %6482 = vst.msk [vmem:[#allocation2 + $0x20] sm:$0xff] %vm797_vm2, %v6472_v39  ;;  %v6464_v56 = vadd.f32 %v6432_v41, %v12968_v20 }
 0x7b1   : > { %v6475_v44 = vmul.f32 %v6465_v62, %v12431_v46  ;;  %v7061_v46 = vld [vmem:[#allocation3 + $0x220] sm:$0xff] }
 0x7b2   : > { %v6474_v0 = vmul.f32 %v6464_v56, %v12429_v45  ;;  %v10756_v1 = vpop.f32.mrb[62].mxu0  ;;  %v7212_v45 = vld [vmem:[#allocation5 + $0x228] sm:$0xff]  ;;  %v11353_v22 = vpack.c.bf16 %v7062_v21, %v7061_v46  ;;  %v7514_v56 = vld [vmem:[#allocation5 + $0x258] sm:$0xff] }
 0x7b3   : > { %6485 = vst.msk [vmem:[#allocation2 + $0x38] sm:$0xff] %vm797_vm2, %v6475_v44  ;;  %v6447_v42 = vadd.f32 %v10756_v1, %v13183_v25  ;;  %v6441_v6 = vpop.f32.mrb[63].mxu0  ;;  %v6510_v2 = vld [vmem:[#allocation2 + $0xf] sm:$0xff]  ;;  %v6511_v5 = vld [vmem:[#allocation2 + $0x17] sm:$0xff]  ;;  %v11361_v50 = vpack.c.bf16 %v7212_v45, %v7211_v14  ;;  %v11381_v9 = vpack.c.bf16 %v7514_v56, %v7513_v55  ;;  %v7363_v44 = vld [vmem:[#allocation3 + $0x250] sm:$0xff] }
 0x7b4   : > { %6484 = vst.msk [vmem:[#allocation2 + $0x30] sm:$0xff] %vm797_vm2, %v6474_v0  ;;  %v6442_v20 = vadd.f32 %v13183_v25, %v6441_v6  ;;  %10768 = vmatprep.mubr.msk.f32.mxu1 %vm797_vm2, %v6510_v2  ;;  %10791 = vmatprep.mubr.msk.f32.mxu0 %vm797_vm2, %v6510_v2  ;;  %v6490_v59 = vld [vmem:[#allocation2 + $0xe] sm:$0xff]  ;;  %v6491_v26 = vld [vmem:[#allocation2 + $0x16] sm:$0xff] }
 0x7b5   : > { %v6467_v3 = vadd.f32 %v6447_v42, %v12983_v18  ;;  %10769 = vmatmul.mubr.msk.f32.vlgmr.msra.gmra.mrb[44].mxu1 %vm797_vm2, %v6511_v5  ;;  %10792 = vmatmul.mubr.msk.f32.vlgmr.msra.gmra.mrb[66].mxu0 %vm797_vm2, %v6511_v5  ;;  %v7050_v10 = vld [vmem:[#allocation2 + $0x10] sm:$0xff]  ;;  %v7051_v63 = vld [vmem:[#allocation2 + $0x18] sm:$0xff]  ;;  %v7364_v0 = vld [vmem:[#allocation3 + $0x258] sm:$0xff] }
 0x7b6   : > { %v6466_v15 = vadd.f32 %v6442_v20, %v12986_v29  ;;  %11348 = vmatpush3.bf16.msra.mxu0 %v11345_v33  ;;  %11340 = vmatpush3.bf16.msra.mxu1 %v11337_v27  ;;  %v7811_v42 = vld [vmem:[#allocation5 + $0x260] sm:$0xff]  ;;  %v7812_v6 = vld [vmem:[#allocation5 + $0x268] sm:$0xff]  ;;  %v11373_v2 = vpack.c.bf16 %v7364_v0, %v7363_v44  ;;  %v7053_v5 = vld [vmem:[#allocation2 + $0x28] sm:$0xff] }
 0x7b7   : > { %v6477_v16 = vmul.f32 %v6467_v3, %v12438_v49  ;;  %v6512_v40 = vld [vmem:[#allocation2 + $0x1f] sm:$0xff]  ;;  %v6513_v11 = vld [vmem:[#allocation2 + $0x27] sm:$0xff]  ;;  %11350 = vmatprep.subr.bf16.mxu0 %v11349_v12  ;;  %11342 = vmatprep.subr.bf16.mxu1 %v11341_v13 }
 0x7b8   : > { %v6476_v23 = vmul.f32 %v6466_v15, %v12436_v48  ;;  %10771 = vmatprep.mubr.msk.f32.mxu1 %vm797_vm2, %v6512_v40  ;;  %10794 = vmatprep.mubr.msk.f32.mxu0 %vm797_vm2, %v6512_v40  ;;  %v6492_v31 = vld [vmem:[#allocation2 + $0x1e] sm:$0xff]  ;;  %v6493_v47 = vld [vmem:[#allocation2 + $0x26] sm:$0xff] }
 0x7b9   : > { %6487 = vst.msk [vmem:[#allocation2 + $0x48] sm:$0xff] %vm797_vm2, %v6477_v16  ;;  %10772 = vmatmul.mubr.msk.f32.gmra.mrb[46].mxu1 %vm797_vm2, %v6513_v11  ;;  %10795 = vmatmul.mubr.msk.f32.gmra.mrb[68].mxu0 %vm797_vm2, %v6513_v11  ;;  %v7052_v1 = vld [vmem:[#allocation2 + $0x20] sm:$0xff]  ;;  %v7662_v14 = vld [vmem:[#allocation3 + $0x268] sm:$0xff]  ;;  %v7814_v11 = vld [vmem:[#allocation5 + $0x278] sm:$0xff] }
 0x7ba   : > { %6486 = vst.msk [vmem:[#allocation2 + $0x40] sm:$0xff] %vm797_vm2, %v6476_v23  ;;  %v10759_v49 = vpop.f32.mrb[64].mxu0  ;;  %11352 = vmatpush3.bf16.msra.mxu0 %v11349_v12  ;;  %11344 = vmatpush3.bf16.msra.mxu1 %v11341_v13  ;;  %v11393_v12 = vpack.c.bf16 %v7812_v6, %v7811_v42  ;;  %v7661_v13 = vld [vmem:[#allocation3 + $0x260] sm:$0xff]  ;;  %v7055_v46 = vld [vmem:[#allocation2 + $0x38] sm:$0xff]  ;;  %v7813_v40 = vld [vmem:[#allocation5 + $0x270] sm:$0xff] }
 0x7bb   : > { %v6457_v18 = vadd.f32 %v10759_v49, %v13183_v25  ;;  %v6451_v29 = vpop.f32.mrb[65].mxu0  ;;  %v6514_v19 = vld [vmem:[#allocation2 + $0x2f] sm:$0xff]  ;;  %v6515_v48 = vld [vmem:[#allocation2 + $0x37] sm:$0xff]  ;;  %11362 = vmatprep.subr.bf16.mxu0 %v11361_v50  ;;  %11354 = vmatprep.subr.bf16.mxu1 %v11353_v22  ;;  %v11385_v45 = vpack.c.bf16 %v7662_v14, %v7661_v13  ;;  %v7663_v49 = vld [vmem:[#allocation3 + $0x270] sm:$0xff] }
 0x7bc   : > { %v6452_v24 = vadd.f32 %v13183_v25, %v6451_v29  ;;  %10774 = vmatprep.mubr.msk.f32.mxu1 %vm797_vm2, %v6514_v19  ;;  %10797 = vmatprep.mubr.msk.f32.mxu0 %vm797_vm2, %v6514_v19  ;;  %v6494_v8 = vld [vmem:[#allocation2 + $0x2e] sm:$0xff]  ;;  %v6495_v43 = vld [vmem:[#allocation2 + $0x36] sm:$0xff]  ;;  %v7352_v29 = vld [vmem:[#allocation2 + $0x21] sm:$0xff] }
 0x7bd   : > { %v6469_v33 = vadd.f32 %v6457_v18, %v13005_v32  ;;  %10775 = vmatmul.mubr.msk.f32.gmra.mrb[48].mxu1 %vm797_vm2, %v6515_v48  ;;  %10798 = vmatmul.mubr.msk.f32.gmra.mrb[70].mxu0 %vm797_vm2, %v6515_v48  ;;  %v7054_v20 = vld [vmem:[#allocation2 + $0x30] sm:$0xff]  ;;  %v7351_v23 = vld [vmem:[#allocation2 + $0x19] sm:$0xff]  ;;  %v7664_v18 = vld [vmem:[#allocation3 + $0x278] sm:$0xff] }
 0x7be   : > { %v6468_v34 = vadd.f32 %v6452_v24, %v13008_v54  ;;  %v11389_v19 = vpack.c.bf16 %v7664_v18, %v7663_v49  ;;  %v7353_v48 = vld [vmem:[#allocation2 + $0x29] sm:$0xff]  ;;  %v7354_v24 = vld [vmem:[#allocation2 + $0x31] sm:$0xff] }
 0x7bf   : > { %v6479_v17 = vmul.f32 %v6469_v33, %v12456_v4  ;;  %v7213_v4 = vld [vmem:[#allocation5 + $0x230] sm:$0xff] }
 0x7c0   : > { %v6478_v27 = vmul.f32 %v6468_v34, %v12462_v7  ;;  %v7214_v7 = vld [vmem:[#allocation5 + $0x238] sm:$0xff] }
 0x7c1   : > { %6489 = vst.msk [vmem:[#allocation2 + $0x58] sm:$0xff] %vm797_vm2, %v6479_v17  ;;  %v6516_v30 = vld [vmem:[#allocation2 + $0x3f] sm:$0xff]  ;;  %v6517_v25 = vld [vmem:[#allocation2 + $0x47] sm:$0xff]  ;;  %v11365_v61 = vpack.c.bf16 %v7214_v7, %v7213_v4  ;;  %v7654_v7 = vld [vmem:[#allocation2 + $0x32] sm:$0xff] }
 0x7c2   : > { %6488 = vst.msk [vmem:[#allocation2 + $0x50] sm:$0xff] %vm797_vm2, %v6478_v27  ;;  %10777 = vmatprep.mubr.msk.f32.mxu1 %vm797_vm2, %v6516_v30  ;;  %10800 = vmatprep.mubr.msk.f32.mxu0 %vm797_vm2, %v6516_v30  ;;  %v6496_v37 = vld [vmem:[#allocation2 + $0x3e] sm:$0xff]  ;;  %v6497_v39 = vld [vmem:[#allocation2 + $0x46] sm:$0xff] }
 0x7c3   : > { %10778 = vmatmul.mubr.msk.f32.gmra.mrb[50].mxu1 %vm797_vm2, %v6517_v25  ;;  %10801 = vmatmul.mubr.msk.f32.gmra.mrb[72].mxu0 %vm797_vm2, %v6517_v25  ;;  %v7056_v21 = vld [vmem:[#allocation2 + $0x40] sm:$0xff]  ;;  %v7057_v3 = vld [vmem:[#allocation2 + $0x48] sm:$0xff]  ;;  %v7650_v25 = vld [vmem:[#allocation2 + $0x12] sm:$0xff] }
 0x7c4   : > { %v7355_v33 = vld [vmem:[#allocation2 + $0x39] sm:$0xff]  ;;  %v7356_v34 = vld [vmem:[#allocation2 + $0x41] sm:$0xff]  ;;  %v7653_v4 = vld [vmem:[#allocation2 + $0x2a] sm:$0xff] }
 0x7c8   : > { %v7059_v16 = vld [vmem:[#allocation2 + $0x58] sm:$0xff] }
 0x7c9   : > { %v6518_v32 = vld [vmem:[#allocation2 + $0x4f] sm:$0xff]  ;;  %v6519_v54 = vld [vmem:[#allocation2 + $0x57] sm:$0xff] }
 0x7ca   : > { %10780 = vmatprep.mubr.msk.f32.mxu1 %vm797_vm2, %v6518_v32  ;;  %10803 = vmatprep.mubr.msk.f32.mxu0 %vm797_vm2, %v6518_v32  ;;  %v6498_v41 = vld [vmem:[#allocation2 + $0x4e] sm:$0xff]  ;;  %v6499_v62 = vld [vmem:[#allocation2 + $0x56] sm:$0xff] }
 0x7cb   : > { %10781 = vmatmul.mubr.msk.f32.gmra.mrb[52].mxu1 %vm797_vm2, %v6519_v54  ;;  %10804 = vmatmul.mubr.msk.f32.gmra.mrb[74].mxu0 %vm797_vm2, %v6519_v54  ;;  %v7058_v15 = vld [vmem:[#allocation2 + $0x50] sm:$0xff]  ;;  %v7359_v30 = vld [vmem:[#allocation2 + $0x59] sm:$0xff]  ;;  %v7652_v54 = vld [vmem:[#allocation2 + $0x22] sm:$0xff] }
 0x7cc   : > { %10814 = vmatprep.mubr.msk.f32.mxu1 %vm797_vm2, %v6490_v59  ;;  %10837 = vmatprep.mubr.msk.f32.mxu0 %vm797_vm2, %v6490_v59  ;;  %v7357_v17 = vld [vmem:[#allocation2 + $0x49] sm:$0xff]  ;;  %v7358_v27 = vld [vmem:[#allocation2 + $0x51] sm:$0xff]  ;;  %v7651_v32 = vld [vmem:[#allocation2 + $0x1a] sm:$0xff] }
 0x7cd   : > { %v7655_v59 = vld [vmem:[#allocation2 + $0x3a] sm:$0xff]  ;;  %v7658_v35 = vld [vmem:[#allocation2 + $0x52] sm:$0xff] }
 0x7ce   : > { %v7659_v36 = vld [vmem:[#allocation2 + $0x5a] sm:$0xff] }
 0x7cf   : > { %10815 = vmatmul.mubr.msk.f32.vlgmr.msra.gmra.mrb[44].mxu1 %vm797_vm2, %v6491_v26  ;;  %10838 = vmatmul.mubr.msk.f32.vlgmr.msra.gmra.mrb[66].mxu0 %vm797_vm2, %v6491_v26  ;;  %v7657_v26 = vld [vmem:[#allocation2 + $0x4a] sm:$0xff] }
 0x7d0   : > { %11364 = vmatpush3.bf16.msra.mxu0 %v11361_v50  ;;  %10817 = vmatprep.mubr.msk.f32.mxu1 %vm797_vm2, %v6492_v31  ;;  %v7350_v50 = vld [vmem:[#allocation2 + $0x11] sm:$0xff] }
 0x7d1   : > { %10840 = vmatprep.mubr.msk.f32.mxu0 %vm797_vm2, %v6492_v31  ;;  %11366 = vmatprep.subr.bf16.mxu0 %v11365_v61  ;;  %v9199_v31 = vld [vmem:[%s13495_s10 + $0x60] sm:$0xff] }
 0x7d2   : > { %11356 = vmatpush3.bf16.msra.mxu1 %v11353_v22  ;;  %v11397_v22 = vpack.c.bf16 %v7814_v11, %v7813_v40  ;;  %v11401_v57 = vpack.c.bf16 %v9200_v60, %v9199_v31 }
 0x7d3   : > { %10818 = vmatmul.mubr.msk.f32.gmra.mrb[46].mxu1 %vm797_vm2, %v6493_v47  ;;  %10841 = vmatmul.mubr.msk.f32.gmra.mrb[68].mxu0 %vm797_vm2, %v6493_v47  ;;  %v9202_v47 = vld [vmem:[%s13495_s10 + $0x78] sm:$0xff] }
 0x7d4   : > { %10820 = vmatprep.mubr.msk.f32.mxu1 %vm797_vm2, %v6494_v8  ;;  %10843 = vmatprep.mubr.msk.f32.mxu0 %vm797_vm2, %v6494_v8  ;;  %v11409_v8 = vpack.c.bf16 %v8279_v52, %v8278_v53 }
 0x7d5   : > { %11368 = vmatpush3.bf16.msra.mxu0 %v11365_v61  ;;  %11358 = vmatprep.subr.bf16.mxu1 %v11357_v38  ;;  %v7656_v61 = vld [vmem:[#allocation2 + $0x42] sm:$0xff] }
 0x7d6   : > { %11360 = vmatpush3.bf16.msra.mxu1 %v11357_v38  ;;  %11378 = vmatprep.subr.bf16.mxu0 %v11377_v51  ;;  %v9201_v38 = vld [vmem:[%s13495_s10 + $0x70] sm:$0xff] }
 0x7d7   : > { %10821 = vmatmul.mubr.msk.f32.gmra.mrb[48].mxu1 %vm797_vm2, %v6495_v43  ;;  %10844 = vmatmul.mubr.msk.f32.gmra.mrb[70].mxu0 %vm797_vm2, %v6495_v43 }
 0x7d8   : > { %10823 = vmatprep.mubr.msk.f32.mxu1 %vm797_vm2, %v6496_v37  ;;  %10846 = vmatprep.mubr.msk.f32.mxu0 %vm797_vm2, %v6496_v37 }
 0x7d9   : > { %11370 = vmatprep.subr.bf16.mxu1 %v11369_v58 }
 0x7db   : > { %10824 = vmatmul.mubr.msk.f32.gmra.mrb[50].mxu1 %vm797_vm2, %v6497_v39  ;;  %10847 = vmatmul.mubr.msk.f32.gmra.mrb[72].mxu0 %vm797_vm2, %v6497_v39 }
 0x7dc   : > { %10826 = vmatprep.mubr.msk.f32.mxu1 %vm797_vm2, %v6498_v41  ;;  %10849 = vmatprep.mubr.msk.f32.mxu0 %vm797_vm2, %v6498_v41 }
 0x7df   : > { %10827 = vmatmul.mubr.msk.f32.gmra.mrb[52].mxu1 %vm797_vm2, %v6499_v62  ;;  %10850 = vmatmul.mubr.msk.f32.gmra.mrb[74].mxu0 %vm797_vm2, %v6499_v62 }
 0x7e0   : > { %10860 = vmatprep.mubr.msk.f32.mxu1 %vm797_vm2, %v7050_v10  ;;  %10883 = vmatprep.mubr.msk.f32.mxu0 %vm797_vm2, %v7050_v10  ;;  %v13353_v10 = vld [vmem:[%s13491_s6 + $0x3] ss:$0 sm:$0xff] }
 0x7e3   : > { %10861 = vmatmul.mubr.msk.f32.vlgmr.msra.gmra.mrb[44].mxu1 %vm797_vm2, %v7051_v63  ;;  %10884 = vmatmul.mubr.msk.f32.vlgmr.msra.gmra.mrb[66].mxu0 %vm797_vm2, %v7051_v63 }
 0x7e4   : > { %11380 = vmatpush3.bf16.msra.mxu0 %v11377_v51  ;;  %10863 = vmatprep.mubr.msk.f32.mxu1 %vm797_vm2, %v7052_v1  ;;  %v11405_v51 = vpack.c.bf16 %v9202_v47, %v9201_v38 }
 0x7e5   : > { %10886 = vmatprep.mubr.msk.f32.mxu0 %vm797_vm2, %v7052_v1  ;;  %11382 = vmatprep.subr.bf16.mxu0 %v11381_v9 }
 0x7e6   : > { %11372 = vmatpush3.bf16.msra.mxu1 %v11369_v58  ;;  %v13346_v58 = vld [vmem:[%s13492_s7 + $0x3] ss:$0 sm:$0xff] }
 0x7e7   : > { %10864 = vmatmul.mubr.msk.f32.gmra.mrb[46].mxu1 %vm797_vm2, %v7053_v5  ;;  %10887 = vmatmul.mubr.msk.f32.gmra.mrb[68].mxu0 %vm797_vm2, %v7053_v5 }
 0x7e8   : > { %10866 = vmatprep.mubr.msk.f32.mxu1 %vm797_vm2, %v7054_v20  ;;  %10889 = vmatprep.mubr.msk.f32.mxu0 %vm797_vm2, %v7054_v20 }
 0x7e9   : > { %11384 = vmatpush3.bf16.msra.mxu0 %v11381_v9  ;;  %11374 = vmatprep.subr.bf16.mxu1 %v11373_v2 }
 0x7ea   : > { %11376 = vmatpush3.bf16.msra.mxu1 %v11373_v2  ;;  %11394 = vmatprep.subr.bf16.mxu0 %v11393_v12 }
 0x7eb   : > { %10867 = vmatmul.mubr.msk.f32.gmra.mrb[48].mxu1 %vm797_vm2, %v7055_v46  ;;  %10890 = vmatmul.mubr.msk.f32.gmra.mrb[70].mxu0 %vm797_vm2, %v7055_v46 }
 0x7ec   : > { %10869 = vmatprep.mubr.msk.f32.mxu1 %vm797_vm2, %v7056_v21  ;;  %10892 = vmatprep.mubr.msk.f32.mxu0 %vm797_vm2, %v7056_v21 }
 0x7ed   : > { %11386 = vmatprep.subr.bf16.mxu1 %v11385_v45 }
 0x7ef   : > { %10870 = vmatmul.mubr.msk.f32.gmra.mrb[50].mxu1 %vm797_vm2, %v7057_v3  ;;  %10893 = vmatmul.mubr.msk.f32.gmra.mrb[72].mxu0 %vm797_vm2, %v7057_v3 }
 0x7f0   : > { %10872 = vmatprep.mubr.msk.f32.mxu1 %vm797_vm2, %v7058_v15  ;;  %10895 = vmatprep.mubr.msk.f32.mxu0 %vm797_vm2, %v7058_v15 }
 0x7f3   : > { %10873 = vmatmul.mubr.msk.f32.gmra.mrb[52].mxu1 %vm797_vm2, %v7059_v16  ;;  %10896 = vmatmul.mubr.msk.f32.gmra.mrb[74].mxu0 %vm797_vm2, %v7059_v16 }
 0x7f4   : > { %10906 = vmatprep.mubr.msk.f32.mxu1 %vm797_vm2, %v7350_v50  ;;  %10929 = vmatprep.mubr.msk.f32.mxu0 %vm797_vm2, %v7350_v50 }
 0x7f7   : > { %10907 = vmatmul.mubr.msk.f32.vlgmr.msra.gmra.mrb[44].mxu1 %vm797_vm2, %v7351_v23  ;;  %10930 = vmatmul.mubr.msk.f32.vlgmr.msra.gmra.mrb[66].mxu0 %vm797_vm2, %v7351_v23 }
 0x7f8   : > { %11396 = vmatpush3.bf16.msra.mxu0 %v11393_v12  ;;  %10909 = vmatprep.mubr.msk.f32.mxu1 %vm797_vm2, %v7352_v29 }
 0x7f9   : > { %10932 = vmatprep.mubr.msk.f32.mxu0 %vm797_vm2, %v7352_v29  ;;  %11398 = vmatprep.subr.bf16.mxu0 %v11397_v22 }
 0x7fa   : > { %11388 = vmatpush3.bf16.msra.mxu1 %v11385_v45 }
 0x7fb   : > { %10910 = vmatmul.mubr.msk.f32.gmra.mrb[46].mxu1 %vm797_vm2, %v7353_v48  ;;  %10933 = vmatmul.mubr.msk.f32.gmra.mrb[68].mxu0 %vm797_vm2, %v7353_v48 }
 0x7fc   : > { %10912 = vmatprep.mubr.msk.f32.mxu1 %vm797_vm2, %v7354_v24  ;;  %10935 = vmatprep.mubr.msk.f32.mxu0 %vm797_vm2, %v7354_v24 }
 0x7fd   : > { %11400 = vmatpush3.bf16.msra.mxu0 %v11397_v22  ;;  %11390 = vmatprep.subr.bf16.mxu1 %v11389_v19 }
 0x7fe   : > { %11392 = vmatpush3.bf16.msra.mxu1 %v11389_v19  ;;  %11410 = vmatprep.subr.bf16.mxu0 %v11409_v8 }
 0x7ff   : > { %10913 = vmatmul.mubr.msk.f32.gmra.mrb[48].mxu1 %vm797_vm2, %v7355_v33  ;;  %10936 = vmatmul.mubr.msk.f32.gmra.mrb[70].mxu0 %vm797_vm2, %v7355_v33 }
 0x800   : > { %10915 = vmatprep.mubr.msk.f32.mxu1 %vm797_vm2, %v7356_v34  ;;  %10938 = vmatprep.mubr.msk.f32.mxu0 %vm797_vm2, %v7356_v34 }
 0x801   : > { %11402 = vmatprep.subr.bf16.mxu1 %v11401_v57 }
 0x803   : > { %10916 = vmatmul.mubr.msk.f32.gmra.mrb[50].mxu1 %vm797_vm2, %v7357_v17  ;;  %10939 = vmatmul.mubr.msk.f32.gmra.mrb[72].mxu0 %vm797_vm2, %v7357_v17 }
 0x804   : > { %10918 = vmatprep.mubr.msk.f32.mxu1 %vm797_vm2, %v7358_v27  ;;  %10941 = vmatprep.mubr.msk.f32.mxu0 %vm797_vm2, %v7358_v27 }
 0x807   : > { %10919 = vmatmul.mubr.msk.f32.gmra.mrb[52].mxu1 %vm797_vm2, %v7359_v30  ;;  %10942 = vmatmul.mubr.msk.f32.gmra.mrb[74].mxu0 %vm797_vm2, %v7359_v30 }
 0x808   : > { %10952 = vmatprep.mubr.msk.f32.mxu1 %vm797_vm2, %v7650_v25  ;;  %10975 = vmatprep.mubr.msk.f32.mxu0 %vm797_vm2, %v7650_v25 }
 0x80b   : > { %10953 = vmatmul.mubr.msk.f32.vlgmr.msra.gmra.mrb[44].mxu1 %vm797_vm2, %v7651_v32  ;;  %10976 = vmatmul.mubr.msk.f32.vlgmr.msra.gmra.mrb[66].mxu0 %vm797_vm2, %v7651_v32 }
 0x80c   : > { %10955 = vmatprep.mubr.msk.f32.mxu1 %vm797_vm2, %v7652_v54  ;;  %10978 = vmatprep.mubr.msk.f32.mxu0 %vm797_vm2, %v7652_v54 }
 0x80d   : > { %11404 = vmatpush3.bf16.msra.mxu1 %v11401_v57  ;;  %11412 = vmatpush3.bf16.msra.mxu0 %v11409_v8 }
 0x80e   : > { %11406 = vmatprep.subr.bf16.mxu1 %v11405_v51 }
 0x80f   : > { %10956 = vmatmul.mubr.msk.f32.gmra.mrb[46].mxu1 %vm797_vm2, %v7653_v4  ;;  %10979 = vmatmul.mubr.msk.f32.gmra.mrb[68].mxu0 %vm797_vm2, %v7653_v4 }
 0x810   : > { %10958 = vmatprep.mubr.msk.f32.mxu1 %vm797_vm2, %v7654_v7  ;;  %10981 = vmatprep.mubr.msk.f32.mxu0 %vm797_vm2, %v7654_v7 }
 0x811   : > { %11408 = vmatpush3.bf16.msra.mxu1 %v11405_v51 }
 0x813   : > { %10959 = vmatmul.mubr.msk.f32.gmra.mrb[48].mxu1 %vm797_vm2, %v7655_v59  ;;  %10982 = vmatmul.mubr.msk.f32.gmra.mrb[70].mxu0 %vm797_vm2, %v7655_v59 }
 0x814   : > { %10961 = vmatprep.mubr.msk.f32.mxu1 %vm797_vm2, %v7656_v61  ;;  %10984 = vmatprep.mubr.msk.f32.mxu0 %vm797_vm2, %v7656_v61 }
 0x817   : > { %10962 = vmatmul.mubr.msk.f32.gmra.mrb[50].mxu1 %vm797_vm2, %v7657_v26  ;;  %10985 = vmatmul.mubr.msk.f32.gmra.mrb[72].mxu0 %vm797_vm2, %v7657_v26 }
 0x818   : > { %10964 = vmatprep.mubr.msk.f32.mxu1 %vm797_vm2, %v7658_v35  ;;  %10987 = vmatprep.mubr.msk.f32.mxu0 %vm797_vm2, %v7658_v35 }
 0x81b   : > { %10965 = vmatmul.mubr.msk.f32.gmra.mrb[52].mxu1 %vm797_vm2, %v7659_v36  ;;  %10988 = vmatmul.mubr.msk.f32.gmra.mrb[74].mxu0 %vm797_vm2, %v7659_v36 }
 0x8de   : > { %v10954_v43 = vpop.f32.mrb[44].mxu1  ;;  %v10977_v37 = vpop.f32.mrb[66].mxu0 }
 0x8df   : > { %v7987_v39 = vadd.f32 %v10977_v37, %v13346_v58  ;;  %v7761_v41 = vpop.f32.mrb[45].mxu1  ;;  %v7881_v62 = vpop.f32.mrb[67].mxu0  ;;  %v7959_v2 = vadd.f32 %v10954_v43, %v13353_v10 }
 0x8e0   : > { %v7986_v55 = vadd.f32 %v13346_v58, %v7881_v62  ;;  %v7958_v12 = vadd.f32 %v13353_v10, %v7761_v41 }
 0x8e1   : > { %v9190_v56 = vmul.f32 -1.442695, %v7987_v39 }
 0x8e2   : > { %v9189_v9 = vmul.f32 -1.442695, %v7986_v55  ;;  %v10957_v63 = vpop.f32.mrb[46].mxu1  ;;  %v10980_v44 = vpop.f32.mrb[68].mxu0 }
 0x8e3   : > { %12035 = vpow2.f32 %v9190_v56  ;;  %v7989_v0 = vadd.f32 %v10980_v44, %v13346_v58  ;;  %v7771_v1 = vpop.f32.mrb[47].mxu1  ;;  %v7891_v42 = vpop.f32.mrb[69].mxu0  ;;  %v7961_v15 = vadd.f32 %v10957_v63, %v13353_v10 }
 0x8e4   : > { %12037 = vpow2.f32 %v9189_v9  ;;  %v7988_v6 = vadd.f32 %v13346_v58, %v7891_v42  ;;  %v7960_v40 = vadd.f32 %v13353_v10, %v7771_v1 }
 0x8e5   : > { %v9192_v5 = vmul.f32 -1.442695, %v7989_v0 }
 0x8e6   : > { %v9191_v13 = vmul.f32 -1.442695, %v7988_v6  ;;  %v10960_v14 = vpop.f32.mrb[48].mxu1  ;;  %v10983_v20 = vpop.f32.mrb[70].mxu0 }
 0x8e7   : > { %12039 = vpow2.f32 %v9192_v5  ;;  %v7991_v45 = vadd.f32 %v10983_v20, %v13346_v58  ;;  %v7781_v46 = vpop.f32.mrb[49].mxu1  ;;  %v7901_v21 = vpop.f32.mrb[71].mxu0  ;;  %v7963_v25 = vadd.f32 %v10960_v14, %v13353_v10 }
 0x8e8   : > { %12041 = vpow2.f32 %v9191_v13  ;;  %v7990_v3 = vadd.f32 %v13346_v58, %v7901_v21  ;;  %v7962_v60 = vadd.f32 %v13353_v10, %v7781_v46 }
 0x8e9   : > { %12043 = vtanh.f32 %v7959_v2  ;;  %v9194_v16 = vmul.f32 -1.442695, %v7991_v45 }
 0x8ea   : > { %12045 = vtanh.f32 %v7958_v12  ;;  %v9193_v11 = vmul.f32 -1.442695, %v7990_v3  ;;  %v10963_v50 = vpop.f32.mrb[50].mxu1  ;;  %v10986_v22 = vpop.f32.mrb[72].mxu0 }
 0x8eb   : > { %12047 = vpow2.f32 %v9194_v16  ;;  %v7993_v23 = vadd.f32 %v10986_v22, %v13346_v58  ;;  %v7791_v49 = vpop.f32.mrb[51].mxu1  ;;  %v7911_v18 = vpop.f32.mrb[73].mxu0  ;;  %v7965_v43 = vadd.f32 %v10963_v50, %v13353_v10 }
 0x8ec   : > { %12049 = vpow2.f32 %v9193_v11  ;;  %v7992_v29 = vadd.f32 %v13346_v58, %v7911_v18  ;;  %v7964_v62 = vadd.f32 %v13353_v10, %v7791_v49 }
 0x8ed   : > { %v12036_v19 = vpop.eup %12035  ;;  %12051 = vtanh.f32 %v7961_v15  ;;  %v9196_v48 = vmul.f32 -1.442695, %v7993_v23 }
 0x8ee   : > { %v12038_v24 = vpop.eup %12037  ;;  %v8027_v33 = vadd.f32 1.0, %v12036_v19  ;;  %12053 = vtanh.f32 %v7960_v40  ;;  %v9195_v34 = vmul.f32 -1.442695, %v7992_v29  ;;  %v10966_v17 = vpop.f32.mrb[52].mxu1 }
 0x8ef   : > { %v10989_v27 = vpop.f32.mrb[74].mxu0  ;;  %v8026_v30 = vadd.f32 1.0, %v12038_v24  ;;  %12055 = vpow2.f32 %v9196_v48  ;;  %v7801_v54 = vpop.f32.mrb[53].mxu1  ;;  %v7967_v42 = vadd.f32 %v10966_v17, %v13353_v10 }
 0x8f0   : > { %v7995_v32 = vadd.f32 %v10989_v27, %v13346_v58  ;;  %v7921_v4 = vpop.f32.mrb[75].mxu0  ;;  %12057 = vrcp.f32 %v8027_v33  ;;  %v7966_v45 = vadd.f32 %v13353_v10, %v7801_v54  ;;  %v8280_v33 = vld [vmem:[%s13497_s12 + $0x10] sm:$0xff] }
 0x8f1   : > { %v12040_v7 = vpop.eup %12039  ;;  %12059 = vrcp.f32 %v8026_v30  ;;  %v7994_v35 = vadd.f32 %v13346_v58, %v7921_v4  ;;  %v8640_v27 = vld [vmem:[%s12370_s24 + $0x10] sm:$0xff]  ;;  %v8639_v30 = vld [vmem:[%s12370_s24 + $0x8] sm:$0xff] }
 0x8f2   : > { %v12042_v59 = vpop.eup %12041  ;;  %v8029_v61 = vadd.f32 1.0, %v12040_v7  ;;  %12061 = vpow2.f32 %v9195_v34  ;;  %v9198_v26 = vmul.f32 -1.442695, %v7995_v32  ;;  %v8281_v34 = vld [vmem:[%s13497_s12 + $0x18] sm:$0xff]  ;;  %8428 = vrot.lane.b32.xlu1 %v8640_v27, %s12189_s26  ;;  %8426 = vrot.lane.b32.xlu0 %v8639_v30, %s12189_s26  ;;  %v8644_v54 = vld [vmem:[%s12370_s24 + $0x30] sm:$0xff] }
 0x8f3   : > { %v12044_v36 = vpop.eup %12043  ;;  %v8028_v31 = vadd.f32 1.0, %v12042_v59  ;;  %12063 = vtanh.f32 %v7963_v25  ;;  %v9197_v53 = vmul.f32 -1.442695, %v7994_v35  ;;  %v11413_v17 = vpack.c.bf16 %v8281_v34, %v8280_v33  ;;  %v8642_v25 = vld [vmem:[%s12370_s24 + $0x20] sm:$0xff]  ;;  %v8641_v32 = vld [vmem:[%s12370_s24 + $0x18] sm:$0xff]  ;;  %v8643_v4 = vld [vmem:[%s12370_s24 + $0x28] sm:$0xff] }
 0x8f4   : > { %v12046_v57 = vpop.eup %12045  ;;  %12065 = vrcp.f32 %v8029_v61  ;;  %v8646_v7 = vld [vmem:[%s12370_s24 + $0x40] sm:$0xff]  ;;  %v8645_v59 = vld [vmem:[%s12370_s24 + $0x38] sm:$0xff] }
 0x8f5   : > { %v12048_v38 = vpop.eup %12047  ;;  %12067 = vrcp.f32 %v8028_v31  ;;  %11414 = vmatprep.subr.bf16.mxu0 %v11413_v17  ;;  %v8771_v61 = vld [vmem:[%s13496_s11] ss:$0 sm:$0xff] }
 0x8f6   : > { %v12050_v47 = vpop.eup %12049  ;;  %v8031_v51 = vadd.f32 1.0, %v12048_v38  ;;  %12069 = vpow2.f32 %v9198_v26  ;;  %11416 = vmatpush3.bf16.msra.mxu0 %v11413_v17  ;;  %8432 = vrot.lane.b32.xlu1 %v8642_v25, %s12189_s26  ;;  %v8912_v26 = vld [vmem:[%s13496_s11 + $0x1] ss:$0 sm:$0xff]  ;;  %v9204_v38 = vld [vmem:[%s13496_s11 + $0x3] ss:$0 sm:$0xff] }
 0x8f7   : > { %v12052_v52 = vpop.eup %12051  ;;  %12071 = vtanh.f32 %v7962_v60  ;;  %v8030_v8 = vadd.f32 1.0, %v12050_v47  ;;  %8430 = vrot.lane.b32.xlu0 %v8641_v32, %s12189_s26  ;;  %v11419_v35 = vadd.f32 %v8912_v26, %v8771_v61  ;;  %v13406_v60 = vpop.permute.xlu0 %8232  ;;  %v9215_v33 = vld [vmem:[%s13514_s19] ss:$0 sm:$0xff] }
 0x8f8   : > { %v12054_v37 = vpop.eup %12053  ;;  %12073 = vrcp.f32 %v8031_v51 }
 0x8f9   : > { %v12056_v58 = vpop.eup %12055  ;;  %12075 = vrcp.f32 %v8030_v8  ;;  %v8238_v8 = vpop.permute.xlu1 %8237 }
 0x8fa   : > { %v12058_v39 = vpop.eup %12057  ;;  %v8033_v41 = vadd.f32 1.0, %v12056_v58  ;;  %12077 = vpow2.f32 %v9197_v53  ;;  %8436 = vrot.lane.b32.xlu1 %v8644_v54, %s12189_s26 }
 0x8fb   : > { %v12060_v55 = vpop.eup %12059  ;;  %v8057_v56 = vmul.f32 %v12058_v39, %v12044_v36  ;;  %12079 = vtanh.f32 %v7965_v43  ;;  %8434 = vrot.lane.b32.xlu0 %v8643_v4, %s12189_s26  ;;  %v9058_v36 = vld [vmem:[%s13496_s11 + $0x2] ss:$0 sm:$0xff]  ;;  %v13412_v39 = vpop.permute.xlu0 %8242 }
 0x8fc   : > { %v12062_v9 = vpop.eup %12061  ;;  %12081 = vrcp.f32 %v8033_v41  ;;  %v8056_v63 = vmul.f32 %v12060_v55, %v12046_v57  ;;  %v11420_v31 = vadd.f32 %v11419_v35, %v9058_v36 }
 0x8fd   : > { %v12064_v44 = vpop.eup %12063  ;;  %v8032_v0 = vadd.f32 1.0, %v12062_v9  ;;  %12083 = vtanh.f32 %v7964_v62 }
 0x8fe   : > { %v12066_v1 = vpop.eup %12065  ;;  %10998 = vmatprep.mubr.msk.f32.mxu1 %vm797_vm2, %v8056_v63  ;;  %8440 = vrot.lane.b32.xlu1 %v8646_v7, %s12189_s26  ;;  %v11437_v41 = vadd.f32 %v11420_v31, %v9204_v38 }
 0x8ff   : > { %v12068_v6 = vpop.eup %12067  ;;  %12085 = vrcp.f32 %v8032_v0  ;;  %10999 = vmatmul.mubr.msk.f32.vlgmr.msra.gmra.mrb[14].mxu1 %vm797_vm2, %v8057_v56  ;;  %v8059_v2 = vmul.f32 %v12066_v1, %v12052_v52  ;;  %8438 = vrot.lane.b32.xlu0 %v8645_v59, %s12189_s26  ;;  %v8248_v1 = vpop.permute.xlu1 %8247 }
 0x900   : > { %v12070_v5 = vpop.eup %12069  ;;  %v8058_v12 = vmul.f32 %v12068_v6, %v12054_v37  ;;  %12087 = vtanh.f32 %v7967_v42 }
 0x901   : > { %v12072_v13 = vpop.eup %12071  ;;  %v8035_v14 = vadd.f32 1.0, %v12070_v5 }
 0x902   : > { %v12074_v20 = vpop.eup %12073  ;;  %11001 = vmatprep.mubr.msk.f32.mxu1 %vm797_vm2, %v8058_v12  ;;  %8468 = vrot.lane.b32.xlu1 %v8640_v27, %s12190_s17 }
 0x903   : > { %v12076_v46 = vpop.eup %12075  ;;  %12089 = vrcp.f32 %v8035_v14  ;;  %11002 = vmatmul.mubr.msk.f32.gmra.mrb[16].mxu1 %vm797_vm2, %v8059_v2  ;;  %v8061_v21 = vmul.f32 %v12074_v20, %v12064_v44  ;;  %8466 = vrot.lane.b32.xlu0 %v8639_v30, %s12190_s17  ;;  %v13416_v2 = vpop.permute.xlu0 %8252 }
 0x904   : > { %v12078_v3 = vpop.eup %12077  ;;  %v8060_v15 = vmul.f32 %v12076_v46, %v12072_v13  ;;  %12091 = vtanh.f32 %v7966_v45  ;;  %v8258_v46 = vpop.permute.xlu1 %8257 }
 0x905   : > { %v12080_v16 = vpop.eup %12079  ;;  %v8034_v40 = vadd.f32 1.0, %v12078_v3 }
 0x906   : > { %v12082_v11 = vpop.eup %12081  ;;  %11004 = vmatprep.mubr.msk.f32.mxu1 %vm797_vm2, %v8060_v15  ;;  %8472 = vrot.lane.b32.xlu1 %v8642_v25, %s12190_s17 }
 0x907   : > { %12093 = vrcp.f32 %v8034_v40  ;;  %11005 = vmatmul.mubr.msk.f32.gmra.mrb[18].mxu1 %vm797_vm2, %v8061_v21  ;;  %v8063_v50 = vmul.f32 %v12082_v11, %v12080_v16  ;;  %v12084_v10 = vpop.eup %12083  ;;  %8470 = vrot.lane.b32.xlu0 %v8641_v32, %s12190_s17  ;;  %v13423_v21 = vpop.permute.xlu0 %8262 }
 0x909   : > { %v12086_v22 = vpop.eup %12085 }
 0x90a   : > { %v8062_v23 = vmul.f32 %v12086_v22, %v12084_v10  ;;  %v12088_v49 = vpop.eup %12087  ;;  %8476 = vrot.lane.b32.xlu1 %v8644_v54, %s12190_s17 }
 0x90b   : > { %8474 = vrot.lane.b32.xlu0 %v8643_v4, %s12190_s17 }
 0x90c   : > { %11007 = vmatprep.mubr.msk.f32.mxu1 %vm797_vm2, %v8062_v23 }
 0x90d   : > { %v12090_v18 = vpop.eup %12089  ;;  %11008 = vmatmul.mubr.msk.f32.gmra.mrb[20].mxu1 %vm797_vm2, %v8063_v50  ;;  %v13428_v50 = vpop.permute.xlu1 %8267 }
 0x90e   : > { %v8065_v29 = vmul.f32 %v12090_v18, %v12088_v49  ;;  %v12092_v19 = vpop.eup %12091  ;;  %8480 = vrot.lane.b32.xlu1 %v8646_v7, %s12190_s17 }
 0x90f   : > { %8478 = vrot.lane.b32.xlu0 %v8645_v59, %s12190_s17 }
 0x911   : > { %v12094_v48 = vpop.eup %12093 }
 0x912   : > { %v8064_v24 = vmul.f32 %v12094_v48, %v12092_v19 }
 0x914   : > { %11010 = vmatprep.mubr.msk.f32.mxu1 %vm797_vm2, %v8064_v24 }
 0x915   : > { %11011 = vmatmul.mubr.msk.f32.gmra.mrb[22].mxu1 %vm797_vm2, %v8065_v29 }
 0x964   : > { %v8429_v22 = vpop.permute.xlu1 %8428  ;;  %v8427_v23 = vpop.permute.xlu0 %8426 }
 0x968   : > { %v8433_v49 = vpop.permute.xlu1 %8432 }
 0x969   : > { %v8431_v18 = vpop.permute.xlu0 %8430 }
 0x96c   : > { %v8437_v29 = vpop.permute.xlu1 %8436 }
 0x96d   : > { %v8435_v19 = vpop.permute.xlu0 %8434 }
 0x970   : > { %v8441_v48 = vpop.permute.xlu1 %8440 }
 0x971   : > { %v8439_v24 = vpop.permute.xlu0 %8438 }
 0x974   : > { %v8469_v17 = vpop.permute.xlu1 %8468 }
 0x975   : > { %v8467_v25 = vpop.permute.xlu0 %8466 }
 0x978   : > { %v8473_v36 = vpop.permute.xlu1 %8472 }
 0x9d2   : > { %v11000_v57 = vpop.f32.mrb[14].mxu1 }
 0x9d3   : > { %v11421_v47 = vadd.f32 %v11420_v31, %v11000_v57  ;;  %v8175_v51 = vpop.f32.mrb[15].mxu1 }
 0x9d5   : > { %v11422_v53 = vadd.f32 %v11421_v47, %v9204_v38 }
 0x9d6   : > { %v11003_v52 = vpop.f32.mrb[16].mxu1 }
 0x9d7   : > { %v8270_v43 = vmul.f32 %v11422_v53, %v13406_v60  ;;  %v11425_v37 = vadd.f32 %v11420_v31, %v11003_v52  ;;  %v8184_v58 = vpop.f32.mrb[17].mxu1 }
 0x9d8   : > { %v11429_v62 = vadd.f32 %v11420_v31, %v8184_v58 }
 0x9d9   : > { %v11426_v55 = vadd.f32 %v11425_v37, %v9204_v38  ;;  %11021 = vmatprep.mubr.msk.f32.mxu0 %vm797_vm2, %v8270_v43 }
 0x9da   : > { %v11430_v56 = vadd.f32 %v11429_v62, %v9204_v38  ;;  %v11006_v9 = vpop.f32.mrb[18].mxu1  ;;  %v8471_v38 = vpop.permute.xlu0 %8470 }
 0x9db   : > { %v8194_v63 = vpop.f32.mrb[19].mxu1  ;;  %v8272_v42 = vmul.f32 %v11426_v55, %v13412_v39  ;;  %v11434_v6 = vadd.f32 %v11437_v41, %v11006_v9 }
 0x9dc   : > { %v8271_v44 = vmul.f32 %v11430_v56, %v8238_v8  ;;  %v11438_v0 = vadd.f32 %v11437_v41, %v8194_v63  ;;  %v8477_v56 = vpop.permute.xlu1 %8476 }
 0x9dd   : > { %v8274_v13 = vmul.f32 %v11434_v6, %v13416_v2 }
 0x9de   : > { %11022 = vmatmul.mubr.msk.f32.vlgmr.msra.gmra.mrb[76].mxu0 %vm797_vm2, %v8271_v44  ;;  %v8273_v5 = vmul.f32 %v11438_v0, %v8248_v1  ;;  %v8475_v63 = vpop.permute.xlu0 %8474 }
 0x9df   : > { %11024 = vmatprep.mubr.msk.f32.mxu0 %vm797_vm2, %v8272_v42 }
 0x9e0   : > { %v11009_v12 = vpop.f32.mrb[20].mxu1 }
 0x9e1   : > { %v11442_v14 = vadd.f32 %v11437_v41, %v11009_v12  ;;  %v8204_v20 = vpop.f32.mrb[21].mxu1 }
 0x9e2   : > { %v11446_v45 = vadd.f32 %v11437_v41, %v8204_v20  ;;  %11025 = vmatmul.mubr.msk.f32.gmra.mrb[78].mxu0 %vm797_vm2, %v8273_v5 }
 0x9e3   : > { %11027 = vmatprep.mubr.msk.f32.mxu0 %vm797_vm2, %v8274_v13  ;;  %v8276_v15 = vmul.f32 %v11442_v14, %v13423_v21  ;;  %v8481_v14 = vpop.permute.xlu1 %8480 }
 0x9e4   : > { %v8275_v3 = vmul.f32 %v11446_v45, %v8258_v46 }
 0x9e6   : > { %11028 = vmatmul.mubr.msk.f32.gmra.mrb[80].mxu0 %vm797_vm2, %v8275_v3 }
 0x9e7   : > { %11030 = vmatprep.mubr.msk.f32.mxu0 %vm797_vm2, %v8276_v15 }
 0x9e8   : > { %v11012_v16 = vpop.f32.mrb[22].mxu1 }
 0x9e9   : > { %v8214_v40 = vpop.f32.mrb[23].mxu1 }
 0x9ea   : > { %v11450_v11 = vadd.f32 %v11437_v41, %v8214_v40 }
 0x9ec   : > { %v8277_v10 = vmul.f32 %v11450_v11, %v13428_v50 }
 0x9ee   : > { %11031 = vmatmul.mubr.msk.f32.gmra.mrb[82].mxu0 %vm797_vm2, %v8277_v10 }
 0xab1   : > { %v11023_v34 = vpop.f32.mrb[76].mxu0 }
 0xab2   : > { %v8385_v27 = vadd.f32 %v11023_v34, %v9215_v33  ;;  %v8379_v30 = vpop.f32.mrb[77].mxu0 }
 0xab3   : > { %v8380_v32 = vadd.f32 %v9215_v33, %v8379_v30 }
 0xab4   : > { %v8451_v28 = vadd.f32 %v8429_v22, %v8385_v27 }
 0xab5   : > { %v8450_v54 = vadd.f32 %v8427_v23, %v8380_v32  ;;  %v11026_v4 = vpop.f32.mrb[78].mxu0 }
 0xab6   : > { %v8459_v7 = vmul.f32 %v8451_v28, %v8238_v8  ;;  %v8395_v59 = vadd.f32 %v11026_v4, %v9215_v33  ;;  %v8389_v61 = vpop.f32.mrb[79].mxu0 }
 0xab7   : > { %v8458_v26 = vmul.f32 %v8450_v54, %v13406_v60  ;;  %v8390_v35 = vadd.f32 %v9215_v33, %v8389_v61 }
 0xab8   : > { %v8453_v31 = vadd.f32 %v8433_v49, %v8395_v59  ;;  %v8491_v57 = vsel %vm587_vm1, %v8459_v7, %v8469_v17 }
 0xab9   : > { %v8452_v47 = vadd.f32 %v8431_v18, %v8390_v35  ;;  %9225 = vst.msk [vmem:[%s13436_s22 + $0x10] sm:$0xff] %vm535_vm3, %v8491_v57  ;;  %v8490_v51 = vsel %vm587_vm1, %v8458_v26, %v8467_v25  ;;  %v11029_v53 = vpop.f32.mrb[80].mxu0 }
 0xaba   : > { %v8461_v52 = vmul.f32 %v8453_v31, %v8248_v1  ;;  %9224 = vst.msk [vmem:[%s13436_s22 + $0x8] sm:$0xff] %vm535_vm3, %v8490_v51  ;;  %v8405_v8 = vadd.f32 %v11029_v53, %v9215_v33  ;;  %v8399_v60 = vpop.f32.mrb[81].mxu0 }
 0xabb   : > { %v8460_v43 = vmul.f32 %v8452_v47, %v13412_v39  ;;  %v8400_v37 = vadd.f32 %v9215_v33, %v8399_v60 }
 0xabc   : > { %v8455_v58 = vadd.f32 %v8437_v29, %v8405_v8  ;;  %v8493_v41 = vsel %vm587_vm1, %v8461_v52, %v8473_v36 }
 0xabd   : > { %v8454_v62 = vadd.f32 %v8435_v19, %v8400_v37  ;;  %9227 = vst.msk [vmem:[%s13436_s22 + $0x20] sm:$0xff] %vm535_vm3, %v8493_v41  ;;  %v8492_v55 = vsel %vm587_vm1, %v8460_v43, %v8471_v38 }
 0xabe   : > { %v8463_v9 = vmul.f32 %v8455_v58, %v8258_v46  ;;  %9226 = vst.msk [vmem:[%s13436_s22 + $0x18] sm:$0xff] %vm535_vm3, %v8492_v55 }
 0xabf   : > { %v8462_v44 = vmul.f32 %v8454_v62, %v13416_v2  ;;  %v8479_v2 = vpop.permute.xlu0 %8478 }
 0xac0   : > { %v8495_v39 = vsel %vm587_vm1, %v8463_v9, %v8477_v56 }
 0xac1   : > { %v11032_v0 = vpop.f32.mrb[82].mxu0  ;;  %9229 = vst.msk [vmem:[%s13436_s22 + $0x30] sm:$0xff] %vm535_vm3, %v8495_v39  ;;  %v8494_v1 = vsel %vm587_vm1, %v8462_v44, %v8475_v63 }
 0xac2   : > { %v8415_v42 = vadd.f32 %v11032_v0, %v9215_v33  ;;  %v8409_v6 = vpop.f32.mrb[83].mxu0  ;;  %9228 = vst.msk [vmem:[%s13436_s22 + $0x28] sm:$0xff] %vm535_vm3, %v8494_v1 }
 0xac3   : > { %v8410_v5 = vadd.f32 %v9215_v33, %v8409_v6 }
 0xac4   : > { %v8457_v12 = vadd.f32 %v8441_v48, %v8415_v42 }
 0xac5   : > { %v8456_v13 = vadd.f32 %v8439_v24, %v8410_v5 }
 0xac6   : > { %v8465_v20 = vmul.f32 %v8457_v12, %v13428_v50 }
 0xac7   : > { %v8464_v45 = vmul.f32 %v8456_v13, %v13423_v21 }
 0xac8   : > { %v8497_v46 = vsel %vm587_vm1, %v8465_v20, %v8481_v14 }
 0xac9   : > { %9231 = vst.msk [vmem:[%s13436_s22 + $0x40] sm:$0xff] %vm535_vm3, %v8497_v46  ;;  %v8496_v3 = vsel %vm587_vm1, %v8464_v45, %v8479_v2 }
 0xaca   : > { %9230 = vst.msk [vmem:[%s13436_s22 + $0x38] sm:$0xff] %vm535_vm3, %v8496_v3 }
 0xacb PF: > { %s13515_s29 = sld [smem:[#allocation10_spill]]  ;;  %s13517_s30 = sld [smem:[#allocation11_spill]] }
 0xad1   : > { %s26_s15 = sadd.s32 1, %s13515_s29   ;;  %s13516_s29 = sld [smem:[#allocation9_spill]] }
 0xad2   : > { %p23_p6 = scmp.ge.s32.totalorder %s26_s15, 4  }
 0xad4   :  { %25 = sbr.rel (!%p23_p6) target bundleno = 5 (0x5), region = 181 }
 0xadb   :  { %8529 = vsyncpa [#allocation4], 1 }
 0xadc   :  { %8531 = vsyncpa [#allocation4 + $0x1], 1 }
 0xadd   :  { %8532 = vsyncpa [#allocation6], 1 }

// kernel: tpu_custom_call.1
= control target key start
LH: loop header
LB: loop body
LE: loop exit
PB: predicated region body
PF: predicated region fallthrough
CT: control target
= control target key end

     0   :  { %s13485_s0 = inlined_call_operand.vmem [shape: f32[2,80,8], index: 0, kind: input, shape index: {}]   ;;  %s13486_s1 = inlined_call_operand.vmem [shape: f32[2,80,1], index: 1, kind: input, shape index: {}]   ;;  %s13487_s2 = inlined_call_operand.vmem [shape: f32[4,32], index: 2, kind: input, shape index: {}]   ;;  %s13488_s3 = inlined_call_operand.vmem [shape: f32[1,32], index: 3, kind: input, shape index: {}]   ;;  %s13489_s4 = inlined_call_operand.hbm [shape: f32[4,5,32,32], index: 4, kind: input, shape index: {}]   ;;  %s13490_s5 = inlined_call_operand.hbm [shape: f32[4,5,32,32], index: 5, kind: input, shape index: {}]   ;;  %s13491_s6 = inlined_call_operand.vmem [shape: f32[4,1,32], index: 6, kind: input, shape index: {}]   ;;  %s13492_s7 = inlined_call_operand.vmem [shape: f32[4,1,32], index: 7, kind: input, shape index: {}]   ;;  %s13493_s8 = inlined_call_operand.vmem [shape: f32[4,32,32], index: 8, kind: input, shape index: {}]   ;;  %s13494_s9 = inlined_call_operand.vmem [shape: f32[4,1,32], index: 9, kind: input, shape index: {}]   ;;  %s13495_s10 = inlined_call_operand.vmem [shape: f32[4,32,32], index: 10, kind: input, shape index: {}]   ;;  %s13496_s11 = inlined_call_operand.vmem [shape: f32[4,1,32], index: 11, kind: input, shape index: {}]   ;;  %s13497_s12 = inlined_call_operand.vmem [shape: f32[32,4], index: 12, kind: input, shape index: {}]   ;;  %s13498_s13 = inlined_call_operand.vmem [shape: f32[1,4], index: 13, kind: input, shape index: {}]   ;;  %s13499_s14 = inlined_call_operand.vmem [shape: f32[2,80,8], index: 14, kind: output, shape index: {}]  }
   0x1   :  { %13505 = sst [smem:[#allocation12_spill]] %s13498_s13 }
   0x2   :  { %19 = vsyncpa [#allocation4], 0 }
   0x3   :  { %20 = vsyncpa [#allocation6], 0  ;;  %s12266_s29 = smov 0   ;;  %s12268_s30 = smov 0  }
   0x4   :  { %s12270_s15 = smov 0  }
   0x5 LB: > { %13506 = sst [smem:[#allocation9_spill]] %s12177_s30  ;;  %s8619_s16 = sadd.s32 4294967295, %s12181_s15   ;;  %s12181_s15 = sphi %s12270_s15, %s26_s15   ;;  %s12177_s30 = sphi %s12268_s30, %s13517_s30   ;;  %s12173_s29 = sphi %s12266_s29, %s13516_s29  }
   0x6   : > { %13507 = sst [smem:[#allocation10_spill]] %s12181_s15  ;;  %s38_s17 = sadd.s32 1, %s12177_s30 }
   0x7   : > { %p40_p0 = scmp.ge.s32.totalorder %s38_s17, 2  ;;  %p8621_p1 = scmp.ge.s32.totalorder %s12181_s15, 1 }
   0x8   : > { %p373_p2 = scmp.lt.s32.totalorder %s12181_s15, 3  ;;  %p12291_p4 = scmp.eq.s32.totalorder %s8619_s16, 0 }
   0x9   : > { %s13519_s17 = smov (%p40_p0, %s38_s17), 0  ;;  %s12183_s20 = smov [#allocation3]  }
   0xa   : > { %13508 = sst [smem:[#allocation11_spill]] %s13519_s17  ;;  %p12287_p3 = pnand %p8621_p1, %p373_p2 }
   0xb   : > { %s13510_s19 = scalar_select %p12291_p4, 1, 0 }
   0xc   : > { %s13509_s18 = scalar_select %p12287_p3, 1, 0 }
   0xd   : > { %p11810_p5 = pneg %p12287_p3  ;;  %s391_s21 = sshll.u32 %s12183_s20, 4  ;;  %s392_s21 = int_to_ptr.vmem [resolvable:$true] %s391_s21 }
   0xe   : > { %s12184_s23 = smov [#allocation5]   ;;  %s12095_s27 = scalar_lea.hbm %s13489_s4, 10240 }
   0xf   : > { %p12299_p6 = pnand %p12291_p4, %p11810_p5  ;;  %s404_s24 = sshll.u32 %s12184_s23, 4  ;;  %s12303_s24 = int_to_ptr.vmem [resolvable:$true] %s404_s24 }
  0x10   : > { %p12096_p7 = scmp.ne.s32.totalorder %s13489_s4, %s12095_s27  ;;  %p12102_p11 = scmp.lt.u32.totalorder %s12095_s27, %s13489_s4 }
  0x11   : > { %p12097_p8 = pneg %p12299_p6 }
  0x13   : > { %p12098_p9 = pnand %p12097_p8, %p12096_p7 }
  0x15   : > { %p12099_p10 = pneg %p12098_p9 }
  0x17   : > { %p12104_p12 = pnand %p12102_p11, %p12099_p10 }
  0x19   : > { %12107 = shalt.err (!%p12104_p12)
}
  0x1a   : > { %s12108_s23 = scalar_lea.vmem %s392_s21, 10240  ;;  %p12116_p2 = scmp.lt.s32.totalorder %s392_s21, %s392_s21 }
  0x1b   : > { %p12109_p13 = scmp.ne.s32.totalorder %s392_s21, %s12108_s23  ;;  %p12117_p5 = scmp.lt.s32.totalorder %s12108_s23, %s12108_s23 }
  0x1d   : > { %p12111_p0 = pnand %p12109_p13, %p12097_p8  ;;  %p12118_p4 = por %p12117_p5, %p12116_p2 }
  0x1f   : > { %p12112_p1 = pneg %p12111_p0 }
  0x21   : > { %p12119_p3 = pnand %p12118_p4, %p12112_p1 }
  0x23   : > { %12122 = shalt.err (!%p12119_p3)
}
  0x24   : > { %s12185_s25 = smov 128   ;;  %s12186_s26 = smov 8  }
  0x25   : > { %11813 = dma.hbm_to_vmem [thread:$0]  (!%p12299_p6), %s13489_s4, 10240, %s392_s21, [#allocation4], %s12185_s25, %s12185_s25, %s12186_s26  }
  0x26   : > { %s12123_s20 = scalar_lea.hbm %s13490_s5, 10240 }
  0x27   : > { %p12124_p7 = scmp.ne.s32.totalorder %s13490_s5, %s12123_s20  ;;  %p12130_p9 = scmp.lt.u32.totalorder %s12123_s20, %s13490_s5 }
  0x29   : > { %p12126_p3 = pnand %p12124_p7, %p12097_p8 }
  0x2b   : > { %p12127_p4 = pneg %p12126_p3 }
  0x2d   : > { %p12132_p10 = pnand %p12130_p9, %p12127_p4 }
  0x2f   : > { %12135 = shalt.err (!%p12132_p10)
}
  0x30   : > { %s12136_s21 = scalar_lea.vmem %s12303_s24, 10240  ;;  %p12144_p0 = scmp.lt.s32.totalorder %s12303_s24, %s12303_s24 }
  0x31   : > { %p12137_p11 = scmp.ne.s32.totalorder %s12303_s24, %s12136_s21  ;;  %p12145_p1 = scmp.lt.s32.totalorder %s12136_s21, %s12136_s21 }
  0x33   : > { %p12139_p12 = pnand %p12137_p11, %p12097_p8  ;;  %p12146_p2 = por %p12145_p1, %p12144_p0 }
  0x35   : > { %p12140_p13 = pneg %p12139_p12 }
  0x37   : > { %p12147_p5 = pnand %p12146_p2, %p12140_p13 }
  0x39   : > { %12150 = shalt.err (!%p12147_p5)
}
  0x3a   : > { %11816 = dma.hbm_to_vmem [thread:$0]  (!%p12299_p6), %s13490_s5, 10240, %s12303_s24, [#allocation6], %s12185_s25, %s12185_s25, %s12186_s26  }
  0x3b   : > { %p13512_p7 = scmp.ne.s32.totalorder %s13509_s18, 0 }
  0x3c   : > { %p13513_p3 = scmp.ne.s32.totalorder (!%p13512_p7), %s13510_s19, 0 }
  0x3d   : > { %460 = sbr.rel (%p13512_p7) target bundleno = 2763 (0xacb), region = 76 }
  0x44   : > { %12164 = dma.done.wait (%p13513_p3), [#allocation4], 10240  }
  0x45   : > { %12166 = vsyncadd (%p13513_p3), [#allocation4], 4294957056 }
  0x46   : > { %12168 = dma.done.wait (%p13513_p3), [#allocation6], 10240  }
  0x47   : > { %12170 = vsyncadd (%p13513_p3), [#allocation6], 4294957056  ;;  %p515_p8 = scmp.lt.s32.totalorder %s12173_s29, 1  ;;  %v12187_v0 = vmov 0   ;;  %vm618_vm0 = vcmask 1043456   ;;  %vm587_vm1 = vcmask 31744  }
  0x48   : > { %11853 = vset.pattern.permute.xlu0 %v12187_v0  ;;  %11854 = vset.pattern.permute.xlu1 %v12187_v0  ;;  %v579_v1 = vld [vmem:[%s13487_s2] sm:$0xf]  ;;  %vm797_vm2 = vcmask 261120   ;;  %v991_v22 = vld [vmem:[#allocation5 + $0x20] sm:$0xff]  ;;  %v992_v23 = vld [vmem:[#allocation5 + $0x28] sm:$0xff]  ;;  %v12188_v28 = vmov 0.0  }
  0x49   : > { %s13521_s29 = smov (!%p515_p8, %s12173_s29), 1  ;;  %9915 = vmatprep.subr.msk.mxu0 %vm618_vm0, %v579_v1  ;;  %11417 = vmatprep.subr.msk.mxu1 %vm618_vm0, %v579_v1  ;;  %v841_v24 = vld [vmem:[#allocation3 + $0x20] sm:$0xff]  ;;  %v11041_v25 = vpack.c.bf16 %v992_v23, %v991_v22  ;;  %v842_v26 = vld [vmem:[#allocation3 + $0x28] sm:$0xff]  ;;  %799 = vst.msk [vmem:[#allocation2 + $0x8] sm:$0xff] %vm797_vm2, %v12188_v28  ;;  %800 = vst.msk [vmem:[#allocation2 + $0x60] sm:$0xff] %vm797_vm2, %v12188_v28  ;;  %s12189_s26 = smov 124  }
  0x4a   : > { %s12364_s15 = smul.u32 80, %s13521_s29  ;;  %9916 = vmatpush3.msk.msra.mxu0 %vm618_vm0, %v579_v1  ;;  %11418 = vmatpush3.msk.msra.mxu1 %vm618_vm0, %v579_v1  ;;  %v11033_v27 = vpack.c.bf16 %v842_v26, %v841_v24  ;;  %v993_v29 = vld [vmem:[#allocation5 + $0x30] sm:$0xff]  ;;  %v994_v30 = vld [vmem:[#allocation5 + $0x38] sm:$0xff]  ;;  %v826_v35 = vld [vmem:[#allocation5] sm:$0xff]  ;;  %vm535_vm3 = vcmask 64512   ;;  %s13514_s19 = sld [smem:[#allocation12_spill]] }
  0x4b   : > { %11042 = vmatprep.subr.bf16.mxu0 %v11041_v25  ;;  %v843_v31 = vld [vmem:[#allocation3 + $0x30] sm:$0xff]  ;;  %v11045_v32 = vpack.c.bf16 %v994_v30, %v993_v29  ;;  %v844_v33 = vld [vmem:[#allocation3 + $0x38] sm:$0xff]  ;;  %v827_v36 = vld [vmem:[#allocation5 + $0x8] sm:$0xff] }
  0x4c   : > { %s12370_s24 = scalar_lea.vmem %s13485_s0, %s12364_s15  ;;  %s12381_s17 = scalar_lea.vmem %s13486_s1, %s12364_s15  ;;  %11034 = vmatprep.subr.bf16.mxu1 %v11033_v27  ;;  %v11037_v34 = vpack.c.bf16 %v844_v33, %v843_v31  ;;  %v12415_v37 = vpack.c.bf16 %v827_v36, %v826_v35  ;;  %v822_v38 = vld [vmem:[#allocation3] sm:$0xff]  ;;  %v823_v39 = vld [vmem:[#allocation3 + $0x8] sm:$0xff]  ;;  %v8647_v47 = vld [vmem:[%s13488_s3] ss:$0 sm:$0xff] }
  0x4d   : > { %v560_v2 = vld [vmem:[%s12370_s24] sm:$0xff]  ;;  %v566_v3 = vld [vmem:[%s12370_s24 + $0x30] sm:$0xff]  ;;  %v561_v4 = vld [vmem:[%s12370_s24 + $0x8] sm:$0xff]  ;;  %v12418_v40 = vpack.c.bf16 %v823_v39, %v822_v38  ;;  %s13436_s22 = scalar_lea.vmem %s13499_s14, %s12364_s15 }
  0x4e   : > { %v567_v5 = vld [vmem:[%s12370_s24 + $0x38] sm:$0xff]  ;;  %v562_v6 = vld [vmem:[%s12370_s24 + $0x10] sm:$0xff]  ;;  %v568_v7 = vld [vmem:[%s12370_s24 + $0x40] sm:$0xff]  ;;  %9917 = vmatprep.mubr.msk.f32.mxu0 %vm587_vm1, %v560_v2  ;;  %9926 = vmatprep.mubr.msk.f32.mxu1 %vm587_vm1, %v566_v3  ;;  %536 = vst.msk [vmem:[%s13436_s22] sm:$0xff] %vm535_vm3, %v12188_v28 }
  0x4f   : > { %v539_v8 = vld [vmem:[%s12381_s17] sm:$0xff]  ;;  %9918 = vmatmul.mubr.msk.f32.vlgmr.msra.gmra.mrb[0].mxu0 %vm587_vm1, %v561_v4  ;;  %9927 = vmatmul.mubr.msk.f32.vlgmr.msra.gmra.mrb[0].mxu1 %vm587_vm1, %v567_v5  ;;  %v541_v9 = vld [vmem:[%s12381_s17 + $0x10] sm:$0xff]  ;;  %v563_v10 = vld [vmem:[%s12370_s24 + $0x18] sm:$0xff]  ;;  %537 = vst.msk [vmem:[%s13436_s22 + $0x48] sm:$0xff] %vm535_vm3, %v12188_v28 }
  0x50   : > { %9920 = vmatprep.mubr.msk.f32.mxu0 %vm587_vm1, %v562_v6  ;;  %9929 = vmatprep.mubr.msk.f32.mxu1 %vm587_vm1, %v568_v7  ;;  %v569_v11 = vld [vmem:[%s12370_s24 + $0x48] sm:$0xff]  ;;  %v564_v12 = vld [vmem:[%s12370_s24 + $0x20] sm:$0xff]  ;;  %v542_v14 = vld [vmem:[%s12381_s17 + $0x18] sm:$0xff] }
  0x51   : > { %739 = vperm.xlu0 %11853, %v539_v8   ;;  %749 = vperm.xlu1 %11854, %v541_v9   ;;  %v540_v13 = vld [vmem:[%s12381_s17 + $0x8] sm:$0xff]  ;;  %v543_v16 = vld [vmem:[%s12381_s17 + $0x20] sm:$0xff]  ;;  %v545_v18 = vld [vmem:[%s12381_s17 + $0x30] sm:$0xff] }
  0x52   : > { %v565_v15 = vld [vmem:[%s12370_s24 + $0x28] sm:$0xff]  ;;  %v546_v19 = vld [vmem:[%s12381_s17 + $0x38] sm:$0xff]  ;;  %v547_v20 = vld [vmem:[%s12381_s17 + $0x40] sm:$0xff]  ;;  %11044 = vmatpush3.bf16.msra.mxu0 %v11041_v25  ;;  %11036 = vmatpush3.bf16.msra.mxu1 %v11033_v27 }
  0x53   : > { %9921 = vmatmul.mubr.msk.f32.gmra.mrb[2].mxu0 %vm587_vm1, %v563_v10  ;;  %9930 = vmatmul.mubr.msk.f32.gmra.mrb[2].mxu1 %vm587_vm1, %v569_v11  ;;  %v544_v17 = vld [vmem:[%s12381_s17 + $0x28] sm:$0xff]  ;;  %v1531_v26 = vld [vmem:[#allocation5 + $0x40] sm:$0xff]  ;;  %v1532_v27 = vld [vmem:[#allocation5 + $0x48] sm:$0xff] }
  0x54   : > { %9923 = vmatprep.mubr.msk.f32.mxu0 %vm587_vm1, %v564_v12  ;;  %v548_v21 = vld [vmem:[%s12381_s17 + $0x48] sm:$0xff]  ;;  %11046 = vmatprep.subr.bf16.mxu0 %v11045_v32  ;;  %v1381_v29 = vld [vmem:[#allocation3 + $0x40] sm:$0xff]  ;;  %v1382_v30 = vld [vmem:[#allocation3 + $0x48] sm:$0xff]  ;;  %v11073_v33 = vpack.c.bf16 %v1532_v27, %v1531_v26  ;;  %s12190_s17 = smov 4  }
  0x55   : > { %744 = vperm.xlu0 %11853, %v540_v13   ;;  %754 = vperm.xlu1 %11854, %v542_v14   ;;  %v2131_v27 = vld [vmem:[#allocation5 + $0x80] sm:$0xff] }
  0x56   : > { %11048 = vmatpush3.bf16.msra.mxu0 %v11045_v32  ;;  %11038 = vmatprep.subr.bf16.mxu1 %v11037_v34 }
  0x57   : > { %9924 = vmatmul.mubr.msk.f32.gmra.mrb[4].mxu0 %vm587_vm1, %v565_v15  ;;  %11040 = vmatpush3.bf16.msra.mxu1 %v11037_v34  ;;  %v828_v15 = vld [vmem:[#allocation5 + $0x10] sm:$0xff]  ;;  %v11065_v34 = vpack.c.bf16 %v1382_v30, %v1381_v29  ;;  %v2132_v29 = vld [vmem:[#allocation5 + $0x88] sm:$0xff] }
  0x58   : > { %11058 = vmatprep.subr.bf16.mxu0 %v12415_v37  ;;  %11050 = vmatprep.subr.bf16.mxu1 %v12418_v40 }
  0x59   : > { %759 = vperm.xlu0 %11853, %v543_v16   ;;  %764 = vperm.xlu1 %11854, %v544_v17  }
  0x5d   : > { %769 = vperm.xlu0 %11853, %v545_v18   ;;  %774 = vperm.xlu1 %11854, %v546_v19  }
  0x61   : > { %779 = vperm.xlu0 %11853, %v547_v20   ;;  %784 = vperm.xlu1 %11854, %v548_v21  }
  0x65   : > { %8232 = vperm.xlu0 %11853, %v540_v13   ;;  %8237 = vperm.xlu1 %11854, %v541_v9  }
  0x69   : > { %8242 = vperm.xlu0 %11853, %v542_v14   ;;  %8247 = vperm.xlu1 %11854, %v543_v16  }
  0x6d   : > { %8252 = vperm.xlu0 %11853, %v544_v17   ;;  %8257 = vperm.xlu1 %11854, %v545_v18   ;;  %v829_v17 = vld [vmem:[#allocation5 + $0x18] sm:$0xff]  ;;  %v824_v18 = vld [vmem:[#allocation3 + $0x10] sm:$0xff] }
  0x6e   : > { %v11061_v24 = vpack.c.bf16 %v829_v17, %v828_v15  ;;  %v1833_v17 = vld [vmem:[#allocation5 + $0x70] sm:$0xff] }
  0x71   : > { %8262 = vperm.xlu0 %11853, %v546_v19   ;;  %8267 = vperm.xlu1 %11854, %v547_v20   ;;  %v825_v19 = vld [vmem:[#allocation3 + $0x18] sm:$0xff] }
  0x72   : > { %v11053_v25 = vpack.c.bf16 %v825_v19, %v824_v18  ;;  %v1834_v18 = vld [vmem:[#allocation5 + $0x78] sm:$0xff] }
  0xd0   : > { %v12421_v41 = vpop.permute.xlu0 %739  ;;  %v12423_v42 = vpop.permute.xlu1 %749 }
  0xd4   : > { %v12425_v43 = vpop.permute.xlu0 %744  ;;  %v12427_v44 = vpop.permute.xlu1 %754 }
  0xd8   : > { %v12429_v45 = vpop.permute.xlu0 %759  ;;  %v12431_v46 = vpop.permute.xlu1 %764 }
  0xdc   : > { %v12436_v48 = vpop.permute.xlu0 %769  ;;  %v12438_v49 = vpop.permute.xlu1 %774 }
  0xe0   : > { %v12456_v4 = vpop.permute.xlu1 %784  ;;  %v12462_v7 = vpop.permute.xlu0 %779 }
 0x122   : > { %v9919_v50 = vpop.f32.mrb[0].mxu0  ;;  %v9928_v51 = vpop.f32.mrb[0].mxu1 }
 0x123   : > { %v694_v52 = vadd.f32 %v9919_v50, %v8647_v47  ;;  %v724_v53 = vadd.f32 %v9928_v51, %v8647_v47  ;;  %v688_v54 = vpop.f32.mrb[1].mxu0  ;;  %v718_v55 = vpop.f32.mrb[1].mxu1  ;;  %v1534_v50 = vld [vmem:[#allocation5 + $0x58] sm:$0xff] }
 0x124   : > { %v689_v56 = vadd.f32 %v8647_v47, %v688_v54  ;;  %v719_v57 = vadd.f32 %v8647_v47, %v718_v55  ;;  %v1383_v54 = vld [vmem:[#allocation3 + $0x50] sm:$0xff]  ;;  %v1384_v55 = vld [vmem:[#allocation3 + $0x58] sm:$0xff] }
 0x125   : > { %v12441_v58 = vmul.f32 %v12425_v43, %v694_v52  ;;  %v12444_v59 = vmul.f32 %v12438_v49, %v724_v53 }
 0x126   : > { %v12447_v60 = vmul.f32 %v12421_v41, %v689_v56  ;;  %v12450_v61 = vmul.f32 %v12436_v48, %v719_v57  ;;  %v9922_v62 = vpop.f32.mrb[2].mxu0  ;;  %v9931_v63 = vpop.f32.mrb[2].mxu1  ;;  %v1831_v57 = vld [vmem:[#allocation5 + $0x60] sm:$0xff] }
 0x127   : > { %803 = vst.msk [vmem:[#allocation2 + $0x18] sm:$0xff] %vm797_vm2, %v12441_v58  ;;  %809 = vst.msk [vmem:[#allocation2 + $0x48] sm:$0xff] %vm797_vm2, %v12444_v59  ;;  %v704_v0 = vadd.f32 %v9922_v62, %v8647_v47  ;;  %v734_v1 = vadd.f32 %v9931_v63, %v8647_v47  ;;  %v698_v2 = vpop.f32.mrb[3].mxu0  ;;  %v728_v3 = vpop.f32.mrb[3].mxu1  ;;  %v1832_v62 = vld [vmem:[#allocation5 + $0x68] sm:$0xff]  ;;  %v11069_v63 = vpack.c.bf16 %v1384_v55, %v1383_v54  ;;  %v1983_v55 = vld [vmem:[#allocation3 + $0x90] sm:$0xff] }
 0x128   : > { %802 = vst.msk [vmem:[#allocation2 + $0x10] sm:$0xff] %vm797_vm2, %v12447_v60  ;;  %808 = vst.msk [vmem:[#allocation2 + $0x40] sm:$0xff] %vm797_vm2, %v12450_v61  ;;  %v699_v5 = vadd.f32 %v8647_v47, %v698_v2  ;;  %v729_v6 = vadd.f32 %v8647_v47, %v728_v3  ;;  %v1681_v2 = vld [vmem:[#allocation3 + $0x60] sm:$0xff]  ;;  %v1682_v3 = vld [vmem:[#allocation3 + $0x68] sm:$0xff] }
 0x129   : > { %v12465_v8 = vmul.f32 %v12427_v44, %v704_v0  ;;  %v12468_v9 = vmul.f32 %v12456_v4, %v734_v1  ;;  %v11089_v1 = vpack.c.bf16 %v1832_v62, %v1831_v57 }
 0x12a   : > { %v12471_v10 = vmul.f32 %v12423_v42, %v699_v5  ;;  %v12474_v11 = vmul.f32 %v12462_v7, %v729_v6  ;;  %v9925_v12 = vpop.f32.mrb[4].mxu0  ;;  %v11081_v6 = vpack.c.bf16 %v1682_v3, %v1681_v2 }
 0x12b   : > { %805 = vst.msk [vmem:[#allocation2 + $0x28] sm:$0xff] %vm797_vm2, %v12465_v8  ;;  %811 = vst.msk [vmem:[#allocation2 + $0x58] sm:$0xff] %vm797_vm2, %v12468_v9  ;;  %v714_v13 = vadd.f32 %v9925_v12, %v8647_v47  ;;  %v708_v14 = vpop.f32.mrb[5].mxu0 }
 0x12c   : > { %804 = vst.msk [vmem:[#allocation2 + $0x20] sm:$0xff] %vm797_vm2, %v12471_v10  ;;  %810 = vst.msk [vmem:[#allocation2 + $0x50] sm:$0xff] %vm797_vm2, %v12474_v11  ;;  %v709_v16 = vadd.f32 %v8647_v47, %v708_v14  ;;  %v1533_v47 = vld [vmem:[#allocation5 + $0x50] sm:$0xff] }
 0x12d   : > { %v12485_v20 = vmul.f32 %v12431_v46, %v714_v13  ;;  %v11077_v52 = vpack.c.bf16 %v1534_v50, %v1533_v47  ;;  %v2133_v50 = vld [vmem:[#allocation5 + $0x90] sm:$0xff] }
 0x12e   : > { %v12488_v21 = vmul.f32 %v12429_v45, %v709_v16 }
 0x12f   : > { %807 = vst.msk [vmem:[#allocation2 + $0x38] sm:$0xff] %vm797_vm2, %v12485_v20  ;;  %v830_v22 = vld [vmem:[#allocation2 + $0xf] sm:$0xff]  ;;  %v831_v23 = vld [vmem:[#allocation2 + $0x17] sm:$0xff]  ;;  %v837_v38 = vld [vmem:[#allocation2 + $0x47] sm:$0xff] }
 0x130   : > { %806 = vst.msk [vmem:[#allocation2 + $0x30] sm:$0xff] %vm797_vm2, %v12488_v21  ;;  %9940 = vmatprep.mubr.msk.f32.mxu1 %vm797_vm2, %v830_v22  ;;  %9963 = vmatprep.mubr.msk.f32.mxu0 %vm797_vm2, %v830_v22  ;;  %v812_v51 = vld [vmem:[#allocation2 + $0xe] sm:$0xff]  ;;  %v813_v53 = vld [vmem:[#allocation2 + $0x16] sm:$0xff]  ;;  %v819_v14 = vld [vmem:[#allocation2 + $0x46] sm:$0xff]  ;;  %v11093_v22 = vpack.c.bf16 %v1834_v18, %v1833_v17 }
 0x131   : > { %9941 = vmatmul.mubr.msk.f32.vlgmr.msra.gmra.mrb[4].mxu1 %vm797_vm2, %v831_v23  ;;  %9964 = vmatmul.mubr.msk.f32.vlgmr.msra.gmra.mrb[6].mxu0 %vm797_vm2, %v831_v23  ;;  %v1370_v19 = vld [vmem:[#allocation2 + $0x10] sm:$0xff]  ;;  %v1371_v23 = vld [vmem:[#allocation2 + $0x18] sm:$0xff]  ;;  %v1676_v2 = vld [vmem:[#allocation2 + $0x41] sm:$0xff] }
 0x132   : > { %11060 = vmatpush3.bf16.msra.mxu0 %v12415_v37  ;;  %11052 = vmatpush3.bf16.msra.mxu1 %v12418_v40  ;;  %v1379_v47 = vld [vmem:[#allocation2 + $0x58] sm:$0xff]  ;;  %v1976_v18 = vld [vmem:[#allocation2 + $0x42] sm:$0xff] }
 0x133   : > { %v832_v31 = vld [vmem:[#allocation2 + $0x1f] sm:$0xff]  ;;  %v833_v32 = vld [vmem:[#allocation2 + $0x27] sm:$0xff]  ;;  %11062 = vmatprep.subr.bf16.mxu0 %v11061_v24  ;;  %11054 = vmatprep.subr.bf16.mxu1 %v11053_v25  ;;  %v838_v39 = vld [vmem:[#allocation2 + $0x4f] sm:$0xff] }
 0x134   : > { %9943 = vmatprep.mubr.msk.f32.mxu1 %vm797_vm2, %v832_v31  ;;  %9966 = vmatprep.mubr.msk.f32.mxu0 %vm797_vm2, %v832_v31  ;;  %v839_v40 = vld [vmem:[#allocation2 + $0x57] sm:$0xff]  ;;  %v815_v0 = vld [vmem:[#allocation2 + $0x26] sm:$0xff]  ;;  %v820_v15 = vld [vmem:[#allocation2 + $0x4e] sm:$0xff] }
 0x135   : > { %9944 = vmatmul.mubr.msk.f32.gmra.mrb[6].mxu1 %vm797_vm2, %v833_v32  ;;  %9967 = vmatmul.mubr.msk.f32.gmra.mrb[8].mxu0 %vm797_vm2, %v833_v32  ;;  %v814_v56 = vld [vmem:[#allocation2 + $0x1e] sm:$0xff]  ;;  %v821_v16 = vld [vmem:[#allocation2 + $0x56] sm:$0xff]  ;;  %v1373_v31 = vld [vmem:[#allocation2 + $0x28] sm:$0xff]  ;;  %v11105_v32 = vpack.c.bf16 %v2132_v29, %v2131_v27 }
 0x136   : > { %11064 = vmatpush3.bf16.msra.mxu0 %v11061_v24  ;;  %11056 = vmatpush3.bf16.msra.mxu1 %v11053_v25  ;;  %v836_v37 = vld [vmem:[#allocation2 + $0x3f] sm:$0xff]  ;;  %v1684_v25 = vld [vmem:[#allocation3 + $0x78] sm:$0xff] }
 0x137   : > { %v834_v35 = vld [vmem:[#allocation2 + $0x2f] sm:$0xff]  ;;  %v835_v36 = vld [vmem:[#allocation2 + $0x37] sm:$0xff]  ;;  %11074 = vmatprep.subr.bf16.mxu0 %v11073_v33  ;;  %11066 = vmatprep.subr.bf16.mxu1 %v11065_v34  ;;  %v1683_v24 = vld [vmem:[#allocation3 + $0x70] sm:$0xff] }
 0x138   : > { %9946 = vmatprep.mubr.msk.f32.mxu1 %vm797_vm2, %v834_v35  ;;  %9969 = vmatprep.mubr.msk.f32.mxu0 %vm797_vm2, %v834_v35  ;;  %v816_v5 = vld [vmem:[#allocation2 + $0x2e] sm:$0xff]  ;;  %v817_v12 = vld [vmem:[#allocation2 + $0x36] sm:$0xff]  ;;  %v818_v13 = vld [vmem:[#allocation2 + $0x3e] sm:$0xff]  ;;  %v11085_v30 = vpack.c.bf16 %v1684_v25, %v1683_v24 }
 0x139   : > { %9947 = vmatmul.mubr.msk.f32.gmra.mrb[8].mxu1 %vm797_vm2, %v835_v36  ;;  %9970 = vmatmul.mubr.msk.f32.gmra.mrb[10].mxu0 %vm797_vm2, %v835_v36  ;;  %v1372_v26 = vld [vmem:[#allocation2 + $0x20] sm:$0xff]  ;;  %v1374_v35 = vld [vmem:[#allocation2 + $0x30] sm:$0xff]  ;;  %v2539_v25 = vld [vmem:[%s13493_s8 + $0x8] sm:$0xff] }
 0x13a   : > { %9949 = vmatprep.mubr.msk.f32.mxu1 %vm797_vm2, %v836_v37  ;;  %9972 = vmatprep.mubr.msk.f32.mxu0 %vm797_vm2, %v836_v37  ;;  %v1375_v37 = vld [vmem:[#allocation2 + $0x38] sm:$0xff]  ;;  %v1672_v57 = vld [vmem:[#allocation2 + $0x21] sm:$0xff]  ;;  %v1677_v3 = vld [vmem:[#allocation2 + $0x49] sm:$0xff] }
 0x13b   : > { %v1671_v54 = vld [vmem:[#allocation2 + $0x19] sm:$0xff]  ;;  %v2385_v29 = vld [vmem:[%s13495_s10 + $0x8] sm:$0xff] }
 0x13c   : > { %v1975_v17 = vld [vmem:[#allocation2 + $0x3a] sm:$0xff] }
 0x13d   : > { %9950 = vmatmul.mubr.msk.f32.gmra.mrb[10].mxu1 %vm797_vm2, %v837_v38  ;;  %9973 = vmatmul.mubr.msk.f32.gmra.mrb[12].mxu0 %vm797_vm2, %v837_v38  ;;  %v1376_v38 = vld [vmem:[#allocation2 + $0x40] sm:$0xff] }
 0x13e   : > { %9952 = vmatprep.mubr.msk.f32.mxu1 %vm797_vm2, %v838_v39  ;;  %9975 = vmatprep.mubr.msk.f32.mxu0 %vm797_vm2, %v838_v39  ;;  %v1377_v39 = vld [vmem:[#allocation2 + $0x48] sm:$0xff]  ;;  %v2538_v24 = vld [vmem:[%s13493_s8] sm:$0xff] }
 0x13f   : > { %v2384_v27 = vld [vmem:[%s13495_s10] sm:$0xff] }
 0x141   : > { %9953 = vmatmul.mubr.msk.f32.gmra.mrb[12].mxu1 %vm797_vm2, %v839_v40  ;;  %9976 = vmatmul.mubr.msk.f32.gmra.mrb[14].mxu0 %vm797_vm2, %v839_v40  ;;  %v1378_v40 = vld [vmem:[#allocation2 + $0x50] sm:$0xff] }
 0x142   : > { %9986 = vmatprep.mubr.msk.f32.mxu1 %vm797_vm2, %v812_v51  ;;  %10009 = vmatprep.mubr.msk.f32.mxu0 %vm797_vm2, %v812_v51  ;;  %v2134_v51 = vld [vmem:[#allocation5 + $0x98] sm:$0xff] }
 0x145   : > { %9987 = vmatmul.mubr.msk.f32.vlgmr.msra.gmra.mrb[4].mxu1 %vm797_vm2, %v813_v53  ;;  %10010 = vmatmul.mubr.msk.f32.vlgmr.msra.gmra.mrb[6].mxu0 %vm797_vm2, %v813_v53  ;;  %v11109_v53 = vpack.c.bf16 %v2134_v51, %v2133_v50 }
 0x146   : > { %11076 = vmatpush3.bf16.msra.mxu0 %v11073_v33  ;;  %9989 = vmatprep.mubr.msk.f32.mxu1 %vm797_vm2, %v814_v56  ;;  %v1981_v33 = vld [vmem:[#allocation3 + $0x80] sm:$0xff] }
 0x147   : > { %10012 = vmatprep.mubr.msk.f32.mxu0 %vm797_vm2, %v814_v56  ;;  %11078 = vmatprep.subr.bf16.mxu0 %v11077_v52  ;;  %v1984_v56 = vld [vmem:[#allocation3 + $0x98] sm:$0xff] }
 0x148   : > { %11068 = vmatpush3.bf16.msra.mxu1 %v11065_v34  ;;  %v1982_v34 = vld [vmem:[#allocation3 + $0x88] sm:$0xff]  ;;  %v11101_v62 = vpack.c.bf16 %v1984_v56, %v1983_v55  ;;  %v12633_v56 = vld [vmem:[%s13491_s6] ss:$0 sm:$0xff] }
 0x149   : > { %9990 = vmatmul.mubr.msk.f32.gmra.mrb[6].mxu1 %vm797_vm2, %v815_v0  ;;  %10013 = vmatmul.mubr.msk.f32.gmra.mrb[8].mxu0 %vm797_vm2, %v815_v0  ;;  %v11097_v36 = vpack.c.bf16 %v1982_v34, %v1981_v33  ;;  %v1674_v0 = vld [vmem:[#allocation2 + $0x31] sm:$0xff] }
 0x14a   : > { %9992 = vmatprep.mubr.msk.f32.mxu1 %vm797_vm2, %v816_v5  ;;  %10015 = vmatprep.mubr.msk.f32.mxu0 %vm797_vm2, %v816_v5  ;;  %v1678_v5 = vld [vmem:[#allocation2 + $0x51] sm:$0xff] }
 0x14b   : > { %11080 = vmatpush3.bf16.msra.mxu0 %v11077_v52  ;;  %11070 = vmatprep.subr.bf16.mxu1 %v11069_v63  ;;  %v1670_v52 = vld [vmem:[#allocation2 + $0x11] sm:$0xff] }
 0x14c   : > { %11072 = vmatpush3.bf16.msra.mxu1 %v11069_v63  ;;  %11090 = vmatprep.subr.bf16.mxu0 %v11089_v1  ;;  %v1673_v63 = vld [vmem:[#allocation2 + $0x29] sm:$0xff] }
 0x14d   : > { %9993 = vmatmul.mubr.msk.f32.gmra.mrb[8].mxu1 %vm797_vm2, %v817_v12  ;;  %10016 = vmatmul.mubr.msk.f32.gmra.mrb[10].mxu0 %vm797_vm2, %v817_v12  ;;  %v1970_v12 = vld [vmem:[#allocation2 + $0x12] sm:$0xff] }
 0x14e   : > { %9995 = vmatprep.mubr.msk.f32.mxu1 %vm797_vm2, %v818_v13  ;;  %10018 = vmatprep.mubr.msk.f32.mxu0 %vm797_vm2, %v818_v13  ;;  %v1971_v13 = vld [vmem:[#allocation2 + $0x1a] sm:$0xff]  ;;  %v2386_v33 = vld [vmem:[%s13495_s10 + $0x10] sm:$0xff] }
 0x14f   : > { %11082 = vmatprep.subr.bf16.mxu1 %v11081_v6 }
 0x151   : > { %9996 = vmatmul.mubr.msk.f32.gmra.mrb[10].mxu1 %vm797_vm2, %v819_v14  ;;  %10019 = vmatmul.mubr.msk.f32.gmra.mrb[12].mxu0 %vm797_vm2, %v819_v14  ;;  %v1972_v14 = vld [vmem:[#allocation2 + $0x22] sm:$0xff] }
 0x152   : > { %9998 = vmatprep.mubr.msk.f32.mxu1 %vm797_vm2, %v820_v15  ;;  %10021 = vmatprep.mubr.msk.f32.mxu0 %vm797_vm2, %v820_v15  ;;  %v1973_v15 = vld [vmem:[#allocation2 + $0x2a] sm:$0xff] }
 0x155   : > { %9999 = vmatmul.mubr.msk.f32.gmra.mrb[12].mxu1 %vm797_vm2, %v821_v16  ;;  %10022 = vmatmul.mubr.msk.f32.gmra.mrb[14].mxu0 %vm797_vm2, %v821_v16  ;;  %v1974_v16 = vld [vmem:[#allocation2 + $0x32] sm:$0xff] }
 0x156   : > { %10032 = vmatprep.mubr.msk.f32.mxu1 %vm797_vm2, %v1370_v19  ;;  %10055 = vmatprep.mubr.msk.f32.mxu0 %vm797_vm2, %v1370_v19  ;;  %v1977_v19 = vld [vmem:[#allocation2 + $0x4a] sm:$0xff] }
 0x159   : > { %10033 = vmatmul.mubr.msk.f32.vlgmr.msra.gmra.mrb[4].mxu1 %vm797_vm2, %v1371_v23  ;;  %10056 = vmatmul.mubr.msk.f32.vlgmr.msra.gmra.mrb[6].mxu0 %vm797_vm2, %v1371_v23  ;;  %v1979_v23 = vld [vmem:[#allocation2 + $0x5a] sm:$0xff] }
 0x15a   : > { %11092 = vmatpush3.bf16.msra.mxu0 %v11089_v1  ;;  %10035 = vmatprep.mubr.msk.f32.mxu1 %vm797_vm2, %v1372_v26  ;;  %v1675_v1 = vld [vmem:[#allocation2 + $0x39] sm:$0xff] }
 0x15b   : > { %10058 = vmatprep.mubr.msk.f32.mxu0 %vm797_vm2, %v1372_v26  ;;  %11094 = vmatprep.subr.bf16.mxu0 %v11093_v22  ;;  %v11121_v26 = vpack.c.bf16 %v2539_v25, %v2538_v24 }
 0x15c   : > { %11084 = vmatpush3.bf16.msra.mxu1 %v11081_v6  ;;  %v1679_v6 = vld [vmem:[#allocation2 + $0x59] sm:$0xff] }
 0x15d   : > { %10036 = vmatmul.mubr.msk.f32.gmra.mrb[6].mxu1 %vm797_vm2, %v1373_v31  ;;  %10059 = vmatmul.mubr.msk.f32.gmra.mrb[8].mxu0 %vm797_vm2, %v1373_v31  ;;  %v2540_v31 = vld [vmem:[%s13493_s8 + $0x10] sm:$0xff] }
 0x15e   : > { %10038 = vmatprep.mubr.msk.f32.mxu1 %vm797_vm2, %v1374_v35  ;;  %10061 = vmatprep.mubr.msk.f32.mxu0 %vm797_vm2, %v1374_v35  ;;  %v2387_v35 = vld [vmem:[%s13495_s10 + $0x18] sm:$0xff] }
 0x15f   : > { %11096 = vmatpush3.bf16.msra.mxu0 %v11093_v22  ;;  %11086 = vmatprep.subr.bf16.mxu1 %v11085_v30  ;;  %v1978_v22 = vld [vmem:[#allocation2 + $0x52] sm:$0xff] }
 0x160   : > { %11088 = vmatpush3.bf16.msra.mxu1 %v11085_v30  ;;  %11106 = vmatprep.subr.bf16.mxu0 %v11105_v32  ;;  %v11113_v30 = vpack.c.bf16 %v2385_v29, %v2384_v27 }
 0x161   : > { %10039 = vmatmul.mubr.msk.f32.gmra.mrb[8].mxu1 %vm797_vm2, %v1375_v37  ;;  %10062 = vmatmul.mubr.msk.f32.gmra.mrb[10].mxu0 %vm797_vm2, %v1375_v37  ;;  %v2875_v37 = vld [vmem:[#allocation5 + $0xc0] sm:$0xff] }
 0x162   : > { %10041 = vmatprep.mubr.msk.f32.mxu1 %vm797_vm2, %v1376_v38  ;;  %10064 = vmatprep.mubr.msk.f32.mxu0 %vm797_vm2, %v1376_v38  ;;  %v2876_v38 = vld [vmem:[#allocation5 + $0xc8] sm:$0xff] }
 0x163   : > { %11098 = vmatprep.subr.bf16.mxu1 %v11097_v36 }
 0x165   : > { %10042 = vmatmul.mubr.msk.f32.gmra.mrb[10].mxu1 %vm797_vm2, %v1377_v39  ;;  %10065 = vmatmul.mubr.msk.f32.gmra.mrb[12].mxu0 %vm797_vm2, %v1377_v39  ;;  %v12620_v39 = vpack.c.bf16 %v2876_v38, %v2875_v37 }
 0x166   : > { %10044 = vmatprep.mubr.msk.f32.mxu1 %vm797_vm2, %v1378_v40  ;;  %10067 = vmatprep.mubr.msk.f32.mxu0 %vm797_vm2, %v1378_v40  ;;  %v12626_v40 = vld [vmem:[%s13492_s7] ss:$0 sm:$0xff] }
 0x169   : > { %10045 = vmatmul.mubr.msk.f32.gmra.mrb[12].mxu1 %vm797_vm2, %v1379_v47  ;;  %10068 = vmatmul.mubr.msk.f32.gmra.mrb[14].mxu0 %vm797_vm2, %v1379_v47 }
 0x16a   : > { %10078 = vmatprep.mubr.msk.f32.mxu1 %vm797_vm2, %v1670_v52  ;;  %10101 = vmatprep.mubr.msk.f32.mxu0 %vm797_vm2, %v1670_v52 }
 0x16d   : > { %10079 = vmatmul.mubr.msk.f32.vlgmr.msra.gmra.mrb[4].mxu1 %vm797_vm2, %v1671_v54  ;;  %10102 = vmatmul.mubr.msk.f32.vlgmr.msra.gmra.mrb[6].mxu0 %vm797_vm2, %v1671_v54 }
 0x16e   : > { %11108 = vmatpush3.bf16.msra.mxu0 %v11105_v32  ;;  %10081 = vmatprep.mubr.msk.f32.mxu1 %vm797_vm2, %v1672_v57  ;;  %v2541_v32 = vld [vmem:[%s13493_s8 + $0x18] sm:$0xff] }
 0x16f   : > { %10104 = vmatprep.mubr.msk.f32.mxu0 %vm797_vm2, %v1672_v57  ;;  %11110 = vmatprep.subr.bf16.mxu0 %v11109_v53  ;;  %v11125_v34 = vpack.c.bf16 %v2541_v32, %v2540_v31 }
 0x170   : > { %11100 = vmatpush3.bf16.msra.mxu1 %v11097_v36  ;;  %v11117_v36 = vpack.c.bf16 %v2387_v35, %v2386_v33 }
 0x171   : > { %10082 = vmatmul.mubr.msk.f32.gmra.mrb[6].mxu1 %vm797_vm2, %v1673_v63  ;;  %10105 = vmatmul.mubr.msk.f32.gmra.mrb[8].mxu0 %vm797_vm2, %v1673_v63 }
 0x172   : > { %10084 = vmatprep.mubr.msk.f32.mxu1 %vm797_vm2, %v1674_v0  ;;  %10107 = vmatprep.mubr.msk.f32.mxu0 %vm797_vm2, %v1674_v0 }
 0x173   : > { %11112 = vmatpush3.bf16.msra.mxu0 %v11109_v53  ;;  %11102 = vmatprep.subr.bf16.mxu1 %v11101_v62 }
 0x174   : > { %11104 = vmatpush3.bf16.msra.mxu1 %v11101_v62  ;;  %11122 = vmatprep.subr.bf16.mxu0 %v11121_v26 }
 0x175   : > { %10085 = vmatmul.mubr.msk.f32.gmra.mrb[8].mxu1 %vm797_vm2, %v1675_v1  ;;  %10108 = vmatmul.mubr.msk.f32.gmra.mrb[10].mxu0 %vm797_vm2, %v1675_v1 }
 0x176   : > { %10087 = vmatprep.mubr.msk.f32.mxu1 %vm797_vm2, %v1676_v2  ;;  %10110 = vmatprep.mubr.msk.f32.mxu0 %vm797_vm2, %v1676_v2 }
 0x177   : > { %11114 = vmatprep.subr.bf16.mxu1 %v11113_v30 }
 0x179   : > { %10088 = vmatmul.mubr.msk.f32.gmra.mrb[10].mxu1 %vm797_vm2, %v1677_v3  ;;  %10111 = vmatmul.mubr.msk.f32.gmra.mrb[12].mxu0 %vm797_vm2, %v1677_v3 }
 0x17a   : > { %10090 = vmatprep.mubr.msk.f32.mxu1 %vm797_vm2, %v1678_v5  ;;  %10113 = vmatprep.mubr.msk.f32.mxu0 %vm797_vm2, %v1678_v5 }
 0x17d   : > { %10091 = vmatmul.mubr.msk.f32.gmra.mrb[12].mxu1 %vm797_vm2, %v1679_v6  ;;  %10114 = vmatmul.mubr.msk.f32.gmra.mrb[14].mxu0 %vm797_vm2, %v1679_v6 }
 0x17e   : > { %10124 = vmatprep.mubr.msk.f32.mxu1 %vm797_vm2, %v1970_v12  ;;  %10147 = vmatprep.mubr.msk.f32.mxu0 %vm797_vm2, %v1970_v12 }
 0x181   : > { %10125 = vmatmul.mubr.msk.f32.vlgmr.msra.gmra.mrb[4].mxu1 %vm797_vm2, %v1971_v13  ;;  %10148 = vmatmul.mubr.msk.f32.vlgmr.msra.gmra.mrb[6].mxu0 %vm797_vm2, %v1971_v13 }
 0x182   : > { %10127 = vmatprep.mubr.msk.f32.mxu1 %vm797_vm2, %v1972_v14  ;;  %10150 = vmatprep.mubr.msk.f32.mxu0 %vm797_vm2, %v1972_v14 }
 0x183   : > { %11124 = vmatpush3.bf16.msra.mxu0 %v11121_v26  ;;  %11116 = vmatpush3.bf16.msra.mxu1 %v11113_v30 }
 0x184   : > { %11126 = vmatprep.subr.bf16.mxu0 %v11125_v34  ;;  %11118 = vmatprep.subr.bf16.mxu1 %v11117_v36 }
 0x185   : > { %10128 = vmatmul.mubr.msk.f32.gmra.mrb[6].mxu1 %vm797_vm2, %v1973_v15  ;;  %10151 = vmatmul.mubr.msk.f32.gmra.mrb[8].mxu0 %vm797_vm2, %v1973_v15 }
 0x186   : > { %10130 = vmatprep.mubr.msk.f32.mxu1 %vm797_vm2, %v1974_v16  ;;  %10153 = vmatprep.mubr.msk.f32.mxu0 %vm797_vm2, %v1974_v16 }
 0x187   : > { %11128 = vmatpush3.bf16.msra.mxu0 %v11125_v34  ;;  %11120 = vmatpush3.bf16.msra.mxu1 %v11117_v36 }
 0x188   : > { %11138 = vmatprep.subr.bf16.mxu0 %v12620_v39 }
 0x189   : > { %10131 = vmatmul.mubr.msk.f32.gmra.mrb[8].mxu1 %vm797_vm2, %v1975_v17  ;;  %10154 = vmatmul.mubr.msk.f32.gmra.mrb[10].mxu0 %vm797_vm2, %v1975_v17 }
 0x18a   : > { %10133 = vmatprep.mubr.msk.f32.mxu1 %vm797_vm2, %v1976_v18  ;;  %10156 = vmatprep.mubr.msk.f32.mxu0 %vm797_vm2, %v1976_v18 }
 0x18d   : > { %10134 = vmatmul.mubr.msk.f32.gmra.mrb[10].mxu1 %vm797_vm2, %v1977_v19  ;;  %10157 = vmatmul.mubr.msk.f32.gmra.mrb[12].mxu0 %vm797_vm2, %v1977_v19 }
 0x18e   : > { %10136 = vmatprep.mubr.msk.f32.mxu1 %vm797_vm2, %v1978_v22  ;;  %10159 = vmatprep.mubr.msk.f32.mxu0 %vm797_vm2, %v1978_v22 }
 0x191   : > { %10137 = vmatmul.mubr.msk.f32.gmra.mrb[12].mxu1 %vm797_vm2, %v1979_v23  ;;  %10160 = vmatmul.mubr.msk.f32.gmra.mrb[14].mxu0 %vm797_vm2, %v1979_v23 }
 0x254   : > { %v10126_v47 = vpop.f32.mrb[4].mxu1  ;;  %v10149_v50 = vpop.f32.mrb[6].mxu0 }
 0x255   : > { %v2305_v51 = vadd.f32 %v10149_v50, %v12626_v40  ;;  %v2081_v52 = vpop.f32.mrb[5].mxu1  ;;  %v2201_v53 = vpop.f32.mrb[7].mxu0  ;;  %v2278_v5 = vadd.f32 %v10126_v47, %v12633_v56 }
 0x256   : > { %v2304_v54 = vadd.f32 %v12626_v40, %v2201_v53  ;;  %v2277_v12 = vadd.f32 %v12633_v56, %v2081_v52 }
 0x257   : > { %v8762_v55 = vmul.f32 -1.442695, %v2305_v51 }
 0x258   : > { %v8761_v57 = vmul.f32 -1.442695, %v2304_v54  ;;  %v10129_v62 = vpop.f32.mrb[6].mxu1  ;;  %v10152_v63 = vpop.f32.mrb[8].mxu0 }
 0x259   : > { %11855 = vpow2.f32 %v8762_v55  ;;  %v2307_v0 = vadd.f32 %v10152_v63, %v12626_v40  ;;  %v2091_v1 = vpop.f32.mrb[7].mxu1  ;;  %v2211_v2 = vpop.f32.mrb[9].mxu0  ;;  %v2280_v22 = vadd.f32 %v10129_v62, %v12633_v56 }
 0x25a   : > { %11857 = vpow2.f32 %v8761_v57  ;;  %v2306_v3 = vadd.f32 %v12626_v40, %v2211_v2  ;;  %v2279_v24 = vadd.f32 %v12633_v56, %v2091_v1 }
 0x25b   : > { %v8764_v6 = vmul.f32 -1.442695, %v2307_v0 }
 0x25c   : > { %v8763_v13 = vmul.f32 -1.442695, %v2306_v3  ;;  %v10132_v14 = vpop.f32.mrb[8].mxu1  ;;  %v10155_v15 = vpop.f32.mrb[10].mxu0 }
 0x25d   : > { %11859 = vpow2.f32 %v8764_v6  ;;  %v2309_v16 = vadd.f32 %v10155_v15, %v12626_v40  ;;  %v2101_v17 = vpop.f32.mrb[9].mxu1  ;;  %v2221_v18 = vpop.f32.mrb[11].mxu0  ;;  %v2282_v51 = vadd.f32 %v10132_v14, %v12633_v56 }
 0x25e   : > { %11861 = vpow2.f32 %v8763_v13  ;;  %v2308_v19 = vadd.f32 %v12626_v40, %v2221_v18  ;;  %v2281_v3 = vadd.f32 %v12633_v56, %v2101_v17 }
 0x25f   : > { %11863 = vtanh.f32 %v2278_v5  ;;  %v8766_v23 = vmul.f32 -1.442695, %v2309_v16 }
 0x260   : > { %11865 = vtanh.f32 %v2277_v12  ;;  %v8765_v25 = vmul.f32 -1.442695, %v2308_v19  ;;  %v10135_v26 = vpop.f32.mrb[10].mxu1  ;;  %v10158_v27 = vpop.f32.mrb[12].mxu0 }
 0x261   : > { %11867 = vpow2.f32 %v8766_v23  ;;  %v2311_v29 = vadd.f32 %v10158_v27, %v12626_v40  ;;  %v2111_v30 = vpop.f32.mrb[11].mxu1  ;;  %v2231_v31 = vpop.f32.mrb[13].mxu0  ;;  %v2284_v18 = vadd.f32 %v10135_v26, %v12633_v56 }
 0x262   : > { %11869 = vpow2.f32 %v8765_v25  ;;  %v2310_v32 = vadd.f32 %v12626_v40, %v2231_v31  ;;  %v2283_v17 = vadd.f32 %v12633_v56, %v2111_v30 }
 0x263   : > { %v11856_v33 = vpop.eup %11855  ;;  %11871 = vtanh.f32 %v2280_v22  ;;  %v8768_v34 = vmul.f32 -1.442695, %v2311_v29 }
 0x264   : > { %v11858_v35 = vpop.eup %11857  ;;  %v2345_v36 = vadd.f32 1.0, %v11856_v33  ;;  %11873 = vtanh.f32 %v2279_v24  ;;  %v8767_v37 = vmul.f32 -1.442695, %v2310_v32  ;;  %v10138_v38 = vpop.f32.mrb[12].mxu1 }
 0x265   : > { %v10161_v47 = vpop.f32.mrb[14].mxu0  ;;  %v2344_v50 = vadd.f32 1.0, %v11858_v35  ;;  %11875 = vpow2.f32 %v8768_v34  ;;  %v2121_v53 = vpop.f32.mrb[13].mxu1  ;;  %v2286_v26 = vadd.f32 %v10138_v38, %v12633_v56 }
 0x266   : > { %v2313_v52 = vadd.f32 %v10161_v47, %v12626_v40  ;;  %v2241_v54 = vpop.f32.mrb[15].mxu0  ;;  %11877 = vrcp.f32 %v2345_v36  ;;  %v2285_v38 = vadd.f32 %v12633_v56, %v2121_v53 }
 0x267   : > { %v11860_v55 = vpop.eup %11859  ;;  %11879 = vrcp.f32 %v2344_v50  ;;  %v2312_v0 = vadd.f32 %v12626_v40, %v2241_v54 }
 0x268   : > { %v11862_v57 = vpop.eup %11861  ;;  %v2347_v62 = vadd.f32 1.0, %v11860_v55  ;;  %11881 = vpow2.f32 %v8767_v37  ;;  %v8770_v63 = vmul.f32 -1.442695, %v2313_v52 }
 0x269   : > { %v11864_v1 = vpop.eup %11863  ;;  %v2346_v2 = vadd.f32 1.0, %v11862_v57  ;;  %11883 = vtanh.f32 %v2282_v51  ;;  %v8769_v14 = vmul.f32 -1.442695, %v2312_v0 }
 0x26a   : > { %v11866_v5 = vpop.eup %11865  ;;  %11885 = vrcp.f32 %v2347_v62 }
 0x26b   : > { %v11868_v6 = vpop.eup %11867  ;;  %11887 = vrcp.f32 %v2346_v2 }
 0x26c   : > { %v11870_v12 = vpop.eup %11869  ;;  %v2349_v13 = vadd.f32 1.0, %v11868_v6  ;;  %11889 = vpow2.f32 %v8770_v63 }
 0x26d   : > { %v11872_v15 = vpop.eup %11871  ;;  %11891 = vtanh.f32 %v2281_v3  ;;  %v2348_v16 = vadd.f32 1.0, %v11870_v12 }
 0x26e   : > { %v11874_v19 = vpop.eup %11873  ;;  %11893 = vrcp.f32 %v2349_v13  ;;  %v2877_v13 = vld [vmem:[#allocation5 + $0xd0] sm:$0xff] }
 0x26f   : > { %v11876_v40 = vpop.eup %11875  ;;  %11895 = vrcp.f32 %v2348_v16  ;;  %v2725_v16 = vld [vmem:[#allocation3 + $0xc0] sm:$0xff] }
 0x270   : > { %v11878_v22 = vpop.eup %11877  ;;  %v2351_v23 = vadd.f32 1.0, %v11876_v40  ;;  %11897 = vpow2.f32 %v8769_v14  ;;  %v2878_v14 = vld [vmem:[#allocation5 + $0xd8] sm:$0xff]  ;;  %v2727_v40 = vld [vmem:[#allocation3 + $0xd0] sm:$0xff] }
 0x271   : > { %v11880_v24 = vpop.eup %11879  ;;  %v2375_v25 = vmul.f32 %v11878_v22, %v11864_v1  ;;  %11899 = vtanh.f32 %v2284_v18  ;;  %v2726_v18 = vld [vmem:[#allocation3 + $0xc8] sm:$0xff]  ;;  %v2728_v22 = vld [vmem:[#allocation3 + $0xd8] sm:$0xff] }
 0x272   : > { %v11882_v27 = vpop.eup %11881  ;;  %11901 = vrcp.f32 %v2351_v23  ;;  %v2374_v29 = vmul.f32 %v11880_v24, %v11866_v5  ;;  %v11133_v23 = vpack.c.bf16 %v2728_v22, %v2727_v40  ;;  %v2711_v24 = vld [vmem:[#allocation5 + $0xa8] sm:$0xff] }
 0x273   : > { %v11884_v31 = vpop.eup %11883  ;;  %v2350_v32 = vadd.f32 1.0, %v11882_v27  ;;  %11903 = vtanh.f32 %v2283_v17  ;;  %v2710_v17 = vld [vmem:[#allocation5 + $0xa0] sm:$0xff]  ;;  %v3266_v40 = vld [vmem:[#allocation3 + $0xe8] sm:$0xff] }
 0x274   : > { %v11886_v33 = vpop.eup %11885  ;;  %10170 = vmatprep.mubr.msk.f32.mxu1 %vm797_vm2, %v2374_v29  ;;  %10193 = vmatprep.mubr.msk.f32.mxu0 %vm797_vm2, %v2374_v29  ;;  %v2705_v27 = vld [vmem:[#allocation3 + $0xa0] sm:$0xff]  ;;  %v2706_v29 = vld [vmem:[#allocation3 + $0xa8] sm:$0xff] }
 0x275   : > { %v11888_v34 = vpop.eup %11887  ;;  %11905 = vrcp.f32 %v2350_v32  ;;  %10171 = vmatmul.mubr.msk.f32.vlgmr.msra.gmra.mrb[14].mxu1 %vm797_vm2, %v2375_v25  ;;  %10194 = vmatmul.mubr.msk.f32.vlgmr.msra.gmra.mrb[16].mxu0 %vm797_vm2, %v2375_v25  ;;  %v2377_v30 = vmul.f32 %v11886_v33, %v11872_v15  ;;  %v11141_v15 = vpack.c.bf16 %v2878_v14, %v2877_v13  ;;  %v11153_v25 = vpack.c.bf16 %v2711_v24, %v2710_v17  ;;  %v12677_v32 = vld [vmem:[%s13494_s9] ss:$0 sm:$0xff] }
 0x276   : > { %v11890_v35 = vpop.eup %11889  ;;  %v2376_v36 = vmul.f32 %v11888_v34, %v11874_v19  ;;  %11140 = vmatpush3.bf16.msra.mxu0 %v12620_v39  ;;  %11907 = vtanh.f32 %v2286_v26  ;;  %v11129_v19 = vpack.c.bf16 %v2726_v18, %v2725_v16  ;;  %v3416_v18 = vld [vmem:[#allocation5 + $0xe8] sm:$0xff] }
 0x277   : > { %v11892_v37 = vpop.eup %11891  ;;  %v2353_v47 = vadd.f32 1.0, %v11890_v35  ;;  %11142 = vmatprep.subr.bf16.mxu0 %v11141_v15 }
 0x278   : > { %v11894_v50 = vpop.eup %11893  ;;  %10173 = vmatprep.mubr.msk.f32.mxu1 %vm797_vm2, %v2376_v36  ;;  %10196 = vmatprep.mubr.msk.f32.mxu0 %vm797_vm2, %v2376_v36 }
 0x279   : > { %v11896_v51 = vpop.eup %11895  ;;  %11909 = vrcp.f32 %v2353_v47  ;;  %10174 = vmatmul.mubr.msk.f32.gmra.mrb[16].mxu1 %vm797_vm2, %v2377_v30  ;;  %10197 = vmatmul.mubr.msk.f32.gmra.mrb[18].mxu0 %vm797_vm2, %v2377_v30  ;;  %v2379_v52 = vmul.f32 %v11894_v50, %v11884_v31  ;;  %v11145_v31 = vpack.c.bf16 %v2706_v29, %v2705_v27 }
 0x27a   : > { %v11898_v54 = vpop.eup %11897  ;;  %v2378_v55 = vmul.f32 %v11896_v51, %v11892_v37  ;;  %11911 = vtanh.f32 %v2285_v38  ;;  %11144 = vmatpush3.bf16.msra.mxu0 %v11141_v15  ;;  %11130 = vmatprep.subr.bf16.mxu1 %v11129_v19  ;;  %v3415_v15 = vld [vmem:[#allocation5 + $0xe0] sm:$0xff] }
 0x27b   : > { %v11900_v39 = vpop.eup %11899  ;;  %v2352_v57 = vadd.f32 1.0, %v11898_v54  ;;  %11132 = vmatpush3.bf16.msra.mxu1 %v11129_v19  ;;  %11154 = vmatprep.subr.bf16.mxu0 %v11153_v25  ;;  %v3265_v19 = vld [vmem:[#allocation3 + $0xe0] sm:$0xff]  ;;  %v11169_v29 = vpack.c.bf16 %v3416_v18, %v3415_v15  ;;  %v3717_v18 = vld [vmem:[#allocation5 + $0x110] sm:$0xff] }
 0x27c   : > { %v11902_v62 = vpop.eup %11901  ;;  %10176 = vmatprep.mubr.msk.f32.mxu1 %vm797_vm2, %v2378_v55  ;;  %10199 = vmatprep.mubr.msk.f32.mxu0 %vm797_vm2, %v2378_v55 }
 0x27d   : > { %11913 = vrcp.f32 %v2352_v57  ;;  %10177 = vmatmul.mubr.msk.f32.gmra.mrb[18].mxu1 %vm797_vm2, %v2379_v52  ;;  %10200 = vmatmul.mubr.msk.f32.gmra.mrb[20].mxu0 %vm797_vm2, %v2379_v52  ;;  %v2381_v56 = vmul.f32 %v11902_v62, %v11900_v39  ;;  %v11904_v53 = vpop.eup %11903 }
 0x27e   : > { %11134 = vmatprep.subr.bf16.mxu1 %v11133_v23 }
 0x27f   : > { %v11906_v63 = vpop.eup %11905  ;;  %11136 = vmatpush3.bf16.msra.mxu1 %v11133_v23 }
 0x280   : > { %v2380_v0 = vmul.f32 %v11906_v63, %v11904_v53  ;;  %v11908_v1 = vpop.eup %11907  ;;  %11146 = vmatprep.subr.bf16.mxu1 %v11145_v31  ;;  %v2712_v53 = vld [vmem:[#allocation5 + $0xb0] sm:$0xff]  ;;  %v2713_v63 = vld [vmem:[#allocation5 + $0xb8] sm:$0xff] }
 0x281   : > { %v11157_v14 = vpack.c.bf16 %v2713_v63, %v2712_v53  ;;  %v3715_v53 = vld [vmem:[#allocation5 + $0x100] sm:$0xff] }
 0x282   : > { %10179 = vmatprep.mubr.msk.f32.mxu1 %vm797_vm2, %v2380_v0  ;;  %10202 = vmatprep.mubr.msk.f32.mxu0 %vm797_vm2, %v2380_v0  ;;  %v2707_v0 = vld [vmem:[#allocation3 + $0xb0] sm:$0xff] }
 0x283   : > { %v11910_v2 = vpop.eup %11909  ;;  %10180 = vmatmul.mubr.msk.f32.gmra.mrb[20].mxu1 %vm797_vm2, %v2381_v56  ;;  %10203 = vmatmul.mubr.msk.f32.gmra.mrb[22].mxu0 %vm797_vm2, %v2381_v56 }
 0x284   : > { %v2383_v3 = vmul.f32 %v11910_v2, %v11908_v1  ;;  %v11912_v5 = vpop.eup %11911  ;;  %v2708_v1 = vld [vmem:[#allocation3 + $0xb8] sm:$0xff] }
 0x287   : > { %v11914_v6 = vpop.eup %11913 }
 0x288   : > { %v2382_v12 = vmul.f32 %v11914_v6, %v11912_v5 }
 0x28a   : > { %10182 = vmatprep.mubr.msk.f32.mxu1 %vm797_vm2, %v2382_v12  ;;  %10205 = vmatprep.mubr.msk.f32.mxu0 %vm797_vm2, %v2382_v12 }
 0x28b   : > { %10183 = vmatmul.mubr.msk.f32.gmra.mrb[22].mxu1 %vm797_vm2, %v2383_v3  ;;  %10206 = vmatmul.mubr.msk.f32.gmra.mrb[24].mxu0 %vm797_vm2, %v2383_v3 }
 0x348   : > { %v10195_v33 = vpop.f32.mrb[16].mxu0 }
 0x349   : > { %v2621_v26 = vadd.f32 %v10195_v33, %v12677_v32  ;;  %v2615_v34 = vpop.f32.mrb[17].mxu0  ;;  %v11161_v33 = vpack.c.bf16 %v3266_v40, %v3265_v19  ;;  %v3718_v19 = vld [vmem:[#allocation5 + $0x118] sm:$0xff] }
 0x34a   : > { %v2616_v30 = vadd.f32 %v12677_v32, %v2615_v34 }
 0x34b   : > { %v2665_v35 = vadd.f32 %v2621_v26, %v12441_v58 }
 0x34c   : > { %v2664_v36 = vadd.f32 %v2616_v30, %v12447_v60  ;;  %v10198_v37 = vpop.f32.mrb[18].mxu0 }
 0x34d   : > { %v12684_v47 = vmul.f32 %v2665_v35, %v12425_v43  ;;  %v2631_v50 = vadd.f32 %v10198_v37, %v12677_v32  ;;  %v2625_v38 = vpop.f32.mrb[19].mxu0 }
 0x34e   : > { %v12688_v51 = vmul.f32 %v2664_v36, %v12421_v41  ;;  %v2626_v52 = vadd.f32 %v12677_v32, %v2625_v38 }
 0x34f   : > { %2685 = vst.msk [vmem:[#allocation2 + $0x18] sm:$0xff] %vm797_vm2, %v12684_v47  ;;  %v2667_v54 = vadd.f32 %v2631_v50, %v12465_v8 }
 0x350   : > { %2684 = vst.msk [vmem:[#allocation2 + $0x10] sm:$0xff] %vm797_vm2, %v12688_v51  ;;  %v2666_v58 = vadd.f32 %v2626_v52, %v12471_v10  ;;  %v10201_v60 = vpop.f32.mrb[20].mxu0  ;;  %v3417_v52 = vld [vmem:[#allocation5 + $0xf0] sm:$0xff] }
 0x351   : > { %v12698_v55 = vmul.f32 %v2667_v54, %v12427_v44  ;;  %v2641_v39 = vadd.f32 %v10201_v60, %v12677_v32  ;;  %v2635_v57 = vpop.f32.mrb[21].mxu0  ;;  %v3418_v54 = vld [vmem:[#allocation5 + $0xf8] sm:$0xff] }
 0x352   : > { %v12702_v62 = vmul.f32 %v2666_v58, %v12423_v42  ;;  %v2636_v56 = vadd.f32 %v12677_v32, %v2635_v57  ;;  %v11173_v60 = vpack.c.bf16 %v3418_v54, %v3417_v52  ;;  %v3267_v57 = vld [vmem:[#allocation3 + $0xf0] sm:$0xff] }
 0x353   : > { %2687 = vst.msk [vmem:[#allocation2 + $0x28] sm:$0xff] %vm797_vm2, %v12698_v55  ;;  %v2669_v8 = vadd.f32 %v2641_v39, %v12485_v20  ;;  %v4017_v54 = vld [vmem:[#allocation5 + $0x130] sm:$0xff] }
 0x354   : > { %2686 = vst.msk [vmem:[#allocation2 + $0x20] sm:$0xff] %vm797_vm2, %v12702_v62  ;;  %v2668_v10 = vadd.f32 %v2636_v56, %v12488_v21  ;;  %v11149_v21 = vpack.c.bf16 %v2708_v1, %v2707_v0  ;;  %v3268_v56 = vld [vmem:[#allocation3 + $0xf8] sm:$0xff] }
 0x355   : > { %v12712_v2 = vmul.f32 %v2669_v8, %v12431_v46  ;;  %v11165_v63 = vpack.c.bf16 %v3268_v56, %v3267_v57  ;;  %v3867_v56 = vld [vmem:[#allocation3 + $0x130] sm:$0xff] }
 0x356   : > { %v12715_v3 = vmul.f32 %v2668_v10, %v12429_v45  ;;  %v10204_v5 = vpop.f32.mrb[22].mxu0  ;;  %v3716_v10 = vld [vmem:[#allocation5 + $0x108] sm:$0xff] }
 0x357   : > { %2689 = vst.msk [vmem:[#allocation2 + $0x38] sm:$0xff] %vm797_vm2, %v12712_v2  ;;  %v2651_v20 = vadd.f32 %v10204_v5, %v12677_v32  ;;  %v2645_v6 = vpop.f32.mrb[23].mxu0  ;;  %v2714_v12 = vld [vmem:[#allocation2 + $0xf] sm:$0xff]  ;;  %v2715_v13 = vld [vmem:[#allocation2 + $0x17] sm:$0xff]  ;;  %v11185_v1 = vpack.c.bf16 %v3716_v10, %v3715_v53 }
 0x358   : > { %2688 = vst.msk [vmem:[#allocation2 + $0x30] sm:$0xff] %vm797_vm2, %v12715_v3  ;;  %v2646_v16 = vadd.f32 %v12677_v32, %v2645_v6  ;;  %10216 = vmatprep.mubr.msk.f32.mxu1 %vm797_vm2, %v2714_v12  ;;  %10239 = vmatprep.mubr.msk.f32.mxu0 %vm797_vm2, %v2714_v12  ;;  %v2694_v58 = vld [vmem:[#allocation2 + $0xe] sm:$0xff]  ;;  %v2695_v39 = vld [vmem:[#allocation2 + $0x16] sm:$0xff] }
 0x359   : > { %v2671_v22 = vadd.f32 %v2651_v20, %v12444_v59  ;;  %10217 = vmatmul.mubr.msk.f32.vlgmr.msra.gmra.mrb[24].mxu1 %vm797_vm2, %v2715_v13  ;;  %10240 = vmatmul.mubr.msk.f32.vlgmr.msra.gmra.mrb[26].mxu0 %vm797_vm2, %v2715_v13  ;;  %v3565_v5 = vld [vmem:[#allocation3 + $0x100] sm:$0xff]  ;;  %v3566_v20 = vld [vmem:[#allocation3 + $0x108] sm:$0xff] }
 0x35a   : > { %v2670_v23 = vadd.f32 %v2646_v16, %v12450_v61  ;;  %11156 = vmatpush3.bf16.msra.mxu0 %v11153_v25  ;;  %11148 = vmatpush3.bf16.msra.mxu1 %v11145_v31  ;;  %v11177_v12 = vpack.c.bf16 %v3566_v20, %v3565_v5  ;;  %v3254_v40 = vld [vmem:[#allocation2 + $0x10] sm:$0xff] }
 0x35b   : > { %v12730_v17 = vmul.f32 %v2671_v22, %v12438_v49  ;;  %v2716_v24 = vld [vmem:[#allocation2 + $0x1f] sm:$0xff]  ;;  %v2717_v27 = vld [vmem:[#allocation2 + $0x27] sm:$0xff]  ;;  %11158 = vmatprep.subr.bf16.mxu0 %v11157_v14  ;;  %11150 = vmatprep.subr.bf16.mxu1 %v11149_v21  ;;  %v11189_v22 = vpack.c.bf16 %v3718_v19, %v3717_v18 }
 0x35c   : > { %v12733_v26 = vmul.f32 %v2670_v23, %v12436_v48  ;;  %10219 = vmatprep.mubr.msk.f32.mxu1 %vm797_vm2, %v2716_v24  ;;  %10242 = vmatprep.mubr.msk.f32.mxu0 %vm797_vm2, %v2716_v24  ;;  %v2696_v8 = vld [vmem:[#allocation2 + $0x1e] sm:$0xff]  ;;  %v2697_v0 = vld [vmem:[#allocation2 + $0x26] sm:$0xff] }
 0x35d   : > { %2691 = vst.msk [vmem:[#allocation2 + $0x48] sm:$0xff] %vm797_vm2, %v12730_v17  ;;  %10220 = vmatmul.mubr.msk.f32.gmra.mrb[26].mxu1 %vm797_vm2, %v2717_v27  ;;  %10243 = vmatmul.mubr.msk.f32.gmra.mrb[28].mxu0 %vm797_vm2, %v2717_v27  ;;  %v3255_v23 = vld [vmem:[#allocation2 + $0x18] sm:$0xff]  ;;  %v3567_v24 = vld [vmem:[#allocation3 + $0x110] sm:$0xff]  ;;  %v3568_v27 = vld [vmem:[#allocation3 + $0x118] sm:$0xff] }
 0x35e   : > { %2690 = vst.msk [vmem:[#allocation2 + $0x40] sm:$0xff] %vm797_vm2, %v12733_v26  ;;  %v10207_v59 = vpop.f32.mrb[24].mxu0  ;;  %11160 = vmatpush3.bf16.msra.mxu0 %v11157_v14  ;;  %11152 = vmatpush3.bf16.msra.mxu1 %v11149_v21  ;;  %v3555_v57 = vld [vmem:[#allocation2 + $0x19] sm:$0xff]  ;;  %v3556_v53 = vld [vmem:[#allocation2 + $0x21] sm:$0xff] }
 0x35f   : > { %v2661_v61 = vadd.f32 %v10207_v59, %v12677_v32  ;;  %v2655_v25 = vpop.f32.mrb[25].mxu0  ;;  %v2718_v31 = vld [vmem:[#allocation2 + $0x2f] sm:$0xff]  ;;  %v2719_v34 = vld [vmem:[#allocation2 + $0x37] sm:$0xff]  ;;  %11170 = vmatprep.subr.bf16.mxu0 %v11169_v29  ;;  %11162 = vmatprep.subr.bf16.mxu1 %v11161_v33 }
 0x360   : > { %v2656_v30 = vadd.f32 %v12677_v32, %v2655_v25  ;;  %10222 = vmatprep.mubr.msk.f32.mxu1 %vm797_vm2, %v2718_v31  ;;  %10245 = vmatprep.mubr.msk.f32.mxu0 %vm797_vm2, %v2718_v31  ;;  %v2698_v6 = vld [vmem:[#allocation2 + $0x2e] sm:$0xff]  ;;  %v2699_v13 = vld [vmem:[#allocation2 + $0x36] sm:$0xff] }
 0x361   : > { %v2673_v35 = vadd.f32 %v2661_v61, %v12468_v9  ;;  %10223 = vmatmul.mubr.msk.f32.gmra.mrb[28].mxu1 %vm797_vm2, %v2719_v34  ;;  %10246 = vmatmul.mubr.msk.f32.gmra.mrb[30].mxu0 %vm797_vm2, %v2719_v34  ;;  %v4016_v59 = vld [vmem:[#allocation5 + $0x128] sm:$0xff]  ;;  %v11181_v61 = vpack.c.bf16 %v3568_v27, %v3567_v24  ;;  %v3257_v25 = vld [vmem:[#allocation2 + $0x28] sm:$0xff]  ;;  %v3865_v34 = vld [vmem:[#allocation3 + $0x120] sm:$0xff] }
 0x362   : > { %v2672_v36 = vadd.f32 %v2656_v30, %v12474_v11  ;;  %v3866_v30 = vld [vmem:[#allocation3 + $0x128] sm:$0xff]  ;;  %v8923_v24 = vld [vmem:[%s13493_s8 + $0x20] sm:$0xff]  ;;  %v8924_v27 = vld [vmem:[%s13493_s8 + $0x28] sm:$0xff] }
 0x363   : > { %v12752_v37 = vmul.f32 %v2673_v35, %v12456_v4  ;;  %v3258_v35 = vld [vmem:[#allocation2 + $0x30] sm:$0xff] }
 0x364   : > { %v12755_v50 = vmul.f32 %v2672_v36, %v12462_v7  ;;  %v11193_v36 = vpack.c.bf16 %v3866_v30, %v3865_v34  ;;  %v8909_v34 = vld [vmem:[%s13495_s10 + $0x30] sm:$0xff] }
 0x365   : > { %2693 = vst.msk [vmem:[#allocation2 + $0x58] sm:$0xff] %vm797_vm2, %v12752_v37  ;;  %v2720_v32 = vld [vmem:[#allocation2 + $0x3f] sm:$0xff]  ;;  %v2721_v38 = vld [vmem:[#allocation2 + $0x47] sm:$0xff] }
 0x366   : > { %2692 = vst.msk [vmem:[#allocation2 + $0x50] sm:$0xff] %vm797_vm2, %v12755_v50  ;;  %10225 = vmatprep.mubr.msk.f32.mxu1 %vm797_vm2, %v2720_v32  ;;  %10248 = vmatprep.mubr.msk.f32.mxu0 %vm797_vm2, %v2720_v32  ;;  %v2700_v14 = vld [vmem:[#allocation2 + $0x3e] sm:$0xff]  ;;  %v2701_v21 = vld [vmem:[#allocation2 + $0x46] sm:$0xff] }
 0x367   : > { %10226 = vmatmul.mubr.msk.f32.gmra.mrb[30].mxu1 %vm797_vm2, %v2721_v38  ;;  %10249 = vmatmul.mubr.msk.f32.gmra.mrb[32].mxu0 %vm797_vm2, %v2721_v38  ;;  %v3259_v32 = vld [vmem:[#allocation2 + $0x38] sm:$0xff]  ;;  %v3260_v38 = vld [vmem:[#allocation2 + $0x40] sm:$0xff] }
 0x368   : > { %v3560_v5 = vld [vmem:[#allocation2 + $0x41] sm:$0xff] }
 0x369   : > { %v3859_v18 = vld [vmem:[#allocation2 + $0x3a] sm:$0xff]  ;;  %v3860_v19 = vld [vmem:[#allocation2 + $0x42] sm:$0xff] }
 0x36c   : > { %v3263_v52 = vld [vmem:[#allocation2 + $0x58] sm:$0xff] }
 0x36d   : > { %v2722_v9 = vld [vmem:[#allocation2 + $0x4f] sm:$0xff]  ;;  %v2723_v11 = vld [vmem:[#allocation2 + $0x57] sm:$0xff] }
 0x36e   : > { %10228 = vmatprep.mubr.msk.f32.mxu1 %vm797_vm2, %v2722_v9  ;;  %10251 = vmatprep.mubr.msk.f32.mxu0 %vm797_vm2, %v2722_v9  ;;  %v2702_v15 = vld [vmem:[#allocation2 + $0x4e] sm:$0xff]  ;;  %v2703_v16 = vld [vmem:[#allocation2 + $0x56] sm:$0xff] }
 0x36f   : > { %10229 = vmatmul.mubr.msk.f32.gmra.mrb[32].mxu1 %vm797_vm2, %v2723_v11  ;;  %10252 = vmatmul.mubr.msk.f32.gmra.mrb[34].mxu0 %vm797_vm2, %v2723_v11  ;;  %v3261_v9 = vld [vmem:[#allocation2 + $0x48] sm:$0xff]  ;;  %v3262_v11 = vld [vmem:[#allocation2 + $0x50] sm:$0xff] }
 0x370   : > { %10262 = vmatprep.mubr.msk.f32.mxu1 %vm797_vm2, %v2694_v58  ;;  %10285 = vmatprep.mubr.msk.f32.mxu0 %vm797_vm2, %v2694_v58  ;;  %v4018_v58 = vld [vmem:[#allocation5 + $0x138] sm:$0xff] }
 0x371   : > { %v3561_v20 = vld [vmem:[#allocation2 + $0x49] sm:$0xff] }
 0x373   : > { %10263 = vmatmul.mubr.msk.f32.vlgmr.msra.gmra.mrb[24].mxu1 %vm797_vm2, %v2695_v39  ;;  %10286 = vmatmul.mubr.msk.f32.vlgmr.msra.gmra.mrb[26].mxu0 %vm797_vm2, %v2695_v39  ;;  %v11205_v39 = vpack.c.bf16 %v4018_v58, %v4017_v54 }
 0x374   : > { %11172 = vmatpush3.bf16.msra.mxu0 %v11169_v29  ;;  %10265 = vmatprep.mubr.msk.f32.mxu1 %vm797_vm2, %v2696_v8  ;;  %v3256_v29 = vld [vmem:[#allocation2 + $0x20] sm:$0xff] }
 0x375   : > { %10288 = vmatprep.mubr.msk.f32.mxu0 %vm797_vm2, %v2696_v8  ;;  %11174 = vmatprep.subr.bf16.mxu0 %v11173_v60  ;;  %v3868_v8 = vld [vmem:[#allocation3 + $0x138] sm:$0xff] }
 0x376   : > { %11164 = vmatpush3.bf16.msra.mxu1 %v11161_v33  ;;  %v4015_v33 = vld [vmem:[#allocation5 + $0x120] sm:$0xff]  ;;  %v11197_v10 = vpack.c.bf16 %v3868_v8, %v3867_v56  ;;  %v12886_v8 = vld [vmem:[%s13491_s6 + $0x1] ss:$0 sm:$0xff] }
 0x377   : > { %10266 = vmatmul.mubr.msk.f32.gmra.mrb[26].mxu1 %vm797_vm2, %v2697_v0  ;;  %10289 = vmatmul.mubr.msk.f32.gmra.mrb[28].mxu0 %vm797_vm2, %v2697_v0  ;;  %v11201_v31 = vpack.c.bf16 %v4016_v59, %v4015_v33  ;;  %v3558_v0 = vld [vmem:[#allocation2 + $0x31] sm:$0xff]  ;;  %v11217_v33 = vpack.c.bf16 %v8924_v27, %v8923_v24  ;;  %v8908_v59 = vld [vmem:[%s13495_s10 + $0x28] sm:$0xff] }
 0x378   : > { %10268 = vmatprep.mubr.msk.f32.mxu1 %vm797_vm2, %v2698_v6  ;;  %10291 = vmatprep.mubr.msk.f32.mxu0 %vm797_vm2, %v2698_v6  ;;  %v3562_v6 = vld [vmem:[#allocation2 + $0x51] sm:$0xff] }
 0x379   : > { %11176 = vmatpush3.bf16.msra.mxu0 %v11173_v60  ;;  %11166 = vmatprep.subr.bf16.mxu1 %v11165_v63  ;;  %v3554_v60 = vld [vmem:[#allocation2 + $0x11] sm:$0xff] }
 0x37a   : > { %11168 = vmatpush3.bf16.msra.mxu1 %v11165_v63  ;;  %11186 = vmatprep.subr.bf16.mxu0 %v11185_v1  ;;  %v3557_v63 = vld [vmem:[#allocation2 + $0x29] sm:$0xff] }
 0x37b   : > { %10269 = vmatmul.mubr.msk.f32.gmra.mrb[28].mxu1 %vm797_vm2, %v2699_v13  ;;  %10292 = vmatmul.mubr.msk.f32.gmra.mrb[30].mxu0 %vm797_vm2, %v2699_v13  ;;  %v3854_v13 = vld [vmem:[#allocation2 + $0x12] sm:$0xff] }
 0x37c   : > { %10271 = vmatprep.mubr.msk.f32.mxu1 %vm797_vm2, %v2700_v14  ;;  %10294 = vmatprep.mubr.msk.f32.mxu0 %vm797_vm2, %v2700_v14  ;;  %v3855_v14 = vld [vmem:[#allocation2 + $0x1a] sm:$0xff] }
 0x37d   : > { %11178 = vmatprep.subr.bf16.mxu1 %v11177_v12 }
 0x37f   : > { %10272 = vmatmul.mubr.msk.f32.gmra.mrb[30].mxu1 %vm797_vm2, %v2701_v21  ;;  %10295 = vmatmul.mubr.msk.f32.gmra.mrb[32].mxu0 %vm797_vm2, %v2701_v21  ;;  %v3856_v21 = vld [vmem:[#allocation2 + $0x22] sm:$0xff] }
 0x380   : > { %10274 = vmatprep.mubr.msk.f32.mxu1 %vm797_vm2, %v2702_v15  ;;  %10297 = vmatprep.mubr.msk.f32.mxu0 %vm797_vm2, %v2702_v15  ;;  %v3857_v15 = vld [vmem:[#allocation2 + $0x2a] sm:$0xff] }
 0x383   : > { %10275 = vmatmul.mubr.msk.f32.gmra.mrb[32].mxu1 %vm797_vm2, %v2703_v16  ;;  %10298 = vmatmul.mubr.msk.f32.gmra.mrb[34].mxu0 %vm797_vm2, %v2703_v16  ;;  %v3858_v16 = vld [vmem:[#allocation2 + $0x32] sm:$0xff] }
 0x384   : > { %10308 = vmatprep.mubr.msk.f32.mxu1 %vm797_vm2, %v3254_v40  ;;  %10331 = vmatprep.mubr.msk.f32.mxu0 %vm797_vm2, %v3254_v40  ;;  %v3861_v40 = vld [vmem:[#allocation2 + $0x4a] sm:$0xff] }
 0x387   : > { %10309 = vmatmul.mubr.msk.f32.vlgmr.msra.gmra.mrb[24].mxu1 %vm797_vm2, %v3255_v23  ;;  %10332 = vmatmul.mubr.msk.f32.vlgmr.msra.gmra.mrb[26].mxu0 %vm797_vm2, %v3255_v23  ;;  %v3863_v23 = vld [vmem:[#allocation2 + $0x5a] sm:$0xff] }
 0x388   : > { %11188 = vmatpush3.bf16.msra.mxu0 %v11185_v1  ;;  %10311 = vmatprep.mubr.msk.f32.mxu1 %vm797_vm2, %v3256_v29  ;;  %v3559_v1 = vld [vmem:[#allocation2 + $0x39] sm:$0xff] }
 0x389   : > { %10334 = vmatprep.mubr.msk.f32.mxu0 %vm797_vm2, %v3256_v29  ;;  %11190 = vmatprep.subr.bf16.mxu0 %v11189_v22  ;;  %v8907_v29 = vld [vmem:[%s13495_s10 + $0x20] sm:$0xff] }
 0x38a   : > { %11180 = vmatpush3.bf16.msra.mxu1 %v11177_v12  ;;  %v3563_v12 = vld [vmem:[#allocation2 + $0x59] sm:$0xff] }
 0x38b   : > { %10312 = vmatmul.mubr.msk.f32.gmra.mrb[26].mxu1 %vm797_vm2, %v3257_v25  ;;  %10335 = vmatmul.mubr.msk.f32.gmra.mrb[28].mxu0 %vm797_vm2, %v3257_v25  ;;  %v8925_v25 = vld [vmem:[%s13493_s8 + $0x30] sm:$0xff] }
 0x38c   : > { %10314 = vmatprep.mubr.msk.f32.mxu1 %vm797_vm2, %v3258_v35  ;;  %10337 = vmatprep.mubr.msk.f32.mxu0 %vm797_vm2, %v3258_v35  ;;  %v8910_v35 = vld [vmem:[%s13495_s10 + $0x38] sm:$0xff] }
 0x38d   : > { %11192 = vmatpush3.bf16.msra.mxu0 %v11189_v22  ;;  %11182 = vmatprep.subr.bf16.mxu1 %v11181_v61  ;;  %v3862_v22 = vld [vmem:[#allocation2 + $0x52] sm:$0xff] }
 0x38e   : > { %11184 = vmatpush3.bf16.msra.mxu1 %v11181_v61  ;;  %11202 = vmatprep.subr.bf16.mxu0 %v11201_v31  ;;  %v11209_v61 = vpack.c.bf16 %v8908_v59, %v8907_v29 }
 0x38f   : > { %10315 = vmatmul.mubr.msk.f32.gmra.mrb[28].mxu1 %vm797_vm2, %v3259_v32  ;;  %10338 = vmatmul.mubr.msk.f32.gmra.mrb[30].mxu0 %vm797_vm2, %v3259_v32  ;;  %v4773_v32 = vld [vmem:[#allocation5 + $0x160] sm:$0xff] }
 0x390   : > { %10317 = vmatprep.mubr.msk.f32.mxu1 %vm797_vm2, %v3260_v38  ;;  %10340 = vmatprep.mubr.msk.f32.mxu0 %vm797_vm2, %v3260_v38  ;;  %v4774_v38 = vld [vmem:[#allocation5 + $0x168] sm:$0xff] }
 0x391   : > { %11194 = vmatprep.subr.bf16.mxu1 %v11193_v36 }
 0x393   : > { %10318 = vmatmul.mubr.msk.f32.gmra.mrb[30].mxu1 %vm797_vm2, %v3261_v9  ;;  %10341 = vmatmul.mubr.msk.f32.gmra.mrb[32].mxu0 %vm797_vm2, %v3261_v9  ;;  %v12873_v9 = vpack.c.bf16 %v4774_v38, %v4773_v32 }
 0x394   : > { %10320 = vmatprep.mubr.msk.f32.mxu1 %vm797_vm2, %v3262_v11  ;;  %10343 = vmatprep.mubr.msk.f32.mxu0 %vm797_vm2, %v3262_v11  ;;  %v12879_v11 = vld [vmem:[%s13492_s7 + $0x1] ss:$0 sm:$0xff] }
 0x397   : > { %10321 = vmatmul.mubr.msk.f32.gmra.mrb[32].mxu1 %vm797_vm2, %v3263_v52  ;;  %10344 = vmatmul.mubr.msk.f32.gmra.mrb[34].mxu0 %vm797_vm2, %v3263_v52 }
 0x398   : > { %10354 = vmatprep.mubr.msk.f32.mxu1 %vm797_vm2, %v3554_v60  ;;  %10377 = vmatprep.mubr.msk.f32.mxu0 %vm797_vm2, %v3554_v60 }
 0x39b   : > { %10355 = vmatmul.mubr.msk.f32.vlgmr.msra.gmra.mrb[24].mxu1 %vm797_vm2, %v3555_v57  ;;  %10378 = vmatmul.mubr.msk.f32.vlgmr.msra.gmra.mrb[26].mxu0 %vm797_vm2, %v3555_v57 }
 0x39c   : > { %11204 = vmatpush3.bf16.msra.mxu0 %v11201_v31  ;;  %10357 = vmatprep.mubr.msk.f32.mxu1 %vm797_vm2, %v3556_v53  ;;  %v8926_v31 = vld [vmem:[%s13493_s8 + $0x38] sm:$0xff] }
 0x39d   : > { %10380 = vmatprep.mubr.msk.f32.mxu0 %vm797_vm2, %v3556_v53  ;;  %11206 = vmatprep.subr.bf16.mxu0 %v11205_v39  ;;  %v11221_v30 = vpack.c.bf16 %v8926_v31, %v8925_v25 }
 0x39e   : > { %11196 = vmatpush3.bf16.msra.mxu1 %v11193_v36  ;;  %v11213_v36 = vpack.c.bf16 %v8910_v35, %v8909_v34 }
 0x39f   : > { %10358 = vmatmul.mubr.msk.f32.gmra.mrb[26].mxu1 %vm797_vm2, %v3557_v63  ;;  %10381 = vmatmul.mubr.msk.f32.gmra.mrb[28].mxu0 %vm797_vm2, %v3557_v63 }
 0x3a0   : > { %10360 = vmatprep.mubr.msk.f32.mxu1 %vm797_vm2, %v3558_v0  ;;  %10383 = vmatprep.mubr.msk.f32.mxu0 %vm797_vm2, %v3558_v0 }
 0x3a1   : > { %11208 = vmatpush3.bf16.msra.mxu0 %v11205_v39  ;;  %11198 = vmatprep.subr.bf16.mxu1 %v11197_v10 }
 0x3a2   : > { %11200 = vmatpush3.bf16.msra.mxu1 %v11197_v10  ;;  %11218 = vmatprep.subr.bf16.mxu0 %v11217_v33 }
 0x3a3   : > { %10361 = vmatmul.mubr.msk.f32.gmra.mrb[28].mxu1 %vm797_vm2, %v3559_v1  ;;  %10384 = vmatmul.mubr.msk.f32.gmra.mrb[30].mxu0 %vm797_vm2, %v3559_v1 }
 0x3a4   : > { %10363 = vmatprep.mubr.msk.f32.mxu1 %vm797_vm2, %v3560_v5  ;;  %10386 = vmatprep.mubr.msk.f32.mxu0 %vm797_vm2, %v3560_v5 }
 0x3a5   : > { %11210 = vmatprep.subr.bf16.mxu1 %v11209_v61 }
 0x3a7   : > { %10364 = vmatmul.mubr.msk.f32.gmra.mrb[30].mxu1 %vm797_vm2, %v3561_v20  ;;  %10387 = vmatmul.mubr.msk.f32.gmra.mrb[32].mxu0 %vm797_vm2, %v3561_v20 }
 0x3a8   : > { %10366 = vmatprep.mubr.msk.f32.mxu1 %vm797_vm2, %v3562_v6  ;;  %10389 = vmatprep.mubr.msk.f32.mxu0 %vm797_vm2, %v3562_v6 }
 0x3ab   : > { %10367 = vmatmul.mubr.msk.f32.gmra.mrb[32].mxu1 %vm797_vm2, %v3563_v12  ;;  %10390 = vmatmul.mubr.msk.f32.gmra.mrb[34].mxu0 %vm797_vm2, %v3563_v12 }
 0x3ac   : > { %10400 = vmatprep.mubr.msk.f32.mxu1 %vm797_vm2, %v3854_v13  ;;  %10423 = vmatprep.mubr.msk.f32.mxu0 %vm797_vm2, %v3854_v13 }
 0x3af   : > { %10401 = vmatmul.mubr.msk.f32.vlgmr.msra.gmra.mrb[24].mxu1 %vm797_vm2, %v3855_v14  ;;  %10424 = vmatmul.mubr.msk.f32.vlgmr.msra.gmra.mrb[26].mxu0 %vm797_vm2, %v3855_v14 }
 0x3b0   : > { %10403 = vmatprep.mubr.msk.f32.mxu1 %vm797_vm2, %v3856_v21  ;;  %10426 = vmatprep.mubr.msk.f32.mxu0 %vm797_vm2, %v3856_v21 }
 0x3b1   : > { %11220 = vmatpush3.bf16.msra.mxu0 %v11217_v33  ;;  %11212 = vmatpush3.bf16.msra.mxu1 %v11209_v61 }
 0x3b2   : > { %11222 = vmatprep.subr.bf16.mxu0 %v11221_v30  ;;  %11214 = vmatprep.subr.bf16.mxu1 %v11213_v36 }
 0x3b3   : > { %10404 = vmatmul.mubr.msk.f32.gmra.mrb[26].mxu1 %vm797_vm2, %v3857_v15  ;;  %10427 = vmatmul.mubr.msk.f32.gmra.mrb[28].mxu0 %vm797_vm2, %v3857_v15 }
 0x3b4   : > { %10406 = vmatprep.mubr.msk.f32.mxu1 %vm797_vm2, %v3858_v16  ;;  %10429 = vmatprep.mubr.msk.f32.mxu0 %vm797_vm2, %v3858_v16 }
 0x3b5   : > { %11224 = vmatpush3.bf16.msra.mxu0 %v11221_v30  ;;  %11216 = vmatpush3.bf16.msra.mxu1 %v11213_v36 }
 0x3b6   : > { %11234 = vmatprep.subr.bf16.mxu0 %v12873_v9 }
 0x3b7   : > { %10407 = vmatmul.mubr.msk.f32.gmra.mrb[28].mxu1 %vm797_vm2, %v3859_v18  ;;  %10430 = vmatmul.mubr.msk.f32.gmra.mrb[30].mxu0 %vm797_vm2, %v3859_v18 }
 0x3b8   : > { %10409 = vmatprep.mubr.msk.f32.mxu1 %vm797_vm2, %v3860_v19  ;;  %10432 = vmatprep.mubr.msk.f32.mxu0 %vm797_vm2, %v3860_v19 }
 0x3bb   : > { %10410 = vmatmul.mubr.msk.f32.gmra.mrb[30].mxu1 %vm797_vm2, %v3861_v40  ;;  %10433 = vmatmul.mubr.msk.f32.gmra.mrb[32].mxu0 %vm797_vm2, %v3861_v40 }
 0x3bc   : > { %10412 = vmatprep.mubr.msk.f32.mxu1 %vm797_vm2, %v3862_v22  ;;  %10435 = vmatprep.mubr.msk.f32.mxu0 %vm797_vm2, %v3862_v22 }
 0x3bf   : > { %10413 = vmatmul.mubr.msk.f32.gmra.mrb[32].mxu1 %vm797_vm2, %v3863_v23  ;;  %10436 = vmatmul.mubr.msk.f32.gmra.mrb[34].mxu0 %vm797_vm2, %v3863_v23 }
 0x482   : > { %v10402_v52 = vpop.f32.mrb[24].mxu1  ;;  %v10425_v54 = vpop.f32.mrb[26].mxu0 }
 0x483   : > { %v4191_v58 = vadd.f32 %v10425_v54, %v12879_v11  ;;  %v3965_v60 = vpop.f32.mrb[25].mxu1  ;;  %v4085_v39 = vpop.f32.mrb[27].mxu0  ;;  %v4163_v6 = vadd.f32 %v10402_v52, %v12886_v8 }
 0x484   : > { %v4190_v57 = vadd.f32 %v12879_v11, %v4085_v39  ;;  %v4162_v13 = vadd.f32 %v12886_v8, %v3965_v60 }
 0x485   : > { %v8898_v56 = vmul.f32 -1.442695, %v4191_v58 }
 0x486   : > { %v8897_v53 = vmul.f32 -1.442695, %v4190_v57  ;;  %v10405_v10 = vpop.f32.mrb[26].mxu1  ;;  %v10428_v63 = vpop.f32.mrb[28].mxu0 }
 0x487   : > { %11915 = vpow2.f32 %v8898_v56  ;;  %v4193_v0 = vadd.f32 %v10428_v63, %v12879_v11  ;;  %v3975_v1 = vpop.f32.mrb[27].mxu1  ;;  %v4095_v5 = vpop.f32.mrb[29].mxu0  ;;  %v4165_v22 = vadd.f32 %v10405_v10, %v12886_v8 }
 0x488   : > { %11917 = vpow2.f32 %v8897_v53  ;;  %v4192_v20 = vadd.f32 %v12879_v11, %v4095_v5  ;;  %v4164_v24 = vadd.f32 %v12886_v8, %v3975_v1 }
 0x489   : > { %v8900_v12 = vmul.f32 -1.442695, %v4193_v0 }
 0x48a   : > { %v8899_v14 = vmul.f32 -1.442695, %v4192_v20  ;;  %v10408_v21 = vpop.f32.mrb[28].mxu1  ;;  %v10431_v15 = vpop.f32.mrb[30].mxu0 }
 0x48b   : > { %11919 = vpow2.f32 %v8900_v12  ;;  %v4195_v16 = vadd.f32 %v10431_v15, %v12879_v11  ;;  %v3985_v18 = vpop.f32.mrb[29].mxu1  ;;  %v4105_v19 = vpop.f32.mrb[31].mxu0  ;;  %v4167_v58 = vadd.f32 %v10408_v21, %v12886_v8 }
 0x48c   : > { %11921 = vpow2.f32 %v8899_v14  ;;  %v4194_v40 = vadd.f32 %v12879_v11, %v4105_v19  ;;  %v4166_v20 = vadd.f32 %v12886_v8, %v3985_v18 }
 0x48d   : > { %11923 = vtanh.f32 %v4163_v6  ;;  %v8902_v23 = vmul.f32 -1.442695, %v4195_v16 }
 0x48e   : > { %11925 = vtanh.f32 %v4162_v13  ;;  %v8901_v27 = vmul.f32 -1.442695, %v4194_v40  ;;  %v10411_v29 = vpop.f32.mrb[30].mxu1  ;;  %v10434_v33 = vpop.f32.mrb[32].mxu0 }
 0x48f   : > { %11927 = vpow2.f32 %v8902_v23  ;;  %v4197_v59 = vadd.f32 %v10434_v33, %v12879_v11  ;;  %v3995_v61 = vpop.f32.mrb[31].mxu1  ;;  %v4115_v25 = vpop.f32.mrb[33].mxu0  ;;  %v4169_v19 = vadd.f32 %v10411_v29, %v12886_v8 }
 0x490   : > { %11929 = vpow2.f32 %v8901_v27  ;;  %v4196_v31 = vadd.f32 %v12879_v11, %v4115_v25  ;;  %v4168_v18 = vadd.f32 %v12886_v8, %v3995_v61 }
 0x491   : > { %v11916_v34 = vpop.eup %11915  ;;  %11931 = vtanh.f32 %v4165_v22  ;;  %v8904_v30 = vmul.f32 -1.442695, %v4197_v59 }
 0x492   : > { %v11918_v35 = vpop.eup %11917  ;;  %v4231_v36 = vadd.f32 1.0, %v11916_v34  ;;  %11933 = vtanh.f32 %v4164_v24  ;;  %v8903_v32 = vmul.f32 -1.442695, %v4196_v31  ;;  %v10414_v38 = vpop.f32.mrb[32].mxu1 }
 0x493   : > { %v10437_v52 = vpop.f32.mrb[34].mxu0  ;;  %v4230_v54 = vadd.f32 1.0, %v11918_v35  ;;  %11935 = vpow2.f32 %v8904_v30  ;;  %v4005_v39 = vpop.f32.mrb[33].mxu1  ;;  %v4171_v29 = vadd.f32 %v10414_v38, %v12886_v8 }
 0x494   : > { %v4199_v60 = vadd.f32 %v10437_v52, %v12879_v11  ;;  %v4125_v57 = vpop.f32.mrb[35].mxu0  ;;  %11937 = vrcp.f32 %v4231_v36  ;;  %v4170_v38 = vadd.f32 %v12886_v8, %v4005_v39 }
 0x495   : > { %v11920_v56 = vpop.eup %11919  ;;  %11939 = vrcp.f32 %v4230_v54  ;;  %v4198_v0 = vadd.f32 %v12879_v11, %v4125_v57 }
 0x496   : > { %v11922_v53 = vpop.eup %11921  ;;  %v4233_v10 = vadd.f32 1.0, %v11920_v56  ;;  %11941 = vpow2.f32 %v8903_v32  ;;  %v8906_v63 = vmul.f32 -1.442695, %v4199_v60 }
 0x497   : > { %v11924_v1 = vpop.eup %11923  ;;  %v4232_v5 = vadd.f32 1.0, %v11922_v53  ;;  %11943 = vtanh.f32 %v4167_v58  ;;  %v8905_v21 = vmul.f32 -1.442695, %v4198_v0 }
 0x498   : > { %v11926_v6 = vpop.eup %11925  ;;  %11945 = vrcp.f32 %v4233_v10 }
 0x499   : > { %v11928_v12 = vpop.eup %11927  ;;  %11947 = vrcp.f32 %v4232_v5 }
 0x49a   : > { %v11930_v13 = vpop.eup %11929  ;;  %v4235_v14 = vadd.f32 1.0, %v11928_v12  ;;  %11949 = vpow2.f32 %v8906_v63 }
 0x49b   : > { %v11932_v15 = vpop.eup %11931  ;;  %11951 = vtanh.f32 %v4166_v20  ;;  %v4234_v16 = vadd.f32 1.0, %v11930_v13 }
 0x49c   : > { %v11934_v40 = vpop.eup %11933  ;;  %11953 = vrcp.f32 %v4235_v14  ;;  %v4775_v14 = vld [vmem:[#allocation5 + $0x170] sm:$0xff] }
 0x49d   : > { %v11936_v11 = vpop.eup %11935  ;;  %11955 = vrcp.f32 %v4234_v16  ;;  %v4623_v16 = vld [vmem:[#allocation3 + $0x160] sm:$0xff] }
 0x49e   : > { %v11938_v22 = vpop.eup %11937  ;;  %v4237_v23 = vadd.f32 1.0, %v11936_v11  ;;  %11957 = vpow2.f32 %v8905_v21  ;;  %v4776_v21 = vld [vmem:[#allocation5 + $0x178] sm:$0xff]  ;;  %v4625_v11 = vld [vmem:[#allocation3 + $0x170] sm:$0xff] }
 0x49f   : > { %v11940_v24 = vpop.eup %11939  ;;  %v4261_v27 = vmul.f32 %v11938_v22, %v11924_v1  ;;  %11959 = vtanh.f32 %v4169_v19  ;;  %v4624_v19 = vld [vmem:[#allocation3 + $0x168] sm:$0xff]  ;;  %v4626_v22 = vld [vmem:[#allocation3 + $0x178] sm:$0xff] }
 0x4a0   : > { %v11942_v33 = vpop.eup %11941  ;;  %11961 = vrcp.f32 %v4237_v23  ;;  %v4260_v59 = vmul.f32 %v11940_v24, %v11926_v6  ;;  %v11229_v23 = vpack.c.bf16 %v4626_v22, %v4625_v11  ;;  %v4609_v24 = vld [vmem:[#allocation5 + $0x148] sm:$0xff] }
 0x4a1   : > { %v11944_v25 = vpop.eup %11943  ;;  %v4236_v31 = vadd.f32 1.0, %v11942_v33  ;;  %11963 = vtanh.f32 %v4168_v18  ;;  %v4608_v18 = vld [vmem:[#allocation5 + $0x140] sm:$0xff]  ;;  %v5164_v11 = vld [vmem:[#allocation3 + $0x188] sm:$0xff] }
 0x4a2   : > { %v11946_v34 = vpop.eup %11945  ;;  %10446 = vmatprep.mubr.msk.f32.mxu1 %vm797_vm2, %v4260_v59  ;;  %10469 = vmatprep.mubr.msk.f32.mxu0 %vm797_vm2, %v4260_v59  ;;  %v4603_v33 = vld [vmem:[#allocation3 + $0x140] sm:$0xff]  ;;  %v4604_v59 = vld [vmem:[#allocation3 + $0x148] sm:$0xff] }
 0x4a3   : > { %v11948_v30 = vpop.eup %11947  ;;  %11965 = vrcp.f32 %v4236_v31  ;;  %10447 = vmatmul.mubr.msk.f32.vlgmr.msra.gmra.mrb[14].mxu1 %vm797_vm2, %v4261_v27  ;;  %10470 = vmatmul.mubr.msk.f32.vlgmr.msra.gmra.mrb[36].mxu0 %vm797_vm2, %v4261_v27  ;;  %v4263_v61 = vmul.f32 %v11946_v34, %v11932_v15  ;;  %v11237_v15 = vpack.c.bf16 %v4776_v21, %v4775_v14  ;;  %v11249_v27 = vpack.c.bf16 %v4609_v24, %v4608_v18  ;;  %v12930_v31 = vld [vmem:[%s13494_s9 + $0x1] ss:$0 sm:$0xff] }
 0x4a4   : > { %v11950_v35 = vpop.eup %11949  ;;  %v4262_v36 = vmul.f32 %v11948_v30, %v11934_v40  ;;  %11236 = vmatpush3.bf16.msra.mxu0 %v12873_v9  ;;  %11967 = vtanh.f32 %v4171_v29  ;;  %v11225_v40 = vpack.c.bf16 %v4624_v19, %v4623_v16  ;;  %v5314_v19 = vld [vmem:[#allocation5 + $0x188] sm:$0xff] }
 0x4a5   : > { %v11952_v32 = vpop.eup %11951  ;;  %v4239_v52 = vadd.f32 1.0, %v11950_v35  ;;  %11238 = vmatprep.subr.bf16.mxu0 %v11237_v15 }
 0x4a6   : > { %v11954_v54 = vpop.eup %11953  ;;  %10449 = vmatprep.mubr.msk.f32.mxu1 %vm797_vm2, %v4262_v36  ;;  %10472 = vmatprep.mubr.msk.f32.mxu0 %vm797_vm2, %v4262_v36 }
 0x4a7   : > { %v11956_v58 = vpop.eup %11955  ;;  %11969 = vrcp.f32 %v4239_v52  ;;  %10450 = vmatmul.mubr.msk.f32.gmra.mrb[16].mxu1 %vm797_vm2, %v4263_v61  ;;  %10473 = vmatmul.mubr.msk.f32.gmra.mrb[38].mxu0 %vm797_vm2, %v4263_v61  ;;  %v4265_v60 = vmul.f32 %v11954_v54, %v11944_v25  ;;  %v11241_v25 = vpack.c.bf16 %v4604_v59, %v4603_v33 }
 0x4a8   : > { %v11958_v57 = vpop.eup %11957  ;;  %v4264_v56 = vmul.f32 %v11956_v58, %v11952_v32  ;;  %11971 = vtanh.f32 %v4170_v38  ;;  %11240 = vmatpush3.bf16.msra.mxu0 %v11237_v15  ;;  %11226 = vmatprep.subr.bf16.mxu1 %v11225_v40  ;;  %v5313_v15 = vld [vmem:[#allocation5 + $0x180] sm:$0xff] }
 0x4a9   : > { %v11960_v9 = vpop.eup %11959  ;;  %v4238_v53 = vadd.f32 1.0, %v11958_v57  ;;  %11228 = vmatpush3.bf16.msra.mxu1 %v11225_v40  ;;  %11250 = vmatprep.subr.bf16.mxu0 %v11249_v27  ;;  %v5163_v40 = vld [vmem:[#allocation3 + $0x180] sm:$0xff]  ;;  %v11265_v59 = vpack.c.bf16 %v5314_v19, %v5313_v15  ;;  %v5615_v19 = vld [vmem:[#allocation5 + $0x1b0] sm:$0xff] }
 0x4aa   : > { %v11962_v10 = vpop.eup %11961  ;;  %10452 = vmatprep.mubr.msk.f32.mxu1 %vm797_vm2, %v4264_v56  ;;  %10475 = vmatprep.mubr.msk.f32.mxu0 %vm797_vm2, %v4264_v56 }
 0x4ab   : > { %11973 = vrcp.f32 %v4238_v53  ;;  %10453 = vmatmul.mubr.msk.f32.gmra.mrb[18].mxu1 %vm797_vm2, %v4265_v60  ;;  %10476 = vmatmul.mubr.msk.f32.gmra.mrb[40].mxu0 %vm797_vm2, %v4265_v60  ;;  %v4267_v8 = vmul.f32 %v11962_v10, %v11960_v9  ;;  %v11964_v39 = vpop.eup %11963 }
 0x4ac   : > { %11230 = vmatprep.subr.bf16.mxu1 %v11229_v23 }
 0x4ad   : > { %v11966_v63 = vpop.eup %11965  ;;  %11232 = vmatpush3.bf16.msra.mxu1 %v11229_v23 }
 0x4ae   : > { %v4266_v0 = vmul.f32 %v11966_v63, %v11964_v39  ;;  %v11968_v1 = vpop.eup %11967  ;;  %11242 = vmatprep.subr.bf16.mxu1 %v11241_v25  ;;  %v4610_v39 = vld [vmem:[#allocation5 + $0x150] sm:$0xff]  ;;  %v4611_v63 = vld [vmem:[#allocation5 + $0x158] sm:$0xff] }
 0x4af   : > { %v11253_v21 = vpack.c.bf16 %v4611_v63, %v4610_v39  ;;  %v5613_v39 = vld [vmem:[#allocation5 + $0x1a0] sm:$0xff] }
 0x4b0   : > { %10455 = vmatprep.mubr.msk.f32.mxu1 %vm797_vm2, %v4266_v0  ;;  %10478 = vmatprep.mubr.msk.f32.mxu0 %vm797_vm2, %v4266_v0  ;;  %v4605_v0 = vld [vmem:[#allocation3 + $0x150] sm:$0xff] }
 0x4b1   : > { %v11970_v5 = vpop.eup %11969  ;;  %10456 = vmatmul.mubr.msk.f32.gmra.mrb[20].mxu1 %vm797_vm2, %v4267_v8  ;;  %10479 = vmatmul.mubr.msk.f32.gmra.mrb[42].mxu0 %vm797_vm2, %v4267_v8 }
 0x4b2   : > { %v4269_v20 = vmul.f32 %v11970_v5, %v11968_v1  ;;  %v11972_v6 = vpop.eup %11971  ;;  %v4606_v1 = vld [vmem:[#allocation3 + $0x158] sm:$0xff] }
 0x4b5   : > { %v11974_v12 = vpop.eup %11973 }
 0x4b6   : > { %v4268_v13 = vmul.f32 %v11974_v12, %v11972_v6 }
 0x4b8   : > { %10458 = vmatprep.mubr.msk.f32.mxu1 %vm797_vm2, %v4268_v13  ;;  %10481 = vmatprep.mubr.msk.f32.mxu0 %vm797_vm2, %v4268_v13 }
 0x4b9   : > { %10459 = vmatmul.mubr.msk.f32.gmra.mrb[22].mxu1 %vm797_vm2, %v4269_v20  ;;  %10482 = vmatmul.mubr.msk.f32.gmra.mrb[44].mxu0 %vm797_vm2, %v4269_v20 }
 0x576   : > { %v10471_v34 = vpop.f32.mrb[36].mxu0 }
 0x577   : > { %v4519_v29 = vadd.f32 %v10471_v34, %v12930_v31  ;;  %v4513_v30 = vpop.f32.mrb[37].mxu0  ;;  %v11257_v34 = vpack.c.bf16 %v5164_v11, %v5163_v40  ;;  %v5616_v40 = vld [vmem:[#allocation5 + $0x1b8] sm:$0xff] }
 0x578   : > { %v4514_v61 = vadd.f32 %v12930_v31, %v4513_v30 }
 0x579   : > { %v4563_v35 = vadd.f32 %v4519_v29, %v12684_v47 }
 0x57a   : > { %v4562_v36 = vadd.f32 %v4514_v61, %v12688_v51  ;;  %v10474_v32 = vpop.f32.mrb[38].mxu0 }
 0x57b   : > { %v12937_v52 = vmul.f32 %v4563_v35, %v12425_v43  ;;  %v4529_v54 = vadd.f32 %v10474_v32, %v12930_v31  ;;  %v4523_v38 = vpop.f32.mrb[39].mxu0 }
 0x57c   : > { %v12941_v58 = vmul.f32 %v4562_v36, %v12421_v41  ;;  %v4524_v60 = vadd.f32 %v12930_v31, %v4523_v38 }
 0x57d   : > { %4583 = vst.msk [vmem:[#allocation2 + $0x18] sm:$0xff] %vm797_vm2, %v12937_v52  ;;  %v4565_v57 = vadd.f32 %v4529_v54, %v12698_v55 }
 0x57e   : > { %4582 = vst.msk [vmem:[#allocation2 + $0x10] sm:$0xff] %vm797_vm2, %v12941_v58  ;;  %v4564_v47 = vadd.f32 %v4524_v60, %v12702_v62  ;;  %v10477_v51 = vpop.f32.mrb[40].mxu0  ;;  %v5315_v60 = vld [vmem:[#allocation5 + $0x190] sm:$0xff] }
 0x57f   : > { %v12951_v56 = vmul.f32 %v4565_v57, %v12427_v44  ;;  %v4539_v9 = vadd.f32 %v10477_v51, %v12930_v31  ;;  %v4533_v53 = vpop.f32.mrb[41].mxu0  ;;  %v5316_v57 = vld [vmem:[#allocation5 + $0x198] sm:$0xff] }
 0x580   : > { %v12955_v10 = vmul.f32 %v4564_v47, %v12423_v42  ;;  %v4534_v8 = vadd.f32 %v12930_v31, %v4533_v53  ;;  %v11269_v51 = vpack.c.bf16 %v5316_v57, %v5315_v60  ;;  %v5165_v53 = vld [vmem:[#allocation3 + $0x190] sm:$0xff] }
 0x581   : > { %4585 = vst.msk [vmem:[#allocation2 + $0x28] sm:$0xff] %vm797_vm2, %v12951_v56  ;;  %v4567_v55 = vadd.f32 %v4539_v9, %v12712_v2  ;;  %v5915_v57 = vld [vmem:[#allocation5 + $0x1d0] sm:$0xff] }
 0x582   : > { %4584 = vst.msk [vmem:[#allocation2 + $0x20] sm:$0xff] %vm797_vm2, %v12955_v10  ;;  %v4566_v62 = vadd.f32 %v4534_v8, %v12715_v3  ;;  %v11245_v3 = vpack.c.bf16 %v4606_v1, %v4605_v0  ;;  %v5166_v8 = vld [vmem:[#allocation3 + $0x198] sm:$0xff] }
 0x583   : > { %v12965_v5 = vmul.f32 %v4567_v55, %v12431_v46  ;;  %v11261_v63 = vpack.c.bf16 %v5166_v8, %v5165_v53  ;;  %v5765_v8 = vld [vmem:[#allocation3 + $0x1d0] sm:$0xff] }
 0x584   : > { %v12968_v20 = vmul.f32 %v4566_v62, %v12429_v45  ;;  %v10480_v6 = vpop.f32.mrb[42].mxu0  ;;  %v5614_v62 = vld [vmem:[#allocation5 + $0x1a8] sm:$0xff] }
 0x585   : > { %4587 = vst.msk [vmem:[#allocation2 + $0x38] sm:$0xff] %vm797_vm2, %v12965_v5  ;;  %v4549_v2 = vadd.f32 %v10480_v6, %v12930_v31  ;;  %v4543_v12 = vpop.f32.mrb[43].mxu0  ;;  %v4612_v13 = vld [vmem:[#allocation2 + $0xf] sm:$0xff]  ;;  %v4613_v14 = vld [vmem:[#allocation2 + $0x17] sm:$0xff]  ;;  %v11281_v1 = vpack.c.bf16 %v5614_v62, %v5613_v39 }
 0x586   : > { %4586 = vst.msk [vmem:[#allocation2 + $0x30] sm:$0xff] %vm797_vm2, %v12968_v20  ;;  %v4544_v16 = vadd.f32 %v12930_v31, %v4543_v12  ;;  %10492 = vmatprep.mubr.msk.f32.mxu1 %vm797_vm2, %v4612_v13  ;;  %10515 = vmatprep.mubr.msk.f32.mxu0 %vm797_vm2, %v4612_v13  ;;  %v4592_v47 = vld [vmem:[#allocation2 + $0xe] sm:$0xff]  ;;  %v4593_v9 = vld [vmem:[#allocation2 + $0x16] sm:$0xff] }
 0x587   : > { %v4569_v22 = vadd.f32 %v4549_v2, %v12730_v17  ;;  %10493 = vmatmul.mubr.msk.f32.vlgmr.msra.gmra.mrb[34].mxu1 %vm797_vm2, %v4613_v14  ;;  %10516 = vmatmul.mubr.msk.f32.vlgmr.msra.gmra.mrb[46].mxu0 %vm797_vm2, %v4613_v14  ;;  %v5463_v6 = vld [vmem:[#allocation3 + $0x1a0] sm:$0xff]  ;;  %v5464_v2 = vld [vmem:[#allocation3 + $0x1a8] sm:$0xff] }
 0x588   : > { %v4568_v23 = vadd.f32 %v4544_v16, %v12733_v26  ;;  %11252 = vmatpush3.bf16.msra.mxu0 %v11249_v27  ;;  %11244 = vmatpush3.bf16.msra.mxu1 %v11241_v25  ;;  %v11273_v13 = vpack.c.bf16 %v5464_v2, %v5463_v6  ;;  %v5152_v11 = vld [vmem:[#allocation2 + $0x10] sm:$0xff] }
 0x589   : > { %v12983_v18 = vmul.f32 %v4569_v22, %v12438_v49  ;;  %v4614_v24 = vld [vmem:[#allocation2 + $0x1f] sm:$0xff]  ;;  %v4615_v33 = vld [vmem:[#allocation2 + $0x27] sm:$0xff]  ;;  %11254 = vmatprep.subr.bf16.mxu0 %v11253_v21  ;;  %11246 = vmatprep.subr.bf16.mxu1 %v11245_v3  ;;  %v11285_v22 = vpack.c.bf16 %v5616_v40, %v5615_v19 }
 0x58a   : > { %v12986_v29 = vmul.f32 %v4568_v23, %v12436_v48  ;;  %10495 = vmatprep.mubr.msk.f32.mxu1 %vm797_vm2, %v4614_v24  ;;  %10518 = vmatprep.mubr.msk.f32.mxu0 %vm797_vm2, %v4614_v24  ;;  %v4594_v55 = vld [vmem:[#allocation2 + $0x1e] sm:$0xff]  ;;  %v4595_v0 = vld [vmem:[#allocation2 + $0x26] sm:$0xff] }
 0x58b   : > { %4589 = vst.msk [vmem:[#allocation2 + $0x48] sm:$0xff] %vm797_vm2, %v12983_v18  ;;  %10496 = vmatmul.mubr.msk.f32.gmra.mrb[36].mxu1 %vm797_vm2, %v4615_v33  ;;  %10519 = vmatmul.mubr.msk.f32.gmra.mrb[48].mxu0 %vm797_vm2, %v4615_v33  ;;  %v5153_v23 = vld [vmem:[#allocation2 + $0x18] sm:$0xff]  ;;  %v5465_v24 = vld [vmem:[#allocation3 + $0x1b0] sm:$0xff]  ;;  %v5466_v33 = vld [vmem:[#allocation3 + $0x1b8] sm:$0xff] }
 0x58c   : > { %4588 = vst.msk [vmem:[#allocation2 + $0x40] sm:$0xff] %vm797_vm2, %v12986_v29  ;;  %v10483_v17 = vpop.f32.mrb[44].mxu0  ;;  %11256 = vmatpush3.bf16.msra.mxu0 %v11253_v21  ;;  %11248 = vmatpush3.bf16.msra.mxu1 %v11245_v3  ;;  %v5453_v53 = vld [vmem:[#allocation2 + $0x19] sm:$0xff]  ;;  %v5454_v39 = vld [vmem:[#allocation2 + $0x21] sm:$0xff] }
 0x58d   : > { %v4559_v26 = vadd.f32 %v10483_v17, %v12930_v31  ;;  %v4553_v27 = vpop.f32.mrb[45].mxu0  ;;  %v4616_v25 = vld [vmem:[#allocation2 + $0x2f] sm:$0xff]  ;;  %v4617_v30 = vld [vmem:[#allocation2 + $0x37] sm:$0xff]  ;;  %11266 = vmatprep.subr.bf16.mxu0 %v11265_v59  ;;  %11258 = vmatprep.subr.bf16.mxu1 %v11257_v34 }
 0x58e   : > { %v4554_v61 = vadd.f32 %v12930_v31, %v4553_v27  ;;  %10498 = vmatprep.mubr.msk.f32.mxu1 %vm797_vm2, %v4616_v25  ;;  %10521 = vmatprep.mubr.msk.f32.mxu0 %vm797_vm2, %v4616_v25  ;;  %v4596_v12 = vld [vmem:[#allocation2 + $0x2e] sm:$0xff]  ;;  %v4597_v14 = vld [vmem:[#allocation2 + $0x36] sm:$0xff] }
 0x58f   : > { %v4571_v35 = vadd.f32 %v4559_v26, %v12752_v37  ;;  %10499 = vmatmul.mubr.msk.f32.gmra.mrb[38].mxu1 %vm797_vm2, %v4617_v30  ;;  %10522 = vmatmul.mubr.msk.f32.gmra.mrb[50].mxu0 %vm797_vm2, %v4617_v30  ;;  %v5914_v17 = vld [vmem:[#allocation5 + $0x1c8] sm:$0xff]  ;;  %v11277_v26 = vpack.c.bf16 %v5466_v33, %v5465_v24  ;;  %v5155_v27 = vld [vmem:[#allocation2 + $0x28] sm:$0xff]  ;;  %v5763_v30 = vld [vmem:[#allocation3 + $0x1c0] sm:$0xff] }
 0x590   : > { %v4570_v36 = vadd.f32 %v4554_v61, %v12755_v50  ;;  %v5764_v61 = vld [vmem:[#allocation3 + $0x1c8] sm:$0xff]  ;;  %v9069_v24 = vld [vmem:[%s13493_s8 + $0x40] sm:$0xff]  ;;  %v9070_v33 = vld [vmem:[%s13493_s8 + $0x48] sm:$0xff] }
 0x591   : > { %v13005_v32 = vmul.f32 %v4571_v35, %v12456_v4  ;;  %v5156_v35 = vld [vmem:[#allocation2 + $0x30] sm:$0xff] }
 0x592   : > { %v13008_v54 = vmul.f32 %v4570_v36, %v12462_v7  ;;  %v11289_v36 = vpack.c.bf16 %v5764_v61, %v5763_v30  ;;  %v9055_v30 = vld [vmem:[%s13495_s10 + $0x50] sm:$0xff] }
 0x593   : > { %4591 = vst.msk [vmem:[#allocation2 + $0x58] sm:$0xff] %vm797_vm2, %v13005_v32  ;;  %v4618_v31 = vld [vmem:[#allocation2 + $0x3f] sm:$0xff]  ;;  %v4619_v38 = vld [vmem:[#allocation2 + $0x47] sm:$0xff] }
 0x594   : > { %4590 = vst.msk [vmem:[#allocation2 + $0x50] sm:$0xff] %vm797_vm2, %v13008_v54  ;;  %10501 = vmatprep.mubr.msk.f32.mxu1 %vm797_vm2, %v4618_v31  ;;  %10524 = vmatprep.mubr.msk.f32.mxu0 %vm797_vm2, %v4618_v31  ;;  %v4598_v21 = vld [vmem:[#allocation2 + $0x3e] sm:$0xff]  ;;  %v4599_v3 = vld [vmem:[#allocation2 + $0x46] sm:$0xff] }
 0x595   : > { %10502 = vmatmul.mubr.msk.f32.gmra.mrb[40].mxu1 %vm797_vm2, %v4619_v38  ;;  %10525 = vmatmul.mubr.msk.f32.gmra.mrb[52].mxu0 %vm797_vm2, %v4619_v38  ;;  %v5157_v31 = vld [vmem:[#allocation2 + $0x38] sm:$0xff]  ;;  %v5158_v38 = vld [vmem:[#allocation2 + $0x40] sm:$0xff] }
 0x596   : > { %v5458_v6 = vld [vmem:[#allocation2 + $0x41] sm:$0xff] }
 0x597   : > { %v5757_v19 = vld [vmem:[#allocation2 + $0x3a] sm:$0xff]  ;;  %v5758_v40 = vld [vmem:[#allocation2 + $0x42] sm:$0xff] }
 0x59a   : > { %v5161_v60 = vld [vmem:[#allocation2 + $0x58] sm:$0xff] }
 0x59b   : > { %v4620_v37 = vld [vmem:[#allocation2 + $0x4f] sm:$0xff]  ;;  %v4621_v50 = vld [vmem:[#allocation2 + $0x57] sm:$0xff] }
 0x59c   : > { %10504 = vmatprep.mubr.msk.f32.mxu1 %vm797_vm2, %v4620_v37  ;;  %10527 = vmatprep.mubr.msk.f32.mxu0 %vm797_vm2, %v4620_v37  ;;  %v4600_v15 = vld [vmem:[#allocation2 + $0x4e] sm:$0xff]  ;;  %v4601_v16 = vld [vmem:[#allocation2 + $0x56] sm:$0xff] }
 0x59d   : > { %10505 = vmatmul.mubr.msk.f32.gmra.mrb[42].mxu1 %vm797_vm2, %v4621_v50  ;;  %10528 = vmatmul.mubr.msk.f32.gmra.mrb[54].mxu0 %vm797_vm2, %v4621_v50  ;;  %v5159_v37 = vld [vmem:[#allocation2 + $0x48] sm:$0xff]  ;;  %v5160_v50 = vld [vmem:[#allocation2 + $0x50] sm:$0xff] }
 0x59e   : > { %10538 = vmatprep.mubr.msk.f32.mxu1 %vm797_vm2, %v4592_v47  ;;  %10561 = vmatprep.mubr.msk.f32.mxu0 %vm797_vm2, %v4592_v47  ;;  %v5916_v47 = vld [vmem:[#allocation5 + $0x1d8] sm:$0xff] }
 0x59f   : > { %v5459_v2 = vld [vmem:[#allocation2 + $0x49] sm:$0xff] }
 0x5a1   : > { %10539 = vmatmul.mubr.msk.f32.vlgmr.msra.gmra.mrb[34].mxu1 %vm797_vm2, %v4593_v9  ;;  %10562 = vmatmul.mubr.msk.f32.vlgmr.msra.gmra.mrb[46].mxu0 %vm797_vm2, %v4593_v9  ;;  %v11301_v9 = vpack.c.bf16 %v5916_v47, %v5915_v57 }
 0x5a2   : > { %11268 = vmatpush3.bf16.msra.mxu0 %v11265_v59  ;;  %10541 = vmatprep.mubr.msk.f32.mxu1 %vm797_vm2, %v4594_v55  ;;  %v5154_v59 = vld [vmem:[#allocation2 + $0x20] sm:$0xff] }
 0x5a3   : > { %10564 = vmatprep.mubr.msk.f32.mxu0 %vm797_vm2, %v4594_v55  ;;  %11270 = vmatprep.subr.bf16.mxu0 %v11269_v51  ;;  %v5766_v55 = vld [vmem:[#allocation3 + $0x1d8] sm:$0xff] }
 0x5a4   : > { %11260 = vmatpush3.bf16.msra.mxu1 %v11257_v34  ;;  %v5913_v34 = vld [vmem:[#allocation5 + $0x1c0] sm:$0xff]  ;;  %v11293_v62 = vpack.c.bf16 %v5766_v55, %v5765_v8  ;;  %v13139_v55 = vld [vmem:[%s13491_s6 + $0x2] ss:$0 sm:$0xff] }
 0x5a5   : > { %10542 = vmatmul.mubr.msk.f32.gmra.mrb[36].mxu1 %vm797_vm2, %v4595_v0  ;;  %10565 = vmatmul.mubr.msk.f32.gmra.mrb[48].mxu0 %vm797_vm2, %v4595_v0  ;;  %v11297_v25 = vpack.c.bf16 %v5914_v17, %v5913_v34  ;;  %v5456_v0 = vld [vmem:[#allocation2 + $0x31] sm:$0xff]  ;;  %v9053_v34 = vld [vmem:[%s13495_s10 + $0x40] sm:$0xff]  ;;  %v9054_v17 = vld [vmem:[%s13495_s10 + $0x48] sm:$0xff] }
 0x5a6   : > { %10544 = vmatprep.mubr.msk.f32.mxu1 %vm797_vm2, %v4596_v12  ;;  %10567 = vmatprep.mubr.msk.f32.mxu0 %vm797_vm2, %v4596_v12  ;;  %v5460_v12 = vld [vmem:[#allocation2 + $0x51] sm:$0xff] }
 0x5a7   : > { %11272 = vmatpush3.bf16.msra.mxu0 %v11269_v51  ;;  %11262 = vmatprep.subr.bf16.mxu1 %v11261_v63  ;;  %v5452_v51 = vld [vmem:[#allocation2 + $0x11] sm:$0xff] }
 0x5a8   : > { %11264 = vmatpush3.bf16.msra.mxu1 %v11261_v63  ;;  %11282 = vmatprep.subr.bf16.mxu0 %v11281_v1  ;;  %v5455_v63 = vld [vmem:[#allocation2 + $0x29] sm:$0xff] }
 0x5a9   : > { %10545 = vmatmul.mubr.msk.f32.gmra.mrb[38].mxu1 %vm797_vm2, %v4597_v14  ;;  %10568 = vmatmul.mubr.msk.f32.gmra.mrb[50].mxu0 %vm797_vm2, %v4597_v14  ;;  %v5752_v14 = vld [vmem:[#allocation2 + $0x12] sm:$0xff] }
 0x5aa   : > { %10547 = vmatprep.mubr.msk.f32.mxu1 %vm797_vm2, %v4598_v21  ;;  %10570 = vmatprep.mubr.msk.f32.mxu0 %vm797_vm2, %v4598_v21  ;;  %v5753_v21 = vld [vmem:[#allocation2 + $0x1a] sm:$0xff] }
 0x5ab   : > { %11274 = vmatprep.subr.bf16.mxu1 %v11273_v13 }
 0x5ad   : > { %10548 = vmatmul.mubr.msk.f32.gmra.mrb[40].mxu1 %vm797_vm2, %v4599_v3  ;;  %10571 = vmatmul.mubr.msk.f32.gmra.mrb[52].mxu0 %vm797_vm2, %v4599_v3  ;;  %v5754_v3 = vld [vmem:[#allocation2 + $0x22] sm:$0xff] }
 0x5ae   : > { %10550 = vmatprep.mubr.msk.f32.mxu1 %vm797_vm2, %v4600_v15  ;;  %10573 = vmatprep.mubr.msk.f32.mxu0 %vm797_vm2, %v4600_v15  ;;  %v5755_v15 = vld [vmem:[#allocation2 + $0x2a] sm:$0xff] }
 0x5b1   : > { %10551 = vmatmul.mubr.msk.f32.gmra.mrb[42].mxu1 %vm797_vm2, %v4601_v16  ;;  %10574 = vmatmul.mubr.msk.f32.gmra.mrb[54].mxu0 %vm797_vm2, %v4601_v16  ;;  %v5756_v16 = vld [vmem:[#allocation2 + $0x32] sm:$0xff] }
 0x5b2   : > { %10584 = vmatprep.mubr.msk.f32.mxu1 %vm797_vm2, %v5152_v11  ;;  %10607 = vmatprep.mubr.msk.f32.mxu0 %vm797_vm2, %v5152_v11  ;;  %v5759_v11 = vld [vmem:[#allocation2 + $0x4a] sm:$0xff] }
 0x5b5   : > { %10585 = vmatmul.mubr.msk.f32.vlgmr.msra.gmra.mrb[34].mxu1 %vm797_vm2, %v5153_v23  ;;  %10608 = vmatmul.mubr.msk.f32.vlgmr.msra.gmra.mrb[46].mxu0 %vm797_vm2, %v5153_v23  ;;  %v5761_v23 = vld [vmem:[#allocation2 + $0x5a] sm:$0xff] }
 0x5b6   : > { %11284 = vmatpush3.bf16.msra.mxu0 %v11281_v1  ;;  %10587 = vmatprep.mubr.msk.f32.mxu1 %vm797_vm2, %v5154_v59  ;;  %v5457_v1 = vld [vmem:[#allocation2 + $0x39] sm:$0xff] }
 0x5b7   : > { %10610 = vmatprep.mubr.msk.f32.mxu0 %vm797_vm2, %v5154_v59  ;;  %11286 = vmatprep.subr.bf16.mxu0 %v11285_v22  ;;  %v11313_v59 = vpack.c.bf16 %v9070_v33, %v9069_v24 }
 0x5b8   : > { %11276 = vmatpush3.bf16.msra.mxu1 %v11273_v13  ;;  %v5461_v13 = vld [vmem:[#allocation2 + $0x59] sm:$0xff] }
 0x5b9   : > { %10588 = vmatmul.mubr.msk.f32.gmra.mrb[36].mxu1 %vm797_vm2, %v5155_v27  ;;  %10611 = vmatmul.mubr.msk.f32.gmra.mrb[48].mxu0 %vm797_vm2, %v5155_v27  ;;  %v9071_v27 = vld [vmem:[%s13493_s8 + $0x50] sm:$0xff] }
 0x5ba   : > { %10590 = vmatprep.mubr.msk.f32.mxu1 %vm797_vm2, %v5156_v35  ;;  %10613 = vmatprep.mubr.msk.f32.mxu0 %vm797_vm2, %v5156_v35  ;;  %v9056_v35 = vld [vmem:[%s13495_s10 + $0x58] sm:$0xff] }
 0x5bb   : > { %11288 = vmatpush3.bf16.msra.mxu0 %v11285_v22  ;;  %11278 = vmatprep.subr.bf16.mxu1 %v11277_v26  ;;  %v5760_v22 = vld [vmem:[#allocation2 + $0x52] sm:$0xff] }
 0x5bc   : > { %11280 = vmatpush3.bf16.msra.mxu1 %v11277_v26  ;;  %11298 = vmatprep.subr.bf16.mxu0 %v11297_v25  ;;  %v11305_v26 = vpack.c.bf16 %v9054_v17, %v9053_v34 }
 0x5bd   : > { %10591 = vmatmul.mubr.msk.f32.gmra.mrb[38].mxu1 %vm797_vm2, %v5157_v31  ;;  %10614 = vmatmul.mubr.msk.f32.gmra.mrb[50].mxu0 %vm797_vm2, %v5157_v31  ;;  %v6671_v31 = vld [vmem:[#allocation5 + $0x200] sm:$0xff] }
 0x5be   : > { %10593 = vmatprep.mubr.msk.f32.mxu1 %vm797_vm2, %v5158_v38  ;;  %10616 = vmatprep.mubr.msk.f32.mxu0 %vm797_vm2, %v5158_v38  ;;  %v6672_v38 = vld [vmem:[#allocation5 + $0x208] sm:$0xff] }
 0x5bf   : > { %11290 = vmatprep.subr.bf16.mxu1 %v11289_v36 }
 0x5c1   : > { %10594 = vmatmul.mubr.msk.f32.gmra.mrb[40].mxu1 %vm797_vm2, %v5159_v37  ;;  %10617 = vmatmul.mubr.msk.f32.gmra.mrb[52].mxu0 %vm797_vm2, %v5159_v37  ;;  %v13126_v37 = vpack.c.bf16 %v6672_v38, %v6671_v31 }
 0x5c2   : > { %10596 = vmatprep.mubr.msk.f32.mxu1 %vm797_vm2, %v5160_v50  ;;  %10619 = vmatprep.mubr.msk.f32.mxu0 %vm797_vm2, %v5160_v50  ;;  %v13132_v50 = vld [vmem:[%s13492_s7 + $0x2] ss:$0 sm:$0xff] }
 0x5c5   : > { %10597 = vmatmul.mubr.msk.f32.gmra.mrb[42].mxu1 %vm797_vm2, %v5161_v60  ;;  %10620 = vmatmul.mubr.msk.f32.gmra.mrb[54].mxu0 %vm797_vm2, %v5161_v60 }
 0x5c6   : > { %10630 = vmatprep.mubr.msk.f32.mxu1 %vm797_vm2, %v5452_v51  ;;  %10653 = vmatprep.mubr.msk.f32.mxu0 %vm797_vm2, %v5452_v51 }
 0x5c9   : > { %10631 = vmatmul.mubr.msk.f32.vlgmr.msra.gmra.mrb[34].mxu1 %vm797_vm2, %v5453_v53  ;;  %10654 = vmatmul.mubr.msk.f32.vlgmr.msra.gmra.mrb[46].mxu0 %vm797_vm2, %v5453_v53 }
 0x5ca   : > { %11300 = vmatpush3.bf16.msra.mxu0 %v11297_v25  ;;  %10633 = vmatprep.mubr.msk.f32.mxu1 %vm797_vm2, %v5454_v39  ;;  %v9072_v25 = vld [vmem:[%s13493_s8 + $0x58] sm:$0xff] }
 0x5cb   : > { %10656 = vmatprep.mubr.msk.f32.mxu0 %vm797_vm2, %v5454_v39  ;;  %11302 = vmatprep.subr.bf16.mxu0 %v11301_v9  ;;  %v11317_v61 = vpack.c.bf16 %v9072_v25, %v9071_v27 }
 0x5cc   : > { %11292 = vmatpush3.bf16.msra.mxu1 %v11289_v36  ;;  %v11309_v36 = vpack.c.bf16 %v9056_v35, %v9055_v30 }
 0x5cd   : > { %10634 = vmatmul.mubr.msk.f32.gmra.mrb[36].mxu1 %vm797_vm2, %v5455_v63  ;;  %10657 = vmatmul.mubr.msk.f32.gmra.mrb[48].mxu0 %vm797_vm2, %v5455_v63 }
 0x5ce   : > { %10636 = vmatprep.mubr.msk.f32.mxu1 %vm797_vm2, %v5456_v0  ;;  %10659 = vmatprep.mubr.msk.f32.mxu0 %vm797_vm2, %v5456_v0 }
 0x5cf   : > { %11304 = vmatpush3.bf16.msra.mxu0 %v11301_v9  ;;  %11294 = vmatprep.subr.bf16.mxu1 %v11293_v62 }
 0x5d0   : > { %11296 = vmatpush3.bf16.msra.mxu1 %v11293_v62  ;;  %11314 = vmatprep.subr.bf16.mxu0 %v11313_v59 }
 0x5d1   : > { %10637 = vmatmul.mubr.msk.f32.gmra.mrb[38].mxu1 %vm797_vm2, %v5457_v1  ;;  %10660 = vmatmul.mubr.msk.f32.gmra.mrb[50].mxu0 %vm797_vm2, %v5457_v1 }
 0x5d2   : > { %10639 = vmatprep.mubr.msk.f32.mxu1 %vm797_vm2, %v5458_v6  ;;  %10662 = vmatprep.mubr.msk.f32.mxu0 %vm797_vm2, %v5458_v6 }
 0x5d3   : > { %11306 = vmatprep.subr.bf16.mxu1 %v11305_v26 }
 0x5d5   : > { %10640 = vmatmul.mubr.msk.f32.gmra.mrb[40].mxu1 %vm797_vm2, %v5459_v2  ;;  %10663 = vmatmul.mubr.msk.f32.gmra.mrb[52].mxu0 %vm797_vm2, %v5459_v2 }
 0x5d6   : > { %10642 = vmatprep.mubr.msk.f32.mxu1 %vm797_vm2, %v5460_v12  ;;  %10665 = vmatprep.mubr.msk.f32.mxu0 %vm797_vm2, %v5460_v12 }
 0x5d9   : > { %10643 = vmatmul.mubr.msk.f32.gmra.mrb[42].mxu1 %vm797_vm2, %v5461_v13  ;;  %10666 = vmatmul.mubr.msk.f32.gmra.mrb[54].mxu0 %vm797_vm2, %v5461_v13 }
 0x5da   : > { %10676 = vmatprep.mubr.msk.f32.mxu1 %vm797_vm2, %v5752_v14  ;;  %10699 = vmatprep.mubr.msk.f32.mxu0 %vm797_vm2, %v5752_v14 }
 0x5dd   : > { %10677 = vmatmul.mubr.msk.f32.vlgmr.msra.gmra.mrb[34].mxu1 %vm797_vm2, %v5753_v21  ;;  %10700 = vmatmul.mubr.msk.f32.vlgmr.msra.gmra.mrb[46].mxu0 %vm797_vm2, %v5753_v21 }
 0x5de   : > { %10679 = vmatprep.mubr.msk.f32.mxu1 %vm797_vm2, %v5754_v3  ;;  %10702 = vmatprep.mubr.msk.f32.mxu0 %vm797_vm2, %v5754_v3 }
 0x5df   : > { %11316 = vmatpush3.bf16.msra.mxu0 %v11313_v59  ;;  %11308 = vmatpush3.bf16.msra.mxu1 %v11305_v26 }
 0x5e0   : > { %11318 = vmatprep.subr.bf16.mxu0 %v11317_v61  ;;  %11310 = vmatprep.subr.bf16.mxu1 %v11309_v36 }
 0x5e1   : > { %10680 = vmatmul.mubr.msk.f32.gmra.mrb[36].mxu1 %vm797_vm2, %v5755_v15  ;;  %10703 = vmatmul.mubr.msk.f32.gmra.mrb[48].mxu0 %vm797_vm2, %v5755_v15 }
 0x5e2   : > { %10682 = vmatprep.mubr.msk.f32.mxu1 %vm797_vm2, %v5756_v16  ;;  %10705 = vmatprep.mubr.msk.f32.mxu0 %vm797_vm2, %v5756_v16 }
 0x5e3   : > { %11320 = vmatpush3.bf16.msra.mxu0 %v11317_v61  ;;  %11312 = vmatpush3.bf16.msra.mxu1 %v11309_v36 }
 0x5e4   : > { %11330 = vmatprep.subr.bf16.mxu0 %v13126_v37 }
 0x5e5   : > { %10683 = vmatmul.mubr.msk.f32.gmra.mrb[38].mxu1 %vm797_vm2, %v5757_v19  ;;  %10706 = vmatmul.mubr.msk.f32.gmra.mrb[50].mxu0 %vm797_vm2, %v5757_v19 }
 0x5e6   : > { %10685 = vmatprep.mubr.msk.f32.mxu1 %vm797_vm2, %v5758_v40  ;;  %10708 = vmatprep.mubr.msk.f32.mxu0 %vm797_vm2, %v5758_v40 }
 0x5e9   : > { %10686 = vmatmul.mubr.msk.f32.gmra.mrb[40].mxu1 %vm797_vm2, %v5759_v11  ;;  %10709 = vmatmul.mubr.msk.f32.gmra.mrb[52].mxu0 %vm797_vm2, %v5759_v11 }
 0x5ea   : > { %10688 = vmatprep.mubr.msk.f32.mxu1 %vm797_vm2, %v5760_v22  ;;  %10711 = vmatprep.mubr.msk.f32.mxu0 %vm797_vm2, %v5760_v22 }
 0x5ed   : > { %10689 = vmatmul.mubr.msk.f32.gmra.mrb[42].mxu1 %vm797_vm2, %v5761_v23  ;;  %10712 = vmatmul.mubr.msk.f32.gmra.mrb[54].mxu0 %vm797_vm2, %v5761_v23 }
 0x6b0   : > { %v10678_v60 = vpop.f32.mrb[34].mxu1  ;;  %v10701_v57 = vpop.f32.mrb[46].mxu0 }
 0x6b1   : > { %v6089_v47 = vadd.f32 %v10701_v57, %v13132_v50  ;;  %v5863_v51 = vpop.f32.mrb[35].mxu1  ;;  %v5983_v9 = vpop.f32.mrb[47].mxu0  ;;  %v6061_v12 = vadd.f32 %v10678_v60, %v13139_v55 }
 0x6b2   : > { %v6088_v53 = vadd.f32 %v13132_v50, %v5983_v9  ;;  %v6060_v14 = vadd.f32 %v13139_v55, %v5863_v51 }
 0x6b3   : > { %v9044_v8 = vmul.f32 -1.442695, %v6089_v47 }
 0x6b4   : > { %v9043_v39 = vmul.f32 -1.442695, %v6088_v53  ;;  %v10681_v62 = vpop.f32.mrb[36].mxu1  ;;  %v10704_v63 = vpop.f32.mrb[48].mxu0 }
 0x6b5   : > { %11975 = vpow2.f32 %v9044_v8  ;;  %v6091_v0 = vadd.f32 %v10704_v63, %v13132_v50  ;;  %v5873_v1 = vpop.f32.mrb[37].mxu1  ;;  %v5993_v6 = vpop.f32.mrb[49].mxu0  ;;  %v6063_v22 = vadd.f32 %v10681_v62, %v13139_v55 }
 0x6b6   : > { %11977 = vpow2.f32 %v9043_v39  ;;  %v6090_v2 = vadd.f32 %v13132_v50, %v5993_v6  ;;  %v6062_v24 = vadd.f32 %v13139_v55, %v5873_v1 }
 0x6b7   : > { %v9046_v13 = vmul.f32 -1.442695, %v6091_v0 }
 0x6b8   : > { %v9045_v21 = vmul.f32 -1.442695, %v6090_v2  ;;  %v10684_v3 = vpop.f32.mrb[38].mxu1  ;;  %v10707_v15 = vpop.f32.mrb[50].mxu0 }
 0x6b9   : > { %11979 = vpow2.f32 %v9046_v13  ;;  %v6093_v16 = vadd.f32 %v10707_v15, %v13132_v50  ;;  %v5883_v19 = vpop.f32.mrb[39].mxu1  ;;  %v6003_v40 = vpop.f32.mrb[51].mxu0  ;;  %v6065_v47 = vadd.f32 %v10684_v3, %v13139_v55 }
 0x6ba   : > { %11981 = vpow2.f32 %v9045_v21  ;;  %v6092_v11 = vadd.f32 %v13132_v50, %v6003_v40  ;;  %v6064_v2 = vadd.f32 %v13139_v55, %v5883_v19 }
 0x6bb   : > { %11983 = vtanh.f32 %v6061_v12  ;;  %v9048_v23 = vmul.f32 -1.442695, %v6093_v16 }
 0x6bc   : > { %11985 = vtanh.f32 %v6060_v14  ;;  %v9047_v33 = vmul.f32 -1.442695, %v6092_v11  ;;  %v10687_v59 = vpop.f32.mrb[40].mxu1  ;;  %v10710_v34 = vpop.f32.mrb[52].mxu0 }
 0x6bd   : > { %11987 = vpow2.f32 %v9048_v23  ;;  %v6095_v17 = vadd.f32 %v10710_v34, %v13132_v50  ;;  %v5893_v26 = vpop.f32.mrb[41].mxu1  ;;  %v6013_v27 = vpop.f32.mrb[53].mxu0  ;;  %v6067_v40 = vadd.f32 %v10687_v59, %v13139_v55 }
 0x6be   : > { %11989 = vpow2.f32 %v9047_v33  ;;  %v6094_v25 = vadd.f32 %v13132_v50, %v6013_v27  ;;  %v6066_v19 = vadd.f32 %v13139_v55, %v5893_v26 }
 0x6bf   : > { %v11976_v30 = vpop.eup %11975  ;;  %11991 = vtanh.f32 %v6063_v22  ;;  %v9050_v61 = vmul.f32 -1.442695, %v6095_v17 }
 0x6c0   : > { %v11978_v35 = vpop.eup %11977  ;;  %v6129_v36 = vadd.f32 1.0, %v11976_v30  ;;  %11993 = vtanh.f32 %v6062_v24  ;;  %v9049_v31 = vmul.f32 -1.442695, %v6094_v25  ;;  %v10690_v38 = vpop.f32.mrb[42].mxu1 }
 0x6c1   : > { %v10713_v60 = vpop.f32.mrb[54].mxu0  ;;  %v6128_v57 = vadd.f32 1.0, %v11978_v35  ;;  %11995 = vpow2.f32 %v9050_v61  ;;  %v5903_v9 = vpop.f32.mrb[43].mxu1  ;;  %v6069_v59 = vadd.f32 %v10690_v38, %v13139_v55 }
 0x6c2   : > { %v6097_v51 = vadd.f32 %v10713_v60, %v13132_v50  ;;  %v6023_v53 = vpop.f32.mrb[55].mxu0  ;;  %11997 = vrcp.f32 %v6129_v36  ;;  %v6068_v38 = vadd.f32 %v13139_v55, %v5903_v9 }
 0x6c3   : > { %v11980_v8 = vpop.eup %11979  ;;  %11999 = vrcp.f32 %v6128_v57  ;;  %v6096_v0 = vadd.f32 %v13132_v50, %v6023_v53 }
 0x6c4   : > { %v11982_v39 = vpop.eup %11981  ;;  %v6131_v62 = vadd.f32 1.0, %v11980_v8  ;;  %12001 = vpow2.f32 %v9049_v31  ;;  %v9052_v63 = vmul.f32 -1.442695, %v6097_v51 }
 0x6c5   : > { %v11984_v1 = vpop.eup %11983  ;;  %v6130_v6 = vadd.f32 1.0, %v11982_v39  ;;  %12003 = vtanh.f32 %v6065_v47  ;;  %v9051_v3 = vmul.f32 -1.442695, %v6096_v0 }
 0x6c6   : > { %v11986_v12 = vpop.eup %11985  ;;  %12005 = vrcp.f32 %v6131_v62 }
 0x6c7   : > { %v11988_v13 = vpop.eup %11987  ;;  %12007 = vrcp.f32 %v6130_v6 }
 0x6c8   : > { %v11990_v14 = vpop.eup %11989  ;;  %v6133_v21 = vadd.f32 1.0, %v11988_v13  ;;  %12009 = vpow2.f32 %v9052_v63 }
 0x6c9   : > { %v11992_v15 = vpop.eup %11991  ;;  %12011 = vtanh.f32 %v6064_v2  ;;  %v6132_v16 = vadd.f32 1.0, %v11990_v14 }
 0x6ca   : > { %v11994_v11 = vpop.eup %11993  ;;  %12013 = vrcp.f32 %v6133_v21  ;;  %v6673_v21 = vld [vmem:[#allocation5 + $0x210] sm:$0xff] }
 0x6cb   : > { %v11996_v50 = vpop.eup %11995  ;;  %12015 = vrcp.f32 %v6132_v16 }
 0x6cc   : > { %v11998_v22 = vpop.eup %11997  ;;  %v6135_v23 = vadd.f32 1.0, %v11996_v50  ;;  %12017 = vpow2.f32 %v9051_v3  ;;  %v6674_v3 = vld [vmem:[#allocation5 + $0x218] sm:$0xff]  ;;  %v6523_v50 = vld [vmem:[#allocation3 + $0x210] sm:$0xff] }
 0x6cd   : > { %v12000_v24 = vpop.eup %11999  ;;  %v6159_v33 = vmul.f32 %v11998_v22, %v11984_v1  ;;  %12019 = vtanh.f32 %v6067_v40  ;;  %v11333_v16 = vpack.c.bf16 %v6674_v3, %v6673_v21  ;;  %v6522_v40 = vld [vmem:[#allocation3 + $0x208] sm:$0xff]  ;;  %v6524_v22 = vld [vmem:[#allocation3 + $0x218] sm:$0xff] }
 0x6ce   : > { %v12002_v34 = vpop.eup %12001  ;;  %12021 = vrcp.f32 %v6135_v23  ;;  %v6158_v17 = vmul.f32 %v12000_v24, %v11986_v12  ;;  %v11325_v23 = vpack.c.bf16 %v6524_v22, %v6523_v50  ;;  %v6507_v24 = vld [vmem:[#allocation5 + $0x1e8] sm:$0xff] }
 0x6cf   : > { %v12004_v27 = vpop.eup %12003  ;;  %v6134_v25 = vadd.f32 1.0, %v12002_v34  ;;  %12023 = vtanh.f32 %v6066_v19  ;;  %v6506_v19 = vld [vmem:[#allocation5 + $0x1e0] sm:$0xff]  ;;  %v7062_v21 = vld [vmem:[#allocation3 + $0x228] sm:$0xff] }
 0x6d0   : > { %v12006_v30 = vpop.eup %12005  ;;  %10722 = vmatprep.mubr.msk.f32.mxu1 %vm797_vm2, %v6158_v17  ;;  %10745 = vmatprep.mubr.msk.f32.mxu0 %vm797_vm2, %v6158_v17  ;;  %v6501_v34 = vld [vmem:[#allocation3 + $0x1e0] sm:$0xff]  ;;  %v6502_v17 = vld [vmem:[#allocation3 + $0x1e8] sm:$0xff] }
 0x6d1   : > { %v12008_v61 = vpop.eup %12007  ;;  %12025 = vrcp.f32 %v6134_v25  ;;  %10723 = vmatmul.mubr.msk.f32.vlgmr.msra.gmra.mrb[14].mxu1 %vm797_vm2, %v6159_v33  ;;  %10746 = vmatmul.mubr.msk.f32.vlgmr.msra.gmra.mrb[56].mxu0 %vm797_vm2, %v6159_v33  ;;  %v6161_v26 = vmul.f32 %v12006_v30, %v11992_v15  ;;  %v6521_v15 = vld [vmem:[#allocation3 + $0x200] sm:$0xff]  ;;  %v11345_v33 = vpack.c.bf16 %v6507_v24, %v6506_v19  ;;  %v13183_v25 = vld [vmem:[%s13494_s9 + $0x2] ss:$0 sm:$0xff] }
 0x6d2   : > { %v12010_v35 = vpop.eup %12009  ;;  %v6160_v36 = vmul.f32 %v12008_v61, %v11994_v11  ;;  %11332 = vmatpush3.bf16.msra.mxu0 %v13126_v37  ;;  %12027 = vtanh.f32 %v6069_v59  ;;  %v11321_v11 = vpack.c.bf16 %v6522_v40, %v6521_v15 }
 0x6d3   : > { %v12012_v31 = vpop.eup %12011  ;;  %v6137_v60 = vadd.f32 1.0, %v12010_v35  ;;  %11334 = vmatprep.subr.bf16.mxu0 %v11333_v16 }
 0x6d4   : > { %v12014_v57 = vpop.eup %12013  ;;  %10725 = vmatprep.mubr.msk.f32.mxu1 %vm797_vm2, %v6160_v36  ;;  %10748 = vmatprep.mubr.msk.f32.mxu0 %vm797_vm2, %v6160_v36 }
 0x6d5   : > { %v12016_v47 = vpop.eup %12015  ;;  %12029 = vrcp.f32 %v6137_v60  ;;  %10726 = vmatmul.mubr.msk.f32.gmra.mrb[16].mxu1 %vm797_vm2, %v6161_v26  ;;  %10749 = vmatmul.mubr.msk.f32.gmra.mrb[58].mxu0 %vm797_vm2, %v6161_v26  ;;  %v6163_v51 = vmul.f32 %v12014_v57, %v12004_v27  ;;  %v11337_v27 = vpack.c.bf16 %v6502_v17, %v6501_v34 }
 0x6d6   : > { %v12018_v53 = vpop.eup %12017  ;;  %v6162_v8 = vmul.f32 %v12016_v47, %v12012_v31  ;;  %12031 = vtanh.f32 %v6068_v38  ;;  %11336 = vmatpush3.bf16.msra.mxu0 %v11333_v16  ;;  %11322 = vmatprep.subr.bf16.mxu1 %v11321_v11 }
 0x6d7   : > { %v12020_v37 = vpop.eup %12019  ;;  %v6136_v39 = vadd.f32 1.0, %v12018_v53  ;;  %11324 = vmatpush3.bf16.msra.mxu1 %v11321_v11  ;;  %11346 = vmatprep.subr.bf16.mxu0 %v11345_v33 }
 0x6d8   : > { %v12022_v62 = vpop.eup %12021  ;;  %10728 = vmatprep.mubr.msk.f32.mxu1 %vm797_vm2, %v6162_v8  ;;  %10751 = vmatprep.mubr.msk.f32.mxu0 %vm797_vm2, %v6162_v8 }
 0x6d9   : > { %12033 = vrcp.f32 %v6136_v39  ;;  %10729 = vmatmul.mubr.msk.f32.gmra.mrb[18].mxu1 %vm797_vm2, %v6163_v51  ;;  %10752 = vmatmul.mubr.msk.f32.gmra.mrb[60].mxu0 %vm797_vm2, %v6163_v51  ;;  %v6165_v55 = vmul.f32 %v12022_v62, %v12020_v37  ;;  %v12024_v9 = vpop.eup %12023 }
 0x6da   : > { %11326 = vmatprep.subr.bf16.mxu1 %v11325_v23 }
 0x6db   : > { %v12026_v63 = vpop.eup %12025  ;;  %11328 = vmatpush3.bf16.msra.mxu1 %v11325_v23 }
 0x6dc   : > { %v6164_v0 = vmul.f32 %v12026_v63, %v12024_v9  ;;  %v12028_v1 = vpop.eup %12027  ;;  %11338 = vmatprep.subr.bf16.mxu1 %v11337_v27  ;;  %v6503_v9 = vld [vmem:[#allocation3 + $0x1f0] sm:$0xff]  ;;  %v6504_v63 = vld [vmem:[#allocation3 + $0x1f8] sm:$0xff] }
 0x6de   : > { %10731 = vmatprep.mubr.msk.f32.mxu1 %vm797_vm2, %v6164_v0  ;;  %10754 = vmatprep.mubr.msk.f32.mxu0 %vm797_vm2, %v6164_v0 }
 0x6df   : > { %v12030_v6 = vpop.eup %12029  ;;  %10732 = vmatmul.mubr.msk.f32.gmra.mrb[20].mxu1 %vm797_vm2, %v6165_v55  ;;  %10755 = vmatmul.mubr.msk.f32.gmra.mrb[62].mxu0 %vm797_vm2, %v6165_v55  ;;  %v6508_v55 = vld [vmem:[#allocation5 + $0x1f0] sm:$0xff] }
 0x6e0   : > { %v6167_v2 = vmul.f32 %v12030_v6, %v12028_v1  ;;  %v12032_v12 = vpop.eup %12031 }
 0x6e3   : > { %v12034_v13 = vpop.eup %12033 }
 0x6e4   : > { %v6166_v14 = vmul.f32 %v12034_v13, %v12032_v12  ;;  %v11341_v13 = vpack.c.bf16 %v6504_v63, %v6503_v9 }
 0x6e6   : > { %10734 = vmatprep.mubr.msk.f32.mxu1 %vm797_vm2, %v6166_v14  ;;  %10757 = vmatprep.mubr.msk.f32.mxu0 %vm797_vm2, %v6166_v14  ;;  %v7211_v14 = vld [vmem:[#allocation5 + $0x220] sm:$0xff] }
 0x6e7   : > { %10735 = vmatmul.mubr.msk.f32.gmra.mrb[22].mxu1 %vm797_vm2, %v6167_v2  ;;  %10758 = vmatmul.mubr.msk.f32.gmra.mrb[64].mxu0 %vm797_vm2, %v6167_v2 }
 0x7a4   : > { %v10747_v30 = vpop.f32.mrb[56].mxu0 }
 0x7a5   : > { %v6417_v59 = vadd.f32 %v10747_v30, %v13183_v25  ;;  %v6411_v61 = vpop.f32.mrb[57].mxu0 }
 0x7a6   : > { %v6412_v26 = vadd.f32 %v13183_v25, %v6411_v61 }
 0x7a7   : > { %v6461_v35 = vadd.f32 %v6417_v59, %v12937_v52 }
 0x7a8   : > { %v6460_v36 = vadd.f32 %v6412_v26, %v12941_v58  ;;  %v10750_v31 = vpop.f32.mrb[58].mxu0 }
 0x7a9   : > { %v6471_v60 = vmul.f32 %v6461_v35, %v12425_v43  ;;  %v6427_v57 = vadd.f32 %v10750_v31, %v13183_v25  ;;  %v6421_v38 = vpop.f32.mrb[59].mxu0  ;;  %v7063_v35 = vld [vmem:[#allocation3 + $0x230] sm:$0xff] }
 0x7aa   : > { %v6470_v47 = vmul.f32 %v6460_v36, %v12421_v41  ;;  %v6422_v51 = vadd.f32 %v13183_v25, %v6421_v38  ;;  %v7064_v36 = vld [vmem:[#allocation3 + $0x238] sm:$0xff] }
 0x7ab   : > { %6481 = vst.msk [vmem:[#allocation2 + $0x18] sm:$0xff] %vm797_vm2, %v6471_v60  ;;  %v6463_v53 = vadd.f32 %v6427_v57, %v12951_v56  ;;  %v7511_v60 = vld [vmem:[#allocation5 + $0x240] sm:$0xff]  ;;  %v7512_v57 = vld [vmem:[#allocation5 + $0x248] sm:$0xff]  ;;  %v11357_v38 = vpack.c.bf16 %v7064_v36, %v7063_v35 }
 0x7ac   : > { %6480 = vst.msk [vmem:[#allocation2 + $0x10] sm:$0xff] %vm797_vm2, %v6470_v47  ;;  %v6462_v52 = vadd.f32 %v6422_v51, %v12955_v10  ;;  %v10753_v8 = vpop.f32.mrb[60].mxu0  ;;  %v6509_v10 = vld [vmem:[#allocation5 + $0x1f8] sm:$0xff]  ;;  %v11377_v51 = vpack.c.bf16 %v7512_v57, %v7511_v60 }
 0x7ad   : > { %v6473_v58 = vmul.f32 %v6463_v53, %v12427_v44  ;;  %v6437_v43 = vadd.f32 %v10753_v8, %v13183_v25  ;;  %v6431_v37 = vpop.f32.mrb[61].mxu0  ;;  %v11349_v12 = vpack.c.bf16 %v6509_v10, %v6508_v55  ;;  %v7361_v53 = vld [vmem:[#allocation3 + $0x240] sm:$0xff]  ;;  %v7513_v55 = vld [vmem:[#allocation5 + $0x250] sm:$0xff]  ;;  %v9200_v60 = vld [vmem:[%s13495_s10 + $0x68] sm:$0xff] }
 0x7ae   : > { %v6472_v39 = vmul.f32 %v6462_v52, %v12423_v42  ;;  %v6432_v41 = vadd.f32 %v13183_v25, %v6431_v37  ;;  %v7362_v52 = vld [vmem:[#allocation3 + $0x248] sm:$0xff] }
 0x7af   : > { %6483 = vst.msk [vmem:[#allocation2 + $0x28] sm:$0xff] %vm797_vm2, %v6473_v58  ;;  %v6465_v62 = vadd.f32 %v6437_v43, %v12965_v5  ;;  %v11369_v58 = vpack.c.bf16 %v7362_v52, %v7361_v53  ;;  %v8278_v53 = vld [vmem:[%s13497_s12] sm:$0xff]  ;;  %v8279_v52 = vld [vmem:[%s13497_s12 + $0x8] sm:$0xff] }
 0x7b0   : > { %6482 = vst.msk [vmem:[#allocation2 + $0x20] sm:$0xff] %vm797_vm2, %v6472_v39  ;;  %v6464_v56 = vadd.f32 %v6432_v41, %v12968_v20 }
 0x7b1   : > { %v6475_v44 = vmul.f32 %v6465_v62, %v12431_v46  ;;  %v7061_v46 = vld [vmem:[#allocation3 + $0x220] sm:$0xff] }
 0x7b2   : > { %v6474_v0 = vmul.f32 %v6464_v56, %v12429_v45  ;;  %v10756_v1 = vpop.f32.mrb[62].mxu0  ;;  %v7212_v45 = vld [vmem:[#allocation5 + $0x228] sm:$0xff]  ;;  %v11353_v22 = vpack.c.bf16 %v7062_v21, %v7061_v46  ;;  %v7514_v56 = vld [vmem:[#allocation5 + $0x258] sm:$0xff] }
 0x7b3   : > { %6485 = vst.msk [vmem:[#allocation2 + $0x38] sm:$0xff] %vm797_vm2, %v6475_v44  ;;  %v6447_v42 = vadd.f32 %v10756_v1, %v13183_v25  ;;  %v6441_v6 = vpop.f32.mrb[63].mxu0  ;;  %v6510_v2 = vld [vmem:[#allocation2 + $0xf] sm:$0xff]  ;;  %v6511_v5 = vld [vmem:[#allocation2 + $0x17] sm:$0xff]  ;;  %v11361_v50 = vpack.c.bf16 %v7212_v45, %v7211_v14  ;;  %v11381_v9 = vpack.c.bf16 %v7514_v56, %v7513_v55  ;;  %v7363_v44 = vld [vmem:[#allocation3 + $0x250] sm:$0xff] }
 0x7b4   : > { %6484 = vst.msk [vmem:[#allocation2 + $0x30] sm:$0xff] %vm797_vm2, %v6474_v0  ;;  %v6442_v20 = vadd.f32 %v13183_v25, %v6441_v6  ;;  %10768 = vmatprep.mubr.msk.f32.mxu1 %vm797_vm2, %v6510_v2  ;;  %10791 = vmatprep.mubr.msk.f32.mxu0 %vm797_vm2, %v6510_v2  ;;  %v6490_v59 = vld [vmem:[#allocation2 + $0xe] sm:$0xff]  ;;  %v6491_v26 = vld [vmem:[#allocation2 + $0x16] sm:$0xff] }
 0x7b5   : > { %v6467_v3 = vadd.f32 %v6447_v42, %v12983_v18  ;;  %10769 = vmatmul.mubr.msk.f32.vlgmr.msra.gmra.mrb[44].mxu1 %vm797_vm2, %v6511_v5  ;;  %10792 = vmatmul.mubr.msk.f32.vlgmr.msra.gmra.mrb[66].mxu0 %vm797_vm2, %v6511_v5  ;;  %v7050_v10 = vld [vmem:[#allocation2 + $0x10] sm:$0xff]  ;;  %v7051_v63 = vld [vmem:[#allocation2 + $0x18] sm:$0xff]  ;;  %v7364_v0 = vld [vmem:[#allocation3 + $0x258] sm:$0xff] }
 0x7b6   : > { %v6466_v15 = vadd.f32 %v6442_v20, %v12986_v29  ;;  %11348 = vmatpush3.bf16.msra.mxu0 %v11345_v33  ;;  %11340 = vmatpush3.bf16.msra.mxu1 %v11337_v27  ;;  %v7811_v42 = vld [vmem:[#allocation5 + $0x260] sm:$0xff]  ;;  %v7812_v6 = vld [vmem:[#allocation5 + $0x268] sm:$0xff]  ;;  %v11373_v2 = vpack.c.bf16 %v7364_v0, %v7363_v44  ;;  %v7053_v5 = vld [vmem:[#allocation2 + $0x28] sm:$0xff] }
 0x7b7   : > { %v6477_v16 = vmul.f32 %v6467_v3, %v12438_v49  ;;  %v6512_v40 = vld [vmem:[#allocation2 + $0x1f] sm:$0xff]  ;;  %v6513_v11 = vld [vmem:[#allocation2 + $0x27] sm:$0xff]  ;;  %11350 = vmatprep.subr.bf16.mxu0 %v11349_v12  ;;  %11342 = vmatprep.subr.bf16.mxu1 %v11341_v13 }
 0x7b8   : > { %v6476_v23 = vmul.f32 %v6466_v15, %v12436_v48  ;;  %10771 = vmatprep.mubr.msk.f32.mxu1 %vm797_vm2, %v6512_v40  ;;  %10794 = vmatprep.mubr.msk.f32.mxu0 %vm797_vm2, %v6512_v40  ;;  %v6492_v31 = vld [vmem:[#allocation2 + $0x1e] sm:$0xff]  ;;  %v6493_v47 = vld [vmem:[#allocation2 + $0x26] sm:$0xff] }
 0x7b9   : > { %6487 = vst.msk [vmem:[#allocation2 + $0x48] sm:$0xff] %vm797_vm2, %v6477_v16  ;;  %10772 = vmatmul.mubr.msk.f32.gmra.mrb[46].mxu1 %vm797_vm2, %v6513_v11  ;;  %10795 = vmatmul.mubr.msk.f32.gmra.mrb[68].mxu0 %vm797_vm2, %v6513_v11  ;;  %v7052_v1 = vld [vmem:[#allocation2 + $0x20] sm:$0xff]  ;;  %v7662_v14 = vld [vmem:[#allocation3 + $0x268] sm:$0xff]  ;;  %v7814_v11 = vld [vmem:[#allocation5 + $0x278] sm:$0xff] }
 0x7ba   : > { %6486 = vst.msk [vmem:[#allocation2 + $0x40] sm:$0xff] %vm797_vm2, %v6476_v23  ;;  %v10759_v49 = vpop.f32.mrb[64].mxu0  ;;  %11352 = vmatpush3.bf16.msra.mxu0 %v11349_v12  ;;  %11344 = vmatpush3.bf16.msra.mxu1 %v11341_v13  ;;  %v11393_v12 = vpack.c.bf16 %v7812_v6, %v7811_v42  ;;  %v7661_v13 = vld [vmem:[#allocation3 + $0x260] sm:$0xff]  ;;  %v7055_v46 = vld [vmem:[#allocation2 + $0x38] sm:$0xff]  ;;  %v7813_v40 = vld [vmem:[#allocation5 + $0x270] sm:$0xff] }
 0x7bb   : > { %v6457_v18 = vadd.f32 %v10759_v49, %v13183_v25  ;;  %v6451_v29 = vpop.f32.mrb[65].mxu0  ;;  %v6514_v19 = vld [vmem:[#allocation2 + $0x2f] sm:$0xff]  ;;  %v6515_v48 = vld [vmem:[#allocation2 + $0x37] sm:$0xff]  ;;  %11362 = vmatprep.subr.bf16.mxu0 %v11361_v50  ;;  %11354 = vmatprep.subr.bf16.mxu1 %v11353_v22  ;;  %v11385_v45 = vpack.c.bf16 %v7662_v14, %v7661_v13  ;;  %v7663_v49 = vld [vmem:[#allocation3 + $0x270] sm:$0xff] }
 0x7bc   : > { %v6452_v24 = vadd.f32 %v13183_v25, %v6451_v29  ;;  %10774 = vmatprep.mubr.msk.f32.mxu1 %vm797_vm2, %v6514_v19  ;;  %10797 = vmatprep.mubr.msk.f32.mxu0 %vm797_vm2, %v6514_v19  ;;  %v6494_v8 = vld [vmem:[#allocation2 + $0x2e] sm:$0xff]  ;;  %v6495_v43 = vld [vmem:[#allocation2 + $0x36] sm:$0xff]  ;;  %v7352_v29 = vld [vmem:[#allocation2 + $0x21] sm:$0xff] }
 0x7bd   : > { %v6469_v33 = vadd.f32 %v6457_v18, %v13005_v32  ;;  %10775 = vmatmul.mubr.msk.f32.gmra.mrb[48].mxu1 %vm797_vm2, %v6515_v48  ;;  %10798 = vmatmul.mubr.msk.f32.gmra.mrb[70].mxu0 %vm797_vm2, %v6515_v48  ;;  %v7054_v20 = vld [vmem:[#allocation2 + $0x30] sm:$0xff]  ;;  %v7351_v23 = vld [vmem:[#allocation2 + $0x19] sm:$0xff]  ;;  %v7664_v18 = vld [vmem:[#allocation3 + $0x278] sm:$0xff] }
 0x7be   : > { %v6468_v34 = vadd.f32 %v6452_v24, %v13008_v54  ;;  %v11389_v19 = vpack.c.bf16 %v7664_v18, %v7663_v49  ;;  %v7353_v48 = vld [vmem:[#allocation2 + $0x29] sm:$0xff]  ;;  %v7354_v24 = vld [vmem:[#allocation2 + $0x31] sm:$0xff] }
 0x7bf   : > { %v6479_v17 = vmul.f32 %v6469_v33, %v12456_v4  ;;  %v7213_v4 = vld [vmem:[#allocation5 + $0x230] sm:$0xff] }
 0x7c0   : > { %v6478_v27 = vmul.f32 %v6468_v34, %v12462_v7  ;;  %v7214_v7 = vld [vmem:[#allocation5 + $0x238] sm:$0xff] }
 0x7c1   : > { %6489 = vst.msk [vmem:[#allocation2 + $0x58] sm:$0xff] %vm797_vm2, %v6479_v17  ;;  %v6516_v30 = vld [vmem:[#allocation2 + $0x3f] sm:$0xff]  ;;  %v6517_v25 = vld [vmem:[#allocation2 + $0x47] sm:$0xff]  ;;  %v11365_v61 = vpack.c.bf16 %v7214_v7, %v7213_v4  ;;  %v7654_v7 = vld [vmem:[#allocation2 + $0x32] sm:$0xff] }
 0x7c2   : > { %6488 = vst.msk [vmem:[#allocation2 + $0x50] sm:$0xff] %vm797_vm2, %v6478_v27  ;;  %10777 = vmatprep.mubr.msk.f32.mxu1 %vm797_vm2, %v6516_v30  ;;  %10800 = vmatprep.mubr.msk.f32.mxu0 %vm797_vm2, %v6516_v30  ;;  %v6496_v37 = vld [vmem:[#allocation2 + $0x3e] sm:$0xff]  ;;  %v6497_v39 = vld [vmem:[#allocation2 + $0x46] sm:$0xff] }
 0x7c3   : > { %10778 = vmatmul.mubr.msk.f32.gmra.mrb[50].mxu1 %vm797_vm2, %v6517_v25  ;;  %10801 = vmatmul.mubr.msk.f32.gmra.mrb[72].mxu0 %vm797_vm2, %v6517_v25  ;;  %v7056_v21 = vld [vmem:[#allocation2 + $0x40] sm:$0xff]  ;;  %v7057_v3 = vld [vmem:[#allocation2 + $0x48] sm:$0xff]  ;;  %v7650_v25 = vld [vmem:[#allocation2 + $0x12] sm:$0xff] }
 0x7c4   : > { %v7355_v33 = vld [vmem:[#allocation2 + $0x39] sm:$0xff]  ;;  %v7356_v34 = vld [vmem:[#allocation2 + $0x41] sm:$0xff]  ;;  %v7653_v4 = vld [vmem:[#allocation2 + $0x2a] sm:$0xff] }
 0x7c8   : > { %v7059_v16 = vld [vmem:[#allocation2 + $0x58] sm:$0xff] }
 0x7c9   : > { %v6518_v32 = vld [vmem:[#allocation2 + $0x4f] sm:$0xff]  ;;  %v6519_v54 = vld [vmem:[#allocation2 + $0x57] sm:$0xff] }
 0x7ca   : > { %10780 = vmatprep.mubr.msk.f32.mxu1 %vm797_vm2, %v6518_v32  ;;  %10803 = vmatprep.mubr.msk.f32.mxu0 %vm797_vm2, %v6518_v32  ;;  %v6498_v41 = vld [vmem:[#allocation2 + $0x4e] sm:$0xff]  ;;  %v6499_v62 = vld [vmem:[#allocation2 + $0x56] sm:$0xff] }
 0x7cb   : > { %10781 = vmatmul.mubr.msk.f32.gmra.mrb[52].mxu1 %vm797_vm2, %v6519_v54  ;;  %10804 = vmatmul.mubr.msk.f32.gmra.mrb[74].mxu0 %vm797_vm2, %v6519_v54  ;;  %v7058_v15 = vld [vmem:[#allocation2 + $0x50] sm:$0xff]  ;;  %v7359_v30 = vld [vmem:[#allocation2 + $0x59] sm:$0xff]  ;;  %v7652_v54 = vld [vmem:[#allocation2 + $0x22] sm:$0xff] }
 0x7cc   : > { %10814 = vmatprep.mubr.msk.f32.mxu1 %vm797_vm2, %v6490_v59  ;;  %10837 = vmatprep.mubr.msk.f32.mxu0 %vm797_vm2, %v6490_v59  ;;  %v7357_v17 = vld [vmem:[#allocation2 + $0x49] sm:$0xff]  ;;  %v7358_v27 = vld [vmem:[#allocation2 + $0x51] sm:$0xff]  ;;  %v7651_v32 = vld [vmem:[#allocation2 + $0x1a] sm:$0xff] }
 0x7cd   : > { %v7655_v59 = vld [vmem:[#allocation2 + $0x3a] sm:$0xff]  ;;  %v7658_v35 = vld [vmem:[#allocation2 + $0x52] sm:$0xff] }
 0x7ce   : > { %v7659_v36 = vld [vmem:[#allocation2 + $0x5a] sm:$0xff] }
 0x7cf   : > { %10815 = vmatmul.mubr.msk.f32.vlgmr.msra.gmra.mrb[44].mxu1 %vm797_vm2, %v6491_v26  ;;  %10838 = vmatmul.mubr.msk.f32.vlgmr.msra.gmra.mrb[66].mxu0 %vm797_vm2, %v6491_v26  ;;  %v7657_v26 = vld [vmem:[#allocation2 + $0x4a] sm:$0xff] }
 0x7d0   : > { %11364 = vmatpush3.bf16.msra.mxu0 %v11361_v50  ;;  %10817 = vmatprep.mubr.msk.f32.mxu1 %vm797_vm2, %v6492_v31  ;;  %v7350_v50 = vld [vmem:[#allocation2 + $0x11] sm:$0xff] }
 0x7d1   : > { %10840 = vmatprep.mubr.msk.f32.mxu0 %vm797_vm2, %v6492_v31  ;;  %11366 = vmatprep.subr.bf16.mxu0 %v11365_v61  ;;  %v9199_v31 = vld [vmem:[%s13495_s10 + $0x60] sm:$0xff] }
 0x7d2   : > { %11356 = vmatpush3.bf16.msra.mxu1 %v11353_v22  ;;  %v11397_v22 = vpack.c.bf16 %v7814_v11, %v7813_v40  ;;  %v11401_v57 = vpack.c.bf16 %v9200_v60, %v9199_v31 }
 0x7d3   : > { %10818 = vmatmul.mubr.msk.f32.gmra.mrb[46].mxu1 %vm797_vm2, %v6493_v47  ;;  %10841 = vmatmul.mubr.msk.f32.gmra.mrb[68].mxu0 %vm797_vm2, %v6493_v47  ;;  %v9202_v47 = vld [vmem:[%s13495_s10 + $0x78] sm:$0xff] }
 0x7d4   : > { %10820 = vmatprep.mubr.msk.f32.mxu1 %vm797_vm2, %v6494_v8  ;;  %10843 = vmatprep.mubr.msk.f32.mxu0 %vm797_vm2, %v6494_v8  ;;  %v11409_v8 = vpack.c.bf16 %v8279_v52, %v8278_v53 }
 0x7d5   : > { %11368 = vmatpush3.bf16.msra.mxu0 %v11365_v61  ;;  %11358 = vmatprep.subr.bf16.mxu1 %v11357_v38  ;;  %v7656_v61 = vld [vmem:[#allocation2 + $0x42] sm:$0xff] }
 0x7d6   : > { %11360 = vmatpush3.bf16.msra.mxu1 %v11357_v38  ;;  %11378 = vmatprep.subr.bf16.mxu0 %v11377_v51  ;;  %v9201_v38 = vld [vmem:[%s13495_s10 + $0x70] sm:$0xff] }
 0x7d7   : > { %10821 = vmatmul.mubr.msk.f32.gmra.mrb[48].mxu1 %vm797_vm2, %v6495_v43  ;;  %10844 = vmatmul.mubr.msk.f32.gmra.mrb[70].mxu0 %vm797_vm2, %v6495_v43 }
 0x7d8   : > { %10823 = vmatprep.mubr.msk.f32.mxu1 %vm797_vm2, %v6496_v37  ;;  %10846 = vmatprep.mubr.msk.f32.mxu0 %vm797_vm2, %v6496_v37 }
 0x7d9   : > { %11370 = vmatprep.subr.bf16.mxu1 %v11369_v58 }
 0x7db   : > { %10824 = vmatmul.mubr.msk.f32.gmra.mrb[50].mxu1 %vm797_vm2, %v6497_v39  ;;  %10847 = vmatmul.mubr.msk.f32.gmra.mrb[72].mxu0 %vm797_vm2, %v6497_v39 }
 0x7dc   : > { %10826 = vmatprep.mubr.msk.f32.mxu1 %vm797_vm2, %v6498_v41  ;;  %10849 = vmatprep.mubr.msk.f32.mxu0 %vm797_vm2, %v6498_v41 }
 0x7df   : > { %10827 = vmatmul.mubr.msk.f32.gmra.mrb[52].mxu1 %vm797_vm2, %v6499_v62  ;;  %10850 = vmatmul.mubr.msk.f32.gmra.mrb[74].mxu0 %vm797_vm2, %v6499_v62 }
 0x7e0   : > { %10860 = vmatprep.mubr.msk.f32.mxu1 %vm797_vm2, %v7050_v10  ;;  %10883 = vmatprep.mubr.msk.f32.mxu0 %vm797_vm2, %v7050_v10  ;;  %v13353_v10 = vld [vmem:[%s13491_s6 + $0x3] ss:$0 sm:$0xff] }
 0x7e3   : > { %10861 = vmatmul.mubr.msk.f32.vlgmr.msra.gmra.mrb[44].mxu1 %vm797_vm2, %v7051_v63  ;;  %10884 = vmatmul.mubr.msk.f32.vlgmr.msra.gmra.mrb[66].mxu0 %vm797_vm2, %v7051_v63 }
 0x7e4   : > { %11380 = vmatpush3.bf16.msra.mxu0 %v11377_v51  ;;  %10863 = vmatprep.mubr.msk.f32.mxu1 %vm797_vm2, %v7052_v1  ;;  %v11405_v51 = vpack.c.bf16 %v9202_v47, %v9201_v38 }
 0x7e5   : > { %10886 = vmatprep.mubr.msk.f32.mxu0 %vm797_vm2, %v7052_v1  ;;  %11382 = vmatprep.subr.bf16.mxu0 %v11381_v9 }
 0x7e6   : > { %11372 = vmatpush3.bf16.msra.mxu1 %v11369_v58  ;;  %v13346_v58 = vld [vmem:[%s13492_s7 + $0x3] ss:$0 sm:$0xff] }
 0x7e7   : > { %10864 = vmatmul.mubr.msk.f32.gmra.mrb[46].mxu1 %vm797_vm2, %v7053_v5  ;;  %10887 = vmatmul.mubr.msk.f32.gmra.mrb[68].mxu0 %vm797_vm2, %v7053_v5 }
 0x7e8   : > { %10866 = vmatprep.mubr.msk.f32.mxu1 %vm797_vm2, %v7054_v20  ;;  %10889 = vmatprep.mubr.msk.f32.mxu0 %vm797_vm2, %v7054_v20 }
 0x7e9   : > { %11384 = vmatpush3.bf16.msra.mxu0 %v11381_v9  ;;  %11374 = vmatprep.subr.bf16.mxu1 %v11373_v2 }
 0x7ea   : > { %11376 = vmatpush3.bf16.msra.mxu1 %v11373_v2  ;;  %11394 = vmatprep.subr.bf16.mxu0 %v11393_v12 }
 0x7eb   : > { %10867 = vmatmul.mubr.msk.f32.gmra.mrb[48].mxu1 %vm797_vm2, %v7055_v46  ;;  %10890 = vmatmul.mubr.msk.f32.gmra.mrb[70].mxu0 %vm797_vm2, %v7055_v46 }
 0x7ec   : > { %10869 = vmatprep.mubr.msk.f32.mxu1 %vm797_vm2, %v7056_v21  ;;  %10892 = vmatprep.mubr.msk.f32.mxu0 %vm797_vm2, %v7056_v21 }
 0x7ed   : > { %11386 = vmatprep.subr.bf16.mxu1 %v11385_v45 }
 0x7ef   : > { %10870 = vmatmul.mubr.msk.f32.gmra.mrb[50].mxu1 %vm797_vm2, %v7057_v3  ;;  %10893 = vmatmul.mubr.msk.f32.gmra.mrb[72].mxu0 %vm797_vm2, %v7057_v3 }
 0x7f0   : > { %10872 = vmatprep.mubr.msk.f32.mxu1 %vm797_vm2, %v7058_v15  ;;  %10895 = vmatprep.mubr.msk.f32.mxu0 %vm797_vm2, %v7058_v15 }
 0x7f3   : > { %10873 = vmatmul.mubr.msk.f32.gmra.mrb[52].mxu1 %vm797_vm2, %v7059_v16  ;;  %10896 = vmatmul.mubr.msk.f32.gmra.mrb[74].mxu0 %vm797_vm2, %v7059_v16 }
 0x7f4   : > { %10906 = vmatprep.mubr.msk.f32.mxu1 %vm797_vm2, %v7350_v50  ;;  %10929 = vmatprep.mubr.msk.f32.mxu0 %vm797_vm2, %v7350_v50 }
 0x7f7   : > { %10907 = vmatmul.mubr.msk.f32.vlgmr.msra.gmra.mrb[44].mxu1 %vm797_vm2, %v7351_v23  ;;  %10930 = vmatmul.mubr.msk.f32.vlgmr.msra.gmra.mrb[66].mxu0 %vm797_vm2, %v7351_v23 }
 0x7f8   : > { %11396 = vmatpush3.bf16.msra.mxu0 %v11393_v12  ;;  %10909 = vmatprep.mubr.msk.f32.mxu1 %vm797_vm2, %v7352_v29 }
 0x7f9   : > { %10932 = vmatprep.mubr.msk.f32.mxu0 %vm797_vm2, %v7352_v29  ;;  %11398 = vmatprep.subr.bf16.mxu0 %v11397_v22 }
 0x7fa   : > { %11388 = vmatpush3.bf16.msra.mxu1 %v11385_v45 }
 0x7fb   : > { %10910 = vmatmul.mubr.msk.f32.gmra.mrb[46].mxu1 %vm797_vm2, %v7353_v48  ;;  %10933 = vmatmul.mubr.msk.f32.gmra.mrb[68].mxu0 %vm797_vm2, %v7353_v48 }
 0x7fc   : > { %10912 = vmatprep.mubr.msk.f32.mxu1 %vm797_vm2, %v7354_v24  ;;  %10935 = vmatprep.mubr.msk.f32.mxu0 %vm797_vm2, %v7354_v24 }
 0x7fd   : > { %11400 = vmatpush3.bf16.msra.mxu0 %v11397_v22  ;;  %11390 = vmatprep.subr.bf16.mxu1 %v11389_v19 }
 0x7fe   : > { %11392 = vmatpush3.bf16.msra.mxu1 %v11389_v19  ;;  %11410 = vmatprep.subr.bf16.mxu0 %v11409_v8 }
 0x7ff   : > { %10913 = vmatmul.mubr.msk.f32.gmra.mrb[48].mxu1 %vm797_vm2, %v7355_v33  ;;  %10936 = vmatmul.mubr.msk.f32.gmra.mrb[70].mxu0 %vm797_vm2, %v7355_v33 }
 0x800   : > { %10915 = vmatprep.mubr.msk.f32.mxu1 %vm797_vm2, %v7356_v34  ;;  %10938 = vmatprep.mubr.msk.f32.mxu0 %vm797_vm2, %v7356_v34 }
 0x801   : > { %11402 = vmatprep.subr.bf16.mxu1 %v11401_v57 }
 0x803   : > { %10916 = vmatmul.mubr.msk.f32.gmra.mrb[50].mxu1 %vm797_vm2, %v7357_v17  ;;  %10939 = vmatmul.mubr.msk.f32.gmra.mrb[72].mxu0 %vm797_vm2, %v7357_v17 }
 0x804   : > { %10918 = vmatprep.mubr.msk.f32.mxu1 %vm797_vm2, %v7358_v27  ;;  %10941 = vmatprep.mubr.msk.f32.mxu0 %vm797_vm2, %v7358_v27 }
 0x807   : > { %10919 = vmatmul.mubr.msk.f32.gmra.mrb[52].mxu1 %vm797_vm2, %v7359_v30  ;;  %10942 = vmatmul.mubr.msk.f32.gmra.mrb[74].mxu0 %vm797_vm2, %v7359_v30 }
 0x808   : > { %10952 = vmatprep.mubr.msk.f32.mxu1 %vm797_vm2, %v7650_v25  ;;  %10975 = vmatprep.mubr.msk.f32.mxu0 %vm797_vm2, %v7650_v25 }
 0x80b   : > { %10953 = vmatmul.mubr.msk.f32.vlgmr.msra.gmra.mrb[44].mxu1 %vm797_vm2, %v7651_v32  ;;  %10976 = vmatmul.mubr.msk.f32.vlgmr.msra.gmra.mrb[66].mxu0 %vm797_vm2, %v7651_v32 }
 0x80c   : > { %10955 = vmatprep.mubr.msk.f32.mxu1 %vm797_vm2, %v7652_v54  ;;  %10978 = vmatprep.mubr.msk.f32.mxu0 %vm797_vm2, %v7652_v54 }
 0x80d   : > { %11404 = vmatpush3.bf16.msra.mxu1 %v11401_v57  ;;  %11412 = vmatpush3.bf16.msra.mxu0 %v11409_v8 }
 0x80e   : > { %11406 = vmatprep.subr.bf16.mxu1 %v11405_v51 }
 0x80f   : > { %10956 = vmatmul.mubr.msk.f32.gmra.mrb[46].mxu1 %vm797_vm2, %v7653_v4  ;;  %10979 = vmatmul.mubr.msk.f32.gmra.mrb[68].mxu0 %vm797_vm2, %v7653_v4 }
 0x810   : > { %10958 = vmatprep.mubr.msk.f32.mxu1 %vm797_vm2, %v7654_v7  ;;  %10981 = vmatprep.mubr.msk.f32.mxu0 %vm797_vm2, %v7654_v7 }
 0x811   : > { %11408 = vmatpush3.bf16.msra.mxu1 %v11405_v51 }
 0x813   : > { %10959 = vmatmul.mubr.msk.f32.gmra.mrb[48].mxu1 %vm797_vm2, %v7655_v59  ;;  %10982 = vmatmul.mubr.msk.f32.gmra.mrb[70].mxu0 %vm797_vm2, %v7655_v59 }
 0x814   : > { %10961 = vmatprep.mubr.msk.f32.mxu1 %vm797_vm2, %v7656_v61  ;;  %10984 = vmatprep.mubr.msk.f32.mxu0 %vm797_vm2, %v7656_v61 }
 0x817   : > { %10962 = vmatmul.mubr.msk.f32.gmra.mrb[50].mxu1 %vm797_vm2, %v7657_v26  ;;  %10985 = vmatmul.mubr.msk.f32.gmra.mrb[72].mxu0 %vm797_vm2, %v7657_v26 }
 0x818   : > { %10964 = vmatprep.mubr.msk.f32.mxu1 %vm797_vm2, %v7658_v35  ;;  %10987 = vmatprep.mubr.msk.f32.mxu0 %vm797_vm2, %v7658_v35 }
 0x81b   : > { %10965 = vmatmul.mubr.msk.f32.gmra.mrb[52].mxu1 %vm797_vm2, %v7659_v36  ;;  %10988 = vmatmul.mubr.msk.f32.gmra.mrb[74].mxu0 %vm797_vm2, %v7659_v36 }
 0x8de   : > { %v10954_v43 = vpop.f32.mrb[44].mxu1  ;;  %v10977_v37 = vpop.f32.mrb[66].mxu0 }
 0x8df   : > { %v7987_v39 = vadd.f32 %v10977_v37, %v13346_v58  ;;  %v7761_v41 = vpop.f32.mrb[45].mxu1  ;;  %v7881_v62 = vpop.f32.mrb[67].mxu0  ;;  %v7959_v2 = vadd.f32 %v10954_v43, %v13353_v10 }
 0x8e0   : > { %v7986_v55 = vadd.f32 %v13346_v58, %v7881_v62  ;;  %v7958_v12 = vadd.f32 %v13353_v10, %v7761_v41 }
 0x8e1   : > { %v9190_v56 = vmul.f32 -1.442695, %v7987_v39 }
 0x8e2   : > { %v9189_v9 = vmul.f32 -1.442695, %v7986_v55  ;;  %v10957_v63 = vpop.f32.mrb[46].mxu1  ;;  %v10980_v44 = vpop.f32.mrb[68].mxu0 }
 0x8e3   : > { %12035 = vpow2.f32 %v9190_v56  ;;  %v7989_v0 = vadd.f32 %v10980_v44, %v13346_v58  ;;  %v7771_v1 = vpop.f32.mrb[47].mxu1  ;;  %v7891_v42 = vpop.f32.mrb[69].mxu0  ;;  %v7961_v15 = vadd.f32 %v10957_v63, %v13353_v10 }
 0x8e4   : > { %12037 = vpow2.f32 %v9189_v9  ;;  %v7988_v6 = vadd.f32 %v13346_v58, %v7891_v42  ;;  %v7960_v40 = vadd.f32 %v13353_v10, %v7771_v1 }
 0x8e5   : > { %v9192_v5 = vmul.f32 -1.442695, %v7989_v0 }
 0x8e6   : > { %v9191_v13 = vmul.f32 -1.442695, %v7988_v6  ;;  %v10960_v14 = vpop.f32.mrb[48].mxu1  ;;  %v10983_v20 = vpop.f32.mrb[70].mxu0 }
 0x8e7   : > { %12039 = vpow2.f32 %v9192_v5  ;;  %v7991_v45 = vadd.f32 %v10983_v20, %v13346_v58  ;;  %v7781_v46 = vpop.f32.mrb[49].mxu1  ;;  %v7901_v21 = vpop.f32.mrb[71].mxu0  ;;  %v7963_v25 = vadd.f32 %v10960_v14, %v13353_v10 }
 0x8e8   : > { %12041 = vpow2.f32 %v9191_v13  ;;  %v7990_v3 = vadd.f32 %v13346_v58, %v7901_v21  ;;  %v7962_v60 = vadd.f32 %v13353_v10, %v7781_v46 }
 0x8e9   : > { %12043 = vtanh.f32 %v7959_v2  ;;  %v9194_v16 = vmul.f32 -1.442695, %v7991_v45 }
 0x8ea   : > { %12045 = vtanh.f32 %v7958_v12  ;;  %v9193_v11 = vmul.f32 -1.442695, %v7990_v3  ;;  %v10963_v50 = vpop.f32.mrb[50].mxu1  ;;  %v10986_v22 = vpop.f32.mrb[72].mxu0 }
 0x8eb   : > { %12047 = vpow2.f32 %v9194_v16  ;;  %v7993_v23 = vadd.f32 %v10986_v22, %v13346_v58  ;;  %v7791_v49 = vpop.f32.mrb[51].mxu1  ;;  %v7911_v18 = vpop.f32.mrb[73].mxu0  ;;  %v7965_v43 = vadd.f32 %v10963_v50, %v13353_v10 }
 0x8ec   : > { %12049 = vpow2.f32 %v9193_v11  ;;  %v7992_v29 = vadd.f32 %v13346_v58, %v7911_v18  ;;  %v7964_v62 = vadd.f32 %v13353_v10, %v7791_v49 }
 0x8ed   : > { %v12036_v19 = vpop.eup %12035  ;;  %12051 = vtanh.f32 %v7961_v15  ;;  %v9196_v48 = vmul.f32 -1.442695, %v7993_v23 }
 0x8ee   : > { %v12038_v24 = vpop.eup %12037  ;;  %v8027_v33 = vadd.f32 1.0, %v12036_v19  ;;  %12053 = vtanh.f32 %v7960_v40  ;;  %v9195_v34 = vmul.f32 -1.442695, %v7992_v29  ;;  %v10966_v17 = vpop.f32.mrb[52].mxu1 }
 0x8ef   : > { %v10989_v27 = vpop.f32.mrb[74].mxu0  ;;  %v8026_v30 = vadd.f32 1.0, %v12038_v24  ;;  %12055 = vpow2.f32 %v9196_v48  ;;  %v7801_v54 = vpop.f32.mrb[53].mxu1  ;;  %v7967_v42 = vadd.f32 %v10966_v17, %v13353_v10 }
 0x8f0   : > { %v7995_v32 = vadd.f32 %v10989_v27, %v13346_v58  ;;  %v7921_v4 = vpop.f32.mrb[75].mxu0  ;;  %12057 = vrcp.f32 %v8027_v33  ;;  %v7966_v45 = vadd.f32 %v13353_v10, %v7801_v54  ;;  %v8280_v33 = vld [vmem:[%s13497_s12 + $0x10] sm:$0xff] }
 0x8f1   : > { %v12040_v7 = vpop.eup %12039  ;;  %12059 = vrcp.f32 %v8026_v30  ;;  %v7994_v35 = vadd.f32 %v13346_v58, %v7921_v4  ;;  %v8640_v27 = vld [vmem:[%s12370_s24 + $0x10] sm:$0xff]  ;;  %v8639_v30 = vld [vmem:[%s12370_s24 + $0x8] sm:$0xff] }
 0x8f2   : > { %v12042_v59 = vpop.eup %12041  ;;  %v8029_v61 = vadd.f32 1.0, %v12040_v7  ;;  %12061 = vpow2.f32 %v9195_v34  ;;  %v9198_v26 = vmul.f32 -1.442695, %v7995_v32  ;;  %v8281_v34 = vld [vmem:[%s13497_s12 + $0x18] sm:$0xff]  ;;  %8428 = vrot.lane.b32.xlu1 %v8640_v27, %s12189_s26  ;;  %8426 = vrot.lane.b32.xlu0 %v8639_v30, %s12189_s26  ;;  %v8644_v54 = vld [vmem:[%s12370_s24 + $0x30] sm:$0xff] }
 0x8f3   : > { %v12044_v36 = vpop.eup %12043  ;;  %v8028_v31 = vadd.f32 1.0, %v12042_v59  ;;  %12063 = vtanh.f32 %v7963_v25  ;;  %v9197_v53 = vmul.f32 -1.442695, %v7994_v35  ;;  %v11413_v17 = vpack.c.bf16 %v8281_v34, %v8280_v33  ;;  %v8642_v25 = vld [vmem:[%s12370_s24 + $0x20] sm:$0xff]  ;;  %v8641_v32 = vld [vmem:[%s12370_s24 + $0x18] sm:$0xff]  ;;  %v8643_v4 = vld [vmem:[%s12370_s24 + $0x28] sm:$0xff] }
 0x8f4   : > { %v12046_v57 = vpop.eup %12045  ;;  %12065 = vrcp.f32 %v8029_v61  ;;  %v8646_v7 = vld [vmem:[%s12370_s24 + $0x40] sm:$0xff]  ;;  %v8645_v59 = vld [vmem:[%s12370_s24 + $0x38] sm:$0xff] }
 0x8f5   : > { %v12048_v38 = vpop.eup %12047  ;;  %12067 = vrcp.f32 %v8028_v31  ;;  %11414 = vmatprep.subr.bf16.mxu0 %v11413_v17  ;;  %v8771_v61 = vld [vmem:[%s13496_s11] ss:$0 sm:$0xff] }
 0x8f6   : > { %v12050_v47 = vpop.eup %12049  ;;  %v8031_v51 = vadd.f32 1.0, %v12048_v38  ;;  %12069 = vpow2.f32 %v9198_v26  ;;  %11416 = vmatpush3.bf16.msra.mxu0 %v11413_v17  ;;  %8432 = vrot.lane.b32.xlu1 %v8642_v25, %s12189_s26  ;;  %v8912_v26 = vld [vmem:[%s13496_s11 + $0x1] ss:$0 sm:$0xff]  ;;  %v9204_v38 = vld [vmem:[%s13496_s11 + $0x3] ss:$0 sm:$0xff] }
 0x8f7   : > { %v12052_v52 = vpop.eup %12051  ;;  %12071 = vtanh.f32 %v7962_v60  ;;  %v8030_v8 = vadd.f32 1.0, %v12050_v47  ;;  %8430 = vrot.lane.b32.xlu0 %v8641_v32, %s12189_s26  ;;  %v11419_v35 = vadd.f32 %v8912_v26, %v8771_v61  ;;  %v13406_v60 = vpop.permute.xlu0 %8232  ;;  %v9215_v33 = vld [vmem:[%s13514_s19] ss:$0 sm:$0xff] }
 0x8f8   : > { %v12054_v37 = vpop.eup %12053  ;;  %12073 = vrcp.f32 %v8031_v51 }
 0x8f9   : > { %v12056_v58 = vpop.eup %12055  ;;  %12075 = vrcp.f32 %v8030_v8  ;;  %v8238_v8 = vpop.permute.xlu1 %8237 }
 0x8fa   : > { %v12058_v39 = vpop.eup %12057  ;;  %v8033_v41 = vadd.f32 1.0, %v12056_v58  ;;  %12077 = vpow2.f32 %v9197_v53  ;;  %8436 = vrot.lane.b32.xlu1 %v8644_v54, %s12189_s26 }
 0x8fb   : > { %v12060_v55 = vpop.eup %12059  ;;  %v8057_v56 = vmul.f32 %v12058_v39, %v12044_v36  ;;  %12079 = vtanh.f32 %v7965_v43  ;;  %8434 = vrot.lane.b32.xlu0 %v8643_v4, %s12189_s26  ;;  %v9058_v36 = vld [vmem:[%s13496_s11 + $0x2] ss:$0 sm:$0xff]  ;;  %v13412_v39 = vpop.permute.xlu0 %8242 }
 0x8fc   : > { %v12062_v9 = vpop.eup %12061  ;;  %12081 = vrcp.f32 %v8033_v41  ;;  %v8056_v63 = vmul.f32 %v12060_v55, %v12046_v57  ;;  %v11420_v31 = vadd.f32 %v11419_v35, %v9058_v36 }
 0x8fd   : > { %v12064_v44 = vpop.eup %12063  ;;  %v8032_v0 = vadd.f32 1.0, %v12062_v9  ;;  %12083 = vtanh.f32 %v7964_v62 }
 0x8fe   : > { %v12066_v1 = vpop.eup %12065  ;;  %10998 = vmatprep.mubr.msk.f32.mxu1 %vm797_vm2, %v8056_v63  ;;  %8440 = vrot.lane.b32.xlu1 %v8646_v7, %s12189_s26  ;;  %v11437_v41 = vadd.f32 %v11420_v31, %v9204_v38 }
 0x8ff   : > { %v12068_v6 = vpop.eup %12067  ;;  %12085 = vrcp.f32 %v8032_v0  ;;  %10999 = vmatmul.mubr.msk.f32.vlgmr.msra.gmra.mrb[14].mxu1 %vm797_vm2, %v8057_v56  ;;  %v8059_v2 = vmul.f32 %v12066_v1, %v12052_v52  ;;  %8438 = vrot.lane.b32.xlu0 %v8645_v59, %s12189_s26  ;;  %v8248_v1 = vpop.permute.xlu1 %8247 }
 0x900   : > { %v12070_v5 = vpop.eup %12069  ;;  %v8058_v12 = vmul.f32 %v12068_v6, %v12054_v37  ;;  %12087 = vtanh.f32 %v7967_v42 }
 0x901   : > { %v12072_v13 = vpop.eup %12071  ;;  %v8035_v14 = vadd.f32 1.0, %v12070_v5 }
 0x902   : > { %v12074_v20 = vpop.eup %12073  ;;  %11001 = vmatprep.mubr.msk.f32.mxu1 %vm797_vm2, %v8058_v12  ;;  %8468 = vrot.lane.b32.xlu1 %v8640_v27, %s12190_s17 }
 0x903   : > { %v12076_v46 = vpop.eup %12075  ;;  %12089 = vrcp.f32 %v8035_v14  ;;  %11002 = vmatmul.mubr.msk.f32.gmra.mrb[16].mxu1 %vm797_vm2, %v8059_v2  ;;  %v8061_v21 = vmul.f32 %v12074_v20, %v12064_v44  ;;  %8466 = vrot.lane.b32.xlu0 %v8639_v30, %s12190_s17  ;;  %v13416_v2 = vpop.permute.xlu0 %8252 }
 0x904   : > { %v12078_v3 = vpop.eup %12077  ;;  %v8060_v15 = vmul.f32 %v12076_v46, %v12072_v13  ;;  %12091 = vtanh.f32 %v7966_v45  ;;  %v8258_v46 = vpop.permute.xlu1 %8257 }
 0x905   : > { %v12080_v16 = vpop.eup %12079  ;;  %v8034_v40 = vadd.f32 1.0, %v12078_v3 }
 0x906   : > { %v12082_v11 = vpop.eup %12081  ;;  %11004 = vmatprep.mubr.msk.f32.mxu1 %vm797_vm2, %v8060_v15  ;;  %8472 = vrot.lane.b32.xlu1 %v8642_v25, %s12190_s17 }
 0x907   : > { %12093 = vrcp.f32 %v8034_v40  ;;  %11005 = vmatmul.mubr.msk.f32.gmra.mrb[18].mxu1 %vm797_vm2, %v8061_v21  ;;  %v8063_v50 = vmul.f32 %v12082_v11, %v12080_v16  ;;  %v12084_v10 = vpop.eup %12083  ;;  %8470 = vrot.lane.b32.xlu0 %v8641_v32, %s12190_s17  ;;  %v13423_v21 = vpop.permute.xlu0 %8262 }
 0x909   : > { %v12086_v22 = vpop.eup %12085 }
 0x90a   : > { %v8062_v23 = vmul.f32 %v12086_v22, %v12084_v10  ;;  %v12088_v49 = vpop.eup %12087  ;;  %8476 = vrot.lane.b32.xlu1 %v8644_v54, %s12190_s17 }
 0x90b   : > { %8474 = vrot.lane.b32.xlu0 %v8643_v4, %s12190_s17 }
 0x90c   : > { %11007 = vmatprep.mubr.msk.f32.mxu1 %vm797_vm2, %v8062_v23 }
 0x90d   : > { %v12090_v18 = vpop.eup %12089  ;;  %11008 = vmatmul.mubr.msk.f32.gmra.mrb[20].mxu1 %vm797_vm2, %v8063_v50  ;;  %v13428_v50 = vpop.permute.xlu1 %8267 }
 0x90e   : > { %v8065_v29 = vmul.f32 %v12090_v18, %v12088_v49  ;;  %v12092_v19 = vpop.eup %12091  ;;  %8480 = vrot.lane.b32.xlu1 %v8646_v7, %s12190_s17 }
 0x90f   : > { %8478 = vrot.lane.b32.xlu0 %v8645_v59, %s12190_s17 }
 0x911   : > { %v12094_v48 = vpop.eup %12093 }
 0x912   : > { %v8064_v24 = vmul.f32 %v12094_v48, %v12092_v19 }
 0x914   : > { %11010 = vmatprep.mubr.msk.f32.mxu1 %vm797_vm2, %v8064_v24 }
 0x915   : > { %11011 = vmatmul.mubr.msk.f32.gmra.mrb[22].mxu1 %vm797_vm2, %v8065_v29 }
 0x964   : > { %v8429_v22 = vpop.permute.xlu1 %8428  ;;  %v8427_v23 = vpop.permute.xlu0 %8426 }
 0x968   : > { %v8433_v49 = vpop.permute.xlu1 %8432 }
 0x969   : > { %v8431_v18 = vpop.permute.xlu0 %8430 }
 0x96c   : > { %v8437_v29 = vpop.permute.xlu1 %8436 }
 0x96d   : > { %v8435_v19 = vpop.permute.xlu0 %8434 }
 0x970   : > { %v8441_v48 = vpop.permute.xlu1 %8440 }
 0x971   : > { %v8439_v24 = vpop.permute.xlu0 %8438 }
 0x974   : > { %v8469_v17 = vpop.permute.xlu1 %8468 }
 0x975   : > { %v8467_v25 = vpop.permute.xlu0 %8466 }
 0x978   : > { %v8473_v36 = vpop.permute.xlu1 %8472 }
 0x9d2   : > { %v11000_v57 = vpop.f32.mrb[14].mxu1 }
 0x9d3   : > { %v11421_v47 = vadd.f32 %v11420_v31, %v11000_v57  ;;  %v8175_v51 = vpop.f32.mrb[15].mxu1 }
 0x9d5   : > { %v11422_v53 = vadd.f32 %v11421_v47, %v9204_v38 }
 0x9d6   : > { %v11003_v52 = vpop.f32.mrb[16].mxu1 }
 0x9d7   : > { %v8270_v43 = vmul.f32 %v11422_v53, %v13406_v60  ;;  %v11425_v37 = vadd.f32 %v11420_v31, %v11003_v52  ;;  %v8184_v58 = vpop.f32.mrb[17].mxu1 }
 0x9d8   : > { %v11429_v62 = vadd.f32 %v11420_v31, %v8184_v58 }
 0x9d9   : > { %v11426_v55 = vadd.f32 %v11425_v37, %v9204_v38  ;;  %11021 = vmatprep.mubr.msk.f32.mxu0 %vm797_vm2, %v8270_v43 }
 0x9da   : > { %v11430_v56 = vadd.f32 %v11429_v62, %v9204_v38  ;;  %v11006_v9 = vpop.f32.mrb[18].mxu1  ;;  %v8471_v38 = vpop.permute.xlu0 %8470 }
 0x9db   : > { %v8194_v63 = vpop.f32.mrb[19].mxu1  ;;  %v8272_v42 = vmul.f32 %v11426_v55, %v13412_v39  ;;  %v11434_v6 = vadd.f32 %v11437_v41, %v11006_v9 }
 0x9dc   : > { %v8271_v44 = vmul.f32 %v11430_v56, %v8238_v8  ;;  %v11438_v0 = vadd.f32 %v11437_v41, %v8194_v63  ;;  %v8477_v56 = vpop.permute.xlu1 %8476 }
 0x9dd   : > { %v8274_v13 = vmul.f32 %v11434_v6, %v13416_v2 }
 0x9de   : > { %11022 = vmatmul.mubr.msk.f32.vlgmr.msra.gmra.mrb[76].mxu0 %vm797_vm2, %v8271_v44  ;;  %v8273_v5 = vmul.f32 %v11438_v0, %v8248_v1  ;;  %v8475_v63 = vpop.permute.xlu0 %8474 }
 0x9df   : > { %11024 = vmatprep.mubr.msk.f32.mxu0 %vm797_vm2, %v8272_v42 }
 0x9e0   : > { %v11009_v12 = vpop.f32.mrb[20].mxu1 }
 0x9e1   : > { %v11442_v14 = vadd.f32 %v11437_v41, %v11009_v12  ;;  %v8204_v20 = vpop.f32.mrb[21].mxu1 }
 0x9e2   : > { %v11446_v45 = vadd.f32 %v11437_v41, %v8204_v20  ;;  %11025 = vmatmul.mubr.msk.f32.gmra.mrb[78].mxu0 %vm797_vm2, %v8273_v5 }
 0x9e3   : > { %11027 = vmatprep.mubr.msk.f32.mxu0 %vm797_vm2, %v8274_v13  ;;  %v8276_v15 = vmul.f32 %v11442_v14, %v13423_v21  ;;  %v8481_v14 = vpop.permute.xlu1 %8480 }
 0x9e4   : > { %v8275_v3 = vmul.f32 %v11446_v45, %v8258_v46 }
 0x9e6   : > { %11028 = vmatmul.mubr.msk.f32.gmra.mrb[80].mxu0 %vm797_vm2, %v8275_v3 }
 0x9e7   : > { %11030 = vmatprep.mubr.msk.f32.mxu0 %vm797_vm2, %v8276_v15 }
 0x9e8   : > { %v11012_v16 = vpop.f32.mrb[22].mxu1 }
 0x9e9   : > { %v8214_v40 = vpop.f32.mrb[23].mxu1 }
 0x9ea   : > { %v11450_v11 = vadd.f32 %v11437_v41, %v8214_v40 }
 0x9ec   : > { %v8277_v10 = vmul.f32 %v11450_v11, %v13428_v50 }
 0x9ee   : > { %11031 = vmatmul.mubr.msk.f32.gmra.mrb[82].mxu0 %vm797_vm2, %v8277_v10 }
 0xab1   : > { %v11023_v34 = vpop.f32.mrb[76].mxu0 }
 0xab2   : > { %v8385_v27 = vadd.f32 %v11023_v34, %v9215_v33  ;;  %v8379_v30 = vpop.f32.mrb[77].mxu0 }
 0xab3   : > { %v8380_v32 = vadd.f32 %v9215_v33, %v8379_v30 }
 0xab4   : > { %v8451_v28 = vadd.f32 %v8429_v22, %v8385_v27 }
 0xab5   : > { %v8450_v54 = vadd.f32 %v8427_v23, %v8380_v32  ;;  %v11026_v4 = vpop.f32.mrb[78].mxu0 }
 0xab6   : > { %v8459_v7 = vmul.f32 %v8451_v28, %v8238_v8  ;;  %v8395_v59 = vadd.f32 %v11026_v4, %v9215_v33  ;;  %v8389_v61 = vpop.f32.mrb[79].mxu0 }
 0xab7   : > { %v8458_v26 = vmul.f32 %v8450_v54, %v13406_v60  ;;  %v8390_v35 = vadd.f32 %v9215_v33, %v8389_v61 }
 0xab8   : > { %v8453_v31 = vadd.f32 %v8433_v49, %v8395_v59  ;;  %v8491_v57 = vsel %vm587_vm1, %v8459_v7, %v8469_v17 }
 0xab9   : > { %v8452_v47 = vadd.f32 %v8431_v18, %v8390_v35  ;;  %9225 = vst.msk [vmem:[%s13436_s22 + $0x10] sm:$0xff] %vm535_vm3, %v8491_v57  ;;  %v8490_v51 = vsel %vm587_vm1, %v8458_v26, %v8467_v25  ;;  %v11029_v53 = vpop.f32.mrb[80].mxu0 }
 0xaba   : > { %v8461_v52 = vmul.f32 %v8453_v31, %v8248_v1  ;;  %9224 = vst.msk [vmem:[%s13436_s22 + $0x8] sm:$0xff] %vm535_vm3, %v8490_v51  ;;  %v8405_v8 = vadd.f32 %v11029_v53, %v9215_v33  ;;  %v8399_v60 = vpop.f32.mrb[81].mxu0 }
 0xabb   : > { %v8460_v43 = vmul.f32 %v8452_v47, %v13412_v39  ;;  %v8400_v37 = vadd.f32 %v9215_v33, %v8399_v60 }
 0xabc   : > { %v8455_v58 = vadd.f32 %v8437_v29, %v8405_v8  ;;  %v8493_v41 = vsel %vm587_vm1, %v8461_v52, %v8473_v36 }
 0xabd   : > { %v8454_v62 = vadd.f32 %v8435_v19, %v8400_v37  ;;  %9227 = vst.msk [vmem:[%s13436_s22 + $0x20] sm:$0xff] %vm535_vm3, %v8493_v41  ;;  %v8492_v55 = vsel %vm587_vm1, %v8460_v43, %v8471_v38 }
 0xabe   : > { %v8463_v9 = vmul.f32 %v8455_v58, %v8258_v46  ;;  %9226 = vst.msk [vmem:[%s13436_s22 + $0x18] sm:$0xff] %vm535_vm3, %v8492_v55 }
 0xabf   : > { %v8462_v44 = vmul.f32 %v8454_v62, %v13416_v2  ;;  %v8479_v2 = vpop.permute.xlu0 %8478 }
 0xac0   : > { %v8495_v39 = vsel %vm587_vm1, %v8463_v9, %v8477_v56 }
 0xac1   : > { %v11032_v0 = vpop.f32.mrb[82].mxu0  ;;  %9229 = vst.msk [vmem:[%s13436_s22 + $0x30] sm:$0xff] %vm535_vm3, %v8495_v39  ;;  %v8494_v1 = vsel %vm587_vm1, %v8462_v44, %v8475_v63 }
 0xac2   : > { %v8415_v42 = vadd.f32 %v11032_v0, %v9215_v33  ;;  %v8409_v6 = vpop.f32.mrb[83].mxu0  ;;  %9228 = vst.msk [vmem:[%s13436_s22 + $0x28] sm:$0xff] %vm535_vm3, %v8494_v1 }
 0xac3   : > { %v8410_v5 = vadd.f32 %v9215_v33, %v8409_v6 }
 0xac4   : > { %v8457_v12 = vadd.f32 %v8441_v48, %v8415_v42 }
 0xac5   : > { %v8456_v13 = vadd.f32 %v8439_v24, %v8410_v5 }
 0xac6   : > { %v8465_v20 = vmul.f32 %v8457_v12, %v13428_v50 }
 0xac7   : > { %v8464_v45 = vmul.f32 %v8456_v13, %v13423_v21 }
 0xac8   : > { %v8497_v46 = vsel %vm587_vm1, %v8465_v20, %v8481_v14 }
 0xac9   : > { %9231 = vst.msk [vmem:[%s13436_s22 + $0x40] sm:$0xff] %vm535_vm3, %v8497_v46  ;;  %v8496_v3 = vsel %vm587_vm1, %v8464_v45, %v8479_v2 }
 0xaca   : > { %9230 = vst.msk [vmem:[%s13436_s22 + $0x38] sm:$0xff] %vm535_vm3, %v8496_v3 }
 0xacb PF: > { %s13515_s29 = sld [smem:[#allocation10_spill]]  ;;  %s13517_s30 = sld [smem:[#allocation11_spill]] }
 0xad1   : > { %s26_s15 = sadd.s32 1, %s13515_s29   ;;  %s13516_s29 = sld [smem:[#allocation9_spill]] }
 0xad2   : > { %p23_p6 = scmp.ge.s32.totalorder %s26_s15, 4  }
 0xad4   :  { %25 = sbr.rel (!%p23_p6) target bundleno = 5 (0x5), region = 181 }
 0xadb   :  { %8529 = vsyncpa [#allocation4], 1 }
 0xadc   :  { %8531 = vsyncpa [#allocation4 + $0x1], 1 }
 0xadd   :  { %8532 = vsyncpa [#allocation6], 1 }

</bundles_post_ra>
